<compile_context>
chip_gen: v5e
topology: v5e:2x2
jax: 0.10.0
libtpu: 0.0.40
codegen_flags: <defaults>
</compile_context>

<pallas_src>
import functools
import math

import jax
import jax.numpy as jnp
from jax import lax
from jax.experimental import pallas as pl
from jax.experimental.pallas import tpu as pltpu

_VMEM = functools.partial(pl.BlockSpec, memory_space=pltpu.MemorySpace.VMEM)


# ----------------------------------------------------------------------------- helpers
def _erf(x):
    # Abramowitz & Stegun 7.1.26 polynomial erf (|err| < 1.5e-7): VPU/EUP-only ops,
    # matches PyTorch exact-GELU erf to f32 tolerance.  (A tanh-GELU would move the
    # work to the idle EUP slot on v5e, but exact-erf parity is kept here.)
    a1, a2, a3, a4, a5 = 0.254829592, -0.284496736, 1.421413741, -1.453152027, 1.061405429
    p = 0.3275911
    sign = jnp.where(x >= 0.0, 1.0, -1.0)
    ax = jnp.abs(x)
    t = 1.0 / (1.0 + p * ax)
    poly = ((((a5 * t + a4) * t + a3) * t + a2) * t + a1) * t
    return sign * (1.0 - poly * jnp.exp(-ax * ax))


def _gelu_exact(x):
    # nn.GELU() default (approximate='none'): 0.5 * x * (1 + erf(x / sqrt(2)))
    return 0.5 * x * (1.0 + _erf(x * 0.7071067811865476))


def _layernorm(x, gamma, beta, eps=1e-5):
    mu = jnp.mean(x, axis=-1, keepdims=True)
    var = jnp.mean((x - mu) * (x - mu), axis=-1, keepdims=True)
    return (x - mu) * lax.rsqrt(var + eps) * gamma + beta


# ----------------------------------------------------------------------------- fused kernel
def make_fused_kernel(*, num_hidden, threshold, n_nodes):
    inv_nn = 1.0 / float(n_nodes * n_nodes)

    def kernel(*refs):
        refs = list(refs)
        pos = [0]

        def nxt():
            r = refs[pos[0]]
            pos[0] += 1
            return r

        # ---- inputs (same order as the wrapper packs them)
        pooled_ref, cnn_w_ref, cnn_b_ref = nxt(), nxt(), nxt()
        gcn_refs = [(nxt(), nxt()) for _ in range(num_hidden)]
        ln_refs = [(nxt(), nxt()) for _ in range(num_hidden - 1)]
        w1a_ref, w1b_ref, hb1_ref = nxt(), nxt(), nxt()
        hln_g_ref, hln_b_ref = nxt(), nxt()
        w2_ref, b2_ref = nxt(), nxt()
        sw_ref, sb_ref = nxt(), nxt()
        # ---- outputs
        main_ref, second_ref, dens_ref = nxt(), nxt(), nxt()

        # --- CNN feature extraction stand-in: Linear(C -> 2048) + ReLU on pooled input.
        # TODO(synk): CNNExtractor is an external ResNet-2048 backbone (not in the module
        # source); stood in with GAP (wrapper) + Linear + ReLU (kept f32, it is a placeholder).
        deep = jnp.maximum(
            jnp.dot(pooled_ref[...], cnn_w_ref[...], preferred_element_type=jnp.float32)
            + cnn_b_ref[...],
            0.0,
        )  # (N, 2048) f32
        deep_bf16 = deep.astype(jnp.bfloat16)  # cast once, reused by GCN + both heads

        # --- adjacency from cosine similarity (adjacency_builder='cos_sim'), f32 so the
        #     discrete threshold decision matches the f32 reference.
        sq = jnp.sum(deep * deep, axis=1, keepdims=True)           # ||x||^2  (N, 1)
        xn = deep * lax.rsqrt(jnp.maximum(sq, 1e-16))               # eps: zero row stays zero
        sim = lax.dot_general(
            xn, xn, (((1,), (1,)), ((), ())), preferred_element_type=jnp.float32
        )
        adj = jnp.where(sim >= threshold, 1.0, 0.0)  # 0/1, symmetric, self-loops
        deg = jnp.sum(adj, axis=1, keepdims=True)    # (N, 1)
        inv_sqrt = lax.rsqrt(jnp.maximum(deg, 1.0))  # guard deg=0 (only for zero rows)
        norm_adj = inv_sqrt * adj * jnp.transpose(inv_sqrt)   # D^-1/2 A D^-1/2

        # --- graph convolution stack: GraphConv(norm='both') = norm_adj @ (X W) + b
        h_bf16 = deep_bf16
        h = deep
        for i, (w_ref, b_ref) in enumerate(gcn_refs):
            xw = jnp.dot(h_bf16, w_ref[...], preferred_element_type=jnp.float32)
            h = jnp.dot(norm_adj, xw, preferred_element_type=jnp.float32) + b_ref[...]
            if i != num_hidden - 1:
                g_ref, be_ref = ln_refs[i]
                h = _gelu_exact(_layernorm(h, g_ref[...], be_ref[...]))
                # F.dropout(p=gnn_dropout, training=False) -> identity
            h_bf16 = h.astype(jnp.bfloat16)

        # --- main head: Linear(2048+H,1024) realized as split matmuls (no concat),
        #     GELU, LayerNorm(1024), Dropout(0.4)=identity(eval), Linear(1024, C)
        t = (
            jnp.dot(deep_bf16, w1a_ref[...], preferred_element_type=jnp.float32)
            + jnp.dot(h_bf16, w1b_ref[...], preferred_element_type=jnp.float32)
            + hb1_ref[...]
        )
        t = _gelu_exact(t)
        t = _layernorm(t, hln_g_ref[...], hln_b_ref[...])
        main_ref[...] = (
            jnp.dot(t.astype(jnp.bfloat16), w2_ref[...], preferred_element_type=jnp.float32)
            + b2_ref[...]
        )

        # --- second head: Linear(2048, C)
        second_ref[...] = (
            jnp.dot(deep_bf16, sw_ref[...], preferred_element_type=jnp.float32) + sb_ref[...]
        )

        # --- utils.get_matrix_density(adj): fraction of nonzero entries (adj is 0/1)
        dens_ref[...] = jnp.sum(deg, axis=0, keepdims=True) * inv_nn

    return kernel


# ----------------------------------------------------------------------------- params
def init_params(key, *, in_ch, hidden_dim, num_hidden, num_classes):
    keys = jax.random.split(key, 16)

    def linear(k, fin, fout, wdtype=jnp.bfloat16):
        # reset_parameters: uniform(-1/sqrt(fan_in), 1/sqrt(fan_in)), zero bias
        y = 1.0 / math.sqrt(fin)
        w = jax.random.uniform(k, (fin, fout), jnp.float32, -y, y).astype(wdtype)
        b = jnp.zeros((1, fout), jnp.float32)
        return w, b

    params = {}
    # CNN stand-in projection kept in f32 (placeholder for external ResNet backbone).
    params["cnn_w"], params["cnn_b"] = linear(keys[0], in_ch, 2048, wdtype=jnp.float32)

    gcn, fin = [], 2048
    for i in range(num_hidden):
        gcn.append(linear(keys[1 + i], fin, hidden_dim))
        fin = hidden_dim
    params["gcn"] = gcn
    params["ln"] = [
        (jnp.ones((1, hidden_dim), jnp.float32), jnp.zeros((1, hidden_dim), jnp.float32))
        for _ in range(num_hidden - 1)
    ]

    # head Linear(2048 + hidden, 1024): init with true fan-in, then split into two slabs
    # so the kernel can skip the feature concat.
    w1, b1 = linear(keys[8], 2048 + hidden_dim, 1024)
    params["head_w1a"] = w1[:2048, :]
    params["head_w1b"] = w1[2048:, :]
    params["head_b1"] = b1
    params["head_ln_g"] = jnp.ones((1, 1024), jnp.float32)
    params["head_ln_b"] = jnp.zeros((1, 1024), jnp.float32)
    params["head_w2"], params["head_b2"] = linear(keys[9], 1024, num_classes)
    params["second_w"], params["second_b"] = linear(keys[10], 2048, num_classes)
    return params


# ----------------------------------------------------------------------------- forward
def graph_classifier_forward(params, x, *, threshold):
    N = x.shape[0]
    num_hidden = len(params["gcn"])
    num_classes = params["head_w2"].shape[1]

    # GAP (glue, part of the CNN stand-in); everything after runs in one Pallas kernel.
    pooled = jnp.mean(x, axis=(2, 3))  # (N, C)

    args = [pooled, params["cnn_w"], params["cnn_b"]]
    for w, b in params["gcn"]:
        args += [w, b]
    for g, be in params["ln"]:
        args += [g, be]
    args += [
        params["head_w1a"], params["head_w1b"], params["head_b1"],
        params["head_ln_g"], params["head_ln_b"],
        params["head_w2"], params["head_b2"],
        params["second_w"], params["second_b"],
    ]

    out_shape = (
        jax.ShapeDtypeStruct((N, num_classes), jnp.float32),
        jax.ShapeDtypeStruct((N, num_classes), jnp.float32),
        jax.ShapeDtypeStruct((1, 1), jnp.float32),
    )

    kernel = make_fused_kernel(num_hidden=num_hidden, threshold=threshold, n_nodes=N)
    logits_main, logits_second, dens = pl.pallas_call(
        kernel,
        out_shape=out_shape,
        in_specs=[_VMEM() for _ in args],
        out_specs=tuple(_VMEM() for _ in out_shape),
    )(*args)

    return logits_main, logits_second, dens[0, 0]


# ----------------------------------------------------------------------------- main
if __name__ == "__main__":
    key = jax.random.PRNGKey(0)
    pkey, xkey = jax.random.split(key)

    N, C, H, W = 8, 4, 16, 16
    hidden_dim, num_hidden, num_classes = 128, 2, 10
    threshold = 0.5  # builder_parameter for cos_sim

    params = init_params(
        pkey, in_ch=C, hidden_dim=hidden_dim, num_hidden=num_hidden, num_classes=num_classes
    )
    x = jax.random.normal(xkey, (N, C, H, W), jnp.float32)

    fwd = jax.jit(functools.partial(graph_classifier_forward, threshold=threshold))
    logits_main, logits_second, density = fwd(params, x)
    jax.block_until_ready((logits_main, logits_second, density))

    assert logits_main.shape == (N, num_classes)
    assert logits_second.shape == (N, num_classes)
    assert density.shape == ()
    assert bool(jnp.isfinite(logits_main).all())
    assert bool(jnp.isfinite(logits_second).all())
    assert 0.0 <= float(density) <= 1.0
    print("KERNEL_OK")
</pallas_src>

<mosaic_0001>
module attributes {stable_mosaic.version = 11 : i64} {
  func.func @kernel(%arg0: memref<8x4xf32, #tpu.memory_space<vmem>>, %arg1: memref<4x2048xf32, #tpu.memory_space<vmem>>, %arg2: memref<1x2048xf32, #tpu.memory_space<vmem>>, %arg3: memref<2048x128xbf16, #tpu.memory_space<vmem>>, %arg4: memref<1x128xf32, #tpu.memory_space<vmem>>, %arg5: memref<128x128xbf16, #tpu.memory_space<vmem>>, %arg6: memref<1x128xf32, #tpu.memory_space<vmem>>, %arg7: memref<1x128xf32, #tpu.memory_space<vmem>>, %arg8: memref<1x128xf32, #tpu.memory_space<vmem>>, %arg9: memref<2048x1024xbf16, #tpu.memory_space<vmem>>, %arg10: memref<128x1024xbf16, #tpu.memory_space<vmem>>, %arg11: memref<1x1024xf32, #tpu.memory_space<vmem>>, %arg12: memref<1x1024xf32, #tpu.memory_space<vmem>>, %arg13: memref<1x1024xf32, #tpu.memory_space<vmem>>, %arg14: memref<1024x10xbf16, #tpu.memory_space<vmem>>, %arg15: memref<1x10xf32, #tpu.memory_space<vmem>>, %arg16: memref<2048x10xbf16, #tpu.memory_space<vmem>>, %arg17: memref<1x10xf32, #tpu.memory_space<vmem>>, %arg18: memref<8x10xf32, #tpu.memory_space<vmem>>, %arg19: memref<8x10xf32, #tpu.memory_space<vmem>>, %arg20: memref<1x1xf32, #tpu.memory_space<vmem>>) attributes {dimension_semantics = [], scalar_prefetch = 0 : i64, scratch_operands = 0 : i64, tpu.core_type = #tpu.core_type<tc>} {
    %c0 = arith.constant 0 : index
    %c0_0 = arith.constant 0 : index
    %0 = vector.load %arg0[%c0, %c0_0] : memref<8x4xf32, #tpu.memory_space<vmem>>, vector<8x4xf32>
    %c0_1 = arith.constant 0 : index
    %c0_2 = arith.constant 0 : index
    %1 = vector.load %arg1[%c0_1, %c0_2] : memref<4x2048xf32, #tpu.memory_space<vmem>>, vector<4x2048xf32>
    %cst = arith.constant dense<0.000000e+00> : vector<8x2048xf32>
    %2 = tpu.matmul %0, %1, %cst {dimension_numbers = #tpu.dot_dimension_numbers<[1], [0], [0], [1], [0, 0, 1, 1], [], []>} : vector<8x4xf32>, vector<4x2048xf32>, vector<8x2048xf32> -> vector<8x2048xf32>
    %c0_3 = arith.constant 0 : index
    %c0_4 = arith.constant 0 : index
    %3 = vector.load %arg2[%c0_3, %c0_4] : memref<1x2048xf32, #tpu.memory_space<vmem>>, vector<1x2048xf32>
    %4 = vector.broadcast %3 : vector<1x2048xf32> to vector<8x2048xf32>
    %5 = arith.addf %2, %4 : vector<8x2048xf32>
    %cst_5 = arith.constant 0.000000e+00 : f32
    %6 = vector.broadcast %cst_5 : f32 to vector<8x2048xf32>
    %7 = arith.maximumf %5, %6 : vector<8x2048xf32>
    %8 = arith.truncf %7 : vector<8x2048xf32> to vector<8x2048xbf16>
    %9 = arith.mulf %7, %7 : vector<8x2048xf32>
    %cst_6 = arith.constant dense<0.000000e+00> : vector<8xf32>
    %10 = vector.multi_reduction <add>, %9, %cst_6 [1] : vector<8x2048xf32> to vector<8xf32>
    %11 = vector.shape_cast %10 : vector<8xf32> to vector<8x1xf32>
    %cst_7 = arith.constant 1.000000e-16 : f32
    %12 = vector.broadcast %cst_7 : f32 to vector<8x1xf32>
    %13 = arith.maximumf %11, %12 : vector<8x1xf32>
    %14 = math.rsqrt %13 : vector<8x1xf32>
    %15 = vector.broadcast %14 : vector<8x1xf32> to vector<8x2048xf32>
    %16 = arith.mulf %7, %15 : vector<8x2048xf32>
    %cst_8 = arith.constant dense<0.000000e+00> : vector<8x8xf32>
    %17 = tpu.matmul %16, %16, %cst_8 {dimension_numbers = #tpu.dot_dimension_numbers<[1], [1], [0], [0], [0, 0, 1, 0], [], []>} : vector<8x2048xf32>, vector<8x2048xf32>, vector<8x8xf32> -> vector<8x8xf32>
    %cst_9 = arith.constant 5.000000e-01 : f32
    %18 = vector.broadcast %cst_9 : f32 to vector<8x8xf32>
    %19 = arith.cmpf oge, %17, %18 : vector<8x8xf32>
    %cst_10 = arith.constant 1.000000e+00 : f32
    %cst_11 = arith.constant 0.000000e+00 : f32
    %20 = vector.broadcast %cst_10 : f32 to vector<8x8xf32>
    %21 = vector.broadcast %cst_11 : f32 to vector<8x8xf32>
    %22 = arith.select %19, %20, %21 : vector<8x8xi1>, vector<8x8xf32>
    %cst_12 = arith.constant dense<0.000000e+00> : vector<8xf32>
    %23 = vector.multi_reduction <add>, %22, %cst_12 [1] : vector<8x8xf32> to vector<8xf32>
    %24 = vector.shape_cast %23 : vector<8xf32> to vector<8x1xf32>
    %cst_13 = arith.constant 1.000000e+00 : f32
    %25 = vector.broadcast %cst_13 : f32 to vector<8x1xf32>
    %26 = arith.maximumf %24, %25 : vector<8x1xf32>
    %27 = math.rsqrt %26 : vector<8x1xf32>
    %28 = vector.broadcast %27 : vector<8x1xf32> to vector<8x8xf32>
    %29 = arith.mulf %28, %22 : vector<8x8xf32>
    %30 = tpu.transpose %27, [1, 0] : vector<8x1xf32> -> vector<1x8xf32>
    %31 = vector.broadcast %30 : vector<1x8xf32> to vector<8x8xf32>
    %32 = arith.mulf %29, %31 : vector<8x8xf32>
    %c0_14 = arith.constant 0 : index
    %c0_15 = arith.constant 0 : index
    %33 = vector.load %arg3[%c0_14, %c0_15] : memref<2048x128xbf16, #tpu.memory_space<vmem>>, vector<2048x128xbf16>
    %cst_16 = arith.constant dense<0.000000e+00> : vector<8x128xf32>
    %34 = tpu.matmul %8, %33, %cst_16 {dimension_numbers = #tpu.dot_dimension_numbers<[1], [0], [0], [1], [0, 0, 1, 1], [], []>} : vector<8x2048xbf16>, vector<2048x128xbf16>, vector<8x128xf32> -> vector<8x128xf32>
    %cst_17 = arith.constant dense<0.000000e+00> : vector<8x128xf32>
    %35 = tpu.matmul %32, %34, %cst_17 {dimension_numbers = #tpu.dot_dimension_numbers<[1], [0], [0], [1], [0, 0, 1, 1], [], []>} : vector<8x8xf32>, vector<8x128xf32>, vector<8x128xf32> -> vector<8x128xf32>
    %c0_18 = arith.constant 0 : index
    %c0_19 = arith.constant 0 : index
    %36 = vector.load %arg4[%c0_18, %c0_19] : memref<1x128xf32, #tpu.memory_space<vmem>>, vector<1x128xf32>
    %37 = vector.broadcast %36 : vector<1x128xf32> to vector<8x128xf32>
    %38 = arith.addf %35, %37 : vector<8x128xf32>
    %c0_20 = arith.constant 0 : index
    %c0_21 = arith.constant 0 : index
    %39 = vector.load %arg7[%c0_20, %c0_21] : memref<1x128xf32, #tpu.memory_space<vmem>>, vector<1x128xf32>
    %c0_22 = arith.constant 0 : index
    %c0_23 = arith.constant 0 : index
    %40 = vector.load %arg8[%c0_22, %c0_23] : memref<1x128xf32, #tpu.memory_space<vmem>>, vector<1x128xf32>
    %cst_24 = arith.constant dense<0.000000e+00> : vector<8xf32>
    %41 = vector.multi_reduction <add>, %38, %cst_24 [1] : vector<8x128xf32> to vector<8xf32>
    %42 = vector.shape_cast %41 : vector<8xf32> to vector<8x1xf32>
    %cst_25 = arith.constant 1.280000e+02 : f32
    %43 = vector.broadcast %cst_25 : f32 to vector<8x1xf32>
    %44 = arith.divf %42, %43 : vector<8x1xf32>
    %45 = vector.broadcast %44 : vector<8x1xf32> to vector<8x128xf32>
    %46 = arith.subf %38, %45 : vector<8x128xf32>
    %47 = vector.broadcast %44 : vector<8x1xf32> to vector<8x128xf32>
    %48 = arith.subf %38, %47 : vector<8x128xf32>
    %49 = arith.mulf %46, %48 : vector<8x128xf32>
    %cst_26 = arith.constant dense<0.000000e+00> : vector<8xf32>
    %50 = vector.multi_reduction <add>, %49, %cst_26 [1] : vector<8x128xf32> to vector<8xf32>
    %51 = vector.shape_cast %50 : vector<8xf32> to vector<8x1xf32>
    %cst_27 = arith.constant 1.280000e+02 : f32
    %52 = vector.broadcast %cst_27 : f32 to vector<8x1xf32>
    %53 = arith.divf %51, %52 : vector<8x1xf32>
    %54 = vector.broadcast %44 : vector<8x1xf32> to vector<8x128xf32>
    %55 = arith.subf %38, %54 : vector<8x128xf32>
    %cst_28 = arith.constant 9.99999974E-6 : f32
    %56 = vector.broadcast %cst_28 : f32 to vector<8x1xf32>
    %57 = arith.addf %53, %56 : vector<8x1xf32>
    %58 = math.rsqrt %57 : vector<8x1xf32>
    %59 = vector.broadcast %58 : vector<8x1xf32> to vector<8x128xf32>
    %60 = arith.mulf %55, %59 : vector<8x128xf32>
    %61 = vector.broadcast %39 : vector<1x128xf32> to vector<8x128xf32>
    %62 = arith.mulf %60, %61 : vector<8x128xf32>
    %63 = vector.broadcast %40 : vector<1x128xf32> to vector<8x128xf32>
    %64 = arith.addf %62, %63 : vector<8x128xf32>
    %cst_29 = arith.constant 5.000000e-01 : f32
    %65 = vector.broadcast %cst_29 : f32 to vector<8x128xf32>
    %66 = arith.mulf %65, %64 : vector<8x128xf32>
    %cst_30 = arith.constant 0.707106769 : f32
    %67 = vector.broadcast %cst_30 : f32 to vector<8x128xf32>
    %68 = arith.mulf %64, %67 : vector<8x128xf32>
    %cst_31 = arith.constant 0.000000e+00 : f32
    %69 = vector.broadcast %cst_31 : f32 to vector<8x128xf32>
    %70 = arith.cmpf oge, %68, %69 : vector<8x128xf32>
    %cst_32 = arith.constant 1.000000e+00 : f32
    %cst_33 = arith.constant -1.000000e+00 : f32
    %71 = vector.broadcast %cst_32 : f32 to vector<8x128xf32>
    %72 = vector.broadcast %cst_33 : f32 to vector<8x128xf32>
    %73 = arith.select %70, %71, %72 : vector<8x128xi1>, vector<8x128xf32>
    %74 = math.absf %68 : vector<8x128xf32>
    %cst_34 = arith.constant 0.327591091 : f32
    %75 = vector.broadcast %cst_34 : f32 to vector<8x128xf32>
    %76 = arith.mulf %75, %74 : vector<8x128xf32>
    %cst_35 = arith.constant 1.000000e+00 : f32
    %77 = vector.broadcast %cst_35 : f32 to vector<8x128xf32>
    %78 = arith.addf %77, %76 : vector<8x128xf32>
    %cst_36 = arith.constant 1.000000e+00 : f32
    %79 = vector.broadcast %cst_36 : f32 to vector<8x128xf32>
    %80 = arith.divf %79, %78 : vector<8x128xf32>
    %cst_37 = arith.constant 1.06140542 : f32
    %81 = vector.broadcast %cst_37 : f32 to vector<8x128xf32>
    %82 = arith.mulf %81, %80 : vector<8x128xf32>
    %cst_38 = arith.constant -1.45315206 : f32
    %83 = vector.broadcast %cst_38 : f32 to vector<8x128xf32>
    %84 = arith.addf %82, %83 : vector<8x128xf32>
    %85 = arith.mulf %84, %80 : vector<8x128xf32>
    %cst_39 = arith.constant 1.42141378 : f32
    %86 = vector.broadcast %cst_39 : f32 to vector<8x128xf32>
    %87 = arith.addf %85, %86 : vector<8x128xf32>
    %88 = arith.mulf %87, %80 : vector<8x128xf32>
    %cst_40 = arith.constant -0.284496725 : f32
    %89 = vector.broadcast %cst_40 : f32 to vector<8x128xf32>
    %90 = arith.addf %88, %89 : vector<8x128xf32>
    %91 = arith.mulf %90, %80 : vector<8x128xf32>
    %cst_41 = arith.constant 0.254829586 : f32
    %92 = vector.broadcast %cst_41 : f32 to vector<8x128xf32>
    %93 = arith.addf %91, %92 : vector<8x128xf32>
    %94 = arith.mulf %93, %80 : vector<8x128xf32>
    %cst_42 = arith.constant 0.000000e+00 : f32
    %95 = vector.broadcast %cst_42 : f32 to vector<8x128xf32>
    %96 = arith.subf %95, %74 : vector<8x128xf32>
    %97 = arith.mulf %96, %74 : vector<8x128xf32>
    %98 = math.exp %97 : vector<8x128xf32>
    %99 = arith.mulf %94, %98 : vector<8x128xf32>
    %cst_43 = arith.constant 1.000000e+00 : f32
    %100 = vector.broadcast %cst_43 : f32 to vector<8x128xf32>
    %101 = arith.subf %100, %99 : vector<8x128xf32>
    %102 = arith.mulf %73, %101 : vector<8x128xf32>
    %cst_44 = arith.constant 1.000000e+00 : f32
    %103 = vector.broadcast %cst_44 : f32 to vector<8x128xf32>
    %104 = arith.addf %103, %102 : vector<8x128xf32>
    %105 = arith.mulf %66, %104 : vector<8x128xf32>
    %106 = arith.truncf %105 : vector<8x128xf32> to vector<8x128xbf16>
    %c0_45 = arith.constant 0 : index
    %c0_46 = arith.constant 0 : index
    %107 = vector.load %arg5[%c0_45, %c0_46] : memref<128x128xbf16, #tpu.memory_space<vmem>>, vector<128x128xbf16>
    %cst_47 = arith.constant dense<0.000000e+00> : vector<8x128xf32>
    %108 = tpu.matmul %106, %107, %cst_47 {dimension_numbers = #tpu.dot_dimension_numbers<[1], [0], [0], [1], [0, 0, 1, 1], [], []>} : vector<8x128xbf16>, vector<128x128xbf16>, vector<8x128xf32> -> vector<8x128xf32>
    %cst_48 = arith.constant dense<0.000000e+00> : vector<8x128xf32>
    %109 = tpu.matmul %32, %108, %cst_48 {dimension_numbers = #tpu.dot_dimension_numbers<[1], [0], [0], [1], [0, 0, 1, 1], [], []>} : vector<8x8xf32>, vector<8x128xf32>, vector<8x128xf32> -> vector<8x128xf32>
    %c0_49 = arith.constant 0 : index
    %c0_50 = arith.constant 0 : index
    %110 = vector.load %arg6[%c0_49, %c0_50] : memref<1x128xf32, #tpu.memory_space<vmem>>, vector<1x128xf32>
    %111 = vector.broadcast %110 : vector<1x128xf32> to vector<8x128xf32>
    %112 = arith.addf %109, %111 : vector<8x128xf32>
    %113 = arith.truncf %112 : vector<8x128xf32> to vector<8x128xbf16>
    %c0_51 = arith.constant 0 : index
    %c0_52 = arith.constant 0 : index
    %114 = vector.load %arg9[%c0_51, %c0_52] : memref<2048x1024xbf16, #tpu.memory_space<vmem>>, vector<2048x1024xbf16>
    %cst_53 = arith.constant dense<0.000000e+00> : vector<8x1024xf32>
    %115 = tpu.matmul %8, %114, %cst_53 {dimension_numbers = #tpu.dot_dimension_numbers<[1], [0], [0], [1], [0, 0, 1, 1], [], []>} : vector<8x2048xbf16>, vector<2048x1024xbf16>, vector<8x1024xf32> -> vector<8x1024xf32>
    %c0_54 = arith.constant 0 : index
    %c0_55 = arith.constant 0 : index
    %116 = vector.load %arg10[%c0_54, %c0_55] : memref<128x1024xbf16, #tpu.memory_space<vmem>>, vector<128x1024xbf16>
    %cst_56 = arith.constant dense<0.000000e+00> : vector<8x1024xf32>
    %117 = tpu.matmul %113, %116, %cst_56 {dimension_numbers = #tpu.dot_dimension_numbers<[1], [0], [0], [1], [0, 0, 1, 1], [], []>} : vector<8x128xbf16>, vector<128x1024xbf16>, vector<8x1024xf32> -> vector<8x1024xf32>
    %118 = arith.addf %115, %117 : vector<8x1024xf32>
    %c0_57 = arith.constant 0 : index
    %c0_58 = arith.constant 0 : index
    %119 = vector.load %arg11[%c0_57, %c0_58] : memref<1x1024xf32, #tpu.memory_space<vmem>>, vector<1x1024xf32>
    %120 = vector.broadcast %119 : vector<1x1024xf32> to vector<8x1024xf32>
    %121 = arith.addf %118, %120 : vector<8x1024xf32>
    %cst_59 = arith.constant 5.000000e-01 : f32
    %122 = vector.broadcast %cst_59 : f32 to vector<8x1024xf32>
    %123 = arith.mulf %122, %121 : vector<8x1024xf32>
    %cst_60 = arith.constant 0.707106769 : f32
    %124 = vector.broadcast %cst_60 : f32 to vector<8x1024xf32>
    %125 = arith.mulf %121, %124 : vector<8x1024xf32>
    %cst_61 = arith.constant 0.000000e+00 : f32
    %126 = vector.broadcast %cst_61 : f32 to vector<8x1024xf32>
    %127 = arith.cmpf oge, %125, %126 : vector<8x1024xf32>
    %cst_62 = arith.constant 1.000000e+00 : f32
    %cst_63 = arith.constant -1.000000e+00 : f32
    %128 = vector.broadcast %cst_62 : f32 to vector<8x1024xf32>
    %129 = vector.broadcast %cst_63 : f32 to vector<8x1024xf32>
    %130 = arith.select %127, %128, %129 : vector<8x1024xi1>, vector<8x1024xf32>
    %131 = math.absf %125 : vector<8x1024xf32>
    %cst_64 = arith.constant 0.327591091 : f32
    %132 = vector.broadcast %cst_64 : f32 to vector<8x1024xf32>
    %133 = arith.mulf %132, %131 : vector<8x1024xf32>
    %cst_65 = arith.constant 1.000000e+00 : f32
    %134 = vector.broadcast %cst_65 : f32 to vector<8x1024xf32>
    %135 = arith.addf %134, %133 : vector<8x1024xf32>
    %cst_66 = arith.constant 1.000000e+00 : f32
    %136 = vector.broadcast %cst_66 : f32 to vector<8x1024xf32>
    %137 = arith.divf %136, %135 : vector<8x1024xf32>
    %cst_67 = arith.constant 1.06140542 : f32
    %138 = vector.broadcast %cst_67 : f32 to vector<8x1024xf32>
    %139 = arith.mulf %138, %137 : vector<8x1024xf32>
    %cst_68 = arith.constant -1.45315206 : f32
    %140 = vector.broadcast %cst_68 : f32 to vector<8x1024xf32>
    %141 = arith.addf %139, %140 : vector<8x1024xf32>
    %142 = arith.mulf %141, %137 : vector<8x1024xf32>
    %cst_69 = arith.constant 1.42141378 : f32
    %143 = vector.broadcast %cst_69 : f32 to vector<8x1024xf32>
    %144 = arith.addf %142, %143 : vector<8x1024xf32>
    %145 = arith.mulf %144, %137 : vector<8x1024xf32>
    %cst_70 = arith.constant -0.284496725 : f32
    %146 = vector.broadcast %cst_70 : f32 to vector<8x1024xf32>
    %147 = arith.addf %145, %146 : vector<8x1024xf32>
    %148 = arith.mulf %147, %137 : vector<8x1024xf32>
    %cst_71 = arith.constant 0.254829586 : f32
    %149 = vector.broadcast %cst_71 : f32 to vector<8x1024xf32>
    %150 = arith.addf %148, %149 : vector<8x1024xf32>
    %151 = arith.mulf %150, %137 : vector<8x1024xf32>
    %cst_72 = arith.constant 0.000000e+00 : f32
    %152 = vector.broadcast %cst_72 : f32 to vector<8x1024xf32>
    %153 = arith.subf %152, %131 : vector<8x1024xf32>
    %154 = arith.mulf %153, %131 : vector<8x1024xf32>
    %155 = math.exp %154 : vector<8x1024xf32>
    %156 = arith.mulf %151, %155 : vector<8x1024xf32>
    %cst_73 = arith.constant 1.000000e+00 : f32
    %157 = vector.broadcast %cst_73 : f32 to vector<8x1024xf32>
    %158 = arith.subf %157, %156 : vector<8x1024xf32>
    %159 = arith.mulf %130, %158 : vector<8x1024xf32>
    %cst_74 = arith.constant 1.000000e+00 : f32
    %160 = vector.broadcast %cst_74 : f32 to vector<8x1024xf32>
    %161 = arith.addf %160, %159 : vector<8x1024xf32>
    %162 = arith.mulf %123, %161 : vector<8x1024xf32>
    %c0_75 = arith.constant 0 : index
    %c0_76 = arith.constant 0 : index
    %163 = vector.load %arg12[%c0_75, %c0_76] : memref<1x1024xf32, #tpu.memory_space<vmem>>, vector<1x1024xf32>
    %c0_77 = arith.constant 0 : index
    %c0_78 = arith.constant 0 : index
    %164 = vector.load %arg13[%c0_77, %c0_78] : memref<1x1024xf32, #tpu.memory_space<vmem>>, vector<1x1024xf32>
    %cst_79 = arith.constant dense<0.000000e+00> : vector<8xf32>
    %165 = vector.multi_reduction <add>, %162, %cst_79 [1] : vector<8x1024xf32> to vector<8xf32>
    %166 = vector.shape_cast %165 : vector<8xf32> to vector<8x1xf32>
    %cst_80 = arith.constant 1.024000e+03 : f32
    %167 = vector.broadcast %cst_80 : f32 to vector<8x1xf32>
    %168 = arith.divf %166, %167 : vector<8x1xf32>
    %169 = vector.broadcast %168 : vector<8x1xf32> to vector<8x1024xf32>
    %170 = arith.subf %162, %169 : vector<8x1024xf32>
    %171 = vector.broadcast %168 : vector<8x1xf32> to vector<8x1024xf32>
    %172 = arith.subf %162, %171 : vector<8x1024xf32>
    %173 = arith.mulf %170, %172 : vector<8x1024xf32>
    %cst_81 = arith.constant dense<0.000000e+00> : vector<8xf32>
    %174 = vector.multi_reduction <add>, %173, %cst_81 [1] : vector<8x1024xf32> to vector<8xf32>
    %175 = vector.shape_cast %174 : vector<8xf32> to vector<8x1xf32>
    %cst_82 = arith.constant 1.024000e+03 : f32
    %176 = vector.broadcast %cst_82 : f32 to vector<8x1xf32>
    %177 = arith.divf %175, %176 : vector<8x1xf32>
    %178 = vector.broadcast %168 : vector<8x1xf32> to vector<8x1024xf32>
    %179 = arith.subf %162, %178 : vector<8x1024xf32>
    %cst_83 = arith.constant 9.99999974E-6 : f32
    %180 = vector.broadcast %cst_83 : f32 to vector<8x1xf32>
    %181 = arith.addf %177, %180 : vector<8x1xf32>
    %182 = math.rsqrt %181 : vector<8x1xf32>
    %183 = vector.broadcast %182 : vector<8x1xf32> to vector<8x1024xf32>
    %184 = arith.mulf %179, %183 : vector<8x1024xf32>
    %185 = vector.broadcast %163 : vector<1x1024xf32> to vector<8x1024xf32>
    %186 = arith.mulf %184, %185 : vector<8x1024xf32>
    %187 = vector.broadcast %164 : vector<1x1024xf32> to vector<8x1024xf32>
    %188 = arith.addf %186, %187 : vector<8x1024xf32>
    %189 = arith.truncf %188 : vector<8x1024xf32> to vector<8x1024xbf16>
    %c0_84 = arith.constant 0 : index
    %c0_85 = arith.constant 0 : index
    %190 = vector.load %arg14[%c0_84, %c0_85] : memref<1024x10xbf16, #tpu.memory_space<vmem>>, vector<1024x10xbf16>
    %cst_86 = arith.constant dense<0.000000e+00> : vector<8x10xf32>
    %191 = tpu.matmul %189, %190, %cst_86 {dimension_numbers = #tpu.dot_dimension_numbers<[1], [0], [0], [1], [0, 0, 1, 1], [], []>} : vector<8x1024xbf16>, vector<1024x10xbf16>, vector<8x10xf32> -> vector<8x10xf32>
    %c0_87 = arith.constant 0 : index
    %c0_88 = arith.constant 0 : index
    %192 = vector.load %arg15[%c0_87, %c0_88] : memref<1x10xf32, #tpu.memory_space<vmem>>, vector<1x10xf32>
    %193 = vector.broadcast %192 : vector<1x10xf32> to vector<8x10xf32>
    %194 = arith.addf %191, %193 : vector<8x10xf32>
    %c0_89 = arith.constant 0 : index
    %c0_90 = arith.constant 0 : index
    %195 = vector.load %arg18[%c0_89, %c0_90] : memref<8x10xf32, #tpu.memory_space<vmem>>, vector<8x10xf32>
    tpu.vector_store %arg18[%c0_89, %c0_90], %194 {strides = array<i32>} : memref<8x10xf32, #tpu.memory_space<vmem>>, vector<8x10xf32>,
    %c0_91 = arith.constant 0 : index
    %c0_92 = arith.constant 0 : index
    %196 = vector.load %arg16[%c0_91, %c0_92] : memref<2048x10xbf16, #tpu.memory_space<vmem>>, vector<2048x10xbf16>
    %cst_93 = arith.constant dense<0.000000e+00> : vector<8x10xf32>
    %197 = tpu.matmul %8, %196, %cst_93 {dimension_numbers = #tpu.dot_dimension_numbers<[1], [0], [0], [1], [0, 0, 1, 1], [], []>} : vector<8x2048xbf16>, vector<2048x10xbf16>, vector<8x10xf32> -> vector<8x10xf32>
    %c0_94 = arith.constant 0 : index
    %c0_95 = arith.constant 0 : index
    %198 = vector.load %arg17[%c0_94, %c0_95] : memref<1x10xf32, #tpu.memory_space<vmem>>, vector<1x10xf32>
    %199 = vector.broadcast %198 : vector<1x10xf32> to vector<8x10xf32>
    %200 = arith.addf %197, %199 : vector<8x10xf32>
    %c0_96 = arith.constant 0 : index
    %c0_97 = arith.constant 0 : index
    %201 = vector.load %arg19[%c0_96, %c0_97] : memref<8x10xf32, #tpu.memory_space<vmem>>, vector<8x10xf32>
    tpu.vector_store %arg19[%c0_96, %c0_97], %200 {strides = array<i32>} : memref<8x10xf32, #tpu.memory_space<vmem>>, vector<8x10xf32>,
    %cst_98 = arith.constant dense<0.000000e+00> : vector<1xf32>
    %202 = vector.multi_reduction <add>, %24, %cst_98 [0] : vector<8x1xf32> to vector<1xf32>
    %203 = vector.shape_cast %202 : vector<1xf32> to vector<1x1xf32>
    %cst_99 = arith.constant 1.562500e-02 : f32
    %204 = vector.broadcast %cst_99 : f32 to vector<1x1xf32>
    %205 = arith.mulf %203, %204 : vector<1x1xf32>
    %c0_100 = arith.constant 0 : index
    %c0_101 = arith.constant 0 : index
    %206 = vector.load %arg20[%c0_100, %c0_101] : memref<1x1xf32, #tpu.memory_space<vmem>>, vector<1x1xf32>
    tpu.vector_store %arg20[%c0_100, %c0_101], %205 {strides = array<i32>} : memref<1x1xf32, #tpu.memory_space<vmem>>, vector<1x1xf32>,
    return
  }
}

</mosaic_0001>

<bundles_post_ra>
// kernel: graph_classifier_forward.1
= control target key start
LH: loop header
LB: loop body
LE: loop exit
PB: predicated region body
PF: predicated region fallthrough
CT: control target
= control target key end

     0   :  { %s22635_s0 = inlined_call_operand.vmem [shape: f32[8,4], index: 0, kind: input, shape index: {}]   ;;  %s22636_s1 = inlined_call_operand.hbm [shape: f32[4,2048], index: 1, kind: input, shape index: {}]   ;;  %s22637_s2 = inlined_call_operand.hbm [shape: f32[1,2048], index: 2, kind: input, shape index: {}]   ;;  %s22638_s3 = inlined_call_operand.hbm [shape: bf16[2048,128], index: 3, kind: input, shape index: {}]   ;;  %s22639_s4 = inlined_call_operand.hbm [shape: f32[1,128], index: 4, kind: input, shape index: {}]   ;;  %s22640_s5 = inlined_call_operand.hbm [shape: bf16[128,128], index: 5, kind: input, shape index: {}]   ;;  %s22641_s6 = inlined_call_operand.hbm [shape: f32[1,128], index: 6, kind: input, shape index: {}]   ;;  %s22642_s7 = inlined_call_operand.hbm [shape: f32[1,128], index: 7, kind: input, shape index: {}]   ;;  %s22643_s8 = inlined_call_operand.hbm [shape: f32[1,128], index: 8, kind: input, shape index: {}]   ;;  %s22644_s9 = inlined_call_operand.hbm [shape: bf16[2048,1024], index: 9, kind: input, shape index: {}]   ;;  %s22645_s10 = inlined_call_operand.hbm [shape: bf16[128,1024], index: 10, kind: input, shape index: {}]   ;;  %s22646_s11 = inlined_call_operand.hbm [shape: f32[1,1024], index: 11, kind: input, shape index: {}]   ;;  %s22647_s12 = inlined_call_operand.hbm [shape: f32[1,1024], index: 12, kind: input, shape index: {}]   ;;  %s22648_s13 = inlined_call_operand.hbm [shape: f32[1,1024], index: 13, kind: input, shape index: {}]   ;;  %s22649_s14 = inlined_call_operand.vmem [shape: bf16[1024,10], index: 14, kind: input, shape index: {}]   ;;  %s22650_s15 = inlined_call_operand.hbm [shape: f32[1,10], index: 15, kind: input, shape index: {}]   ;;  %s22651_s16 = inlined_call_operand.vmem [shape: bf16[2048,10], index: 16, kind: input, shape index: {}]   ;;  %s22652_s17 = inlined_call_operand.hbm [shape: f32[1,10], index: 17, kind: input, shape index: {}]   ;;  %s22653_s18 = inlined_call_operand.hbm [shape: f32[8,10], index: 18, kind: output, shape index: {0}]   ;;  %s22654_s19 = inlined_call_operand.hbm [shape: f32[8,10], index: 19, kind: output, shape index: {1}]   ;;  %s22655_s20 = inlined_call_operand.hbm [shape: f32[1,1], index: 20, kind: output, shape index: {2}]  }
   0x1   :  { %22669 = sst [smem:[#allocation51_spill]] %s22635_s0 }
   0x2   :  { %22670 = sst [smem:[#allocation52_spill]] %s22636_s1 }
   0x3   :  { %22671 = sst [smem:[#allocation53_spill]] %s22637_s2 }
   0x4   :  { %22672 = sst [smem:[#allocation54_spill]] %s22638_s3 }
   0x5   :  { %22673 = sst [smem:[#allocation55_spill]] %s22639_s4 }
   0x6   :  { %22674 = sst [smem:[#allocation56_spill]] %s22655_s20 }
   0x7   :  { %26 = vsyncpa [#allocation3], 0 }
   0x8   :  { %27 = vsyncpa [#allocation6], 0 }
   0x9   :  { %28 = vsyncpa [#allocation9], 0 }
   0xa   :  { %29 = vsyncpa [#allocation12], 0 }
   0xb   :  { %30 = vsyncpa [#allocation15], 0 }
   0xc   :  { %31 = vsyncpa [#allocation18], 0 }
   0xd   :  { %32 = vsyncpa [#allocation21], 0 }
   0xe   :  { %33 = vsyncpa [#allocation24], 0 }
   0xf   :  { %34 = vsyncpa [#allocation4], 0  ;;  %s22675_s23 = sld [smem:[#allocation53_spill]] }
  0x15   :  { %s54_s24 = sshll.u32 %s22675_s23, 4  ;;  %s55_s24 = int_to_ptr.hbm [resolvable:$true] %s54_s24 }
  0x16   :  { %35 = vsyncpa [#allocation28], 0  ;;  %s20948_s2 = smov [#allocation5]   ;;  %s22676_s27 = sld [smem:[#allocation55_spill]] }
  0x17   :  { %s56_s25 = sshll.u32 %s20948_s2, 4  ;;  %s20949_s4 = smov [#allocation8]   ;;  %s57_s25 = int_to_ptr.vmem [resolvable:$true] %s56_s25 }
  0x18   :  { %59 = dma.hbm_to_vmem [thread:$0]  %s55_s24, 256, %s57_s25, [#allocation6]  }
  0x19   :  { %s80_s29 = sshll.u32 %s20949_s4, 4  ;;  %s102_s21 = sshll.u32 %s22641_s6, 4  ;;  %s81_s29 = int_to_ptr.vmem [resolvable:$true] %s80_s29  ;;  %s103_s21 = int_to_ptr.hbm [resolvable:$true] %s102_s21 }
  0x1a   :  { %s124_s23 = sshll.u32 %s22643_s8, 4  ;;  %s20950_s2 = smov [#allocation11]   ;;  %s125_s23 = int_to_ptr.hbm [resolvable:$true] %s124_s23 }
  0x1b   :  { %s104_s20 = sshll.u32 %s20950_s2, 4  ;;  %s20951_s24 = smov [#allocation14]   ;;  %s105_s20 = int_to_ptr.vmem [resolvable:$true] %s104_s20 }
  0x1c   :  { %s78_s28 = sshll.u32 %s22676_s27, 4  ;;  %s126_s25 = sshll.u32 %s20951_s24, 4  ;;  %s79_s28 = int_to_ptr.hbm [resolvable:$true] %s78_s28  ;;  %s127_s25 = int_to_ptr.vmem [resolvable:$true] %s126_s25 }
  0x1d   :  { %83 = dma.hbm_to_vmem [thread:$0]  %s79_s28, 16, %s81_s29, [#allocation9]  }
  0x1e   :  { %107 = dma.hbm_to_vmem [thread:$0]  %s103_s21, 16, %s105_s20, [#allocation12]  }
  0x1f   :  { %129 = dma.hbm_to_vmem [thread:$0]  %s125_s23, 16, %s127_s25, [#allocation15]  }
  0x20   :  { %s147_s6 = sshll.u32 %s22645_s10, 4  ;;  %s20952_s27 = smov [#allocation17]   ;;  %s148_s6 = int_to_ptr.hbm [resolvable:$true] %s147_s6 }
  0x21   :  { %s149_s28 = sshll.u32 %s20952_s27, 4  ;;  %s172_s8 = sshll.u32 %s22647_s12, 4  ;;  %s150_s28 = int_to_ptr.vmem [resolvable:$true] %s149_s28  ;;  %s173_s8 = int_to_ptr.hbm [resolvable:$true] %s172_s8 }
  0x22   :  { %s20953_s30 = smov 512   ;;  %s20954_s0 = smov 32  }
  0x23   :  { %155 = dma.hbm_to_vmem [thread:$0]  %s148_s6, 8192, %s150_s28, [#allocation18], %s20953_s30, %s20953_s30, %s20954_s0  }
  0x24   :  { %s20955_s20 = smov [#allocation20]   ;;  %s196_s10 = sshll.u32 %s22650_s15, 4  ;;  %s197_s10 = int_to_ptr.hbm [resolvable:$true] %s196_s10 }
  0x25   :  { %s174_s21 = sshll.u32 %s20955_s20, 4  ;;  %s22677_s24 = sld [smem:[#allocation52_spill]]  ;;  %s175_s21 = int_to_ptr.vmem [resolvable:$true] %s174_s21 }
  0x26   :  { %177 = dma.hbm_to_vmem [thread:$0]  %s173_s8, 128, %s175_s21, [#allocation21]  }
  0x27   :  { %s20956_s25 = smov [#allocation23]   ;;  %s20957_s26 = smov [#allocation2]  }
  0x28   :  { %s198_s3 = sshll.u32 %s20956_s25, 4  ;;  %s45_s6 = sshll.u32 %s20957_s26, 4  ;;  %s199_s3 = int_to_ptr.vmem [resolvable:$true] %s198_s3  ;;  %s46_s6 = int_to_ptr.vmem [resolvable:$true] %s45_s6 }
  0x29   :  { %201 = dma.hbm_to_vmem [thread:$0]  %s197_s10, 16, %s199_s3, [#allocation24]  }
  0x2a   :  { %s22678_s4 = sld [smem:[#allocation54_spill]]  ;;  %s20958_s15 = smov [#allocation7]  }
  0x2b   :  { %s43_s12 = sshll.u32 %s22677_s24, 4  ;;  %s66_s8 = sshll.u32 %s20958_s15, 4  ;;  %s44_s12 = int_to_ptr.hbm [resolvable:$true] %s43_s12  ;;  %s67_s8 = int_to_ptr.vmem [resolvable:$true] %s66_s8 }
  0x2c   :  { %48 = dma.hbm_to_vmem [thread:$0]  %s44_s12, 1024, %s46_s6, [#allocation3]  }
  0x2d   :  { %s88_s1 = sshll.u32 %s22640_s5, 4  ;;  %s20959_s22 = smov 64   ;;  %s89_s1 = int_to_ptr.hbm [resolvable:$true] %s88_s1 }
  0x2e   :  { %s20960_s23 = smov 4   ;;  %s20961_s10 = smov [#allocation10]  }
  0x2f   :  { %s90_s2 = sshll.u32 %s20961_s10, 4  ;;  %s113_s3 = sshll.u32 %s22642_s7, 4  ;;  %s91_s2 = int_to_ptr.vmem [resolvable:$true] %s90_s2  ;;  %s114_s3 = int_to_ptr.hbm [resolvable:$true] %s113_s3 }
  0x30   :  { %s64_s29 = sshll.u32 %s22678_s4, 4  ;;  %s134_s6 = sshll.u32 %s22644_s9, 4  ;;  %s65_s29 = int_to_ptr.hbm [resolvable:$true] %s64_s29  ;;  %s135_s6 = int_to_ptr.hbm [resolvable:$true] %s134_s6 }
  0x31   :  { %72 = dma.hbm_to_vmem [thread:$0]  %s65_s29, 16384, %s67_s8, [#allocation6], %s20959_s22, %s20959_s22, %s20960_s23  }
  0x32   :  { %96 = dma.hbm_to_vmem [thread:$0]  %s89_s1, 1024, %s91_s2, [#allocation9], %s20959_s22, %s20959_s22, %s20960_s23  }
  0x33   :  { %s20962_s27 = smov [#allocation13]   ;;  %s20963_s5 = smov [#allocation16]  }
  0x34   :  { %s115_s28 = sshll.u32 %s20962_s27, 4  ;;  %s136_s4 = sshll.u32 %s20963_s5, 4  ;;  %s116_s28 = int_to_ptr.vmem [resolvable:$true] %s115_s28  ;;  %s137_s4 = int_to_ptr.vmem [resolvable:$true] %s136_s4 }
  0x35   :  { %118 = dma.hbm_to_vmem [thread:$0]  %s114_s3, 16, %s116_s28, [#allocation12]  }
  0x36   :  { %s161_s8 = sshll.u32 %s22646_s11, 4  ;;  %s183_s9 = sshll.u32 %s22648_s13, 4  ;;  %s162_s8 = int_to_ptr.hbm [resolvable:$true] %s161_s8  ;;  %s184_s9 = int_to_ptr.hbm [resolvable:$true] %s183_s9 }
  0x37   :  { %142 = dma.hbm_to_vmem [thread:$0]  %s135_s6, 131072, %s137_s4, [#allocation15], %s20953_s30, %s20953_s30, %s20954_s0  }
  0x38   :  { %s20964_s21 = smov [#allocation19]   ;;  %s20965_s22 = smov [#allocation22]  }
  0x39   :  { %s163_s1 = sshll.u32 %s20964_s21, 4  ;;  %s185_s23 = sshll.u32 %s20965_s22, 4  ;;  %s164_s1 = int_to_ptr.vmem [resolvable:$true] %s163_s1  ;;  %s186_s23 = int_to_ptr.vmem [resolvable:$true] %s185_s23 }
  0x3a   :  { %166 = dma.hbm_to_vmem [thread:$0]  %s162_s8, 128, %s164_s1, [#allocation18]  }
  0x3b   :  { %s209_s11 = sshll.u32 %s22652_s17, 4  ;;  %s20966_s24 = smov [#allocation25]   ;;  %s210_s11 = int_to_ptr.hbm [resolvable:$true] %s209_s11 }
  0x3c   :  { %188 = dma.hbm_to_vmem [thread:$0]  %s184_s9, 128, %s186_s23, [#allocation21]  }
  0x3d   :  { %s211_s30 = sshll.u32 %s20966_s24, 4  ;;  %s212_s30 = int_to_ptr.vmem [resolvable:$true] %s211_s30 }
  0x3e   :  { %214 = dma.hbm_to_vmem [thread:$0]  %s210_s11, 16, %s212_s30, [#allocation24]  }
  0x3f   :  { %20928 = dma.done.wait [#allocation3], 1024  }
  0x40   :  { %20929 = vsyncadd [#allocation3], 4294966272 }
  0x41   :  { %20930 = dma.done.wait [#allocation6], 16640  }
  0x42   :  { %20931 = vsyncadd [#allocation6], 4294950656 }
  0x43   :  { %20932 = dma.done.wait [#allocation9], 1040  }
  0x44   :  { %20933 = vsyncadd [#allocation9], 4294966256 }
  0x45   :  { %20934 = dma.done.wait [#allocation12], 32  }
  0x46   :  { %20935 = vsyncadd [#allocation12], 4294967264 }
  0x47   :  { %20936 = dma.done.wait [#allocation15], 131088  }
  0x48   :  { %20937 = vsyncadd [#allocation15], 4294836208 }
  0x49   :  { %20938 = dma.done.wait [#allocation18], 8320  }
  0x4a   :  { %20939 = vsyncadd [#allocation18], 4294958976 }
  0x4b   :  { %20940 = dma.done.wait [#allocation21], 256  }
  0x4c   :  { %20941 = vsyncadd [#allocation21], 4294967040 }
  0x4d   :  { %20942 = dma.done.wait [#allocation24], 32  }
  0x4e   :  { %20943 = vsyncadd [#allocation24], 4294967264  ;;  %v276_v0 = vld [vmem:[#allocation2] sm:$0xff]  ;;  %v277_v1 = vld [vmem:[#allocation2 + $0x8] sm:$0xff]  ;;  %vm359_vm0 = vcmask 1043456   ;;  %s22679_s0 = sld [smem:[#allocation51_spill]] }
  0x4f   :  { %328 = vst [vmem:[#allocation1] ss:$2 sm:$0xff] %v276_v0  ;;  %v278_v2 = vld [vmem:[#allocation2 + $0x10] sm:$0xff]  ;;  %v279_v3 = vld [vmem:[#allocation2 + $0x18] sm:$0xff]  ;;  %v280_v4 = vld [vmem:[#allocation2 + $0x20] sm:$0xff]  ;;  %vm355_vm1 = vcmask 31744  }
  0x50   :  { %330 = vst [vmem:[#allocation1 + $0x10] ss:$2 sm:$0xff] %v277_v1  ;;  %v281_v6 = vld [vmem:[#allocation2 + $0x28] sm:$0xff]  ;;  %v282_v10 = vld [vmem:[#allocation2 + $0x30] sm:$0xff]  ;;  %v283_v14 = vld [vmem:[#allocation2 + $0x38] sm:$0xff]  ;;  %vm1126_vm5 = vcmask 64512  }
  0x51   :  { %332 = vst [vmem:[#allocation1 + $0x20] ss:$2 sm:$0xff] %v278_v2  ;;  %v284_v25 = vld [vmem:[#allocation5] sm:$0xff]  ;;  %v21179_v52 = vld [vmem:[#allocation5 + $0x8] sm:$0xff]  ;;  %vm13245_vm10 = vcmask 0   ;;  %s13265_s26 = sshll.u32 %s22654_s19, 4  ;;  %s13266_s26 = int_to_ptr.hbm [resolvable:$true] %s13265_s26 }
  0x52   :  { %334 = vst [vmem:[#allocation1 + $0x30] ss:$2 sm:$0xff] %v279_v3  ;;  %v288_v26 = vperm.slane %v284_v25, 0  ;;  %v289_v27 = vperm.slane %v284_v25, 1  ;;  %v290_v32 = vperm.slane %v284_v25, 2  ;;  %v291_v37 = vperm.slane %v284_v25, 3 }
  0x53   :  { %v292_v38 = vperm.slane %v284_v25, 4  ;;  %v293_v50 = vperm.slane %v284_v25, 5  ;;  %v294_v51 = vperm.slane %v284_v25, 6  ;;  %v296_v60 = vperm.slane %v21179_v52, 0  ;;  %s20973_s6 = smov [#allocation29]   ;;  %s22719_s4 = sld [smem:[#allocation56_spill]] }
  0x54   :  { %v275_v5 = vld [vmem:[%s22679_s0] sm:$0xff]  ;;  %v297_v1 = vperm.slane %v21179_v52, 1  ;;  %v298_v2 = vperm.slane %v21179_v52, 2  ;;  %s13254_s0 = sshll.u32 %s22653_s18, 4  ;;  %s20972_s18 = smov [#allocation27]   ;;  %s13255_s0 = int_to_ptr.hbm [resolvable:$true] %s13254_s0 }
  0x55   :  { %s13263_s25 = sshll.u32 %s20972_s18, 4  ;;  %s13274_s27 = sshll.u32 %s20973_s6, 4  ;;  %s13264_s25 = int_to_ptr.vmem [resolvable:$true] %s13263_s25  ;;  %s13275_s27 = int_to_ptr.vmem [resolvable:$true] %s13274_s27 }
  0x56   :  { %v336_v7 = vld.sshfl [vmem:[#allocation1 + $0x8] sm:$0xff pattern:$0x75316420]  ;;  %v335_v8 = vld.sshfl [vmem:[#allocation1] sm:$0xff pattern:$0x75316420] }
  0x57   :  { %13304 = vmatpush.msk.msra.mxu3 %vm359_vm0, %v336_v7  ;;  %v337_v9 = vld.sshfl [vmem:[#allocation1 + $0x10] sm:$0xff pattern:$0x75316420]  ;;  %343 = vst [vmem:[#allocation1] ss:$2 sm:$0xff] %v280_v4  ;;  %13302 = vmatpush.msk.msra.mxu0 %vm359_vm0, %v335_v8 }
  0x58   :  { %13305 = vmatmul.msk.f32.vlgmr.msra.gmra.mxu3 %vm355_vm1, %v275_v5  ;;  %13306 = vmatpush.msk.msra.mxu2 %vm359_vm0, %v337_v9  ;;  %v338_v11 = vld.sshfl [vmem:[#allocation1 + $0x18] sm:$0xff pattern:$0x75316420]  ;;  %v339_v12 = vld.sshfl [vmem:[#allocation1 + $0x20] sm:$0xff pattern:$0x75316420] }
  0x59   :  { %13307 = vmatmul.msk.f32.vlgmr.msra.gmra.mxu2 %vm355_vm1, %v275_v5  ;;  %13303 = vmatmul.msk.f32.vlgmr.msra.gmra.mxu0 %vm355_vm1, %v275_v5  ;;  %344 = vst [vmem:[#allocation1 + $0x10] ss:$2 sm:$0xff] %v281_v6  ;;  %v340_v13 = vld.sshfl [vmem:[#allocation1 + $0x28] sm:$0xff pattern:$0x75316420]  ;;  %v295_v6 = vperm.slane %v284_v25, 7 }
  0x5a   :  { %13308 = vmatpush.msk.msrb.mxu3 %vm359_vm0, %v338_v11  ;;  %13310 = vmatpush.msk.msrb.mxu0 %vm359_vm0, %v339_v12  ;;  %345 = vst [vmem:[#allocation1 + $0x20] ss:$2 sm:$0xff] %v282_v10  ;;  %v341_v15 = vld.sshfl [vmem:[#allocation1 + $0x30] sm:$0xff pattern:$0x75316420]  ;;  %v300_v12 = vperm.slane %v21179_v52, 4 }
  0x5b   :  { %13314 = vmatpush.msk.msrb.mxu2 %vm359_vm0, %v341_v15  ;;  %v342_v16 = vld.sshfl [vmem:[#allocation1 + $0x38] sm:$0xff pattern:$0x75316420]  ;;  %s13276_s29 = sshll.u32 %s22719_s4, 4  ;;  %s13277_s29 = int_to_ptr.hbm [resolvable:$true] %s13276_s29 }
  0x5c   :  { %13312 = vmatpush.msk.msra.mxu3 %vm359_vm0, %v340_v13  ;;  %346 = vst [vmem:[#allocation1 + $0x30] ss:$2 sm:$0xff] %v283_v14 }
  0x5e   :  { %v347_v17 = vld.sshfl [vmem:[#allocation1] sm:$0xff pattern:$0x75316420]  ;;  %v348_v18 = vld.sshfl [vmem:[#allocation1 + $0x8] sm:$0xff pattern:$0x75316420] }
  0x5f   :  { %13318 = vmatpush.msk.msra.mxu0 %vm359_vm0, %v347_v17  ;;  %13320 = vmatpush.msk.msra.mxu1 %vm359_vm0, %v348_v18 }
  0x60   :  { %13309 = vmatmul.msk.f32.vlgmr.msrb.gmra.mxu3 %vm355_vm1, %v275_v5  ;;  %v349_v19 = vld.sshfl [vmem:[#allocation1 + $0x10] sm:$0xff pattern:$0x75316420]  ;;  %13321 = vmatmul.msk.f32.vlgmr.msra.gmra.mxu1 %vm355_vm1, %v275_v5  ;;  %v350_v23 = vld.sshfl [vmem:[#allocation1 + $0x18] sm:$0xff pattern:$0x75316420] }
  0x61   :  { %13311 = vmatmul.msk.f32.vlgmr.msrb.gmra.mxu0 %vm355_vm1, %v275_v5  ;;  %13315 = vmatmul.msk.f32.vlgmr.msrb.gmra.mxu2 %vm355_vm1, %v275_v5  ;;  %v351_v20 = vld.sshfl [vmem:[#allocation1 + $0x20] sm:$0xff pattern:$0x75316420]  ;;  %v352_v21 = vld.sshfl [vmem:[#allocation1 + $0x28] sm:$0xff pattern:$0x75316420] }
  0x62   :  { %13316 = vmatpush.msk.msrb.mxu3 %vm359_vm0, %v342_v16  ;;  %13322 = vmatpush.msk.msra.mxu2 %vm359_vm0, %v349_v19 }
  0x63   :  { %v353_v22 = vld.sshfl [vmem:[#allocation1 + $0x30] sm:$0xff pattern:$0x75316420]  ;;  %13326 = vmatpush.msk.msrb.mxu0 %vm359_vm0, %v351_v20  ;;  %13328 = vmatpush.msk.msrb.mxu1 %vm359_vm0, %v352_v21  ;;  %v354_v24 = vld.sshfl [vmem:[#allocation1 + $0x38] sm:$0xff pattern:$0x75316420] }
  0x64   :  { %13330 = vmatpush.msk.msrb.mxu2 %vm359_vm0, %v353_v22  ;;  %v301_v20 = vperm.slane %v21179_v52, 5  ;;  %v299_v22 = vperm.slane %v21179_v52, 3 }
  0x68   :  { %13313 = vmatmul.msk.f32.vlgmr.msra.gmra.mxu3 %vm355_vm1, %v275_v5  ;;  %13329 = vmatmul.msk.f32.vlgmr.msrb.gmra.mxu1 %vm355_vm1, %v275_v5 }
  0x69   :  { %13323 = vmatmul.msk.f32.vlgmr.msra.gmra.mxu2 %vm355_vm1, %v275_v5  ;;  %13324 = vmatpush.msk.msra.mxu3 %vm359_vm0, %v350_v23 }
  0x6a   :  { %13319 = vmatmul.msk.f32.vlgmr.msra.gmra.mxu0 %vm355_vm1, %v275_v5 }
  0x70   :  { %13317 = vmatmul.msk.f32.vlgmr.msrb.gmra.mxu3 %vm355_vm1, %v275_v5 }
  0x71   :  { %13331 = vmatmul.msk.f32.vlgmr.msrb.gmra.mxu2 %vm355_vm1, %v275_v5  ;;  %13332 = vmatpush.msk.msrb.mxu3 %vm359_vm0, %v354_v24  ;;  %v302_v24 = vperm.slane %v21179_v52, 6 }
  0x72   :  { %13327 = vmatmul.msk.f32.vlgmr.msrb.gmra.mxu0 %vm355_vm1, %v275_v5 }
  0x78   :  { %13325 = vmatmul.msk.f32.vlgmr.msra.gmra.mxu3 %vm355_vm1, %v275_v5 }
  0x80   :  { %13333 = vmatmul.msk.f32.vlgmr.msrb.gmra.mxu3 %vm355_vm1, %v275_v5 }
  0xd6   :  { %v409_v28 = vpop.f32.mrf.mxu0 }
  0xd7   :  { %v410_v30 = vadd.f32 %v409_v28, %v288_v26 }
  0xd9   :  { %v21165_v34 = vmax.f32 %v410_v30, 0.0 }
  0xdb   :  { %v429_v29 = vpop.f32.mrf.mxu3  ;;  %v744_v41 = vmul.f32 %v21165_v34, %v21165_v34 }
  0xdc   :  { %v430_v31 = vadd.f32 %v429_v29, %v289_v27  ;;  %v449_v33 = vpop.f32.mrf.mxu2 }
  0xdd   :  { %v450_v36 = vadd.f32 %v449_v33, %v290_v32  ;;  %v589_v61 = vpop.f32.mrf.mxu1 }
  0xde   :  { %v21167_v35 = vmax.f32 %v430_v31, 0.0  ;;  %v489_v40 = vpop.f32.mrf.mxu0  ;;  %v590_v9 = vadd.f32 %v589_v61, %v297_v1 }
  0xdf   :  { %v21173_v43 = vmax.f32 %v450_v36, 0.0  ;;  %v490_v46 = vadd.f32 %v489_v40, %v292_v38 }
  0xe0   :  { %v745_v42 = vmul.f32 %v21167_v35, %v21167_v35  ;;  %v21203_v19 = vmax.f32 %v590_v9, 0.0 }
  0xe1   :  { %v746_v49 = vmul.f32 %v21173_v43, %v21173_v43  ;;  %v21183_v54 = vmax.f32 %v490_v46, 0.0  ;;  %v303_v46 = vperm.slane %v21179_v52, 7 }
  0xe2   :  { %v760_v48 = vadd.f32 %v745_v42, %v744_v41  ;;  %v753_v31 = vmul.f32 %v21203_v19, %v21203_v19 }
  0xe3   :  { %v469_v39 = vpop.f32.mrf.mxu3  ;;  %v748_v63 = vmul.f32 %v21183_v54, %v21183_v54 }
  0xe4   :  { %v470_v44 = vadd.f32 %v469_v39, %v291_v37  ;;  %v529_v47 = vpop.f32.mrf.mxu2  ;;  %v761_v57 = vadd.f32 %v760_v48, %v746_v49 }
  0xe5   :  { %v530_v59 = vadd.f32 %v529_v47, %v294_v51  ;;  %v669_v23 = vpop.f32.mrf.mxu1 }
  0xe6   :  { %v21175_v45 = vmax.f32 %v470_v44, 0.0  ;;  %v670_v32 = vadd.f32 %v669_v23, %v301_v20 }
  0xe7   :  { %v569_v56 = vpop.f32.mrf.mxu0  ;;  %v21194_v5 = vmax.f32 %v530_v59, 0.0 }
  0xe8   :  { %v747_v53 = vmul.f32 %v21175_v45, %v21175_v45  ;;  %v570_v7 = vadd.f32 %v569_v56, %v296_v60  ;;  %v21222_v44 = vmax.f32 %v670_v32, 0.0  ;;  %v19023_v32 = vld [vmem:[#allocation7 + $0xb8] sm:$0xff] }
  0xe9   :  { %v750_v14 = vmul.f32 %v21194_v5, %v21194_v5 }
  0xea   :  { %v762_v62 = vadd.f32 %v761_v57, %v747_v53  ;;  %v21199_v16 = vmax.f32 %v570_v7, 0.0  ;;  %v757_v53 = vmul.f32 %v21222_v44, %v21222_v44 }
  0xeb   :  { %v509_v55 = vpop.f32.mrf.mxu3 }
  0xec   :  { %v510_v58 = vadd.f32 %v509_v55, %v293_v50  ;;  %v609_v3 = vpop.f32.mrf.mxu2  ;;  %v763_v8 = vadd.f32 %v762_v62, %v748_v63  ;;  %v752_v27 = vmul.f32 %v21199_v16, %v21199_v16 }
  0xed   :  { %v610_v11 = vadd.f32 %v609_v3, %v298_v2 }
  0xee   :  { %v21188_v0 = vmax.f32 %v510_v58, 0.0 }
  0xef   :  { %v649_v17 = vpop.f32.mrf.mxu0  ;;  %v21206_v21 = vmax.f32 %v610_v11, 0.0 }
  0xf0   :  { %v749_v4 = vmul.f32 %v21188_v0, %v21188_v0  ;;  %v650_v28 = vadd.f32 %v649_v17, %v300_v12 }
  0xf1   :  { %v754_v33 = vmul.f32 %v21206_v21, %v21206_v21 }
  0xf2   :  { %v764_v13 = vadd.f32 %v763_v8, %v749_v4  ;;  %v21218_v39 = vmax.f32 %v650_v28, 0.0 }
  0xf3   :  { %v549_v10 = vpop.f32.mrf.mxu3 }
  0xf4   :  { %v550_v15 = vadd.f32 %v549_v10, %v295_v6  ;;  %v765_v25 = vadd.f32 %v764_v13, %v750_v14  ;;  %v689_v29 = vpop.f32.mrf.mxu2  ;;  %v756_v49 = vmul.f32 %v21218_v39, %v21218_v39 }
  0xf5   :  { %v690_v40 = vadd.f32 %v689_v29, %v302_v24 }
  0xf6   :  { %v21201_v18 = vmax.f32 %v550_v15, 0.0 }
  0xf7   :  { %v21229_v50 = vmax.f32 %v690_v40, 0.0  ;;  %v19030_v40 = vld [vmem:[#allocation7 + $0xf0] sm:$0xff] }
  0xf8   :  { %v751_v26 = vmul.f32 %v21201_v18, %v21201_v18 }
  0xf9   :  { %v758_v57 = vmul.f32 %v21229_v50, %v21229_v50 }
  0xfa   :  { %v766_v30 = vadd.f32 %v765_v25, %v751_v26 }
  0xfb   :  { %v629_v36 = vpop.f32.mrf.mxu3 }
  0xfc   :  { %v767_v37 = vadd.f32 %v766_v30, %v752_v27  ;;  %v630_v38 = vadd.f32 %v629_v36, %v299_v22  ;;  %v19007_v30 = vld [vmem:[#allocation7 + $0x38] sm:$0xff]  ;;  %v19006_v36 = vld [vmem:[#allocation7 + $0x30] sm:$0xff] }
  0xfe   :  { %v768_v41 = vadd.f32 %v767_v37, %v753_v31  ;;  %v21220_v42 = vmax.f32 %v630_v38, 0.0  ;;  %v19015_v31 = vld [vmem:[#allocation7 + $0x78] sm:$0xff]  ;;  %v19014_v37 = vld [vmem:[#allocation7 + $0x70] sm:$0xff] }
  0xff   :  { %v19022_v38 = vld [vmem:[#allocation7 + $0xb0] sm:$0xff] }
 0x100   :  { %v769_v47 = vadd.f32 %v768_v41, %v754_v33  ;;  %v755_v48 = vmul.f32 %v21220_v42, %v21220_v42  ;;  %v19031_v33 = vld [vmem:[#allocation7 + $0xf8] sm:$0xff]  ;;  %v19005_v41 = vld [vmem:[#allocation7 + $0x28] sm:$0xff] }
 0x102   :  { %v770_v51 = vadd.f32 %v769_v47, %v755_v48  ;;  %v19021_v47 = vld [vmem:[#allocation7 + $0xa8] sm:$0xff] }
 0x103   :  { %v709_v55 = vpop.f32.mrf.mxu3  ;;  %v19029_v48 = vld [vmem:[#allocation7 + $0xe8] sm:$0xff] }
 0x104   :  { %v710_v56 = vadd.f32 %v709_v55, %v303_v46  ;;  %v771_v58 = vadd.f32 %v770_v51, %v756_v49  ;;  %v19013_v46 = vld [vmem:[#allocation7 + $0x68] sm:$0xff]  ;;  %v19004_v49 = vld [vmem:[#allocation7 + $0x20] sm:$0xff] }
 0x105   :  { %v19012_v51 = vld [vmem:[#allocation7 + $0x60] sm:$0xff] }
 0x106   :  { %v21235_v52 = vmax.f32 %v710_v56, 0.0  ;;  %v772_v59 = vadd.f32 %v771_v58, %v757_v53  ;;  %v19020_v53 = vld [vmem:[#allocation7 + $0xa0] sm:$0xff]  ;;  %v19003_v56 = vld [vmem:[#allocation7 + $0x18] sm:$0xff] }
 0x107   :  { %v19028_v55 = vld [vmem:[#allocation7 + $0xe0] sm:$0xff]  ;;  %v19019_v58 = vld [vmem:[#allocation7 + $0x98] sm:$0xff] }
 0x108   :  { %v759_v60 = vmul.f32 %v21235_v52, %v21235_v52  ;;  %v773_v61 = vadd.f32 %v772_v59, %v758_v57  ;;  %v19011_v57 = vld [vmem:[#allocation7 + $0x58] sm:$0xff] }
 0x109   :  { %v19027_v59 = vld [vmem:[#allocation7 + $0xd8] sm:$0xff] }
 0x10a   :  { %v774_v62 = vadd.f32 %v773_v61, %v759_v60  ;;  %v19002_v60 = vld [vmem:[#allocation7 + $0x10] sm:$0xff] }
 0x10b   :  { %v19010_v61 = vld [vmem:[#allocation7 + $0x50] sm:$0xff] }
 0x10c   :  { %775 = vadd.xlane.f32.xlu0 %v774_v62  ;;  %v19018_v62 = vld [vmem:[#allocation7 + $0x90] sm:$0xff] }
 0x17f   :  { %v776_v63 = vpop.xlane.xlu0 %775 }
 0x180   :  { %v777_v1 = vmax.f32 %v776_v63, 1e-16  ;;  %v19026_v63 = vld [vmem:[#allocation7 + $0xd0] sm:$0xff] }
 0x182   :  { %20448 = vrsqrt.f32 %v777_v1  ;;  %vm784_vm3 = vweird.f32 %v777_v1 }
 0x188   :  { %v20449_v2 = vpop.eup %20448 }
 0x189   :  { %v779_v3 = vmul.f32 %v20449_v2, %v777_v1  ;;  %vm785_vm2 = vweird.f32 %v20449_v2  ;;  %v19001_v1 = vld [vmem:[#allocation7 + $0x8] sm:$0xff] }
 0x18a   :  { %vm786_vm4 = vmor %vm784_vm3, %vm785_vm2 }
 0x18b   :  { %v780_v4 = vmul.f32 %v20449_v2, %v779_v3  ;;  %v19017_v3 = vld [vmem:[#allocation7 + $0x88] sm:$0xff] }
 0x18d   :  { %v781_v6 = vmul.f32 0.5, %v780_v4  ;;  %v19025_v4 = vld [vmem:[#allocation7 + $0xc8] sm:$0xff] }
 0x18f   :  { %v782_v7 = vsub.f32 1.5, %v781_v6  ;;  %v19000_v6 = vld [vmem:[#allocation7] sm:$0xff] }
 0x191   :  { %v783_v8 = vmul.f32 %v20449_v2, %v782_v7  ;;  %v19008_v7 = vld [vmem:[#allocation7 + $0x40] sm:$0xff] }
 0x193   :  { %v787_v9 = vsel %vm786_vm4, %v20449_v2, %v783_v8  ;;  %v19009_v2 = vld [vmem:[#allocation7 + $0x48] sm:$0xff]  ;;  %v19016_v8 = vld [vmem:[#allocation7 + $0x80] sm:$0xff] }
 0x194   :  { %v788_v10 = vmul.f32 %v787_v9, %v21165_v34  ;;  %v789_v11 = vmul.f32 %v787_v9, %v21167_v35  ;;  %v790_v12 = vmul.f32 %v787_v9, %v21173_v43  ;;  %v791_v13 = vmul.f32 %v787_v9, %v21175_v45 }
 0x195   :  { %v792_v14 = vmul.f32 %v787_v9, %v21183_v54  ;;  %v793_v15 = vmul.f32 %v787_v9, %v21188_v0  ;;  %v794_v17 = vmul.f32 %v787_v9, %v21194_v5  ;;  %v795_v20 = vmul.f32 %v787_v9, %v21201_v18 }
 0x196   :  { %819 = vmatpush.xpose.msra.mxu0 %v788_v10  ;;  %839 = vmatpush.xpose.msra.mxu1 %v789_v11  ;;  %v796_v22 = vmul.f32 %v787_v9, %v21199_v16  ;;  %v797_v23 = vmul.f32 %v787_v9, %v21203_v19  ;;  %v798_v24 = vmul.f32 %v787_v9, %v21206_v21 }
 0x197   :  { %859 = vmatpush.xpose.msra.mxu2 %v790_v12  ;;  %879 = vmatpush.xpose.msra.mxu3 %v791_v13  ;;  %v799_v25 = vmul.f32 %v787_v9, %v21220_v42  ;;  %v800_v26 = vmul.f32 %v787_v9, %v21218_v39  ;;  %v801_v27 = vmul.f32 %v787_v9, %v21222_v44 }
 0x198   :  { %v802_v28 = vmul.f32 %v787_v9, %v21229_v50  ;;  %v803_v29 = vmul.f32 %v787_v9, %v21235_v52  ;;  %v19024_v9 = vld [vmem:[#allocation7 + $0xc0] sm:$0xff] }
 0x199   :  { %820 = vmatmul.f32.vlgmr.msra.gmra.mxu0 %v788_v10  ;;  %840 = vmatmul.f32.vlgmr.msra.gmra.mxu1 %v789_v11  ;;  %v19039_v10 = vld [vmem:[#allocation7 + $0x138] sm:$0xff] }
 0x19a   :  { %899 = vmatpush.xpose.msrb.mxu0 %v792_v14  ;;  %919 = vmatpush.xpose.msrb.mxu1 %v793_v15  ;;  %v19047_v11 = vld [vmem:[#allocation7 + $0x178] sm:$0xff] }
 0x19b   :  { %939 = vmatpush.xpose.msrb.mxu2 %v794_v17  ;;  %959 = vmatpush.xpose.msrb.mxu3 %v795_v20 }
 0x19c   :  { %860 = vmatmul.f32.vlgmr.msra.gmra.mxu2 %v790_v12  ;;  %880 = vmatmul.f32.vlgmr.msra.gmra.mxu3 %v791_v13  ;;  %v19055_v12 = vld [vmem:[#allocation7 + $0x1b8] sm:$0xff] }
 0x19d   :  { %v19063_v13 = vld [vmem:[#allocation7 + $0x1f8] sm:$0xff] }
 0x19e   :  { %979 = vmatpush.xpose.msra.mxu0 %v796_v22  ;;  %999 = vmatpush.xpose.msra.mxu1 %v797_v23 }
 0x19f   :  { %1019 = vmatpush.xpose.msra.mxu2 %v798_v24  ;;  %1039 = vmatpush.xpose.msra.mxu3 %v799_v25 }
 0x1a1   :  { %900 = vmatmul.f32.vlgmr.msrb.gmra.mxu0 %v792_v14  ;;  %920 = vmatmul.f32.vlgmr.msrb.gmra.mxu1 %v793_v15  ;;  %v21257_v14 = vpack.c.bf16 %v21165_v34, %v21165_v34  ;;  %v21261_v15 = vpack.c.bf16 %v21167_v35, %v21167_v35  ;;  %v19054_v34 = vld [vmem:[#allocation7 + $0x1b0] sm:$0xff]  ;;  %v19037_v35 = vld [vmem:[#allocation7 + $0x128] sm:$0xff] }
 0x1a2   :  { %1059 = vmatpush.xpose.msrb.mxu0 %v800_v26  ;;  %1079 = vmatpush.xpose.msrb.mxu1 %v801_v27 }
 0x1a4   :  { %940 = vmatmul.f32.vlgmr.msrb.gmra.mxu2 %v794_v17  ;;  %960 = vmatmul.f32.vlgmr.msrb.gmra.mxu3 %v795_v20  ;;  %v19038_v17 = vld [vmem:[#allocation7 + $0x130] sm:$0xff] }
 0x1a5   :  { %1099 = vmatpush.xpose.msrb.mxu2 %v802_v28  ;;  %1119 = vmatpush.xpose.msrb.mxu3 %v803_v29  ;;  %v19046_v20 = vld [vmem:[#allocation7 + $0x170] sm:$0xff] }
 0x1a9   :  { %980 = vmatmul.f32.vlgmr.msra.gmra.mxu0 %v796_v22  ;;  %1000 = vmatmul.f32.vlgmr.msra.gmra.mxu1 %v797_v23  ;;  %v21265_v22 = vpack.c.bf16 %v21173_v43, %v21173_v43  ;;  %v21269_v23 = vpack.c.bf16 %v21175_v45, %v21175_v45  ;;  %v19045_v43 = vld [vmem:[#allocation7 + $0x168] sm:$0xff] }
 0x1aa   :  { %2200 = vmatpush.bf16.msra.mxu0 %v19007_v30  ;;  %2213 = vmatpush.bf16.msra.mxu1 %v19015_v31  ;;  %v19053_v45 = vld [vmem:[#allocation7 + $0x1a8] sm:$0xff]  ;;  %v19035_v30 = vld [vmem:[#allocation7 + $0x118] sm:$0xff] }
 0x1ab   :  { %v19043_v31 = vld [vmem:[#allocation7 + $0x158] sm:$0xff] }
 0x1ac   :  { %1020 = vmatmul.f32.vlgmr.msra.gmra.mxu2 %v798_v24  ;;  %1040 = vmatmul.f32.vlgmr.msra.gmra.mxu3 %v799_v25  ;;  %v19062_v24 = vld [vmem:[#allocation7 + $0x1f0] sm:$0xff]  ;;  %v19061_v25 = vld [vmem:[#allocation7 + $0x1e8] sm:$0xff] }
 0x1ad   :  { %2226 = vmatpush.bf16.msra.mxu2 %v19023_v32  ;;  %2239 = vmatpush.bf16.msra.mxu3 %v19031_v33  ;;  %v19051_v32 = vld [vmem:[#allocation7 + $0x198] sm:$0xff] }
 0x1ae   :  { %2201 = vmatpush.bf16.msra.mxu0 %v19006_v36  ;;  %2214 = vmatpush.bf16.msra.mxu1 %v19014_v37  ;;  %v19059_v33 = vld [vmem:[#allocation7 + $0x1d8] sm:$0xff]  ;;  %v19034_v36 = vld [vmem:[#allocation7 + $0x110] sm:$0xff] }
 0x1af   :  { %v19042_v37 = vld [vmem:[#allocation7 + $0x150] sm:$0xff] }
 0x1b1   :  { %2227 = vmatpush.bf16.msra.mxu2 %v19022_v38  ;;  %2240 = vmatpush.bf16.msra.mxu3 %v19030_v40  ;;  %v19050_v38 = vld [vmem:[#allocation7 + $0x190] sm:$0xff] }
 0x1b2   :  { %1060 = vmatmul.f32.vlgmr.msrb.gmra.mxu0 %v800_v26  ;;  %1080 = vmatmul.f32.vlgmr.msrb.gmra.mxu1 %v801_v27  ;;  %v19036_v26 = vld [vmem:[#allocation7 + $0x120] sm:$0xff]  ;;  %v19058_v40 = vld [vmem:[#allocation7 + $0x1d0] sm:$0xff] }
 0x1b3   :  { %2202 = vmatpush.bf16.msra.mxu0 %v19005_v41  ;;  %2215 = vmatpush.bf16.msra.mxu1 %v19013_v46  ;;  %v19044_v27 = vld [vmem:[#allocation7 + $0x160] sm:$0xff]  ;;  %v19033_v41 = vld [vmem:[#allocation7 + $0x108] sm:$0xff] }
 0x1b4   :  { %1100 = vmatmul.f32.vlgmr.msrb.gmra.mxu2 %v802_v28  ;;  %1120 = vmatmul.f32.vlgmr.msrb.gmra.mxu3 %v803_v29  ;;  %v19052_v28 = vld [vmem:[#allocation7 + $0x1a0] sm:$0xff]  ;;  %v19041_v46 = vld [vmem:[#allocation7 + $0x148] sm:$0xff] }
 0x1b5   :  { %2228 = vmatpush.bf16.msra.mxu2 %v19021_v47  ;;  %2241 = vmatpush.bf16.msra.mxu3 %v19029_v48  ;;  %v19060_v29 = vld [vmem:[#allocation7 + $0x1e0] sm:$0xff]  ;;  %v19049_v47 = vld [vmem:[#allocation7 + $0x188] sm:$0xff] }
 0x1b6   :  { %v19057_v48 = vld [vmem:[#allocation7 + $0x1c8] sm:$0xff] }
 0x1b7   :  { %2203 = vmatpush.bf16.msra.mxu0 %v19004_v49  ;;  %2216 = vmatpush.bf16.msra.mxu1 %v19012_v51  ;;  %v19032_v49 = vld [vmem:[#allocation7 + $0x100] sm:$0xff] }
 0x1b8   :  { %v19040_v51 = vld [vmem:[#allocation7 + $0x140] sm:$0xff] }
 0x1b9   :  { %2229 = vmatpush.bf16.msra.mxu2 %v19020_v53  ;;  %2242 = vmatpush.bf16.msra.mxu3 %v19028_v55  ;;  %v19048_v53 = vld [vmem:[#allocation7 + $0x180] sm:$0xff] }
 0x1ba   :  { %v19056_v55 = vld [vmem:[#allocation7 + $0x1c0] sm:$0xff] }
 0x1bb   :  { %2204 = vmatpush.bf16.msra.mxu0 %v19003_v56  ;;  %2217 = vmatpush.bf16.msra.mxu1 %v19011_v57  ;;  %v19071_v56 = vld [vmem:[#allocation7 + $0x238] sm:$0xff] }
 0x1bc   :  { %v19079_v57 = vld [vmem:[#allocation7 + $0x278] sm:$0xff] }
 0x1bd   :  { %2230 = vmatpush.bf16.msra.mxu2 %v19019_v58  ;;  %2243 = vmatpush.bf16.msra.mxu3 %v19027_v59  ;;  %v19087_v58 = vld [vmem:[#allocation7 + $0x2b8] sm:$0xff] }
 0x1be   :  { %v19095_v59 = vld [vmem:[#allocation7 + $0x2f8] sm:$0xff] }
 0x1bf   :  { %2205 = vmatpush.bf16.msra.mxu0 %v19002_v60  ;;  %2218 = vmatpush.bf16.msra.mxu1 %v19010_v61  ;;  %v21277_v60 = vpack.c.bf16 %v21183_v54, %v21183_v54  ;;  %v21281_v61 = vpack.c.bf16 %v21188_v0, %v21188_v0  ;;  %v19086_v54 = vld [vmem:[#allocation7 + $0x2b0] sm:$0xff]  ;;  %v19069_v0 = vld [vmem:[#allocation7 + $0x228] sm:$0xff] }
 0x1c1   :  { %2231 = vmatpush.bf16.msra.mxu2 %v19018_v62  ;;  %2244 = vmatpush.bf16.msra.mxu3 %v19026_v63  ;;  %22680 = vst [vmem:[#allocation40_spill] sm:$0xff] %v21281_v61  ;;  %v19070_v62 = vld [vmem:[#allocation7 + $0x230] sm:$0xff] }
 0x1c2   :  { %v19078_v63 = vld [vmem:[#allocation7 + $0x270] sm:$0xff] }
 0x1c3   :  { %2206 = vmatpush.bf16.msra.mxu0 %v19001_v1  ;;  %2219 = vmatpush.bf16.msra.mxu1 %v19009_v2  ;;  %v21285_v1 = vpack.c.bf16 %v21194_v5, %v21194_v5  ;;  %v21289_v2 = vpack.c.bf16 %v21201_v18, %v21201_v18  ;;  %v19077_v5 = vld [vmem:[#allocation7 + $0x268] sm:$0xff] }
 0x1c4   :  { %v19085_v18 = vld [vmem:[#allocation7 + $0x2a8] sm:$0xff] }
 0x1c5   :  { %2232 = vmatpush.bf16.msra.mxu2 %v19017_v3  ;;  %2245 = vmatpush.bf16.msra.mxu3 %v19025_v4  ;;  %22681 = vst [vmem:[#allocation41_spill] sm:$0xff] %v21285_v1  ;;  %v19094_v3 = vld [vmem:[#allocation7 + $0x2f0] sm:$0xff]  ;;  %v19093_v4 = vld [vmem:[#allocation7 + $0x2e8] sm:$0xff] }
 0x1c6   :  { %22682 = vst [vmem:[#allocation42_spill] sm:$0xff] %v21289_v2 }
 0x1c7   :  { %2207 = vmatpush.bf16.msra.mxu0 %v19000_v6  ;;  %2220 = vmatpush.bf16.msra.mxu1 %v19008_v7  ;;  %v19068_v6 = vld [vmem:[#allocation7 + $0x220] sm:$0xff] }
 0x1c8   :  { %v19076_v7 = vld [vmem:[#allocation7 + $0x260] sm:$0xff] }
 0x1c9   :  { %2233 = vmatpush.bf16.msra.mxu2 %v19016_v8  ;;  %2246 = vmatpush.bf16.msra.mxu3 %v19024_v9  ;;  %v19084_v8 = vld [vmem:[#allocation7 + $0x2a0] sm:$0xff] }
 0x1ca   :  { %2208 = vmatmul.bf16.vlgmr.msra.gmra.mxu0 %v21257_v14  ;;  %2221 = vmatmul.bf16.vlgmr.msra.gmra.mxu1 %v21261_v15  ;;  %v19092_v9 = vld [vmem:[#allocation7 + $0x2e0] sm:$0xff] }
 0x1cb   :  { %2252 = vmatpush.bf16.msrb.mxu0 %v19039_v10  ;;  %2265 = vmatpush.bf16.msrb.mxu1 %v19047_v11  ;;  %v19067_v10 = vld [vmem:[#allocation7 + $0x218] sm:$0xff] }
 0x1cc   :  { %2234 = vmatmul.bf16.vlgmr.msra.gmra.mxu2 %v21265_v22  ;;  %2247 = vmatmul.bf16.vlgmr.msra.gmra.mxu3 %v21269_v23  ;;  %v19075_v11 = vld [vmem:[#allocation7 + $0x258] sm:$0xff] }
 0x1cd   :  { %2278 = vmatpush.bf16.msrb.mxu2 %v19055_v12  ;;  %2291 = vmatpush.bf16.msrb.mxu3 %v19063_v13  ;;  %v19083_v12 = vld [vmem:[#allocation7 + $0x298] sm:$0xff] }
 0x1ce   :  { %v19091_v13 = vld [vmem:[#allocation7 + $0x2d8] sm:$0xff] }
 0x1cf   :  { %2253 = vmatpush.bf16.msrb.mxu0 %v19038_v17  ;;  %2266 = vmatpush.bf16.msrb.mxu1 %v19046_v20  ;;  %v19066_v17 = vld [vmem:[#allocation7 + $0x210] sm:$0xff] }
 0x1d0   :  { %v19074_v20 = vld [vmem:[#allocation7 + $0x250] sm:$0xff] }
 0x1d1   :  { %2279 = vmatpush.bf16.msrb.mxu2 %v19054_v34  ;;  %2292 = vmatpush.bf16.msrb.mxu3 %v19062_v24  ;;  %v19082_v34 = vld [vmem:[#allocation7 + $0x290] sm:$0xff] }
 0x1d2   :  { %v19090_v24 = vld [vmem:[#allocation7 + $0x2d0] sm:$0xff] }
 0x1d3   :  { %2254 = vmatpush.bf16.msrb.mxu0 %v19037_v35  ;;  %2267 = vmatpush.bf16.msrb.mxu1 %v19045_v43  ;;  %v19065_v35 = vld [vmem:[#allocation7 + $0x208] sm:$0xff] }
 0x1d4   :  { %v19073_v43 = vld [vmem:[#allocation7 + $0x248] sm:$0xff] }
 0x1d5   :  { %2280 = vmatpush.bf16.msrb.mxu2 %v19053_v45  ;;  %2293 = vmatpush.bf16.msrb.mxu3 %v19061_v25  ;;  %v19081_v45 = vld [vmem:[#allocation7 + $0x288] sm:$0xff] }
 0x1d6   :  { %v19089_v25 = vld [vmem:[#allocation7 + $0x2c8] sm:$0xff] }
 0x1d7   :  { %2255 = vmatpush.bf16.msrb.mxu0 %v19036_v26  ;;  %2268 = vmatpush.bf16.msrb.mxu1 %v19044_v27  ;;  %v19064_v26 = vld [vmem:[#allocation7 + $0x200] sm:$0xff] }
 0x1d8   :  { %v19072_v27 = vld [vmem:[#allocation7 + $0x240] sm:$0xff] }
 0x1d9   :  { %2281 = vmatpush.bf16.msrb.mxu2 %v19052_v28  ;;  %2294 = vmatpush.bf16.msrb.mxu3 %v19060_v29  ;;  %v19080_v28 = vld [vmem:[#allocation7 + $0x280] sm:$0xff] }
 0x1da   :  { %v19088_v29 = vld [vmem:[#allocation7 + $0x2c0] sm:$0xff] }
 0x1db   :  { %2256 = vmatpush.bf16.msrb.mxu0 %v19035_v30  ;;  %2269 = vmatpush.bf16.msrb.mxu1 %v19043_v31  ;;  %v19103_v30 = vld [vmem:[#allocation7 + $0x338] sm:$0xff] }
 0x1dc   :  { %v19111_v31 = vld [vmem:[#allocation7 + $0x378] sm:$0xff] }
 0x1dd   :  { %2282 = vmatpush.bf16.msrb.mxu2 %v19051_v32  ;;  %2295 = vmatpush.bf16.msrb.mxu3 %v19059_v33  ;;  %v19119_v32 = vld [vmem:[#allocation7 + $0x3b8] sm:$0xff] }
 0x1de   :  { %v19127_v33 = vld [vmem:[#allocation7 + $0x3f8] sm:$0xff] }
 0x1df   :  { %2257 = vmatpush.bf16.msrb.mxu0 %v19034_v36  ;;  %2270 = vmatpush.bf16.msrb.mxu1 %v19042_v37  ;;  %v21297_v36 = vpack.c.bf16 %v21199_v16, %v21199_v16  ;;  %v21301_v37 = vpack.c.bf16 %v21203_v19, %v21203_v19  ;;  %v19118_v16 = vld [vmem:[#allocation7 + $0x3b0] sm:$0xff]  ;;  %v19101_v19 = vld [vmem:[#allocation7 + $0x328] sm:$0xff] }
 0x1e1   :  { %2283 = vmatpush.bf16.msrb.mxu2 %v19050_v38  ;;  %2296 = vmatpush.bf16.msrb.mxu3 %v19058_v40  ;;  %22683 = vst [vmem:[#allocation43_spill] sm:$0xff] %v21297_v36  ;;  %v19102_v38 = vld [vmem:[#allocation7 + $0x330] sm:$0xff] }
 0x1e2   :  { %22684 = vst [vmem:[#allocation44_spill] sm:$0xff] %v21301_v37  ;;  %v19110_v40 = vld [vmem:[#allocation7 + $0x370] sm:$0xff] }
 0x1e3   :  { %2258 = vmatpush.bf16.msrb.mxu0 %v19033_v41  ;;  %2271 = vmatpush.bf16.msrb.mxu1 %v19041_v46  ;;  %v21305_v41 = vpack.c.bf16 %v21206_v21, %v21206_v21  ;;  %v21309_v46 = vpack.c.bf16 %v21220_v42, %v21220_v42  ;;  %v19109_v21 = vld [vmem:[#allocation7 + $0x368] sm:$0xff] }
 0x1e4   :  { %v19117_v42 = vld [vmem:[#allocation7 + $0x3a8] sm:$0xff] }
 0x1e5   :  { %2284 = vmatpush.bf16.msrb.mxu2 %v19049_v47  ;;  %2297 = vmatpush.bf16.msrb.mxu3 %v19057_v48  ;;  %22685 = vst [vmem:[#allocation45_spill] sm:$0xff] %v21305_v41  ;;  %v19126_v47 = vld [vmem:[#allocation7 + $0x3f0] sm:$0xff]  ;;  %v19125_v48 = vld [vmem:[#allocation7 + $0x3e8] sm:$0xff] }
 0x1e6   :  { %22686 = vst [vmem:[#allocation46_spill] sm:$0xff] %v21309_v46 }
 0x1e7   :  { %2259 = vmatpush.bf16.msrb.mxu0 %v19032_v49  ;;  %2272 = vmatpush.bf16.msrb.mxu1 %v19040_v51  ;;  %v19100_v49 = vld [vmem:[#allocation7 + $0x320] sm:$0xff] }
 0x1e8   :  { %v19108_v51 = vld [vmem:[#allocation7 + $0x360] sm:$0xff] }
 0x1e9   :  { %2285 = vmatpush.bf16.msrb.mxu2 %v19048_v53  ;;  %2298 = vmatpush.bf16.msrb.mxu3 %v19056_v55  ;;  %v19116_v53 = vld [vmem:[#allocation7 + $0x3a0] sm:$0xff] }
 0x1ea   :  { %2260 = vmatmul.bf16.vlgmr.msrb.gmra.mxu0 %v21277_v60  ;;  %2273 = vmatmul.bf16.vlgmr.msrb.gmra.mxu1 %v21281_v61  ;;  %v19124_v55 = vld [vmem:[#allocation7 + $0x3e0] sm:$0xff] }
 0x1eb   :  { %2304 = vmatpush.bf16.msra.mxu0 %v19071_v56  ;;  %2317 = vmatpush.bf16.msra.mxu1 %v19079_v57  ;;  %v19099_v56 = vld [vmem:[#allocation7 + $0x318] sm:$0xff] }
 0x1ec   :  { %2286 = vmatmul.bf16.vlgmr.msrb.gmra.mxu2 %v21285_v1  ;;  %2299 = vmatmul.bf16.vlgmr.msrb.gmra.mxu3 %v21289_v2  ;;  %v19107_v57 = vld [vmem:[#allocation7 + $0x358] sm:$0xff] }
 0x1ed   :  { %2330 = vmatpush.bf16.msra.mxu2 %v19087_v58  ;;  %2343 = vmatpush.bf16.msra.mxu3 %v19095_v59  ;;  %v19115_v58 = vld [vmem:[#allocation7 + $0x398] sm:$0xff] }
 0x1ee   :  { %v19123_v59 = vld [vmem:[#allocation7 + $0x3d8] sm:$0xff] }
 0x1ef   :  { %2305 = vmatpush.bf16.msra.mxu0 %v19070_v62  ;;  %2318 = vmatpush.bf16.msra.mxu1 %v19078_v63  ;;  %v19098_v62 = vld [vmem:[#allocation7 + $0x310] sm:$0xff] }
 0x1f0   :  { %v19106_v63 = vld [vmem:[#allocation7 + $0x350] sm:$0xff] }
 0x1f1   :  { %2331 = vmatpush.bf16.msra.mxu2 %v19086_v54  ;;  %2344 = vmatpush.bf16.msra.mxu3 %v19094_v3  ;;  %v19114_v54 = vld [vmem:[#allocation7 + $0x390] sm:$0xff] }
 0x1f2   :  { %v19122_v3 = vld [vmem:[#allocation7 + $0x3d0] sm:$0xff] }
 0x1f3   :  { %2306 = vmatpush.bf16.msra.mxu0 %v19069_v0  ;;  %2319 = vmatpush.bf16.msra.mxu1 %v19077_v5 }
 0x1f5   :  { %2332 = vmatpush.bf16.msra.mxu2 %v19085_v18  ;;  %2345 = vmatpush.bf16.msra.mxu3 %v19093_v4  ;;  %v19097_v18 = vld [vmem:[#allocation7 + $0x308] sm:$0xff] }
 0x1f6   :  { %v19105_v4 = vld [vmem:[#allocation7 + $0x348] sm:$0xff] }
 0x1f7   :  { %2307 = vmatpush.bf16.msra.mxu0 %v19068_v6  ;;  %2320 = vmatpush.bf16.msra.mxu1 %v19076_v7  ;;  %v19113_v6 = vld [vmem:[#allocation7 + $0x388] sm:$0xff] }
 0x1f8   :  { %v19121_v7 = vld [vmem:[#allocation7 + $0x3c8] sm:$0xff] }
 0x1f9   :  { %2333 = vmatpush.bf16.msra.mxu2 %v19084_v8  ;;  %2346 = vmatpush.bf16.msra.mxu3 %v19092_v9 }
 0x1fb   :  { %2308 = vmatpush.bf16.msra.mxu0 %v19067_v10  ;;  %2321 = vmatpush.bf16.msra.mxu1 %v19075_v11  ;;  %v19096_v11 = vld [vmem:[#allocation7 + $0x300] sm:$0xff] }
 0x1fd   :  { %2334 = vmatpush.bf16.msra.mxu2 %v19083_v12  ;;  %2347 = vmatpush.bf16.msra.mxu3 %v19091_v13  ;;  %v19104_v12 = vld [vmem:[#allocation7 + $0x340] sm:$0xff] }
 0x1ff   :  { %2309 = vmatpush.bf16.msra.mxu0 %v19066_v17  ;;  %2322 = vmatpush.bf16.msra.mxu1 %v19074_v20  ;;  %v19112_v17 = vld [vmem:[#allocation7 + $0x380] sm:$0xff] }
 0x200   :  { %v19120_v20 = vld [vmem:[#allocation7 + $0x3c0] sm:$0xff] }
 0x201   :  { %2335 = vmatpush.bf16.msra.mxu2 %v19082_v34  ;;  %2348 = vmatpush.bf16.msra.mxu3 %v19090_v24 }
 0x203   :  { %2310 = vmatpush.bf16.msra.mxu0 %v19065_v35  ;;  %2323 = vmatpush.bf16.msra.mxu1 %v19073_v43  ;;  %v21317_v43 = vpack.c.bf16 %v21218_v39, %v21218_v39 }
 0x205   :  { %2336 = vmatpush.bf16.msra.mxu2 %v19081_v45  ;;  %2349 = vmatpush.bf16.msra.mxu3 %v19089_v25  ;;  %22687 = vst [vmem:[#allocation47_spill] sm:$0xff] %v21317_v43  ;;  %v21321_v45 = vpack.c.bf16 %v21222_v44, %v21222_v44 }
 0x207   :  { %2311 = vmatpush.bf16.msra.mxu0 %v19064_v26  ;;  %2324 = vmatpush.bf16.msra.mxu1 %v19072_v27  ;;  %22688 = vst [vmem:[#allocation48_spill] sm:$0xff] %v21321_v45  ;;  %v21325_v26 = vpack.c.bf16 %v21229_v50, %v21229_v50  ;;  %v21329_v27 = vpack.c.bf16 %v21235_v52, %v21235_v52 }
 0x209   :  { %2337 = vmatpush.bf16.msra.mxu2 %v19080_v28  ;;  %2350 = vmatpush.bf16.msra.mxu3 %v19088_v29  ;;  %22689 = vst [vmem:[#allocation49_spill] sm:$0xff] %v21325_v26 }
 0x20a   :  { %2312 = vmatmul.bf16.vlgmr.msra.gmra.mxu0 %v21297_v36  ;;  %2325 = vmatmul.bf16.vlgmr.msra.gmra.mxu1 %v21301_v37  ;;  %22690 = vst [vmem:[#allocation50_spill] sm:$0xff] %v21329_v27 }
 0x20b   :  { %2356 = vmatpush.bf16.msrb.mxu0 %v19103_v30  ;;  %2369 = vmatpush.bf16.msrb.mxu1 %v19111_v31 }
 0x20c   :  { %2338 = vmatmul.bf16.vlgmr.msra.gmra.mxu2 %v21305_v41  ;;  %2351 = vmatmul.bf16.vlgmr.msra.gmra.mxu3 %v21309_v46 }
 0x20d   :  { %2382 = vmatpush.bf16.msrb.mxu2 %v19119_v32  ;;  %2395 = vmatpush.bf16.msrb.mxu3 %v19127_v33 }
 0x20f   :  { %2357 = vmatpush.bf16.msrb.mxu0 %v19102_v38  ;;  %2370 = vmatpush.bf16.msrb.mxu1 %v19110_v40 }
 0x211   :  { %2383 = vmatpush.bf16.msrb.mxu2 %v19118_v16  ;;  %2396 = vmatpush.bf16.msrb.mxu3 %v19126_v47 }
 0x213   :  { %2358 = vmatpush.bf16.msrb.mxu0 %v19101_v19  ;;  %2371 = vmatpush.bf16.msrb.mxu1 %v19109_v21 }
 0x215   :  { %2384 = vmatpush.bf16.msrb.mxu2 %v19117_v42  ;;  %2397 = vmatpush.bf16.msrb.mxu3 %v19125_v48 }
 0x216   :  { %v821_v0 = vpop.f32.mrf.mxu0  ;;  %v841_v5 = vpop.f32.mrf.mxu1 }
 0x217   :  { %2359 = vmatpush.bf16.msrb.mxu0 %v19100_v49  ;;  %2372 = vmatpush.bf16.msrb.mxu1 %v19108_v51  ;;  %v842_v8 = vadd.f32 %v841_v5, %v821_v0 }
 0x219   :  { %2385 = vmatpush.bf16.msrb.mxu2 %v19116_v53  ;;  %2398 = vmatpush.bf16.msrb.mxu3 %v19124_v55  ;;  %v20967_v55 = vmov 0.0  }
 0x21b   :  { %2360 = vmatpush.bf16.msrb.mxu0 %v19099_v56  ;;  %2373 = vmatpush.bf16.msrb.mxu1 %v19107_v57 }
 0x21d   :  { %2386 = vmatpush.bf16.msrb.mxu2 %v19115_v58  ;;  %2399 = vmatpush.bf16.msrb.mxu3 %v19123_v59 }
 0x21e   :  { %v901_v34 = vpop.f32.mrf.mxu0  ;;  %v921_v24 = vpop.f32.mrf.mxu1 }
 0x21f   :  { %2361 = vmatpush.bf16.msrb.mxu0 %v19098_v62  ;;  %2374 = vmatpush.bf16.msrb.mxu1 %v19106_v63  ;;  %v861_v9 = vpop.f32.mrf.mxu2  ;;  %v881_v10 = vpop.f32.mrf.mxu3 }
 0x220   :  { %v862_v13 = vadd.f32 %v861_v9, %v842_v8 }
 0x221   :  { %2387 = vmatpush.bf16.msrb.mxu2 %v19114_v54  ;;  %2400 = vmatpush.bf16.msrb.mxu3 %v19122_v3 }
 0x222   :  { %v882_v35 = vadd.f32 %v881_v10, %v862_v13 }
 0x223   :  { %2362 = vmatpush.bf16.msrb.mxu0 %v19097_v18  ;;  %2375 = vmatpush.bf16.msrb.mxu1 %v19105_v4 }
 0x224   :  { %v902_v25 = vadd.f32 %v901_v34, %v882_v35 }
 0x225   :  { %2388 = vmatpush.bf16.msrb.mxu2 %v19113_v6  ;;  %2401 = vmatpush.bf16.msrb.mxu3 %v19121_v7 }
 0x226   :  { %v922_v28 = vadd.f32 %v921_v24, %v902_v25  ;;  %v981_v30 = vpop.f32.mrf.mxu0  ;;  %v1001_v50 = vpop.f32.mrf.mxu1 }
 0x227   :  { %2363 = vmatpush.bf16.msrb.mxu0 %v19096_v11  ;;  %2376 = vmatpush.bf16.msrb.mxu1 %v19104_v12  ;;  %v941_v39 = vpop.f32.mrf.mxu2  ;;  %v961_v44 = vpop.f32.mrf.mxu3 }
 0x228   :  { %v942_v29 = vadd.f32 %v941_v39, %v922_v28 }
 0x229   :  { %2389 = vmatpush.bf16.msrb.mxu2 %v19112_v17  ;;  %2402 = vmatpush.bf16.msrb.mxu3 %v19120_v20 }
 0x22a   :  { %2364 = vmatmul.bf16.vlgmr.msrb.gmra.mxu0 %v21317_v43  ;;  %2377 = vmatmul.bf16.vlgmr.msrb.gmra.mxu1 %v21321_v45  ;;  %v962_v31 = vadd.f32 %v961_v44, %v942_v29 }
 0x22c   :  { %2390 = vmatmul.bf16.vlgmr.msrb.gmra.mxu2 %v21325_v26  ;;  %2403 = vmatmul.bf16.vlgmr.msrb.gmra.mxu3 %v21329_v27  ;;  %v982_v32 = vadd.f32 %v981_v30, %v962_v31 }
 0x22e   :  { %v1002_v33 = vadd.f32 %v1001_v50, %v982_v32 }
 0x22f   :  { %v1021_v38 = vpop.f32.mrf.mxu2  ;;  %v1041_v52 = vpop.f32.mrf.mxu3 }
 0x230   :  { %v1022_v40 = vadd.f32 %v1021_v38, %v1002_v33  ;;  %v1061_v47 = vpop.f32.mrf.mxu0  ;;  %v1081_v21 = vpop.f32.mrf.mxu1 }
 0x232   :  { %v1042_v16 = vadd.f32 %v1041_v52, %v1022_v40 }
 0x234   :  { %v1062_v19 = vadd.f32 %v1061_v47, %v1042_v16 }
 0x236   :  { %v1082_v42 = vadd.f32 %v1081_v21, %v1062_v19 }
 0x237   :  { %v1101_v48 = vpop.f32.mrf.mxu2  ;;  %v1121_v51 = vpop.f32.mrf.mxu3 }
 0x238   :  { %v1102_v49 = vadd.f32 %v1101_v48, %v1082_v42 }
 0x23a   :  { %v1122_v53 = vadd.f32 %v1121_v51, %v1102_v49 }
 0x23c   :  { %vm1124_vm6 = vcmp.ge.f32.partialorder %v1122_v53, 0.5 }
 0x23d   :  { %v21335_v56 = vsel %vm1124_vm6, 1.0, %v20967_v55 }
 0x23e   :  { %v1127_v57 = vsel %vm1126_vm5, %v21335_v56, 0.0 }
 0x23f   :  { %1128 = vadd.xlane.f32.xlu0 %v1127_v57 }
 0x247   :  { %v2209_v58 = vpop.f32.mrf.mxu0  ;;  %v2222_v59 = vpop.f32.mrf.mxu1 }
 0x248   :  { %v2223_v62 = vadd.f32 %v2222_v59, %v2209_v58 }
 0x24f   :  { %v2235_v63 = vpop.f32.mrf.mxu2  ;;  %v2248_v54 = vpop.f32.mrf.mxu3 }
 0x250   :  { %v2236_v3 = vadd.f32 %v2235_v63, %v2223_v62  ;;  %v2211_v0 = vpop.f32.mrf.mxu0  ;;  %v2224_v5 = vpop.f32.mrf.mxu1 }
 0x252   :  { %v2249_v18 = vadd.f32 %v2248_v54, %v2236_v3 }
 0x257   :  { %v2237_v4 = vpop.f32.mrf.mxu2  ;;  %v2250_v6 = vpop.f32.mrf.mxu3 }
 0x267   :  { %v2261_v7 = vpop.f32.mrf.mxu0  ;;  %v2274_v8 = vpop.f32.mrf.mxu1 }
 0x268   :  { %v2262_v24 = vadd.f32 %v2261_v7, %v2249_v18 }
 0x26a   :  { %v2275_v44 = vadd.f32 %v2274_v8, %v2262_v24 }
 0x26f   :  { %v2287_v9 = vpop.f32.mrf.mxu2  ;;  %v2300_v10 = vpop.f32.mrf.mxu3 }
 0x270   :  { %v2263_v11 = vpop.f32.mrf.mxu0  ;;  %v2276_v12 = vpop.f32.mrf.mxu1  ;;  %v2288_v29 = vadd.f32 %v2287_v9, %v2275_v44 }
 0x272   :  { %v2301_v50 = vadd.f32 %v2300_v10, %v2288_v29 }
 0x277   :  { %v2289_v13 = vpop.f32.mrf.mxu2  ;;  %v2302_v17 = vpop.f32.mrf.mxu3 }
 0x287   :  { %v2313_v20 = vpop.f32.mrf.mxu0  ;;  %v2326_v34 = vpop.f32.mrf.mxu1 }
 0x288   :  { %v2314_v32 = vadd.f32 %v2313_v20, %v2301_v50 }
 0x28a   :  { %v2327_v33 = vadd.f32 %v2326_v34, %v2314_v32  ;;  %v20442_v34 = vld [vmem:[#allocation8] ss:$0 sm:$0xff] }
 0x28f   :  { %v2339_v35 = vpop.f32.mrf.mxu2  ;;  %v2352_v25 = vpop.f32.mrf.mxu3 }
 0x290   :  { %v2315_v28 = vpop.f32.mrf.mxu0  ;;  %v2328_v39 = vpop.f32.mrf.mxu1  ;;  %v2340_v38 = vadd.f32 %v2339_v35, %v2327_v33 }
 0x292   :  { %v2353_v52 = vadd.f32 %v2352_v25, %v2340_v38  ;;  %v20968_v25 = vmov 128.0   ;;  %v19135_v38 = vld [vmem:[#allocation10 + $0x38] sm:$0xff] }
 0x293   :  { %2577 = vmatpush.bf16.msra.mxu1 %v19135_v38 }
 0x297   :  { %v2341_v30 = vpop.f32.mrf.mxu2  ;;  %v2354_v31 = vpop.f32.mrf.mxu3 }
 0x2a7   :  { %v2365_v40 = vpop.f32.mrf.mxu0  ;;  %v2378_v16 = vpop.f32.mrf.mxu1 }
 0x2a8   :  { %v2366_v47 = vadd.f32 %v2365_v40, %v2353_v52  ;;  %v19134_v52 = vld [vmem:[#allocation10 + $0x30] sm:$0xff]  ;;  %v19133_v40 = vld [vmem:[#allocation10 + $0x28] sm:$0xff] }
 0x2a9   :  { %2578 = vmatpush.bf16.msra.mxu1 %v19134_v52 }
 0x2aa   :  { %v2379_v19 = vadd.f32 %v2378_v16, %v2366_v47 }
 0x2ad   :  { %2579 = vmatpush.bf16.msra.mxu1 %v19133_v40 }
 0x2af   :  { %v2391_v21 = vpop.f32.mrf.mxu2  ;;  %v2404_v42 = vpop.f32.mrf.mxu3 }
 0x2b0   :  { %v2392_v48 = vadd.f32 %v2391_v21, %v2379_v19  ;;  %v2367_v49 = vpop.f32.mrf.mxu0  ;;  %v2380_v51 = vpop.f32.mrf.mxu1  ;;  %v19132_v21 = vld [vmem:[#allocation10 + $0x20] sm:$0xff] }
 0x2b1   :  { %2580 = vmatpush.bf16.msra.mxu1 %v19132_v21  ;;  %v19130_v49 = vld [vmem:[#allocation10 + $0x10] sm:$0xff] }
 0x2b2   :  { %v2405_v53 = vadd.f32 %v2404_v42, %v2392_v48  ;;  %v1129_v58 = vpop.xlane.xlu0 %1128  ;;  %v19131_v42 = vld [vmem:[#allocation10 + $0x18] sm:$0xff] }
 0x2b3   :  { %v1130_v59 = vmax.f32 %v1129_v58, 1.0  ;;  %v13238_v62 = vrot.slane %v1129_v58, 4 }
 0x2b4   :  { %2430 = vmatpush.msra.mxu0 %v2405_v53 }
 0x2b5   :  { %20450 = vrsqrt.f32 %v1130_v59  ;;  %v13239_v63 = vadd.f32 %v13238_v62, %v1129_v58  ;;  %vm1137_vm8 = vweird.f32 %v1130_v59  ;;  %2581 = vmatpush.bf16.msra.mxu1 %v19131_v42 }
 0x2b6   :  { %20452 = vrcp.f32 %v20968_v25 }
 0x2b7   :  { %v2393_v55 = vpop.f32.mrf.mxu2  ;;  %v2406_v57 = vpop.f32.mrf.mxu3  ;;  %v13240_v54 = vrot.slane %v13239_v63, 2 }
 0x2b8   :  { %v19129_v55 = vld [vmem:[#allocation10 + $0x8] sm:$0xff] }
 0x2b9   :  { %v13241_v3 = vadd.f32 %v13240_v54, %v13239_v63  ;;  %2582 = vmatpush.bf16.msra.mxu1 %v19130_v49  ;;  %v20443_v63 = vld [vmem:[#allocation13] ss:$0 sm:$0xff] }
 0x2bb   :  { %v20451_v0 = vpop.eup %20450  ;;  %v13242_v18 = vrot.slane %v13241_v3, 1 }
 0x2bc   :  { %v1132_v5 = vmul.f32 %v20451_v0, %v1130_v59  ;;  %vm1138_vm7 = vweird.f32 %v20451_v0  ;;  %v20453_v28 = vpop.eup %20452  ;;  %v19128_v59 = vld [vmem:[#allocation10] sm:$0xff] }
 0x2bd   :  { %v13243_v6 = vadd.f32 %v13242_v18, %v13241_v3  ;;  %vm1139_vm9 = vmor %vm1137_vm8, %vm1138_vm7  ;;  %v2440_v39 = vmul.f32 128.0, %v20453_v28  ;;  %vm2444_vm11 = vweird.f32 %v20453_v28  ;;  %2583 = vmatpush.bf16.msra.mxu1 %v19129_v55  ;;  %v14106_v55 = vld [vmem:[#allocation17 + $0x1c0] sm:$0xf] }
 0x2be   :  { %v1133_v4 = vmul.f32 %v20451_v0, %v1132_v5 }
 0x2bf   :  { %v13244_v9 = vmul.f32 0.015625, %v13243_v6  ;;  %v2441_v44 = vsub.f32 1.0, %v2440_v39 }
 0x2c0   :  { %v1134_v7 = vmul.f32 0.5, %v1133_v4 }
 0x2c1   :  { %13246 = vst.msk [vmem:[#allocation29] sm:$0x1] %vm13245_vm10, %v13244_v9  ;;  %v2442_v29 = vmul.f32 %v20453_v28, %v2441_v44  ;;  %2584 = vmatpush.bf16.msra.mxu1 %v19128_v59 }
 0x2c2   :  { %v1135_v8 = vsub.f32 1.5, %v1134_v7 }
 0x2c3   :  { %v2443_v30 = vadd.f32 %v20453_v28, %v2442_v29 }
 0x2c4   :  { %v1136_v10 = vmul.f32 %v20451_v0, %v1135_v8 }
 0x2c5   :  { %v2445_v31 = vsel %vm2444_vm11, %v20453_v28, %v2443_v30 }
 0x2c6   :  { %v1140_v11 = vsel %vm1139_vm9, %v20451_v0, %v1136_v10  ;;  %v20444_v0 = vld [vmem:[#allocation14] ss:$0 sm:$0xff] }
 0x2c7   :  { %1142 = vxpose.xlu1.b32.start.end [1/1] (short) (narrow) %v1140_v11, 8  ;;  %v1141_v13 = vmul.f32 %v1140_v11, %v21335_v56 }
 0x36b   :  { %v1158_v12 = vpop.trf.xlu1 }
 0x36c   :  { %v1174_v17 = vperm.slane %v1158_v12, 0 }
 0x36e   :  { %v21340_v20 = vmul.f32 %v1174_v17, %v1141_v13 }
 0x370   :  { %13846 = vmatmul.msk.f32.vlgmr.msra.gmra.mxu0 %vm1126_vm5, %v21340_v20 }
 0x3ed   :  { %v2432_v24 = vpop.f32.mrf.mxu0 }
 0x3ee   :  { %v2433_v35 = vadd.f32 %v20442_v34, %v2432_v24 }
 0x3f0   :  { %2437 = vadd.xlane.f32.xlu1 %v2433_v35 }
 0x463   :  { %v2438_v56 = vpop.xlane.xlu1 %2437 }
 0x464   :  { %v2446_v50 = vmul.f32 %v2445_v31, %v2438_v56 }
 0x466   :  { %v2447_v32 = vsub.f32 %v2433_v35, %v2446_v50 }
 0x468   :  { %v2448_v33 = vmul.f32 %v2447_v32, %v2447_v32 }
 0x46a   :  { %2449 = vadd.xlane.f32.xlu2 %v2448_v33 }
 0x4dd   :  { %v2450_v16 = vpop.xlane.xlu2 %2449 }
 0x4de   :  { %v2451_v47 = vmul.f32 %v2450_v16, %v2445_v31 }
 0x4e0   :  { %v2452_v19 = vadd.f32 1e-05, %v2451_v47 }
 0x4e2   :  { %20454 = vrsqrt.f32 %v2452_v19  ;;  %vm2459_vm13 = vweird.f32 %v2452_v19 }
 0x4e8   :  { %v20455_v48 = vpop.eup %20454 }
 0x4e9   :  { %v2454_v51 = vmul.f32 %v20455_v48, %v2452_v19  ;;  %vm2460_vm12 = vweird.f32 %v20455_v48  ;;  %v22656_v19 = vmov -1.0  }
 0x4ea   :  { %vm2461_vm14 = vmor %vm2459_vm13, %vm2460_vm12 }
 0x4eb   :  { %v2455_v53 = vmul.f32 %v20455_v48, %v2454_v51 }
 0x4ed   :  { %v2456_v57 = vmul.f32 0.5, %v2455_v53 }
 0x4ef   :  { %v2457_v58 = vsub.f32 1.5, %v2456_v57  ;;  %v20220_v57 = vld [vmem:[#allocation17 + $0x1dc] sm:$0xf0] }
 0x4f0   :  { %v14107_v59 = vor.u32 %v20220_v57, %v14106_v55  ;;  %v20176_v57 = vld [vmem:[#allocation17 + $0x84] sm:$0xf] }
 0x4f1   :  { %v2458_v62 = vmul.f32 %v20455_v48, %v2457_v58  ;;  %v20216_v58 = vld [vmem:[#allocation17 + $0x1c4] sm:$0xf] }
 0x4f2   :  { %4023 = vmatpush.bf16.msra.mxu3 %v14107_v59  ;;  %v20177_v59 = vld [vmem:[#allocation17 + $0x8c] sm:$0xf] }
 0x4f3   :  { %v2462_v54 = vsel %vm2461_vm14, %v20455_v48, %v2458_v62  ;;  %v14108_v62 = vld [vmem:[#allocation17 + $0x1e0] sm:$0xf0] }
 0x4f4   :  { %v2463_v3 = vmul.f32 %v2462_v54, %v2447_v32  ;;  %v20217_v54 = vld [vmem:[#allocation17 + $0x1cc] sm:$0xf] }
 0x4f6   :  { %v2467_v5 = vmul.f32 %v20443_v63, %v2463_v3  ;;  %v14111_v63 = vor.u32 %v20216_v58, %v14108_v62  ;;  %v14116_v3 = vld [vmem:[#allocation17 + $0x1e8] sm:$0xf0]  ;;  %v13948_v58 = vld [vmem:[#allocation17 + $0xa0] sm:$0xf0] }
 0x4f7   :  { %v13956_v62 = vld [vmem:[#allocation17 + $0xa8] sm:$0xf0] }
 0x4f8   :  { %v2471_v18 = vadd.f32 %v20444_v0, %v2467_v5  ;;  %v14074_v0 = vld [vmem:[#allocation17 + $0x180] sm:$0xf]  ;;  %v14119_v5 = vor.u32 %v20217_v54, %v14116_v3  ;;  %4036 = vmatpush.bf16.msrb.mxu0 %v14111_v63  ;;  %v14114_v63 = vld [vmem:[#allocation17 + $0x1c8] sm:$0xf] }
 0x4f9   :  { %v20221_v3 = vld [vmem:[#allocation17 + $0x1e4] sm:$0xf0] }
 0x4fa   :  { %v2473_v4 = vmul.f32 0.70710677, %v2471_v18  ;;  %v2472_v48 = vmul.f32 0.5, %v2471_v18  ;;  %4062 = vmatpush.bf16.msrb.mxu1 %v14119_v5  ;;  %v13914_v5 = vld [vmem:[#allocation17 + $0x40] sm:$0xf] }
 0x4fc   :  { %v2476_v6 = vand.u32 2147483647, %v2473_v4  ;;  %vm2474_vm3 = vcmp.ge.f32.partialorder %v2473_v4, 0.0  ;;  %v20212_v4 = vld [vmem:[#allocation17 + $0x19c] sm:$0xf0] }
 0x4fd   :  { %v2475_v21 = vsel %vm2474_vm3, 1.0, %v22656_v19  ;;  %v14075_v18 = vor.u32 %v20212_v4, %v14074_v0  ;;  %v13951_v0 = vor.u32 %v20176_v57, %v13948_v58  ;;  %v20172_v4 = vld [vmem:[#allocation17 + $0x5c] sm:$0xf0]  ;;  %v20211_v58 = vld [vmem:[#allocation17 + $0x19c] sm:$0xf] }
 0x4fe   :  { %v2477_v7 = vmul.f32 0.3275911, %v2476_v6  ;;  %v2503_v28 = vsub.f32 0.0, %v2476_v6 }
 0x4ff   :  { %4024 = vmatpush.bf16.msra.mxu3 %v14075_v18  ;;  %v13916_v18 = vld [vmem:[#allocation17 + $0x60] sm:$0xf0] }
 0x500   :  { %v2478_v8 = vadd.f32 1.0, %v2477_v7  ;;  %v2504_v29 = vmul.f32 %v2503_v28, %v2476_v6  ;;  %v20208_v6 = vld [vmem:[#allocation17 + $0x184] sm:$0xf] }
 0x501   :  { %v14076_v7 = vld [vmem:[#allocation17 + $0x1a0] sm:$0xf0] }
 0x502   :  { %20456 = vrcp.f32 %v2478_v8  ;;  %v2490_v12 = vand.u32 2147483648, %v2478_v8  ;;  %v2488_v17 = vand.u32 2147483647, %v2478_v8  ;;  %vm2484_vm0 = vweird.f32 %v2478_v8 }
 0x503   :  { %v2505_v56 = vmul.f32 1.442695, %v2504_v29 }
 0x504   :  { %v2491_v24 = vor.u32 1.1754944e-38, %v2490_v12  ;;  %vm2489_vm2 = vcmp.eq.f32.partialorder %v2488_v17, 8.507059e+37  ;;  %v20204_v12 = vld [vmem:[#allocation17 + $0x15c] sm:$0xf0]  ;;  %v20200_v17 = vld [vmem:[#allocation17 + $0x144] sm:$0xf] }
 0x505   :  { %20458 = vpow2.f32 %v2505_v56  ;;  %v20193_v56 = vld [vmem:[#allocation17 + $0x10c] sm:$0xf] }
 0x508   :  { %v20457_v9 = vpop.eup %20456 }
 0x509   :  { %v2480_v10 = vmul.f32 %v20457_v9, %v2478_v8  ;;  %vm2485_vm15 = vweird.f32 %v20457_v9  ;;  %v14079_v8 = vor.u32 %v20208_v6, %v14076_v7  ;;  %v13959_v6 = vor.u32 %v20177_v59, %v13956_v62  ;;  %v20168_v7 = vld [vmem:[#allocation17 + $0x44] sm:$0xf]  ;;  %v14100_v59 = vld [vmem:[#allocation17 + $0x1b8] sm:$0xf0] }
 0x50a   :  { %vm2486_vm1 = vmor %vm2484_vm0, %vm2485_vm15 }
 0x50b   :  { %v2481_v11 = vsub.f32 1.0, %v2480_v10  ;;  %v20459_v40 = vpop.eup %20458  ;;  %v14084_v10 = vld [vmem:[#allocation17 + $0x1a8] sm:$0xf0]  ;;  %4037 = vmatpush.bf16.msrb.mxu0 %v14079_v8 }
 0x50c   :  { %v20169_v8 = vld [vmem:[#allocation17 + $0x4c] sm:$0xf] }
 0x50d   :  { %v2482_v13 = vmul.f32 %v20457_v9, %v2481_v11  ;;  %v14042_v11 = vld [vmem:[#allocation17 + $0x140] sm:$0xf] }
 0x50f   :  { %v2483_v34 = vadd.f32 %v20457_v9, %v2482_v13 }
 0x511   :  { %v2487_v35 = vsel %vm2486_vm1, %v20457_v9, %v2483_v34  ;;  %v20209_v9 = vld [vmem:[#allocation17 + $0x18c] sm:$0xf]  ;;  %v14044_v34 = vld [vmem:[#allocation17 + $0x160] sm:$0xf0] }
 0x512   :  { %v2492_v25 = vsel %vm2489_vm2, %v2491_v24, %v2487_v35  ;;  %v14087_v13 = vor.u32 %v20209_v9, %v14084_v10  ;;  %v14043_v24 = vor.u32 %v20204_v12, %v14042_v11  ;;  %v20201_v35 = vld [vmem:[#allocation17 + $0x14c] sm:$0xf]  ;;  %v14047_v28 = vor.u32 %v20200_v17, %v14044_v34  ;;  %v14082_v11 = vld [vmem:[#allocation17 + $0x188] sm:$0xf]  ;;  %v13882_v17 = vld [vmem:[#allocation17] sm:$0xf] }
 0x513   :  { %v2494_v39 = vmul.f32 1.0614054, %v2492_v25  ;;  %v13924_v9 = vld [vmem:[#allocation17 + $0x68] sm:$0xf0]  ;;  %v14115_v10 = vor.u32 %v20221_v3, %v14114_v63  ;;  %v20213_v12 = vld [vmem:[#allocation17 + $0x1a4] sm:$0xf0] }
 0x514   :  { %4063 = vmatpush.bf16.msrb.mxu1 %v14087_v13  ;;  %4025 = vmatpush.bf16.msra.mxu3 %v14043_v24  ;;  %v13915_v13 = vor.u32 %v20172_v4, %v13914_v5  ;;  %v13919_v24 = vor.u32 %v20168_v7, %v13916_v18  ;;  %v14018_v63 = vld [vmem:[#allocation17 + $0x108] sm:$0xf]  ;;  %v14058_v5 = vld [vmem:[#allocation17 + $0x150] sm:$0xf]  ;;  %v20202_v7 = vld [vmem:[#allocation17 + $0x154] sm:$0xf] }
 0x515   :  { %v2495_v44 = vadd.f32 -1.4531521, %v2494_v39  ;;  %v14010_v39 = vld [vmem:[#allocation17 + $0x100] sm:$0xf]  ;;  %4038 = vmatpush.bf16.msrb.mxu0 %v14047_v28  ;;  %v13884_v28 = vld [vmem:[#allocation17 + $0x20] sm:$0xf0] }
 0x516   :  { %v20206_v4 = vld [vmem:[#allocation17 + $0x16c] sm:$0xf0]  ;;  %v14060_v18 = vld [vmem:[#allocation17 + $0x170] sm:$0xf0] }
 0x517   :  { %v2496_v30 = vmul.f32 %v2495_v44, %v2492_v25  ;;  %v20196_v44 = vld [vmem:[#allocation17 + $0x11c] sm:$0xf0] }
 0x519   :  { %v2497_v31 = vadd.f32 1.4214138, %v2496_v30  ;;  %v20192_v30 = vld [vmem:[#allocation17 + $0x104] sm:$0xf] }
 0x51b   :  { %v2498_v50 = vmul.f32 %v2497_v31, %v2492_v25  ;;  %v14012_v31 = vld [vmem:[#allocation17 + $0x120] sm:$0xf0] }
 0x51d   :  { %v2499_v32 = vadd.f32 -0.28449672, %v2498_v50  ;;  %v14020_v50 = vld [vmem:[#allocation17 + $0x128] sm:$0xf0] }
 0x51f   :  { %v2500_v33 = vmul.f32 %v2499_v32, %v2492_v25  ;;  %v14011_v32 = vor.u32 %v20196_v44, %v14010_v39  ;;  %v13927_v39 = vor.u32 %v20169_v8, %v13924_v9  ;;  %v20161_v44 = vld [vmem:[#allocation17 + $0xc] sm:$0xf]  ;;  %v20203_v9 = vld [vmem:[#allocation17 + $0x15c] sm:$0xf] }
 0x521   :  { %v2501_v38 = vadd.f32 0.2548296, %v2500_v33  ;;  %v14015_v33 = vor.u32 %v20192_v30, %v14012_v31  ;;  %4026 = vmatpush.bf16.msra.mxu3 %v14011_v32  ;;  %v20222_v30 = vld [vmem:[#allocation17 + $0x1ec] sm:$0xf0]  ;;  %v13892_v31 = vld [vmem:[#allocation17 + $0x28] sm:$0xf0]  ;;  %v14083_v32 = vor.u32 %v20213_v12, %v14082_v11 }
 0x522   :  { %v13986_v11 = vld [vmem:[#allocation17 + $0xc8] sm:$0xf] }
 0x523   :  { %v2502_v52 = vmul.f32 %v2501_v38, %v2492_v25  ;;  %v14052_v25 = vld [vmem:[#allocation17 + $0x168] sm:$0xf0]  ;;  %v13978_v38 = vld [vmem:[#allocation17 + $0xc0] sm:$0xf]  ;;  %4039 = vmatpush.bf16.msrb.mxu0 %v14015_v33  ;;  %v20189_v12 = vld [vmem:[#allocation17 + $0xe4] sm:$0xf0] }
 0x524   :  { %v14055_v29 = vor.u32 %v20201_v35, %v14052_v25  ;;  %v20164_v35 = vld [vmem:[#allocation17 + $0x1c] sm:$0xf0]  ;;  %v20160_v25 = vld [vmem:[#allocation17 + $0x4] sm:$0xf] }
 0x525   :  { %v2507_v16 = vmul.f32 %v20459_v40, %v2502_v52  ;;  %v20188_v52 = vld [vmem:[#allocation17 + $0xdc] sm:$0xf0]  ;;  %v14023_v40 = vor.u32 %v20193_v56, %v14020_v50  ;;  %v20218_v56 = vld [vmem:[#allocation17 + $0x1d4] sm:$0xf]  ;;  %v13883_v33 = vor.u32 %v20164_v35, %v13882_v17  ;;  %v14063_v17 = vor.u32 %v20202_v7, %v14060_v18 }
 0x526   :  { %4064 = vmatpush.bf16.msrb.mxu1 %v14055_v29  ;;  %v14122_v29 = vld [vmem:[#allocation17 + $0x1d0] sm:$0xf]  ;;  %v14124_v50 = vld [vmem:[#allocation17 + $0x1f0] sm:$0xf0] }
 0x527   :  { %v2508_v47 = vsub.f32 1.0, %v2507_v16  ;;  %v20184_v16 = vld [vmem:[#allocation17 + $0xc4] sm:$0xf] }
 0x529   :  { %v2509_v42 = vmul.f32 %v2508_v47, %v2475_v21  ;;  %v13980_v47 = vld [vmem:[#allocation17 + $0xe0] sm:$0xf0]  ;;  %v20185_v21 = vld [vmem:[#allocation17 + $0xcc] sm:$0xf] }
 0x52a   :  { %4065 = vmatpush.bf16.msrb.mxu1 %v14023_v40  ;;  %v14050_v40 = vld [vmem:[#allocation17 + $0x148] sm:$0xf] }
 0x52b   :  { %v2510_v49 = vadd.f32 1.0, %v2509_v42  ;;  %v13988_v42 = vld [vmem:[#allocation17 + $0xe8] sm:$0xf0] }
 0x52c   :  { %v13991_v55 = vor.u32 %v20185_v21, %v13988_v42  ;;  %v14123_v21 = vor.u32 %v20222_v30, %v14122_v29  ;;  %v13895_v42 = vor.u32 %v20161_v44, %v13892_v31  ;;  %v20195_v44 = vld [vmem:[#allocation17 + $0x11c] sm:$0xf]  ;;  %v13954_v30 = vld [vmem:[#allocation17 + $0x88] sm:$0xf] }
 0x52d   :  { %v2511_v51 = vmul.f32 %v2510_v49, %v2472_v48  ;;  %v13979_v48 = vor.u32 %v20188_v52, %v13978_v38  ;;  %v13983_v49 = vor.u32 %v20184_v16, %v13980_v47  ;;  %v20219_v38 = vld [vmem:[#allocation17 + $0x1dc] sm:$0xf]  ;;  %v20205_v16 = vld [vmem:[#allocation17 + $0x164] sm:$0xf0]  ;;  %v13887_v47 = vor.u32 %v20160_v25, %v13884_v28  ;;  %v20194_v25 = vld [vmem:[#allocation17 + $0x114] sm:$0xf] }
 0x52e   :  { %4066 = vmatpush.bf16.msrb.mxu1 %v13991_v55  ;;  %v14132_v52 = vld [vmem:[#allocation17 + $0x1f8] sm:$0xf0]  ;;  %v14092_v55 = vld [vmem:[#allocation17 + $0x1b0] sm:$0xf0]  ;;  %v14051_v57 = vor.u32 %v20205_v16, %v14050_v40  ;;  %v20181_v31 = vld [vmem:[#allocation17 + $0xa4] sm:$0xf0] }
 0x52f   :  { %v2512_v53 = vpack.c.bf16 %v2511_v51, %v2511_v51  ;;  %v13946_v51 = vld [vmem:[#allocation17 + $0x80] sm:$0xf]  ;;  %4027 = vmatpush.bf16.msra.mxu3 %v13979_v48  ;;  %4040 = vmatpush.bf16.msrb.mxu0 %v13983_v49  ;;  %v14127_v48 = vor.u32 %v20218_v56, %v14124_v50  ;;  %v14090_v49 = vld [vmem:[#allocation17 + $0x190] sm:$0xf]  ;;  %v14028_v28 = vld [vmem:[#allocation17 + $0x130] sm:$0xf0]  ;;  %v13955_v16 = vor.u32 %v20181_v31, %v13954_v30 }
 0x530   :  { %v14036_v29 = vld [vmem:[#allocation17 + $0x138] sm:$0xf0]  ;;  %v14031_v50 = vor.u32 %v20194_v25, %v14028_v28  ;;  %v13996_v40 = vld [vmem:[#allocation17 + $0xf0] sm:$0xf0]  ;;  %v14002_v25 = vld [vmem:[#allocation17 + $0xd8] sm:$0xf] }
 0x531   :  { %2585 = vmatmul.bf16.vlgmr.msra.gmra.mxu1 %v2512_v53  ;;  %v20180_v53 = vld [vmem:[#allocation17 + $0x9c] sm:$0xf0]  ;;  %v20191_v28 = vld [vmem:[#allocation17 + $0xf4] sm:$0xf0]  ;;  %v13930_v31 = vld [vmem:[#allocation17 + $0x50] sm:$0xf] }
 0x532   :  { %v13947_v54 = vor.u32 %v20180_v53, %v13946_v51  ;;  %4067 = vmatpush.bf16.msrb.mxu1 %v13959_v6  ;;  %v20214_v51 = vld [vmem:[#allocation17 + $0x1ac] sm:$0xf0]  ;;  %v20210_v53 = vld [vmem:[#allocation17 + $0x194] sm:$0xf]  ;;  %v14103_v6 = vor.u32 %v20211_v58, %v14100_v59 }
 0x533   :  { %4041 = vmatpush.bf16.msrb.mxu0 %v13951_v0  ;;  %v14091_v3 = vor.u32 %v20214_v51, %v14090_v49  ;;  %v14095_v0 = vor.u32 %v20210_v53, %v14092_v55  ;;  %v20182_v53 = vld [vmem:[#allocation17 + $0xac] sm:$0xf0]  ;;  %v13964_v58 = vld [vmem:[#allocation17 + $0xb0] sm:$0xf0] }
 0x534   :  { %4028 = vmatpush.bf16.msra.mxu3 %v13947_v54  ;;  %v20197_v54 = vld [vmem:[#allocation17 + $0x124] sm:$0xf0] }
 0x535   :  { %v14019_v8 = vor.u32 %v20197_v54, %v14018_v63  ;;  %v13972_v63 = vld [vmem:[#allocation17 + $0xb8] sm:$0xf0]  ;;  %v13890_v54 = vld [vmem:[#allocation17 + $0x8] sm:$0xf] }
 0x536   :  { %4068 = vmatpush.bf16.msrb.mxu1 %v13927_v39  ;;  %v13987_v39 = vor.u32 %v20189_v12, %v13986_v11  ;;  %v14066_v12 = vld [vmem:[#allocation17 + $0x158] sm:$0xf] }
 0x537   :  { %4042 = vmatpush.bf16.msrb.mxu0 %v13919_v24  ;;  %v20198_v24 = vld [vmem:[#allocation17 + $0x12c] sm:$0xf0] }
 0x538   :  { %4029 = vmatpush.bf16.msra.mxu3 %v13915_v13  ;;  %v14059_v13 = vor.u32 %v20206_v4, %v14058_v5  ;;  %v14130_v5 = vld [vmem:[#allocation17 + $0x1d8] sm:$0xf] }
 0x539   :  { %v20223_v4 = vld [vmem:[#allocation17 + $0x1f4] sm:$0xf0] }
 0x53a   :  { %4069 = vmatpush.bf16.msrb.mxu1 %v13895_v42  ;;  %v13922_v42 = vld [vmem:[#allocation17 + $0x48] sm:$0xf] }
 0x53b   :  { %4043 = vmatpush.bf16.msrb.mxu0 %v13887_v47  ;;  %v20187_v47 = vld [vmem:[#allocation17 + $0xdc] sm:$0xf] }
 0x53c   :  { %4030 = vmatpush.bf16.msra.mxu3 %v13883_v33  ;;  %v20190_v33 = vld [vmem:[#allocation17 + $0xec] sm:$0xf0] }
 0x53f   :  { %4088 = vmatpush.bf16.msra.mxu0 %v14127_v48  ;;  %v20173_v48 = vld [vmem:[#allocation17 + $0x64] sm:$0xf0] }
 0x540   :  { %4075 = vmatpush.bf16.msrb.mxu3 %v14123_v21  ;;  %v14004_v21 = vld [vmem:[#allocation17 + $0xf8] sm:$0xf0]  ;;  %v13923_v59 = vor.u32 %v20173_v48, %v13922_v42  ;;  %v13898_v42 = vld [vmem:[#allocation17 + $0x10] sm:$0xf] }
 0x541   :  { %v14007_v55 = vor.u32 %v20187_v47, %v14004_v21  ;;  %v20171_v47 = vld [vmem:[#allocation17 + $0x5c] sm:$0xf] }
 0x542   :  { %v13940_v21 = vld [vmem:[#allocation17 + $0x78] sm:$0xf0] }
 0x543   :  { %4089 = vmatpush.bf16.msra.mxu0 %v14095_v0  ;;  %v13943_v48 = vor.u32 %v20171_v47, %v13940_v21  ;;  %v14810_v47 = vld [vmem:[#allocation16 + $0x540] sm:$0xf] }
 0x544   :  { %4076 = vmatpush.bf16.msrb.mxu3 %v14091_v3  ;;  %v20165_v3 = vld [vmem:[#allocation17 + $0x24] sm:$0xf0]  ;;  %v19308_v21 = vld [vmem:[#allocation16 + $0x55c] sm:$0xf0] }
 0x545   :  { %v13891_v18 = vor.u32 %v20165_v3, %v13890_v54  ;;  %v20445_v3 = vld [vmem:[#allocation11] ss:$0 sm:$0xff] }
 0x547   :  { %4090 = vmatpush.bf16.msra.mxu0 %v14063_v17 }
 0x548   :  { %4077 = vmatpush.bf16.msrb.mxu3 %v14059_v13  ;;  %v20207_v13 = vld [vmem:[#allocation17 + $0x174] sm:$0xf0] }
 0x549   :  { %v14067_v17 = vor.u32 %v20207_v13, %v14066_v12 }
 0x54b   :  { %4091 = vmatpush.bf16.msra.mxu0 %v14031_v50  ;;  %v20170_v50 = vld [vmem:[#allocation17 + $0x54] sm:$0xf] }
 0x5ae   :  { %v2586_v34 = vpop.f32.mrf.mxu1 }
 0x5af   :  { %2609 = vmatpush.msra.mxu2 %v2586_v34  ;;  %v14026_v34 = vld [vmem:[#allocation17 + $0x110] sm:$0xf] }
 0x5b0   :  { %13879 = vmatmul.msk.f32.vlgmr.msra.gmra.mxu2 %vm1126_vm5, %v21340_v20  ;;  %v14135_v20 = vor.u32 %v20219_v38, %v14132_v52  ;;  %v14027_v56 = vor.u32 %v20198_v24, %v14026_v34  ;;  %v14039_v38 = vor.u32 %v20195_v44, %v14036_v29  ;;  %v20186_v52 = vld [vmem:[#allocation17 + $0xd4] sm:$0xf]  ;;  %v14034_v34 = vld [vmem:[#allocation17 + $0x118] sm:$0xf] }
 0x5b1   :  { %4049 = vmatpush.bf16.msrb.mxu2 %v14115_v10  ;;  %v14068_v10 = vld [vmem:[#allocation17 + $0x178] sm:$0xf0]  ;;  %v13999_v51 = vor.u32 %v20186_v52, %v13996_v40  ;;  %v20199_v24 = vld [vmem:[#allocation17 + $0x134] sm:$0xf0] }
 0x5b2   :  { %4114 = vmatpush.bf16.msra.mxu1 %v14135_v20  ;;  %v14071_v35 = vor.u32 %v20203_v9, %v14068_v10  ;;  %4078 = vmatpush.bf16.msrb.mxu3 %v14027_v56  ;;  %v13962_v20 = vld [vmem:[#allocation17 + $0x90] sm:$0xf]  ;;  %v14098_v9 = vld [vmem:[#allocation17 + $0x198] sm:$0xf] }
 0x5b3   :  { %v13963_v0 = vor.u32 %v20182_v53, %v13962_v20  ;;  %4092 = vmatpush.bf16.msra.mxu0 %v13999_v51  ;;  %v20215_v10 = vld [vmem:[#allocation17 + $0x1b4] sm:$0xf0]  ;;  %v20174_v56 = vld [vmem:[#allocation17 + $0x6c] sm:$0xf0]  ;;  %v20162_v51 = vld [vmem:[#allocation17 + $0x14] sm:$0xf] }
 0x5b4   :  { %v14099_v11 = vor.u32 %v20215_v10, %v14098_v9  ;;  %v13970_v44 = vld [vmem:[#allocation17 + $0x98] sm:$0xf]  ;;  %v13900_v20 = vld [vmem:[#allocation17 + $0x30] sm:$0xf0]  ;;  %v19324_v9 = vld [vmem:[#allocation16 + $0x5dc] sm:$0xf0] }
 0x5b5   :  { %4050 = vmatpush.bf16.msrb.mxu2 %v14083_v32  ;;  %v13994_v32 = vld [vmem:[#allocation17 + $0xd0] sm:$0xf]  ;;  %v20183_v29 = vld [vmem:[#allocation17 + $0xb4] sm:$0xf0]  ;;  %v15130_v10 = vld [vmem:[#allocation16 + $0x7c0] sm:$0xf] }
 0x5b6   :  { %v2588_v62 = vpop.f32.mrf.mxu1  ;;  %4115 = vmatpush.bf16.msra.mxu1 %v14103_v6  ;;  %v13995_v49 = vor.u32 %v20190_v33, %v13994_v32  ;;  %v13971_v30 = vor.u32 %v20183_v29, %v13970_v44  ;;  %v13931_v32 = vor.u32 %v20174_v56, %v13930_v31  ;;  %v13932_v33 = vld [vmem:[#allocation17 + $0x70] sm:$0xf0]  ;;  %v20175_v52 = vld [vmem:[#allocation17 + $0x74] sm:$0xf0]  ;;  %v14842_v44 = vld [vmem:[#allocation16 + $0x580] sm:$0xf] }
 0x5b7   :  { %v20179_v62 = vld [vmem:[#allocation17 + $0x9c] sm:$0xf]  ;;  %v13935_v40 = vor.u32 %v20170_v50, %v13932_v33  ;;  %v19316_v29 = vld [vmem:[#allocation16 + $0x59c] sm:$0xf0] }
 0x5b8   :  { %4079 = vmatpush.bf16.msrb.mxu3 %v13995_v49  ;;  %v13975_v7 = vor.u32 %v20179_v62, %v13972_v63  ;;  %v20166_v49 = vld [vmem:[#allocation17 + $0x2c] sm:$0xf0]  ;;  %v13908_v63 = vld [vmem:[#allocation17 + $0x38] sm:$0xf0]  ;;  %v19380_v31 = vld [vmem:[#allocation16 + $0x79c] sm:$0xf0] }
 0x5b9   :  { %4051 = vmatpush.bf16.msrb.mxu2 %v14051_v57  ;;  %v20178_v57 = vld [vmem:[#allocation17 + $0x94] sm:$0xf]  ;;  %v13899_v53 = vor.u32 %v20166_v49, %v13898_v42  ;;  %v19180_v33 = vld [vmem:[#allocation16 + $0x15c] sm:$0xf0] }
 0x5ba   :  { %4116 = vmatpush.bf16.msra.mxu1 %v14071_v35  ;;  %v13967_v6 = vor.u32 %v20178_v57, %v13964_v58  ;;  %v14035_v35 = vor.u32 %v20199_v24, %v14034_v34  ;;  %v13906_v57 = vld [vmem:[#allocation17 + $0x18] sm:$0xf]  ;;  %v14330_v34 = vld [vmem:[#allocation16 + $0x180] sm:$0xf] }
 0x5bb   :  { %v20167_v58 = vld [vmem:[#allocation17 + $0x34] sm:$0xf0]  ;;  %v19188_v24 = vld [vmem:[#allocation16 + $0x19c] sm:$0xf0] }
 0x5bc   :  { %4080 = vmatpush.bf16.msrb.mxu3 %v13963_v0  ;;  %4093 = vmatpush.bf16.msra.mxu0 %v13967_v6  ;;  %v13907_v62 = vor.u32 %v20167_v58, %v13906_v57  ;;  %v14362_v0 = vld [vmem:[#allocation16 + $0x1c0] sm:$0xf]  ;;  %v14331_v56 = vor.u32 %v19188_v24, %v14330_v34 }
 0x5bd   :  { %4052 = vmatpush.bf16.msrb.mxu2 %v14019_v8  ;;  %v14131_v8 = vor.u32 %v20223_v4, %v14130_v5  ;;  %v19196_v5 = vld [vmem:[#allocation16 + $0x1dc] sm:$0xf0] }
 0x5be   :  { %4117 = vmatpush.bf16.msra.mxu1 %v14039_v38  ;;  %v13938_v38 = vld [vmem:[#allocation17 + $0x58] sm:$0xf]  ;;  %v14618_v6 = vld [vmem:[#allocation16 + $0x3c0] sm:$0xf]  ;;  %v14363_v13 = vor.u32 %v19196_v5, %v14362_v0 }
 0x5bf   :  { %v15066_v42 = vld [vmem:[#allocation16 + $0x740] sm:$0xf] }
 0x5c0   :  { %4081 = vmatpush.bf16.msrb.mxu3 %v13931_v32  ;;  %4094 = vmatpush.bf16.msra.mxu0 %v13935_v40  ;;  %v14298_v32 = vld [vmem:[#allocation16 + $0x140] sm:$0xf] }
 0x5c1   :  { %4053 = vmatpush.bf16.msrb.mxu2 %v13987_v39  ;;  %v14003_v39 = vor.u32 %v20191_v28, %v14002_v25  ;;  %v14586_v28 = vld [vmem:[#allocation16 + $0x380] sm:$0xf]  ;;  %v14299_v49 = vor.u32 %v19180_v33, %v14298_v32 }
 0x5c2   :  { %4118 = vmatpush.bf16.msra.mxu1 %v14007_v55  ;;  %v13903_v55 = vor.u32 %v20162_v51, %v13900_v20  ;;  %v14554_v40 = vld [vmem:[#allocation16 + $0x340] sm:$0xf] }
 0x5c3   :  { %v14266_v20 = vld [vmem:[#allocation16 + $0x100] sm:$0xf] }
 0x5c4   :  { %4082 = vmatpush.bf16.msrb.mxu3 %v13899_v53  ;;  %4095 = vmatpush.bf16.msra.mxu0 %v13903_v55  ;;  %v19172_v53 = vld [vmem:[#allocation16 + $0x11c] sm:$0xf0]  ;;  %v14811_v55 = vor.u32 %v19308_v21, %v14810_v47 }
 0x5c5   :  { %4054 = vmatpush.bf16.msrb.mxu2 %v13955_v16  ;;  %v13939_v16 = vor.u32 %v20175_v52, %v13938_v38  ;;  %v14843_v38 = vor.u32 %v19316_v29, %v14842_v44  ;;  %v14522_v58 = vld [vmem:[#allocation16 + $0x300] sm:$0xf]  ;;  %v14267_v0 = vor.u32 %v19172_v53, %v14266_v20 }
 0x5c6   :  { %4119 = vmatpush.bf16.msra.mxu1 %v13975_v7  ;;  %v19260_v7 = vld [vmem:[#allocation16 + $0x3dc] sm:$0xf0] }
 0x5c7   :  { %v14458_v44 = vld [vmem:[#allocation16 + $0x280] sm:$0xf] }
 0x5c8   :  { %v19220_v29 = vld [vmem:[#allocation16 + $0x29c] sm:$0xf0] }
 0x5c9   :  { %4055 = vmatpush.bf16.msrb.mxu2 %v13923_v59  ;;  %v20163_v59 = vld [vmem:[#allocation17 + $0x1c] sm:$0xf]  ;;  %v14459_v33 = vor.u32 %v19220_v29, %v14458_v44  ;;  %v14426_v47 = vld [vmem:[#allocation16 + $0x240] sm:$0xf] }
 0x5ca   :  { %4120 = vmatpush.bf16.msra.mxu1 %v13943_v48  ;;  %v13911_v54 = vor.u32 %v20163_v59, %v13908_v63  ;;  %v19372_v48 = vld [vmem:[#allocation16 + $0x75c] sm:$0xf0] }
 0x5cb   :  { %v15067_v57 = vor.u32 %v19372_v48, %v15066_v42  ;;  %v19236_v59 = vld [vmem:[#allocation16 + $0x31c] sm:$0xf0] }
 0x5cc   :  { %v19300_v63 = vld [vmem:[#allocation16 + $0x51c] sm:$0xf0]  ;;  %v14523_v5 = vor.u32 %v19236_v59, %v14522_v58 }
 0x5cd   :  { %4056 = vmatpush.bf16.msrb.mxu2 %v13891_v18  ;;  %v14874_v18 = vld [vmem:[#allocation16 + $0x5c0] sm:$0xf] }
 0x5ce   :  { %4121 = vmatpush.bf16.msra.mxu1 %v13911_v54  ;;  %v15034_v54 = vld [vmem:[#allocation16 + $0x700] sm:$0xf] }
 0x5cf   :  { %v19212_v21 = vld [vmem:[#allocation16 + $0x25c] sm:$0xf0] }
 0x5d0   :  { %v14682_v42 = vld [vmem:[#allocation16 + $0x440] sm:$0xf]  ;;  %v14427_v53 = vor.u32 %v19212_v21, %v14426_v47 }
 0x5d1   :  { %4101 = vmatpush.bf16.msra.mxu2 %v14131_v8  ;;  %v19276_v48 = vld [vmem:[#allocation16 + $0x45c] sm:$0xf0] }
 0x5d2   :  { %v14138_v20 = vld [vmem:[#allocation16] sm:$0xf]  ;;  %v14683_v59 = vor.u32 %v19276_v48, %v14682_v42 }
 0x5d3   :  { %v19204_v58 = vld [vmem:[#allocation16 + $0x21c] sm:$0xf0] }
 0x5d4   :  { %v15610_v29 = vld [vmem:[#allocation16 + $0xb80] sm:$0xf] }
 0x5d5   :  { %4102 = vmatpush.bf16.msra.mxu2 %v14099_v11  ;;  %v19388_v11 = vld [vmem:[#allocation16 + $0x7dc] sm:$0xf0] }
 0x5d6   :  { %v15131_v25 = vor.u32 %v19388_v11, %v15130_v10  ;;  %v14746_v10 = vld [vmem:[#allocation16 + $0x4c0] sm:$0xf] }
 0x5d7   :  { %v19292_v11 = vld [vmem:[#allocation16 + $0x4dc] sm:$0xf0] }
 0x5d8   :  { %v15578_v21 = vld [vmem:[#allocation16 + $0xb40] sm:$0xf] }
 0x5d9   :  { %4103 = vmatpush.bf16.msra.mxu2 %v14067_v17  ;;  %v14619_v17 = vor.u32 %v19260_v7, %v14618_v6  ;;  %v19164_v6 = vld [vmem:[#allocation16 + $0xdc] sm:$0xf0] }
 0x5da   :  { %v19500_v42 = vld [vmem:[#allocation16 + $0xb5c] sm:$0xf0] }
 0x5db   :  { %v15834_v48 = vld [vmem:[#allocation16 + $0xd40] sm:$0xf] }
 0x5dd   :  { %4104 = vmatpush.bf16.msra.mxu2 %v14035_v35  ;;  %v14875_v35 = vor.u32 %v19324_v9, %v14874_v18  ;;  %v19228_v9 = vld [vmem:[#allocation16 + $0x2dc] sm:$0xf0] }
 0x5e1   :  { %4105 = vmatpush.bf16.msra.mxu2 %v14003_v39  ;;  %v19252_v39 = vld [vmem:[#allocation16 + $0x39c] sm:$0xf0] }
 0x5e2   :  { %v14587_v50 = vor.u32 %v19252_v39, %v14586_v28  ;;  %v14747_v28 = vor.u32 %v19292_v11, %v14746_v10  ;;  %v19580_v10 = vld [vmem:[#allocation16 + $0xddc] sm:$0xf0] }
 0x5e3   :  { %v16154_v11 = vld [vmem:[#allocation16 + $0xfc0] sm:$0xf] }
 0x5e5   :  { %4106 = vmatpush.bf16.msra.mxu2 %v13971_v30  ;;  %v15098_v30 = vld [vmem:[#allocation16 + $0x780] sm:$0xf] }
 0x5e6   :  { %v15099_v52 = vor.u32 %v19380_v31, %v15098_v30  ;;  %v14714_v30 = vld [vmem:[#allocation16 + $0x480] sm:$0xf] }
 0x5e7   :  { %v19284_v31 = vld [vmem:[#allocation16 + $0x49c] sm:$0xf0] }
 0x5e9   :  { %4107 = vmatpush.bf16.msra.mxu2 %v13939_v16  ;;  %v19244_v16 = vld [vmem:[#allocation16 + $0x35c] sm:$0xf0] }
 0x5ea   :  { %v14555_v51 = vor.u32 %v19244_v16, %v14554_v40  ;;  %v14715_v40 = vor.u32 %v19284_v31, %v14714_v30  ;;  %v19508_v30 = vld [vmem:[#allocation16 + $0xb9c] sm:$0xf0] }
 0x5eb   :  { %v15866_v31 = vld [vmem:[#allocation16 + $0xd80] sm:$0xf] }
 0x5ed   :  { %4108 = vmatpush.bf16.msra.mxu2 %v13907_v62  ;;  %v14778_v62 = vld [vmem:[#allocation16 + $0x500] sm:$0xf] }
 0x5ee   :  { %v14779_v7 = vor.u32 %v19300_v63, %v14778_v62  ;;  %v14650_v63 = vld [vmem:[#allocation16 + $0x400] sm:$0xf] }
 0x633   :  { %v2611_v4 = vpop.f32.mrf.mxu2 }
 0x634   :  { %v2612_v8 = vadd.f32 %v20445_v3, %v2611_v4  ;;  %v19364_v3 = vld [vmem:[#allocation16 + $0x71c] sm:$0xf0] }
 0x635   :  { %v14234_v4 = vld [vmem:[#allocation16 + $0xc0] sm:$0xf]  ;;  %v15035_v18 = vor.u32 %v19364_v3, %v15034_v54 }
 0x636   :  { %v21347_v12 = vpack.c.bf16 %v2612_v8, %v2612_v8  ;;  %v14490_v8 = vld [vmem:[#allocation16 + $0x2c0] sm:$0xf]  ;;  %v14235_v34 = vor.u32 %v19164_v6, %v14234_v4 }
 0x637   :  { %v14491_v24 = vor.u32 %v19228_v9, %v14490_v8  ;;  %v19268_v54 = vld [vmem:[#allocation16 + $0x41c] sm:$0xf0] }
 0x638   :  { %4031 = vmatmul.bf16.vlgmr.msra.gmra.mxu3 %v21347_v12  ;;  %4044 = vmatmul.bf16.vlgmr.msrb.gmra.mxu0 %v21347_v12  ;;  %v14906_v3 = vld [vmem:[#allocation16 + $0x600] sm:$0xf] }
 0x639   :  { %4057 = vmatmul.bf16.vlgmr.msrb.gmra.mxu2 %v21347_v12  ;;  %4070 = vmatmul.bf16.vlgmr.msrb.gmra.mxu1 %v21347_v12  ;;  %v19452_v4 = vld [vmem:[#allocation16 + $0x9dc] sm:$0xf0] }
 0x63a   :  { %9247 = vmatpush.bf16.msra.mxu3 %v14363_v13  ;;  %9260 = vmatpush.bf16.msrb.mxu0 %v14619_v17  ;;  %v15002_v13 = vld [vmem:[#allocation16 + $0x6c0] sm:$0xf] }
 0x63b   :  { %9273 = vmatpush.bf16.msrb.mxu2 %v14875_v35  ;;  %9286 = vmatpush.bf16.msrb.mxu1 %v15131_v25  ;;  %v19356_v17 = vld [vmem:[#allocation16 + $0x6dc] sm:$0xf0] }
 0x63c   :  { %v14202_v35 = vld [vmem:[#allocation16 + $0x80] sm:$0xf]  ;;  %v15003_v39 = vor.u32 %v19356_v17, %v15002_v13  ;;  %v14651_v17 = vor.u32 %v19268_v54, %v14650_v63 }
 0x63d   :  { %v19156_v25 = vld [vmem:[#allocation16 + $0x9c] sm:$0xf0] }
 0x63e   :  { %9248 = vmatpush.bf16.msra.mxu3 %v14331_v56  ;;  %9261 = vmatpush.bf16.msrb.mxu0 %v14587_v50  ;;  %v14970_v56 = vld [vmem:[#allocation16 + $0x680] sm:$0xf]  ;;  %v14203_v32 = vor.u32 %v19156_v25, %v14202_v35 }
 0x63f   :  { %9274 = vmatpush.bf16.msrb.mxu2 %v14843_v38  ;;  %9287 = vmatpush.bf16.msrb.mxu1 %v15099_v52  ;;  %v19348_v50 = vld [vmem:[#allocation16 + $0x69c] sm:$0xf0] }
 0x640   :  { %v14170_v38 = vld [vmem:[#allocation16 + $0x40] sm:$0xf]  ;;  %v14971_v16 = vor.u32 %v19348_v50, %v14970_v56 }
 0x641   :  { %v19148_v52 = vld [vmem:[#allocation16 + $0x5c] sm:$0xf0] }
 0x642   :  { %9249 = vmatpush.bf16.msra.mxu3 %v14299_v49  ;;  %9262 = vmatpush.bf16.msrb.mxu0 %v14555_v51  ;;  %v14938_v49 = vld [vmem:[#allocation16 + $0x640] sm:$0xf] }
 0x643   :  { %9275 = vmatpush.bf16.msrb.mxu2 %v14811_v55  ;;  %9288 = vmatpush.bf16.msrb.mxu1 %v15067_v57  ;;  %v19340_v51 = vld [vmem:[#allocation16 + $0x65c] sm:$0xf0] }
 0x644   :  { %v19140_v55 = vld [vmem:[#allocation16 + $0x1c] sm:$0xf0]  ;;  %v14939_v62 = vor.u32 %v19340_v51, %v14938_v49 }
 0x645   :  { %v14394_v57 = vld [vmem:[#allocation16 + $0x200] sm:$0xf]  ;;  %v14139_v8 = vor.u32 %v19140_v55, %v14138_v20 }
 0x646   :  { %9250 = vmatpush.bf16.msra.mxu3 %v14267_v0  ;;  %9263 = vmatpush.bf16.msrb.mxu0 %v14523_v5  ;;  %v19332_v0 = vld [vmem:[#allocation16 + $0x61c] sm:$0xf0]  ;;  %v14395_v9 = vor.u32 %v19204_v58, %v14394_v57 }
 0x647   :  { %9276 = vmatpush.bf16.msrb.mxu2 %v14779_v7  ;;  %9289 = vmatpush.bf16.msrb.mxu1 %v15035_v18  ;;  %v15386_v5 = vld [vmem:[#allocation16 + $0x9c0] sm:$0xf] }
 0x648   :  { %4083 = vmatmul.bf16.vlgmr.msrb.gmra.mxu3 %v21347_v12  ;;  %4096 = vmatmul.bf16.vlgmr.msra.gmra.mxu0 %v21347_v12  ;;  %v15642_v6 = vld [vmem:[#allocation16 + $0xbc0] sm:$0xf] }
 0x649   :  { %4109 = vmatmul.bf16.vlgmr.msra.gmra.mxu2 %v21347_v12  ;;  %4122 = vmatmul.bf16.vlgmr.msra.gmra.mxu1 %v21347_v12  ;;  %v14171_v12 = vor.u32 %v19148_v52, %v14170_v38  ;;  %v19516_v7 = vld [vmem:[#allocation16 + $0xbdc] sm:$0xf0]  ;;  %v15611_v38 = vor.u32 %v19508_v30, %v15610_v29 }
 0x64a   :  { %9251 = vmatpush.bf16.msra.mxu3 %v14235_v34  ;;  %9264 = vmatpush.bf16.msrb.mxu0 %v14491_v24  ;;  %v15898_v18 = vld [vmem:[#allocation16 + $0xdc0] sm:$0xf]  ;;  %v14907_v34 = vor.u32 %v19332_v0, %v14906_v3  ;;  %v15387_v24 = vor.u32 %v19452_v4, %v15386_v5  ;;  %v15643_v35 = vor.u32 %v19516_v7, %v15642_v6 }
 0x64b   :  { %9277 = vmatpush.bf16.msrb.mxu2 %v14747_v28  ;;  %9290 = vmatpush.bf16.msrb.mxu1 %v15003_v39  ;;  %v19644_v13 = vld [vmem:[#allocation16 + $0xfdc] sm:$0xf0]  ;;  %v15899_v39 = vor.u32 %v19580_v10, %v15898_v18 }
 0x64c   :  { %v15354_v25 = vld [vmem:[#allocation16 + $0x980] sm:$0xf]  ;;  %v16155_v44 = vor.u32 %v19644_v13, %v16154_v11 }
 0x64d   :  { %v19444_v28 = vld [vmem:[#allocation16 + $0x99c] sm:$0xf0] }
 0x64e   :  { %9252 = vmatpush.bf16.msra.mxu3 %v14203_v32  ;;  %9265 = vmatpush.bf16.msrb.mxu0 %v14459_v33  ;;  %v19572_v56 = vld [vmem:[#allocation16 + $0xd9c] sm:$0xf0]  ;;  %v15355_v33 = vor.u32 %v19444_v28, %v15354_v25 }
 0x64f   :  { %9278 = vmatpush.bf16.msrb.mxu2 %v14715_v40  ;;  %9291 = vmatpush.bf16.msrb.mxu1 %v14971_v16  ;;  %v16122_v50 = vld [vmem:[#allocation16 + $0xf80] sm:$0xf]  ;;  %v15867_v16 = vor.u32 %v19572_v56, %v15866_v31 }
 0x650   :  { %v19636_v32 = vld [vmem:[#allocation16 + $0xf9c] sm:$0xf0] }
 0x651   :  { %v15322_v52 = vld [vmem:[#allocation16 + $0x940] sm:$0xf]  ;;  %v16123_v47 = vor.u32 %v19636_v32, %v16122_v50 }
 0x652   :  { %9253 = vmatpush.bf16.msra.mxu3 %v14171_v12  ;;  %9266 = vmatpush.bf16.msrb.mxu0 %v14427_v53  ;;  %v19436_v40 = vld [vmem:[#allocation16 + $0x95c] sm:$0xf0]  ;;  %v15579_v53 = vor.u32 %v19500_v42, %v15578_v21 }
 0x653   :  { %9279 = vmatpush.bf16.msrb.mxu2 %v14683_v59  ;;  %9292 = vmatpush.bf16.msrb.mxu1 %v14939_v62  ;;  %v19564_v49 = vld [vmem:[#allocation16 + $0xd5c] sm:$0xf0]  ;;  %v15323_v12 = vor.u32 %v19436_v40, %v15322_v52 }
 0x654   :  { %v16090_v51 = vld [vmem:[#allocation16 + $0xf40] sm:$0xf]  ;;  %v15835_v58 = vor.u32 %v19564_v49, %v15834_v48 }
 0x655   :  { %v19628_v20 = vld [vmem:[#allocation16 + $0xf5c] sm:$0xf0] }
 0x656   :  { %9254 = vmatpush.bf16.msra.mxu3 %v14139_v8  ;;  %9267 = vmatpush.bf16.msrb.mxu0 %v14395_v9  ;;  %v15290_v55 = vld [vmem:[#allocation16 + $0x900] sm:$0xf]  ;;  %v16091_v59 = vor.u32 %v19628_v20, %v16090_v51 }
 0x657   :  { %9280 = vmatpush.bf16.msrb.mxu2 %v14651_v17  ;;  %9293 = vmatpush.bf16.msrb.mxu1 %v14907_v34  ;;  %v19428_v57 = vld [vmem:[#allocation16 + $0x91c] sm:$0xf0] }
 0x658   :  { %v15546_v62 = vld [vmem:[#allocation16 + $0xb00] sm:$0xf]  ;;  %v15291_v4 = vor.u32 %v19428_v57, %v15290_v55 }
 0x659   :  { %9255 = vmatmul.bf16.vlgmr.msra.gmra.mxu3 %v21257_v14  ;;  %9268 = vmatmul.bf16.vlgmr.msrb.gmra.mxu0 %v21261_v15  ;;  %v19492_v63 = vld [vmem:[#allocation16 + $0xb1c] sm:$0xf0] }
 0x65a   :  { %9299 = vmatpush.bf16.msrb.mxu3 %v15387_v24  ;;  %9312 = vmatpush.bf16.msra.mxu0 %v15643_v35  ;;  %v15802_v54 = vld [vmem:[#allocation16 + $0xd00] sm:$0xf]  ;;  %v15547_v6 = vor.u32 %v19492_v63, %v15546_v62 }
 0x65b   :  { %9325 = vmatpush.bf16.msra.mxu2 %v15899_v39  ;;  %9338 = vmatpush.bf16.msra.mxu1 %v16155_v44  ;;  %v19556_v3 = vld [vmem:[#allocation16 + $0xd1c] sm:$0xf0] }
 0x65c   :  { %9281 = vmatmul.bf16.vlgmr.msrb.gmra.mxu2 %v21265_v22  ;;  %9294 = vmatmul.bf16.vlgmr.msrb.gmra.mxu1 %v21269_v23  ;;  %v16058_v0 = vld [vmem:[#allocation16 + $0xf00] sm:$0xf]  ;;  %v15803_v8 = vor.u32 %v19556_v3, %v15802_v54 }
 0x65d   :  { %v19620_v5 = vld [vmem:[#allocation16 + $0xf1c] sm:$0xf0] }
 0x65e   :  { %9300 = vmatpush.bf16.msrb.mxu3 %v15355_v33  ;;  %9313 = vmatpush.bf16.msra.mxu0 %v15611_v38  ;;  %v15258_v7 = vld [vmem:[#allocation16 + $0x8c0] sm:$0xf]  ;;  %v16059_v9 = vor.u32 %v19620_v5, %v16058_v0 }
 0x65f   :  { %9326 = vmatpush.bf16.msra.mxu2 %v15867_v16  ;;  %9339 = vmatpush.bf16.msra.mxu1 %v16123_v47  ;;  %v19420_v18 = vld [vmem:[#allocation16 + $0x8dc] sm:$0xf0] }
 0x660   :  { %v15514_v10 = vld [vmem:[#allocation16 + $0xac0] sm:$0xf]  ;;  %v15259_v35 = vor.u32 %v19420_v18, %v15258_v7 }
 0x661   :  { %v19484_v11 = vld [vmem:[#allocation16 + $0xadc] sm:$0xf0] }
 0x662   :  { %9301 = vmatpush.bf16.msrb.mxu3 %v15323_v12  ;;  %9314 = vmatpush.bf16.msra.mxu0 %v15579_v53  ;;  %v15770_v13 = vld [vmem:[#allocation16 + $0xcc0] sm:$0xf]  ;;  %v15515_v25 = vor.u32 %v19484_v11, %v15514_v10 }
 0x663   :  { %9327 = vmatpush.bf16.msra.mxu2 %v15835_v58  ;;  %9340 = vmatpush.bf16.msra.mxu1 %v16091_v59  ;;  %v19548_v17 = vld [vmem:[#allocation16 + $0xcdc] sm:$0xf0] }
 0x664   :  { %v16026_v34 = vld [vmem:[#allocation16 + $0xec0] sm:$0xf]  ;;  %v15771_v44 = vor.u32 %v19548_v17, %v15770_v13 }
 0x665   :  { %v19612_v24 = vld [vmem:[#allocation16 + $0xedc] sm:$0xf0] }
 0x666   :  { %9302 = vmatpush.bf16.msrb.mxu3 %v15291_v4  ;;  %9315 = vmatpush.bf16.msra.mxu0 %v15547_v6  ;;  %v15226_v28 = vld [vmem:[#allocation16 + $0x880] sm:$0xf]  ;;  %v16027_v29 = vor.u32 %v19612_v24, %v16026_v34 }
 0x667   :  { %v19412_v39 = vld [vmem:[#allocation16 + $0x89c] sm:$0xf0]  ;;  %9328 = vmatpush.bf16.msra.mxu2 %v15803_v8  ;;  %9341 = vmatpush.bf16.msra.mxu1 %v16059_v9 }
 0x668   :  { %v15482_v30 = vld [vmem:[#allocation16 + $0xa80] sm:$0xf]  ;;  %v15227_v38 = vor.u32 %v19412_v39, %v15226_v28 }
 0x669   :  { %v19476_v31 = vld [vmem:[#allocation16 + $0xa9c] sm:$0xf0] }
 0x66a   :  { %v15738_v56 = vld [vmem:[#allocation16 + $0xc80] sm:$0xf]  ;;  %9303 = vmatpush.bf16.msrb.mxu3 %v15259_v35  ;;  %9316 = vmatpush.bf16.msra.mxu0 %v15515_v25  ;;  %v15483_v52 = vor.u32 %v19476_v31, %v15482_v30 }
 0x66b   :  { %v19540_v50 = vld [vmem:[#allocation16 + $0xc9c] sm:$0xf0]  ;;  %9329 = vmatpush.bf16.msra.mxu2 %v15771_v44  ;;  %9342 = vmatpush.bf16.msra.mxu1 %v16027_v29 }
 0x66c   :  { %v15994_v32 = vld [vmem:[#allocation16 + $0xe80] sm:$0xf]  ;;  %v15739_v47 = vor.u32 %v19540_v50, %v15738_v56 }
 0x66d   :  { %v19604_v33 = vld [vmem:[#allocation16 + $0xe9c] sm:$0xf0] }
 0x66e   :  { %v15194_v40 = vld [vmem:[#allocation16 + $0x840] sm:$0xf]  ;;  %v15995_v21 = vor.u32 %v19604_v33, %v15994_v32  ;;  %9304 = vmatpush.bf16.msrb.mxu3 %v15227_v38  ;;  %9317 = vmatpush.bf16.msra.mxu0 %v15483_v52 }
 0x66f   :  { %v19404_v16 = vld [vmem:[#allocation16 + $0x85c] sm:$0xf0]  ;;  %9330 = vmatpush.bf16.msra.mxu2 %v15739_v47 }
 0x670   :  { %v15450_v42 = vld [vmem:[#allocation16 + $0xa40] sm:$0xf]  ;;  %v15195_v55 = vor.u32 %v19404_v16, %v15194_v40  ;;  %9343 = vmatpush.bf16.msra.mxu1 %v15995_v21 }
 0x671   :  { %v19468_v48 = vld [vmem:[#allocation16 + $0xa5c] sm:$0xf0] }
 0x672   :  { %v15706_v49 = vld [vmem:[#allocation16 + $0xc40] sm:$0xf]  ;;  %v15451_v57 = vor.u32 %v19468_v48, %v15450_v42  ;;  %9305 = vmatpush.bf16.msrb.mxu3 %v15195_v55 }
 0x673   :  { %v19532_v51 = vld [vmem:[#allocation16 + $0xc5c] sm:$0xf0] }
 0x674   :  { %v15962_v20 = vld [vmem:[#allocation16 + $0xe40] sm:$0xf]  ;;  %v15707_v63 = vor.u32 %v19532_v51, %v15706_v49  ;;  %9318 = vmatpush.bf16.msra.mxu0 %v15451_v57 }
 0x675   :  { %v19596_v12 = vld [vmem:[#allocation16 + $0xe5c] sm:$0xf0] }
 0x676   :  { %v15162_v53 = vld [vmem:[#allocation16 + $0x800] sm:$0xf]  ;;  %v15963_v54 = vor.u32 %v19596_v12, %v15962_v20  ;;  %9331 = vmatpush.bf16.msra.mxu2 %v15707_v63 }
 0x677   :  { %v19396_v58 = vld [vmem:[#allocation16 + $0x81c] sm:$0xf0] }
 0x678   :  { %v15418_v59 = vld [vmem:[#allocation16 + $0xa00] sm:$0xf]  ;;  %v15163_v10 = vor.u32 %v19396_v58, %v15162_v53  ;;  %9344 = vmatpush.bf16.msra.mxu1 %v15963_v54 }
 0x679   :  { %v19460_v62 = vld [vmem:[#allocation16 + $0xa1c] sm:$0xf0] }
 0x67a   :  { %v15674_v3 = vld [vmem:[#allocation16 + $0xc00] sm:$0xf]  ;;  %v15419_v11 = vor.u32 %v19460_v62, %v15418_v59  ;;  %9306 = vmatpush.bf16.msrb.mxu3 %v15163_v10 }
 0x67b   :  { %v19524_v0 = vld [vmem:[#allocation16 + $0xc1c] sm:$0xf0] }
 0x67c   :  { %v15930_v5 = vld [vmem:[#allocation16 + $0xe00] sm:$0xf]  ;;  %v15675_v24 = vor.u32 %v19524_v0, %v15674_v3  ;;  %9319 = vmatpush.bf16.msra.mxu0 %v15419_v11 }
 0x67d   :  { %v19588_v4 = vld [vmem:[#allocation16 + $0xe1c] sm:$0xf0]  ;;  %9307 = vmatmul.bf16.vlgmr.msrb.gmra.mxu3 %v21277_v60 }
 0x67e   :  { %v16410_v6 = vld [vmem:[#allocation16 + $0x11c0] sm:$0xf]  ;;  %v15931_v35 = vor.u32 %v19588_v4, %v15930_v5  ;;  %9332 = vmatpush.bf16.msra.mxu2 %v15675_v24 }
 0x67f   :  { %v19708_v7 = vld [vmem:[#allocation16 + $0x11dc] sm:$0xf0]  ;;  %9320 = vmatmul.bf16.vlgmr.msra.gmra.mxu0 %v21281_v61 }
 0x680   :  { %v16666_v18 = vld [vmem:[#allocation16 + $0x13c0] sm:$0xf]  ;;  %v16411_v25 = vor.u32 %v19708_v7, %v16410_v6  ;;  %9345 = vmatpush.bf16.msra.mxu1 %v15931_v35 }
 0x681   :  { %v19772_v8 = vld [vmem:[#allocation16 + $0x13dc] sm:$0xf0]  ;;  %9333 = vmatmul.bf16.vlgmr.msra.gmra.mxu2 %v21285_v1 }
 0x682   :  { %v16922_v9 = vld [vmem:[#allocation16 + $0x15c0] sm:$0xf]  ;;  %v16667_v28 = vor.u32 %v19772_v8, %v16666_v18  ;;  %9351 = vmatpush.bf16.msra.mxu3 %v16411_v25 }
 0x683   :  { %v19836_v13 = vld [vmem:[#allocation16 + $0x15dc] sm:$0xf0]  ;;  %9346 = vmatmul.bf16.vlgmr.msra.gmra.mxu1 %v21289_v2 }
 0x684   :  { %v17178_v17 = vld [vmem:[#allocation16 + $0x17c0] sm:$0xf]  ;;  %v16923_v29 = vor.u32 %v19836_v13, %v16922_v9  ;;  %9364 = vmatpush.bf16.msrb.mxu0 %v16667_v28 }
 0x685   :  { %v19900_v34 = vld [vmem:[#allocation16 + $0x17dc] sm:$0xf0] }
 0x686   :  { %v16378_v39 = vld [vmem:[#allocation16 + $0x1180] sm:$0xf]  ;;  %v17179_v30 = vor.u32 %v19900_v34, %v17178_v17  ;;  %9377 = vmatpush.bf16.msrb.mxu2 %v16923_v29 }
 0x687   :  { %v19700_v44 = vld [vmem:[#allocation16 + $0x119c] sm:$0xf0] }
 0x688   :  { %v16634_v31 = vld [vmem:[#allocation16 + $0x1380] sm:$0xf]  ;;  %v16379_v52 = vor.u32 %v19700_v44, %v16378_v39  ;;  %9390 = vmatpush.bf16.msrb.mxu1 %v17179_v30 }
 0x689   :  { %v19764_v56 = vld [vmem:[#allocation16 + $0x139c] sm:$0xf0] }
 0x68a   :  { %v16890_v50 = vld [vmem:[#allocation16 + $0x1580] sm:$0xf]  ;;  %v16635_v40 = vor.u32 %v19764_v56, %v16634_v31  ;;  %9352 = vmatpush.bf16.msra.mxu3 %v16379_v52 }
 0x68b   :  { %v19828_v32 = vld [vmem:[#allocation16 + $0x159c] sm:$0xf0] }
 0x68c   :  { %v17146_v33 = vld [vmem:[#allocation16 + $0x1780] sm:$0xf]  ;;  %v16891_v21 = vor.u32 %v19828_v32, %v16890_v50  ;;  %9365 = vmatpush.bf16.msrb.mxu0 %v16635_v40 }
 0x68d   :  { %v19892_v38 = vld [vmem:[#allocation16 + $0x179c] sm:$0xf0] }
 0x68e   :  { %v16346_v16 = vld [vmem:[#allocation16 + $0x1140] sm:$0xf]  ;;  %v17147_v42 = vor.u32 %v19892_v38, %v17146_v33  ;;  %9378 = vmatpush.bf16.msrb.mxu2 %v16891_v21 }
 0x68f   :  { %v19692_v47 = vld [vmem:[#allocation16 + $0x115c] sm:$0xf0] }
 0x690   :  { %v16602_v48 = vld [vmem:[#allocation16 + $0x1340] sm:$0xf]  ;;  %v16347_v55 = vor.u32 %v19692_v47, %v16346_v16  ;;  %9391 = vmatpush.bf16.msrb.mxu1 %v17147_v42 }
 0x691   :  { %v19756_v49 = vld [vmem:[#allocation16 + $0x135c] sm:$0xf0] }
 0x692   :  { %v16858_v51 = vld [vmem:[#allocation16 + $0x1540] sm:$0xf]  ;;  %v16603_v57 = vor.u32 %v19756_v49, %v16602_v48  ;;  %9353 = vmatpush.bf16.msra.mxu3 %v16347_v55 }
 0x693   :  { %v19820_v20 = vld [vmem:[#allocation16 + $0x155c] sm:$0xf0] }
 0x694   :  { %v17114_v12 = vld [vmem:[#allocation16 + $0x1740] sm:$0xf]  ;;  %v16859_v62 = vor.u32 %v19820_v20, %v16858_v51  ;;  %9366 = vmatpush.bf16.msrb.mxu0 %v16603_v57 }
 0x695   :  { %v19884_v53 = vld [vmem:[#allocation16 + $0x175c] sm:$0xf0] }
 0x696   :  { %v16314_v58 = vld [vmem:[#allocation16 + $0x1100] sm:$0xf]  ;;  %v17115_v63 = vor.u32 %v19884_v53, %v17114_v12  ;;  %9379 = vmatpush.bf16.msrb.mxu2 %v16859_v62 }
 0x697   :  { %v19684_v59 = vld [vmem:[#allocation16 + $0x111c] sm:$0xf0] }
 0x698   :  { %v16570_v54 = vld [vmem:[#allocation16 + $0x1300] sm:$0xf]  ;;  %v16315_v7 = vor.u32 %v19684_v59, %v16314_v58  ;;  %9392 = vmatpush.bf16.msrb.mxu1 %v17115_v63 }
 0x699   :  { %v19748_v3 = vld [vmem:[#allocation16 + $0x131c] sm:$0xf0] }
 0x69a   :  { %v16826_v0 = vld [vmem:[#allocation16 + $0x1500] sm:$0xf]  ;;  %v16571_v18 = vor.u32 %v19748_v3, %v16570_v54  ;;  %9354 = vmatpush.bf16.msra.mxu3 %v16315_v7 }
 0x69b   :  { %v19812_v5 = vld [vmem:[#allocation16 + $0x151c] sm:$0xf0] }
 0x69c   :  { %v17082_v4 = vld [vmem:[#allocation16 + $0x1700] sm:$0xf]  ;;  %v16827_v10 = vor.u32 %v19812_v5, %v16826_v0  ;;  %9367 = vmatpush.bf16.msrb.mxu0 %v16571_v18 }
 0x69d   :  { %v19876_v6 = vld [vmem:[#allocation16 + $0x171c] sm:$0xf0] }
 0x69e   :  { %v16282_v8 = vld [vmem:[#allocation16 + $0x10c0] sm:$0xf]  ;;  %v17083_v11 = vor.u32 %v19876_v6, %v17082_v4  ;;  %9380 = vmatpush.bf16.msrb.mxu2 %v16827_v10 }
 0x69f   :  { %v19676_v9 = vld [vmem:[#allocation16 + $0x10dc] sm:$0xf0] }
 0x6a0   :  { %v16538_v13 = vld [vmem:[#allocation16 + $0x12c0] sm:$0xf]  ;;  %v16283_v28 = vor.u32 %v19676_v9, %v16282_v8  ;;  %9393 = vmatpush.bf16.msrb.mxu1 %v17083_v11 }
 0x6a1   :  { %v19740_v17 = vld [vmem:[#allocation16 + $0x12dc] sm:$0xf0] }
 0x6a2   :  { %v16794_v34 = vld [vmem:[#allocation16 + $0x14c0] sm:$0xf]  ;;  %v16539_v39 = vor.u32 %v19740_v17, %v16538_v13  ;;  %9355 = vmatpush.bf16.msra.mxu3 %v16283_v28 }
 0x6a3   :  { %v19804_v24 = vld [vmem:[#allocation16 + $0x14dc] sm:$0xf0] }
 0x6a4   :  { %v17050_v35 = vld [vmem:[#allocation16 + $0x16c0] sm:$0xf]  ;;  %v16795_v30 = vor.u32 %v19804_v24, %v16794_v34  ;;  %9368 = vmatpush.bf16.msrb.mxu0 %v16539_v39 }
 0x6a5   :  { %v19868_v25 = vld [vmem:[#allocation16 + $0x16dc] sm:$0xf0] }
 0x6a6   :  { %v16250_v44 = vld [vmem:[#allocation16 + $0x1080] sm:$0xf]  ;;  %v17051_v31 = vor.u32 %v19868_v25, %v17050_v35  ;;  %9381 = vmatpush.bf16.msrb.mxu2 %v16795_v30 }
 0x6a7   :  { %v19668_v29 = vld [vmem:[#allocation16 + $0x109c] sm:$0xf0] }
 0x6a8   :  { %v16506_v56 = vld [vmem:[#allocation16 + $0x1280] sm:$0xf]  ;;  %v16251_v40 = vor.u32 %v19668_v29, %v16250_v44  ;;  %9394 = vmatpush.bf16.msrb.mxu1 %v17051_v31 }
 0x6a9   :  { %v19732_v50 = vld [vmem:[#allocation16 + $0x129c] sm:$0xf0] }
 0x6aa   :  { %v16762_v32 = vld [vmem:[#allocation16 + $0x1480] sm:$0xf]  ;;  %v16507_v16 = vor.u32 %v19732_v50, %v16506_v56  ;;  %9356 = vmatpush.bf16.msra.mxu3 %v16251_v40 }
 0x6ab   :  { %v19796_v33 = vld [vmem:[#allocation16 + $0x149c] sm:$0xf0] }
 0x6ac   :  { %v17018_v38 = vld [vmem:[#allocation16 + $0x1680] sm:$0xf]  ;;  %v16763_v42 = vor.u32 %v19796_v33, %v16762_v32  ;;  %9369 = vmatpush.bf16.msrb.mxu0 %v16507_v16 }
 0x6ad   :  { %v19860_v52 = vld [vmem:[#allocation16 + $0x169c] sm:$0xf0] }
 0x6ae   :  { %v16218_v47 = vld [vmem:[#allocation16 + $0x1040] sm:$0xf]  ;;  %v17019_v48 = vor.u32 %v19860_v52, %v17018_v38  ;;  %9382 = vmatpush.bf16.msrb.mxu2 %v16763_v42 }
 0x6af   :  { %v19660_v21 = vld [vmem:[#allocation16 + $0x105c] sm:$0xf0] }
 0x6b0   :  { %v16474_v49 = vld [vmem:[#allocation16 + $0x1240] sm:$0xf]  ;;  %v16219_v58 = vor.u32 %v19660_v21, %v16218_v47  ;;  %9395 = vmatpush.bf16.msrb.mxu1 %v17019_v48 }
 0x6b1   :  { %v19724_v51 = vld [vmem:[#allocation16 + $0x125c] sm:$0xf0] }
 0x6b2   :  { %v16730_v20 = vld [vmem:[#allocation16 + $0x1440] sm:$0xf]  ;;  %v16475_v59 = vor.u32 %v19724_v51, %v16474_v49  ;;  %9357 = vmatpush.bf16.msra.mxu3 %v16219_v58 }
 0x6b3   :  { %v19788_v12 = vld [vmem:[#allocation16 + $0x145c] sm:$0xf0] }
 0x6b4   :  { %v16986_v53 = vld [vmem:[#allocation16 + $0x1640] sm:$0xf]  ;;  %v16731_v3 = vor.u32 %v19788_v12, %v16730_v20  ;;  %9370 = vmatpush.bf16.msrb.mxu0 %v16475_v59 }
 0x6b5   :  { %v19852_v55 = vld [vmem:[#allocation16 + $0x165c] sm:$0xf0] }
 0x6b6   :  { %v16186_v57 = vld [vmem:[#allocation16 + $0x1000] sm:$0xf]  ;;  %v16987_v0 = vor.u32 %v19852_v55, %v16986_v53  ;;  %9383 = vmatpush.bf16.msrb.mxu2 %v16731_v3 }
 0x6b7   :  { %v19652_v62 = vld [vmem:[#allocation16 + $0x101c] sm:$0xf0] }
 0x6b8   :  { %v16442_v63 = vld [vmem:[#allocation16 + $0x1200] sm:$0xf]  ;;  %v16187_v13 = vor.u32 %v19652_v62, %v16186_v57  ;;  %9396 = vmatpush.bf16.msrb.mxu1 %v16987_v0 }
 0x6b9   :  { %v19716_v54 = vld [vmem:[#allocation16 + $0x121c] sm:$0xf0] }
 0x6ba   :  { %v16698_v5 = vld [vmem:[#allocation16 + $0x1400] sm:$0xf]  ;;  %v16443_v17 = vor.u32 %v19716_v54, %v16442_v63  ;;  %9358 = vmatpush.bf16.msra.mxu3 %v16187_v13 }
 0x6bb   :  { %v19780_v4 = vld [vmem:[#allocation16 + $0x141c] sm:$0xf0] }
 0x6bc   :  { %v16954_v6 = vld [vmem:[#allocation16 + $0x1600] sm:$0xf]  ;;  %v16699_v25 = vor.u32 %v19780_v4, %v16698_v5  ;;  %9371 = vmatpush.bf16.msrb.mxu0 %v16443_v17 }
 0x6bd   :  { %v19844_v7 = vld [vmem:[#allocation16 + $0x161c] sm:$0xf0]  ;;  %9359 = vmatmul.bf16.vlgmr.msra.gmra.mxu3 %v21297_v36 }
 0x6be   :  { %v17434_v18 = vld [vmem:[#allocation16 + $0x19c0] sm:$0xf]  ;;  %v16955_v28 = vor.u32 %v19844_v7, %v16954_v6  ;;  %9384 = vmatpush.bf16.msrb.mxu2 %v16699_v25 }
 0x6bf   :  { %v19964_v8 = vld [vmem:[#allocation16 + $0x19dc] sm:$0xf0]  ;;  %9372 = vmatmul.bf16.vlgmr.msrb.gmra.mxu0 %v21301_v37 }
 0x6c0   :  { %v17690_v9 = vld [vmem:[#allocation16 + $0x1bc0] sm:$0xf]  ;;  %v17435_v39 = vor.u32 %v19964_v8, %v17434_v18  ;;  %9397 = vmatpush.bf16.msrb.mxu1 %v16955_v28 }
 0x6c1   :  { %v20028_v10 = vld [vmem:[#allocation16 + $0x1bdc] sm:$0xf0]  ;;  %9385 = vmatmul.bf16.vlgmr.msrb.gmra.mxu2 %v21305_v41 }
 0x6c2   :  { %v17946_v11 = vld [vmem:[#allocation16 + $0x1dc0] sm:$0xf]  ;;  %v17691_v44 = vor.u32 %v20028_v10, %v17690_v9  ;;  %9403 = vmatpush.bf16.msrb.mxu3 %v17435_v39 }
 0x6c3   :  { %v20092_v34 = vld [vmem:[#allocation16 + $0x1ddc] sm:$0xf0]  ;;  %9398 = vmatmul.bf16.vlgmr.msrb.gmra.mxu1 %v21309_v46 }
 0x6c4   :  { %v18202_v24 = vld [vmem:[#allocation16 + $0x1fc0] sm:$0xf]  ;;  %v17947_v31 = vor.u32 %v20092_v34, %v17946_v11  ;;  %9416 = vmatpush.bf16.msra.mxu0 %v17691_v44 }
 0x6c5   :  { %v20156_v35 = vld [vmem:[#allocation16 + $0x1fdc] sm:$0xf0] }
 0x6c6   :  { %v17402_v29 = vld [vmem:[#allocation16 + $0x1980] sm:$0xf]  ;;  %v18203_v56 = vor.u32 %v20156_v35, %v18202_v24  ;;  %9429 = vmatpush.bf16.msra.mxu2 %v17947_v31 }
 0x6c7   :  { %v19956_v30 = vld [vmem:[#allocation16 + $0x199c] sm:$0xf0] }
 0x6c8   :  { %v17658_v50 = vld [vmem:[#allocation16 + $0x1b80] sm:$0xf]  ;;  %v17403_v16 = vor.u32 %v19956_v30, %v17402_v29  ;;  %9442 = vmatpush.bf16.msra.mxu1 %v18203_v56 }
 0x6c9   :  { %v20020_v32 = vld [vmem:[#allocation16 + $0x1b9c] sm:$0xf0] }
 0x6ca   :  { %v17914_v33 = vld [vmem:[#allocation16 + $0x1d80] sm:$0xf]  ;;  %v17659_v47 = vor.u32 %v20020_v32, %v17658_v50  ;;  %9404 = vmatpush.bf16.msrb.mxu3 %v17403_v16 }
 0x6cb   :  { %v20084_v38 = vld [vmem:[#allocation16 + $0x1d9c] sm:$0xf0] }
 0x6cc   :  { %v18170_v52 = vld [vmem:[#allocation16 + $0x1f80] sm:$0xf]  ;;  %v17915_v48 = vor.u32 %v20084_v38, %v17914_v33  ;;  %9417 = vmatpush.bf16.msra.mxu0 %v17659_v47 }
 0x6cd   :  { %v20148_v40 = vld [vmem:[#allocation16 + $0x1f9c] sm:$0xf0] }
 0x6ce   :  { %v17370_v21 = vld [vmem:[#allocation16 + $0x1940] sm:$0xf]  ;;  %v18171_v49 = vor.u32 %v20148_v40, %v18170_v52  ;;  %9430 = vmatpush.bf16.msra.mxu2 %v17915_v48 }
 0x6cf   :  { %v19948_v42 = vld [vmem:[#allocation16 + $0x195c] sm:$0xf0] }
 0x6d0   :  { %v17626_v51 = vld [vmem:[#allocation16 + $0x1b40] sm:$0xf]  ;;  %v17371_v58 = vor.u32 %v19948_v42, %v17370_v21  ;;  %9443 = vmatpush.bf16.msra.mxu1 %v18171_v49 }
 0x6d1   :  { %v20012_v20 = vld [vmem:[#allocation16 + $0x1b5c] sm:$0xf0] }
 0x6d2   :  { %v17882_v12 = vld [vmem:[#allocation16 + $0x1d40] sm:$0xf]  ;;  %v17627_v59 = vor.u32 %v20012_v20, %v17626_v51  ;;  %9405 = vmatpush.bf16.msrb.mxu3 %v17371_v58 }
 0x6d3   :  { %v20076_v53 = vld [vmem:[#allocation16 + $0x1d5c] sm:$0xf0] }
 0x6d4   :  { %v18138_v55 = vld [vmem:[#allocation16 + $0x1f40] sm:$0xf]  ;;  %v17883_v54 = vor.u32 %v20076_v53, %v17882_v12  ;;  %9418 = vmatpush.bf16.msra.mxu0 %v17627_v59 }
 0x6d5   :  { %v20140_v57 = vld [vmem:[#allocation16 + $0x1f5c] sm:$0xf0] }
 0x6d6   :  { %v17338_v62 = vld [vmem:[#allocation16 + $0x1900] sm:$0xf]  ;;  %v18139_v3 = vor.u32 %v20140_v57, %v18138_v55  ;;  %9431 = vmatpush.bf16.msra.mxu2 %v17883_v54 }
 0x6d7   :  { %v19940_v63 = vld [vmem:[#allocation16 + $0x191c] sm:$0xf0] }
 0x6d8   :  { %v17594_v0 = vld [vmem:[#allocation16 + $0x1b00] sm:$0xf]  ;;  %v17339_v8 = vor.u32 %v19940_v63, %v17338_v62  ;;  %9444 = vmatpush.bf16.msra.mxu1 %v18139_v3 }
 0x6d9   :  { %v20004_v5 = vld [vmem:[#allocation16 + $0x1b1c] sm:$0xf0] }
 0x6da   :  { %v17850_v4 = vld [vmem:[#allocation16 + $0x1d00] sm:$0xf]  ;;  %v17595_v9 = vor.u32 %v20004_v5, %v17594_v0  ;;  %9406 = vmatpush.bf16.msrb.mxu3 %v17339_v8 }
 0x6db   :  { %v20068_v6 = vld [vmem:[#allocation16 + $0x1d1c] sm:$0xf0] }
 0x6dc   :  { %v18106_v7 = vld [vmem:[#allocation16 + $0x1f00] sm:$0xf]  ;;  %v17851_v13 = vor.u32 %v20068_v6, %v17850_v4  ;;  %9419 = vmatpush.bf16.msra.mxu0 %v17595_v9  ;;  %v19192_v9 = vld [vmem:[#allocation16 + $0x1c4] sm:$0xf] }
 0x6dd   :  { %v20132_v18 = vld [vmem:[#allocation16 + $0x1f1c] sm:$0xf0] }
 0x6de   :  { %v17306_v10 = vld [vmem:[#allocation16 + $0x18c0] sm:$0xf]  ;;  %v18107_v17 = vor.u32 %v20132_v18, %v18106_v7  ;;  %9432 = vmatpush.bf16.msra.mxu2 %v17851_v13  ;;  %v14620_v13 = vld [vmem:[#allocation16 + $0x3e0] sm:$0xf0] }
 0x6df   :  { %v19932_v11 = vld [vmem:[#allocation16 + $0x18dc] sm:$0xf0] }
 0x6e0   :  { %v17562_v34 = vld [vmem:[#allocation16 + $0x1ac0] sm:$0xf]  ;;  %v17307_v44 = vor.u32 %v19932_v11, %v17306_v10  ;;  %9445 = vmatpush.bf16.msra.mxu1 %v18107_v17  ;;  %v14364_v10 = vld [vmem:[#allocation16 + $0x1e0] sm:$0xf0] }
 0x6e1   :  { %v19996_v24 = vld [vmem:[#allocation16 + $0x1adc] sm:$0xf0]  ;;  %v19256_v11 = vld [vmem:[#allocation16 + $0x3c4] sm:$0xf] }
 0x6e2   :  { %v17818_v35 = vld [vmem:[#allocation16 + $0x1cc0] sm:$0xf]  ;;  %v17563_v29 = vor.u32 %v19996_v24, %v17562_v34  ;;  %9407 = vmatpush.bf16.msrb.mxu3 %v17307_v44  ;;  %v19320_v17 = vld [vmem:[#allocation16 + $0x5c4] sm:$0xf] }
 0x6e3   :  { %v20060_v25 = vld [vmem:[#allocation16 + $0x1cdc] sm:$0xf0] }
 0x6e4   :  { %v18074_v28 = vld [vmem:[#allocation16 + $0x1ec0] sm:$0xf]  ;;  %v17819_v56 = vor.u32 %v20060_v25, %v17818_v35  ;;  %9420 = vmatpush.bf16.msra.mxu0 %v17563_v29  ;;  %v14876_v35 = vld [vmem:[#allocation16 + $0x5e0] sm:$0xf0]  ;;  %v14367_v29 = vor.u32 %v19192_v9, %v14364_v10 }
 0x6e5   :  { %v20124_v39 = vld [vmem:[#allocation16 + $0x1edc] sm:$0xf0]  ;;  %v19384_v25 = vld [vmem:[#allocation16 + $0x7c4] sm:$0xf] }
 0x6e6   :  { %v17274_v30 = vld [vmem:[#allocation16 + $0x1880] sm:$0xf]  ;;  %v18075_v50 = vor.u32 %v20124_v39, %v18074_v28  ;;  %9433 = vmatpush.bf16.msra.mxu2 %v17819_v56  ;;  %v15132_v28 = vld [vmem:[#allocation16 + $0x7e0] sm:$0xf0] }
 0x6e7   :  { %v19924_v31 = vld [vmem:[#allocation16 + $0x189c] sm:$0xf0]  ;;  %v14332_v56 = vld [vmem:[#allocation16 + $0x1a0] sm:$0xf0] }
 0x6e8   :  { %v17530_v32 = vld [vmem:[#allocation16 + $0x1a80] sm:$0xf]  ;;  %v17275_v47 = vor.u32 %v19924_v31, %v17274_v30  ;;  %9446 = vmatpush.bf16.msra.mxu1 %v18075_v50  ;;  %v14623_v30 = vor.u32 %v19256_v11, %v14620_v13  ;;  %v19184_v31 = vld [vmem:[#allocation16 + $0x184] sm:$0xf]  ;;  %v14879_v50 = vor.u32 %v19320_v17, %v14876_v35 }
 0x6e9   :  { %v19988_v33 = vld [vmem:[#allocation16 + $0x1a9c] sm:$0xf0]  ;;  %v14780_v9 = vld [vmem:[#allocation16 + $0x520] sm:$0xf0] }
 0x6ea   :  { %v17786_v38 = vld [vmem:[#allocation16 + $0x1c80] sm:$0xf]  ;;  %v17531_v21 = vor.u32 %v19988_v33, %v17530_v32  ;;  %9408 = vmatpush.bf16.msrb.mxu3 %v17275_v47  ;;  %v15135_v32 = vor.u32 %v19384_v25, %v15132_v28  ;;  %v19248_v33 = vld [vmem:[#allocation16 + $0x384] sm:$0xf]  ;;  %v21377_v28 = vpop.f32.mrf.mxu3 }
 0x6eb   :  { %v20052_v52 = vld [vmem:[#allocation16 + $0x1c9c] sm:$0xf0]  ;;  %v15100_v47 = vld [vmem:[#allocation16 + $0x7a0] sm:$0xf0] }
 0x6ec   :  { %v18042_v40 = vld [vmem:[#allocation16 + $0x1e80] sm:$0xf]  ;;  %v17787_v49 = vor.u32 %v20052_v52, %v17786_v38  ;;  %9421 = vmatpush.bf16.msra.mxu0 %v17531_v21  ;;  %v14588_v38 = vld [vmem:[#allocation16 + $0x3a0] sm:$0xf0]  ;;  %v14335_v21 = vor.u32 %v19184_v31, %v14332_v56 }
 0x6ed   :  { %v20116_v16 = vld [vmem:[#allocation16 + $0x1e9c] sm:$0xf0]  ;;  %v19312_v52 = vld [vmem:[#allocation16 + $0x584] sm:$0xf] }
 0x6ee   :  { %v17242_v42 = vld [vmem:[#allocation16 + $0x1840] sm:$0xf]  ;;  %v18043_v51 = vor.u32 %v20116_v16, %v18042_v40  ;;  %9434 = vmatpush.bf16.msra.mxu2 %v17787_v49  ;;  %v14844_v40 = vld [vmem:[#allocation16 + $0x5a0] sm:$0xf0] }
 0x6ef   :  { %v19916_v48 = vld [vmem:[#allocation16 + $0x185c] sm:$0xf0]  ;;  %v19376_v16 = vld [vmem:[#allocation16 + $0x784] sm:$0xf] }
 0x6f0   :  { %v17498_v20 = vld [vmem:[#allocation16 + $0x1a40] sm:$0xf]  ;;  %v17243_v62 = vor.u32 %v19916_v48, %v17242_v42  ;;  %9447 = vmatpush.bf16.msra.mxu1 %v18043_v51  ;;  %v14591_v42 = vor.u32 %v19248_v33, %v14588_v38  ;;  %v19176_v48 = vld [vmem:[#allocation16 + $0x144] sm:$0xf]  ;;  %v14847_v51 = vor.u32 %v19312_v52, %v14844_v40 }
 0x6f1   :  { %v19980_v12 = vld [vmem:[#allocation16 + $0x1a5c] sm:$0xf0]  ;;  %v14300_v49 = vld [vmem:[#allocation16 + $0x160] sm:$0xf0] }
 0x6f2   :  { %v17754_v53 = vld [vmem:[#allocation16 + $0x1c40] sm:$0xf]  ;;  %v17499_v63 = vor.u32 %v19980_v12, %v17498_v20  ;;  %9409 = vmatpush.bf16.msrb.mxu3 %v17243_v62  ;;  %v15103_v20 = vor.u32 %v19376_v16, %v15100_v47  ;;  %v19240_v12 = vld [vmem:[#allocation16 + $0x344] sm:$0xf]  ;;  %v21373_v62 = vpop.f32.mrf.mxu0 }
 0x6f3   :  { %v20044_v55 = vld [vmem:[#allocation16 + $0x1c5c] sm:$0xf0]  ;;  %v19360_v10 = vld [vmem:[#allocation16 + $0x704] sm:$0xf] }
 0x6f4   :  { %v18010_v57 = vld [vmem:[#allocation16 + $0x1e40] sm:$0xf]  ;;  %v17755_v5 = vor.u32 %v20044_v55, %v17754_v53  ;;  %9422 = vmatpush.bf16.msra.mxu0 %v17499_v63  ;;  %v14556_v53 = vld [vmem:[#allocation16 + $0x360] sm:$0xf0]  ;;  %v14303_v63 = vor.u32 %v19176_v48, %v14300_v49 }
 0x6f5   :  { %v20108_v58 = vld [vmem:[#allocation16 + $0x1e5c] sm:$0xf0]  ;;  %v19304_v55 = vld [vmem:[#allocation16 + $0x544] sm:$0xf] }
 0x6f6   :  { %v17210_v59 = vld [vmem:[#allocation16 + $0x1800] sm:$0xf]  ;;  %v18011_v4 = vor.u32 %v20108_v58, %v18010_v57  ;;  %9435 = vmatpush.bf16.msra.mxu2 %v17755_v5  ;;  %v14812_v57 = vld [vmem:[#allocation16 + $0x560] sm:$0xf0] }
 0x6f7   :  { %v19908_v54 = vld [vmem:[#allocation16 + $0x181c] sm:$0xf0]  ;;  %v19368_v58 = vld [vmem:[#allocation16 + $0x744] sm:$0xf] }
 0x6f8   :  { %v17466_v3 = vld [vmem:[#allocation16 + $0x1a00] sm:$0xf]  ;;  %v17211_v34 = vor.u32 %v19908_v54, %v17210_v59  ;;  %9448 = vmatpush.bf16.msra.mxu1 %v18011_v4  ;;  %v15068_v59 = vld [vmem:[#allocation16 + $0x760] sm:$0xf0]  ;;  %v14559_v54 = vor.u32 %v19240_v12, %v14556_v53  ;;  %v14815_v4 = vor.u32 %v19304_v55, %v14812_v57 }
 0x6f9   :  { %v19972_v0 = vld [vmem:[#allocation16 + $0x1a1c] sm:$0xf0]  ;;  %v14268_v5 = vld [vmem:[#allocation16 + $0x120] sm:$0xf0] }
 0x6fa   :  { %v17722_v6 = vld [vmem:[#allocation16 + $0x1c00] sm:$0xf]  ;;  %v17467_v24 = vor.u32 %v19972_v0, %v17466_v3  ;;  %9410 = vmatpush.bf16.msrb.mxu3 %v17211_v34  ;;  %v21375_v3 = vpop.f32.mrf.mxu1  ;;  %v19168_v0 = vld [vmem:[#allocation16 + $0x104] sm:$0xf] }
 0x6fb   :  { %v20036_v7 = vld [vmem:[#allocation16 + $0x1c1c] sm:$0xf0]  ;;  %v15036_v11 = vld [vmem:[#allocation16 + $0x720] sm:$0xf0]  ;;  %v14271_v13 = vor.u32 %v19168_v0, %v14268_v5 }
 0x6fc   :  { %v17978_v18 = vld [vmem:[#allocation16 + $0x1e00] sm:$0xf]  ;;  %v17723_v39 = vor.u32 %v20036_v7, %v17722_v6  ;;  %9423 = vmatpush.bf16.msra.mxu0 %v17467_v24  ;;  %v15071_v6 = vor.u32 %v19368_v58, %v15068_v59  ;;  %v19232_v7 = vld [vmem:[#allocation16 + $0x304] sm:$0xf]  ;;  %v15039_v25 = vor.u32 %v19360_v10, %v15036_v11 }
 0x6fd   :  { %v20100_v8 = vld [vmem:[#allocation16 + $0x1e1c] sm:$0xf0]  ;;  %9411 = vmatmul.bf16.vlgmr.msrb.gmra.mxu3 %v21317_v43  ;;  %v19160_v34 = vld [vmem:[#allocation16 + $0xc4] sm:$0xf] }
 0x6fe   :  { %v17979_v44 = vor.u32 %v20100_v8, %v17978_v18  ;;  %9436 = vmatpush.bf16.msra.mxu2 %v17723_v39  ;;  %9455 = vmatpush.bf16.msra.mxu3 %v14367_v29  ;;  %v14524_v18 = vld [vmem:[#allocation16 + $0x320] sm:$0xf0] }
 0x6ff   :  { %9424 = vmatmul.bf16.vlgmr.msra.gmra.mxu0 %v21321_v45  ;;  %v19296_v8 = vld [vmem:[#allocation16 + $0x504] sm:$0xf]  ;;  %v14527_v17 = vor.u32 %v19232_v7, %v14524_v18 }
 0x700   :  { %9449 = vmatpush.bf16.msra.mxu1 %v17979_v44  ;;  %9468 = vmatpush.bf16.msrb.mxu0 %v14623_v30  ;;  %v14236_v24 = vld [vmem:[#allocation16 + $0xe0] sm:$0xf0]  ;;  %v14783_v35 = vor.u32 %v19296_v8, %v14780_v9  ;;  %v21379_v30 = vpop.f32.mrf.mxu2 }
 0x701   :  { %9437 = vmatmul.bf16.vlgmr.msra.gmra.mxu2 %v21325_v26  ;;  %v19224_v39 = vld [vmem:[#allocation16 + $0x2c4] sm:$0xf]  ;;  %v14239_v33 = vor.u32 %v19160_v34, %v14236_v24 }
 0x702   :  { %9481 = vmatpush.bf16.msrb.mxu2 %v14879_v50  ;;  %9456 = vmatpush.bf16.msra.mxu3 %v14335_v21  ;;  %v14492_v44 = vld [vmem:[#allocation16 + $0x2e0] sm:$0xf0]  ;;  %v4073_v52 = vpop.f32.mrf.mxu1 }
 0x703   :  { %9450 = vmatmul.bf16.vlgmr.msra.gmra.mxu1 %v21329_v27  ;;  %v19288_v29 = vld [vmem:[#allocation16 + $0x4c4] sm:$0xf]  ;;  %v14495_v38 = vor.u32 %v19224_v39, %v14492_v44 }
 0x704   :  { %9494 = vmatpush.bf16.msrb.mxu1 %v15135_v32  ;;  %9469 = vmatpush.bf16.msrb.mxu0 %v14591_v42  ;;  %v14748_v31 = vld [vmem:[#allocation16 + $0x4e0] sm:$0xf0]  ;;  %v4047_v32 = vpop.f32.mrf.mxu0 }
 0x705   :  { %v19352_v56 = vld [vmem:[#allocation16 + $0x6c4] sm:$0xf]  ;;  %v14751_v47 = vor.u32 %v19288_v29, %v14748_v31 }
 0x706   :  { %9482 = vmatpush.bf16.msrb.mxu2 %v14847_v51  ;;  %9457 = vmatpush.bf16.msra.mxu3 %v14303_v63  ;;  %v15004_v50 = vld [vmem:[#allocation16 + $0x6e0] sm:$0xf0] }
 0x707   :  { %v19152_v40 = vld [vmem:[#allocation16 + $0x84] sm:$0xf]  ;;  %v15007_v21 = vor.u32 %v19352_v56, %v15004_v50 }
 0x708   :  { %9495 = vmatpush.bf16.msrb.mxu1 %v15103_v20  ;;  %9470 = vmatpush.bf16.msrb.mxu0 %v14559_v54  ;;  %v14204_v16 = vld [vmem:[#allocation16 + $0xa0] sm:$0xf0]  ;;  %v4034_v54 = vpop.f32.mrf.mxu3 }
 0x709   :  { %v19216_v42 = vld [vmem:[#allocation16 + $0x284] sm:$0xf]  ;;  %v14207_v53 = vor.u32 %v19152_v40, %v14204_v16 }
 0x70a   :  { %9483 = vmatpush.bf16.msrb.mxu2 %v14815_v4  ;;  %9458 = vmatpush.bf16.msra.mxu3 %v14271_v13  ;;  %v14460_v48 = vld [vmem:[#allocation16 + $0x2a0] sm:$0xf0] }
 0x70b   :  { %v19280_v49 = vld [vmem:[#allocation16 + $0x484] sm:$0xf]  ;;  %v14463_v55 = vor.u32 %v19216_v42, %v14460_v48 }
 0x70c   :  { %9496 = vmatpush.bf16.msrb.mxu1 %v15071_v6  ;;  %9471 = vmatpush.bf16.msrb.mxu0 %v14527_v17  ;;  %v14716_v51 = vld [vmem:[#allocation16 + $0x4a0] sm:$0xf0]  ;;  %v4060_v6 = vpop.f32.mrf.mxu2  ;;  %v21381_v9 = vpop.f32.mrf.mxu0 }
 0x70d   :  { %v19344_v20 = vld [vmem:[#allocation16 + $0x684] sm:$0xf]  ;;  %v14719_v59 = vor.u32 %v19280_v49, %v14716_v51  ;;  %v21383_v17 = vpop.f32.mrf.mxu1 }
 0x70e   :  { %9484 = vmatpush.bf16.msrb.mxu2 %v14783_v35  ;;  %v14972_v12 = vld [vmem:[#allocation16 + $0x6a0] sm:$0xf0]  ;;  %9459 = vmatpush.bf16.msra.mxu3 %v14239_v33 }
 0x70f   :  { %v19144_v57 = vld [vmem:[#allocation16 + $0x44] sm:$0xf]  ;;  %v14975_v63 = vor.u32 %v19344_v20, %v14972_v12 }
 0x710   :  { %9497 = vmatpush.bf16.msrb.mxu1 %v15039_v25  ;;  %9472 = vmatpush.bf16.msrb.mxu0 %v14495_v38  ;;  %v14172_v58 = vld [vmem:[#allocation16 + $0x60] sm:$0xf0]  ;;  %v21385_v51 = vpop.f32.mrf.mxu3 }
 0x711   :  { %v19208_v0 = vld [vmem:[#allocation16 + $0x244] sm:$0xf]  ;;  %v14175_v11 = vor.u32 %v19144_v57, %v14172_v58 }
 0x712   :  { %9485 = vmatpush.bf16.msrb.mxu2 %v14751_v47  ;;  %v14428_v5 = vld [vmem:[#allocation16 + $0x260] sm:$0xf0]  ;;  %9460 = vmatpush.bf16.msra.mxu3 %v14207_v53 }
 0x713   :  { %v19272_v4 = vld [vmem:[#allocation16 + $0x444] sm:$0xf]  ;;  %v14431_v13 = vor.u32 %v19208_v0, %v14428_v5 }
 0x714   :  { %9498 = vmatpush.bf16.msrb.mxu1 %v15007_v21  ;;  %v14684_v7 = vld [vmem:[#allocation16 + $0x460] sm:$0xf0]  ;;  %9473 = vmatpush.bf16.msrb.mxu0 %v14463_v55  ;;  %v21387_v53 = vpop.f32.mrf.mxu2 }
 0x715   :  { %v19336_v18 = vld [vmem:[#allocation16 + $0x644] sm:$0xf]  ;;  %v14687_v25 = vor.u32 %v19272_v4, %v14684_v7  ;;  %v4125_v4 = vpop.f32.mrf.mxu1 }
 0x716   :  { %v14940_v8 = vld [vmem:[#allocation16 + $0x660] sm:$0xf0]  ;;  %9486 = vmatpush.bf16.msrb.mxu2 %v14719_v59  ;;  %9461 = vmatpush.bf16.msra.mxu3 %v14175_v11 }
 0x717   :  { %v19136_v10 = vld [vmem:[#allocation16 + $0x4] sm:$0xf]  ;;  %v14943_v39 = vor.u32 %v19336_v18, %v14940_v8 }
 0x718   :  { %v14140_v34 = vld [vmem:[#allocation16 + $0x20] sm:$0xf0]  ;;  %9499 = vmatpush.bf16.msrb.mxu1 %v14975_v63  ;;  %9474 = vmatpush.bf16.msrb.mxu0 %v14431_v13  ;;  %v4099_v63 = vpop.f32.mrf.mxu0 }
 0x719   :  { %v19200_v24 = vld [vmem:[#allocation16 + $0x204] sm:$0xf]  ;;  %v14143_v40 = vor.u32 %v19136_v10, %v14140_v34 }
 0x71a   :  { %v14396_v35 = vld [vmem:[#allocation16 + $0x220] sm:$0xf0]  ;;  %9487 = vmatpush.bf16.msrb.mxu2 %v14687_v25 }
 0x71b   :  { %v19264_v44 = vld [vmem:[#allocation16 + $0x404] sm:$0xf]  ;;  %v14399_v16 = vor.u32 %v19200_v24, %v14396_v35  ;;  %9462 = vmatpush.bf16.msra.mxu3 %v14143_v40 }
 0x71c   :  { %v14652_v29 = vld [vmem:[#allocation16 + $0x420] sm:$0xf0]  ;;  %9500 = vmatpush.bf16.msrb.mxu1 %v14943_v39 }
 0x71d   :  { %v19328_v31 = vld [vmem:[#allocation16 + $0x604] sm:$0xf]  ;;  %v14655_v48 = vor.u32 %v19264_v44, %v14652_v29  ;;  %9475 = vmatpush.bf16.msrb.mxu0 %v14399_v16 }
 0x71e   :  { %v14908_v56 = vld [vmem:[#allocation16 + $0x620] sm:$0xf0]  ;;  %9463 = vmatmul.bf16.vlgmr.msra.gmra.mxu3 %v21257_v14 }
 0x71f   :  { %v19448_v50 = vld [vmem:[#allocation16 + $0x9c4] sm:$0xf]  ;;  %v14911_v49 = vor.u32 %v19328_v31, %v14908_v56  ;;  %9488 = vmatpush.bf16.msrb.mxu2 %v14655_v48  ;;  %v4086_v56 = vpop.f32.mrf.mxu3 }
 0x720   :  { %v15388_v32 = vld [vmem:[#allocation16 + $0x9e0] sm:$0xf0]  ;;  %9476 = vmatmul.bf16.vlgmr.msrb.gmra.mxu0 %v21261_v15 }
 0x721   :  { %v19512_v33 = vld [vmem:[#allocation16 + $0xbc4] sm:$0xf]  ;;  %v15391_v20 = vor.u32 %v19448_v50, %v15388_v32  ;;  %9501 = vmatpush.bf16.msrb.mxu1 %v14911_v49 }
 0x722   :  { %v15644_v38 = vld [vmem:[#allocation16 + $0xbe0] sm:$0xf0]  ;;  %9489 = vmatmul.bf16.vlgmr.msrb.gmra.mxu2 %v21265_v22 }
 0x723   :  { %v19576_v52 = vld [vmem:[#allocation16 + $0xdc4] sm:$0xf]  ;;  %v15647_v12 = vor.u32 %v19512_v33, %v15644_v38  ;;  %9507 = vmatpush.bf16.msrb.mxu3 %v15391_v20  ;;  %v4112_v33 = vpop.f32.mrf.mxu2 }
 0x724   :  { %v15900_v47 = vld [vmem:[#allocation16 + $0xde0] sm:$0xf0]  ;;  %9502 = vmatmul.bf16.vlgmr.msrb.gmra.mxu1 %v21269_v23 }
 0x725   :  { %v19640_v21 = vld [vmem:[#allocation16 + $0xfc4] sm:$0xf]  ;;  %v15903_v58 = vor.u32 %v19576_v52, %v15900_v47  ;;  %9520 = vmatpush.bf16.msra.mxu0 %v15647_v12  ;;  %v9269_v12 = vpop.f32.mrf.mxu0 }
 0x726   :  { %v16156_v42 = vld [vmem:[#allocation16 + $0xfe0] sm:$0xf0] }
 0x727   :  { %v19440_v55 = vld [vmem:[#allocation16 + $0x984] sm:$0xf]  ;;  %v16159_v59 = vor.u32 %v19640_v21, %v16156_v42  ;;  %9533 = vmatpush.bf16.msra.mxu2 %v15903_v58 }
 0x728   :  { %v15356_v57 = vld [vmem:[#allocation16 + $0x9a0] sm:$0xf0] }
 0x729   :  { %v19504_v54 = vld [vmem:[#allocation16 + $0xb84] sm:$0xf]  ;;  %v15359_v8 = vor.u32 %v19440_v55, %v15356_v57  ;;  %9546 = vmatpush.bf16.msra.mxu1 %v16159_v59  ;;  %v9295_v55 = vpop.f32.mrf.mxu1 }
 0x72a   :  { %v15612_v0 = vld [vmem:[#allocation16 + $0xba0] sm:$0xf0] }
 0x72b   :  { %v19568_v5 = vld [vmem:[#allocation16 + $0xd84] sm:$0xf]  ;;  %v15615_v10 = vor.u32 %v19504_v54, %v15612_v0  ;;  %9508 = vmatpush.bf16.msrb.mxu3 %v15359_v8  ;;  %v9282_v56 = vpop.f32.mrf.mxu2 }
 0x72c   :  { %v15868_v6 = vld [vmem:[#allocation16 + $0xda0] sm:$0xf0] }
 0x72d   :  { %v19632_v7 = vld [vmem:[#allocation16 + $0xf84] sm:$0xf]  ;;  %v15871_v34 = vor.u32 %v19568_v5, %v15868_v6  ;;  %9521 = vmatpush.bf16.msra.mxu0 %v15615_v10 }
 0x72e   :  { %v16124_v18 = vld [vmem:[#allocation16 + $0xfa0] sm:$0xf0] }
 0x72f   :  { %v19432_v11 = vld [vmem:[#allocation16 + $0x944] sm:$0xf]  ;;  %v16127_v24 = vor.u32 %v19632_v7, %v16124_v18  ;;  %9534 = vmatpush.bf16.msra.mxu2 %v15871_v34 }
 0x730   :  { %v15324_v13 = vld [vmem:[#allocation16 + $0x960] sm:$0xf0] }
 0x731   :  { %v19496_v35 = vld [vmem:[#allocation16 + $0xb44] sm:$0xf]  ;;  %v15327_v50 = vor.u32 %v19432_v11, %v15324_v13  ;;  %9547 = vmatpush.bf16.msra.mxu1 %v16127_v24 }
 0x732   :  { %v15580_v25 = vld [vmem:[#allocation16 + $0xb60] sm:$0xf0] }
 0x733   :  { %v19560_v39 = vld [vmem:[#allocation16 + $0xd44] sm:$0xf]  ;;  %v15583_v32 = vor.u32 %v19496_v35, %v15580_v25  ;;  %9509 = vmatpush.bf16.msrb.mxu3 %v15327_v50  ;;  %v9256_v25 = vpop.f32.mrf.mxu3 }
 0x734   :  { %v15836_v44 = vld [vmem:[#allocation16 + $0xd60] sm:$0xf0] }
 0x735   :  { %v19624_v29 = vld [vmem:[#allocation16 + $0xf44] sm:$0xf]  ;;  %v15839_v40 = vor.u32 %v19560_v39, %v15836_v44  ;;  %9522 = vmatpush.bf16.msra.mxu0 %v15583_v32 }
 0x736   :  { %v16092_v31 = vld [vmem:[#allocation16 + $0xf60] sm:$0xf0] }
 0x737   :  { %v19424_v38 = vld [vmem:[#allocation16 + $0x904] sm:$0xf]  ;;  %v16095_v16 = vor.u32 %v19624_v29, %v16092_v31  ;;  %9535 = vmatpush.bf16.msra.mxu2 %v15839_v40  ;;  %v9257_v31 = vadd.f32 %v9256_v25, %v21377_v28  ;;  %v9297_v40 = vpop.f32.mrf.mxu1 }
 0x738   :  { %v15292_v52 = vld [vmem:[#allocation16 + $0x920] sm:$0xf0] }
 0x739   :  { %v19488_v47 = vld [vmem:[#allocation16 + $0xb04] sm:$0xf]  ;;  %v15295_v57 = vor.u32 %v19424_v38, %v15292_v52  ;;  %9548 = vmatpush.bf16.msra.mxu1 %v16095_v16  ;;  %v9271_v38 = vpop.f32.mrf.mxu0  ;;  %v9270_v52 = vadd.f32 %v9269_v12, %v9257_v31 }
 0x73a   :  { %v15548_v21 = vld [vmem:[#allocation16 + $0xb20] sm:$0xf0] }
 0x73b   :  { %v19552_v42 = vld [vmem:[#allocation16 + $0xd04] sm:$0xf]  ;;  %v15551_v58 = vor.u32 %v19488_v47, %v15548_v21  ;;  %9510 = vmatpush.bf16.msrb.mxu3 %v15295_v57 }
 0x73c   :  { %v15804_v48 = vld [vmem:[#allocation16 + $0xd20] sm:$0xf0] }
 0x73d   :  { %v19616_v49 = vld [vmem:[#allocation16 + $0xf04] sm:$0xf]  ;;  %v15807_v54 = vor.u32 %v19552_v42, %v15804_v48  ;;  %9523 = vmatpush.bf16.msra.mxu0 %v15551_v58  ;;  %v9283_v58 = vadd.f32 %v9282_v56, %v9270_v52 }
 0x73e   :  { %v16060_v20 = vld [vmem:[#allocation16 + $0xf20] sm:$0xf0] }
 0x73f   :  { %v19416_v59 = vld [vmem:[#allocation16 + $0x8c4] sm:$0xf]  ;;  %v16063_v0 = vor.u32 %v19616_v49, %v16060_v20  ;;  %9536 = vmatpush.bf16.msra.mxu2 %v15807_v54 }
 0x740   :  { %v15260_v63 = vld [vmem:[#allocation16 + $0x8e0] sm:$0xf0] }
 0x741   :  { %v19480_v5 = vld [vmem:[#allocation16 + $0xac4] sm:$0xf]  ;;  %v15263_v10 = vor.u32 %v19416_v59, %v15260_v63  ;;  %9549 = vmatpush.bf16.msra.mxu1 %v16063_v0 }
 0x742   :  { %v15516_v4 = vld [vmem:[#allocation16 + $0xae0] sm:$0xf0] }
 0x743   :  { %v19544_v6 = vld [vmem:[#allocation16 + $0xcc4] sm:$0xf]  ;;  %v15519_v11 = vor.u32 %v19480_v5, %v15516_v4  ;;  %9511 = vmatpush.bf16.msrb.mxu3 %v15263_v10 }
 0x744   :  { %v15772_v7 = vld [vmem:[#allocation16 + $0xce0] sm:$0xf0] }
 0x745   :  { %v19608_v18 = vld [vmem:[#allocation16 + $0xec4] sm:$0xf]  ;;  %v15775_v24 = vor.u32 %v19544_v6, %v15772_v7  ;;  %9524 = vmatpush.bf16.msra.mxu0 %v15519_v11  ;;  %v9258_v11 = vpop.f32.mrf.mxu3 }
 0x746   :  { %v16028_v8 = vld [vmem:[#allocation16 + $0xee0] sm:$0xf0] }
 0x747   :  { %v19408_v13 = vld [vmem:[#allocation16 + $0x884] sm:$0xf]  ;;  %v16031_v35 = vor.u32 %v19608_v18, %v16028_v8  ;;  %9537 = vmatpush.bf16.msra.mxu2 %v15775_v24  ;;  %v21394_v18 = vadd.f32 %v9295_v55, %v9283_v58 }
 0x748   :  { %v15228_v34 = vld [vmem:[#allocation16 + $0x8a0] sm:$0xf0] }
 0x749   :  { %v19472_v39 = vld [vmem:[#allocation16 + $0xa84] sm:$0xf]  ;;  %v15231_v16 = vor.u32 %v19408_v13, %v15228_v34  ;;  %9550 = vmatpush.bf16.msra.mxu1 %v16031_v35  ;;  %v9284_v35 = vpop.f32.mrf.mxu2 }
 0x74a   :  { %v15484_v44 = vld [vmem:[#allocation16 + $0xaa0] sm:$0xf0] }
 0x74b   :  { %v19536_v29 = vld [vmem:[#allocation16 + $0xc84] sm:$0xf]  ;;  %v15487_v47 = vor.u32 %v19472_v39, %v15484_v44  ;;  %9512 = vmatpush.bf16.msrb.mxu3 %v15231_v16 }
 0x74c   :  { %v15740_v50 = vld [vmem:[#allocation16 + $0xca0] sm:$0xf0] }
 0x74d   :  { %v19600_v32 = vld [vmem:[#allocation16 + $0xe84] sm:$0xf]  ;;  %v15743_v48 = vor.u32 %v19536_v29, %v15740_v50  ;;  %9525 = vmatpush.bf16.msra.mxu0 %v15487_v47 }
 0x74e   :  { %v15996_v33 = vld [vmem:[#allocation16 + $0xea0] sm:$0xf0] }
 0x74f   :  { %v19400_v21 = vld [vmem:[#allocation16 + $0x844] sm:$0xf]  ;;  %v15999_v49 = vor.u32 %v19600_v32, %v15996_v33  ;;  %9538 = vmatpush.bf16.msra.mxu2 %v15743_v48 }
 0x750   :  { %v15196_v42 = vld [vmem:[#allocation16 + $0x860] sm:$0xf0] }
 0x751   :  { %v19464_v20 = vld [vmem:[#allocation16 + $0xa44] sm:$0xf]  ;;  %v15199_v12 = vor.u32 %v19400_v21, %v15196_v42  ;;  %9551 = vmatpush.bf16.msra.mxu1 %v15999_v49 }
 0x752   :  { %v15452_v57 = vld [vmem:[#allocation16 + $0xa60] sm:$0xf0] }
 0x753   :  { %v19528_v28 = vld [vmem:[#allocation16 + $0xc44] sm:$0xf]  ;;  %v15455_v5 = vor.u32 %v19464_v20, %v15452_v57  ;;  %9513 = vmatpush.bf16.msrb.mxu3 %v15199_v12 }
 0x754   :  { %v15708_v59 = vld [vmem:[#allocation16 + $0xc60] sm:$0xf0] }
 0x755   :  { %v19592_v63 = vld [vmem:[#allocation16 + $0xe44] sm:$0xf]  ;;  %v15711_v8 = vor.u32 %v19528_v28, %v15708_v59  ;;  %9526 = vmatpush.bf16.msra.mxu0 %v15455_v5 }
 0x756   :  { %v15964_v54 = vld [vmem:[#allocation16 + $0xe60] sm:$0xf0] }
 0x757   :  { %v19392_v0 = vld [vmem:[#allocation16 + $0x804] sm:$0xf]  ;;  %v15967_v10 = vor.u32 %v19592_v63, %v15964_v54  ;;  %9539 = vmatpush.bf16.msra.mxu2 %v15711_v8 }
 0x758   :  { %v15164_v4 = vld [vmem:[#allocation16 + $0x820] sm:$0xf0] }
 0x759   :  { %v19456_v6 = vld [vmem:[#allocation16 + $0xa04] sm:$0xf]  ;;  %v15167_v50 = vor.u32 %v19392_v0, %v15164_v4  ;;  %9552 = vmatpush.bf16.msra.mxu1 %v15967_v10 }
 0x75a   :  { %v15420_v7 = vld [vmem:[#allocation16 + $0xa20] sm:$0xf0] }
 0x75b   :  { %v19520_v13 = vld [vmem:[#allocation16 + $0xc04] sm:$0xf]  ;;  %v15423_v55 = vor.u32 %v19456_v6, %v15420_v7  ;;  %9514 = vmatpush.bf16.msrb.mxu3 %v15167_v50 }
 0x75c   :  { %v15676_v34 = vld [vmem:[#allocation16 + $0xc20] sm:$0xf0] }
 0x75d   :  { %v19584_v24 = vld [vmem:[#allocation16 + $0xe04] sm:$0xf]  ;;  %v15679_v52 = vor.u32 %v19520_v13, %v15676_v34  ;;  %9527 = vmatpush.bf16.msra.mxu0 %v15423_v55 }
 0x75e   :  { %v15932_v25 = vld [vmem:[#allocation16 + $0xe20] sm:$0xf0]  ;;  %9515 = vmatmul.bf16.vlgmr.msrb.gmra.mxu3 %v21277_v60 }
 0x75f   :  { %v19704_v39 = vld [vmem:[#allocation16 + $0x11c4] sm:$0xf]  ;;  %v15935_v40 = vor.u32 %v19584_v24, %v15932_v25  ;;  %9540 = vmatpush.bf16.msra.mxu2 %v15679_v52  ;;  %v9347_v52 = vpop.f32.mrf.mxu1 }
 0x760   :  { %v16412_v44 = vld [vmem:[#allocation16 + $0x11e0] sm:$0xf0]  ;;  %9528 = vmatmul.bf16.vlgmr.msra.gmra.mxu0 %v21281_v61 }
 0x761   :  { %v19768_v29 = vld [vmem:[#allocation16 + $0x13c4] sm:$0xf]  ;;  %v16415_v16 = vor.u32 %v19704_v39, %v16412_v44  ;;  %9553 = vmatpush.bf16.msra.mxu1 %v15935_v40 }
 0x762   :  { %v16668_v31 = vld [vmem:[#allocation16 + $0x13e0] sm:$0xf0]  ;;  %9541 = vmatmul.bf16.vlgmr.msra.gmra.mxu2 %v21285_v1 }
 0x763   :  { %v19832_v56 = vld [vmem:[#allocation16 + $0x15c4] sm:$0xf]  ;;  %v16671_v47 = vor.u32 %v19768_v29, %v16668_v31  ;;  %9559 = vmatpush.bf16.msra.mxu3 %v16415_v16 }
 0x764   :  { %v16924_v32 = vld [vmem:[#allocation16 + $0x15e0] sm:$0xf0]  ;;  %9554 = vmatmul.bf16.vlgmr.msra.gmra.mxu1 %v21289_v2 }
 0x765   :  { %v19896_v33 = vld [vmem:[#allocation16 + $0x17c4] sm:$0xf]  ;;  %v16927_v48 = vor.u32 %v19832_v56, %v16924_v32  ;;  %9572 = vmatpush.bf16.msrb.mxu0 %v16671_v47 }
 0x766   :  { %v17180_v38 = vld [vmem:[#allocation16 + $0x17e0] sm:$0xf0] }
 0x767   :  { %v19696_v21 = vld [vmem:[#allocation16 + $0x1184] sm:$0xf]  ;;  %v17183_v49 = vor.u32 %v19896_v33, %v17180_v38  ;;  %9585 = vmatpush.bf16.msrb.mxu2 %v16927_v48  ;;  %v9321_v38 = vpop.f32.mrf.mxu0 }
 0x768   :  { %v16380_v42 = vld [vmem:[#allocation16 + $0x11a0] sm:$0xf0] }
 0x769   :  { %v19760_v20 = vld [vmem:[#allocation16 + $0x1384] sm:$0xf]  ;;  %v16383_v54 = vor.u32 %v19696_v21, %v16380_v42  ;;  %9598 = vmatpush.bf16.msrb.mxu1 %v17183_v49 }
 0x76a   :  { %v16636_v57 = vld [vmem:[#allocation16 + $0x13a0] sm:$0xf0] }
 0x76b   :  { %v19824_v28 = vld [vmem:[#allocation16 + $0x1584] sm:$0xf]  ;;  %v16639_v0 = vor.u32 %v19760_v20, %v16636_v57  ;;  %9560 = vmatpush.bf16.msra.mxu3 %v16383_v54 }
 0x76c   :  { %v16892_v58 = vld [vmem:[#allocation16 + $0x15a0] sm:$0xf0] }
 0x76d   :  { %v19888_v59 = vld [vmem:[#allocation16 + $0x1784] sm:$0xf]  ;;  %v16895_v4 = vor.u32 %v19824_v28, %v16892_v58  ;;  %9573 = vmatpush.bf16.msrb.mxu0 %v16639_v0 }
 0x76e   :  { %v17148_v63 = vld [vmem:[#allocation16 + $0x17a0] sm:$0xf0] }
 0x76f   :  { %v19688_v12 = vld [vmem:[#allocation16 + $0x1144] sm:$0xf]  ;;  %v17151_v6 = vor.u32 %v19888_v59, %v17148_v63  ;;  %9586 = vmatpush.bf16.msrb.mxu2 %v16895_v4 }
 0x770   :  { %v16348_v5 = vld [vmem:[#allocation16 + $0x1160] sm:$0xf0] }
 0x771   :  { %v19752_v7 = vld [vmem:[#allocation16 + $0x1344] sm:$0xf]  ;;  %v16351_v24 = vor.u32 %v19688_v12, %v16348_v5  ;;  %9599 = vmatpush.bf16.msrb.mxu1 %v17151_v6  ;;  %v9308_v6 = vpop.f32.mrf.mxu3 }
 0x772   :  { %v16604_v8 = vld [vmem:[#allocation16 + $0x1360] sm:$0xf0] }
 0x773   :  { %v19816_v10 = vld [vmem:[#allocation16 + $0x1544] sm:$0xf]  ;;  %v16607_v35 = vor.u32 %v19752_v7, %v16604_v8  ;;  %9561 = vmatpush.bf16.msra.mxu3 %v16351_v24 }
 0x774   :  { %v16860_v11 = vld [vmem:[#allocation16 + $0x1560] sm:$0xf0] }
 0x775   :  { %v19880_v13 = vld [vmem:[#allocation16 + $0x1744] sm:$0xf]  ;;  %v16863_v44 = vor.u32 %v19816_v10, %v16860_v11  ;;  %9574 = vmatpush.bf16.msrb.mxu0 %v16607_v35  ;;  %v9309_v11 = vadd.f32 %v9308_v6, %v21394_v18 }
 0x776   :  { %v17116_v34 = vld [vmem:[#allocation16 + $0x1760] sm:$0xf0] }
 0x777   :  { %v19680_v25 = vld [vmem:[#allocation16 + $0x1104] sm:$0xf]  ;;  %v17119_v29 = vor.u32 %v19880_v13, %v17116_v34  ;;  %9587 = vmatpush.bf16.msrb.mxu2 %v16863_v44  ;;  %v9334_v13 = vpop.f32.mrf.mxu2  ;;  %v9349_v44 = vpop.f32.mrf.mxu1 }
 0x778   :  { %v16316_v39 = vld [vmem:[#allocation16 + $0x1120] sm:$0xf0] }
 0x779   :  { %v19744_v31 = vld [vmem:[#allocation16 + $0x1304] sm:$0xf]  ;;  %v16319_v40 = vor.u32 %v19680_v25, %v16316_v39  ;;  %9600 = vmatpush.bf16.msrb.mxu1 %v17119_v29  ;;  %v9323_v25 = vpop.f32.mrf.mxu0  ;;  %v9322_v39 = vadd.f32 %v9321_v38, %v9309_v11 }
 0x77a   :  { %v16572_v56 = vld [vmem:[#allocation16 + $0x1320] sm:$0xf0] }
 0x77b   :  { %v19808_v50 = vld [vmem:[#allocation16 + $0x1504] sm:$0xf]  ;;  %v16575_v16 = vor.u32 %v19744_v31, %v16572_v56  ;;  %9562 = vmatpush.bf16.msra.mxu3 %v16319_v40 }
 0x77c   :  { %v16828_v55 = vld [vmem:[#allocation16 + $0x1520] sm:$0xf0] }
 0x77d   :  { %v19872_v32 = vld [vmem:[#allocation16 + $0x1704] sm:$0xf]  ;;  %v16831_v42 = vor.u32 %v19808_v50, %v16828_v55  ;;  %9575 = vmatpush.bf16.msrb.mxu0 %v16575_v16  ;;  %v9335_v16 = vadd.f32 %v9334_v13, %v9322_v39 }
 0x77e   :  { %v17084_v33 = vld [vmem:[#allocation16 + $0x1720] sm:$0xf0] }
 0x77f   :  { %v19672_v47 = vld [vmem:[#allocation16 + $0x10c4] sm:$0xf]  ;;  %v17087_v48 = vor.u32 %v19872_v32, %v17084_v33  ;;  %9588 = vmatpush.bf16.msrb.mxu2 %v16831_v42 }
 0x780   :  { %v16284_v21 = vld [vmem:[#allocation16 + $0x10e0] sm:$0xf0] }
 0x781   :  { %v19736_v49 = vld [vmem:[#allocation16 + $0x12c4] sm:$0xf]  ;;  %v16287_v63 = vor.u32 %v19672_v47, %v16284_v21  ;;  %9601 = vmatpush.bf16.msrb.mxu1 %v17087_v48 }
 0x782   :  { %v16540_v20 = vld [vmem:[#allocation16 + $0x12e0] sm:$0xf0] }
 0x783   :  { %v19800_v57 = vld [vmem:[#allocation16 + $0x14c4] sm:$0xf]  ;;  %v16543_v54 = vor.u32 %v19736_v49, %v16540_v20  ;;  %9563 = vmatpush.bf16.msra.mxu3 %v16287_v63 }
 0x784   :  { %v16796_v28 = vld [vmem:[#allocation16 + $0x14e0] sm:$0xf0] }
 0x785   :  { %v19864_v58 = vld [vmem:[#allocation16 + $0x16c4] sm:$0xf]  ;;  %v16799_v5 = vor.u32 %v19800_v57, %v16796_v28  ;;  %9576 = vmatpush.bf16.msrb.mxu0 %v16543_v54  ;;  %v9310_v54 = vpop.f32.mrf.mxu3 }
 0x786   :  { %v17052_v59 = vld [vmem:[#allocation16 + $0x16e0] sm:$0xf0] }
 0x787   :  { %v19664_v0 = vld [vmem:[#allocation16 + $0x1084] sm:$0xf]  ;;  %v17055_v4 = vor.u32 %v19864_v58, %v17052_v59  ;;  %9589 = vmatpush.bf16.msrb.mxu2 %v16799_v5  ;;  %v21401_v58 = vadd.f32 %v9347_v52, %v9335_v16 }
 0x788   :  { %v16252_v12 = vld [vmem:[#allocation16 + $0x10a0] sm:$0xf0] }
 0x789   :  { %v19728_v7 = vld [vmem:[#allocation16 + $0x1284] sm:$0xf]  ;;  %v16255_v29 = vor.u32 %v19664_v0, %v16252_v12  ;;  %9602 = vmatpush.bf16.msrb.mxu1 %v17055_v4  ;;  %v9336_v4 = vpop.f32.mrf.mxu2 }
 0x78a   :  { %v16508_v8 = vld [vmem:[#allocation16 + $0x12a0] sm:$0xf0] }
 0x78b   :  { %v19792_v10 = vld [vmem:[#allocation16 + $0x1484] sm:$0xf]  ;;  %v16511_v31 = vor.u32 %v19728_v7, %v16508_v8  ;;  %9564 = vmatpush.bf16.msra.mxu3 %v16255_v29 }
 0x78c   :  { %v16764_v34 = vld [vmem:[#allocation16 + $0x14a0] sm:$0xf0] }
 0x78d   :  { %v19856_v24 = vld [vmem:[#allocation16 + $0x1684] sm:$0xf]  ;;  %v16767_v55 = vor.u32 %v19792_v10, %v16764_v34  ;;  %9577 = vmatpush.bf16.msrb.mxu0 %v16511_v31 }
 0x78e   :  { %v17020_v35 = vld [vmem:[#allocation16 + $0x16a0] sm:$0xf0] }
 0x78f   :  { %v19656_v56 = vld [vmem:[#allocation16 + $0x1044] sm:$0xf]  ;;  %v17023_v32 = vor.u32 %v19856_v24, %v17020_v35  ;;  %9590 = vmatpush.bf16.msrb.mxu2 %v16767_v55 }
 0x790   :  { %v16220_v50 = vld [vmem:[#allocation16 + $0x1060] sm:$0xf0] }
 0x791   :  { %v19720_v33 = vld [vmem:[#allocation16 + $0x1244] sm:$0xf]  ;;  %v16223_v38 = vor.u32 %v19656_v56, %v16220_v50  ;;  %9603 = vmatpush.bf16.msrb.mxu1 %v17023_v32 }
 0x792   :  { %v16476_v40 = vld [vmem:[#allocation16 + $0x1260] sm:$0xf0] }
 0x793   :  { %v19784_v18 = vld [vmem:[#allocation16 + $0x1444] sm:$0xf]  ;;  %v16479_v49 = vor.u32 %v19720_v33, %v16476_v40  ;;  %9565 = vmatpush.bf16.msra.mxu3 %v16223_v38 }
 0x794   :  { %v16732_v47 = vld [vmem:[#allocation16 + $0x1460] sm:$0xf0] }
 0x795   :  { %v19848_v21 = vld [vmem:[#allocation16 + $0x1644] sm:$0xf]  ;;  %v16735_v59 = vor.u32 %v19784_v18, %v16732_v47  ;;  %9578 = vmatpush.bf16.msrb.mxu0 %v16479_v49 }
 0x796   :  { %v16988_v42 = vld [vmem:[#allocation16 + $0x1660] sm:$0xf0] }
 0x797   :  { %v19648_v48 = vld [vmem:[#allocation16 + $0x1004] sm:$0xf]  ;;  %v16991_v63 = vor.u32 %v19848_v21, %v16988_v42  ;;  %9591 = vmatpush.bf16.msrb.mxu2 %v16735_v59 }
 0x798   :  { %v16188_v20 = vld [vmem:[#allocation16 + $0x1020] sm:$0xf0] }
 0x799   :  { %v19712_v57 = vld [vmem:[#allocation16 + $0x1204] sm:$0xf]  ;;  %v16191_v34 = vor.u32 %v19648_v48, %v16188_v20  ;;  %9604 = vmatpush.bf16.msrb.mxu1 %v16991_v63 }
 0x79a   :  { %v16444_v28 = vld [vmem:[#allocation16 + $0x1220] sm:$0xf0] }
 0x79b   :  { %v19776_v0 = vld [vmem:[#allocation16 + $0x1404] sm:$0xf]  ;;  %v16447_v52 = vor.u32 %v19712_v57, %v16444_v28  ;;  %9566 = vmatpush.bf16.msra.mxu3 %v16191_v34 }
 0x79c   :  { %v16700_v12 = vld [vmem:[#allocation16 + $0x1420] sm:$0xf0] }
 0x79d   :  { %v19840_v5 = vld [vmem:[#allocation16 + $0x1604] sm:$0xf]  ;;  %v16703_v39 = vor.u32 %v19776_v0, %v16700_v12  ;;  %9579 = vmatpush.bf16.msrb.mxu0 %v16447_v52 }
 0x79e   :  { %v16956_v6 = vld [vmem:[#allocation16 + $0x1620] sm:$0xf0]  ;;  %9567 = vmatmul.bf16.vlgmr.msra.gmra.mxu3 %v21297_v36 }
 0x79f   :  { %v19960_v7 = vld [vmem:[#allocation16 + $0x19c4] sm:$0xf]  ;;  %v16959_v44 = vor.u32 %v19840_v5, %v16956_v6  ;;  %9592 = vmatpush.bf16.msrb.mxu2 %v16703_v39  ;;  %v9399_v39 = vpop.f32.mrf.mxu1 }
 0x7a0   :  { %v17436_v8 = vld [vmem:[#allocation16 + $0x19e0] sm:$0xf0]  ;;  %9580 = vmatmul.bf16.vlgmr.msrb.gmra.mxu0 %v21301_v37 }
 0x7a1   :  { %v20024_v10 = vld [vmem:[#allocation16 + $0x1bc4] sm:$0xf]  ;;  %v17439_v29 = vor.u32 %v19960_v7, %v17436_v8  ;;  %9605 = vmatpush.bf16.msrb.mxu1 %v16959_v44 }
 0x7a2   :  { %v17692_v11 = vld [vmem:[#allocation16 + $0x1be0] sm:$0xf0]  ;;  %9593 = vmatmul.bf16.vlgmr.msrb.gmra.mxu2 %v21305_v41 }
 0x7a3   :  { %v20088_v13 = vld [vmem:[#allocation16 + $0x1dc4] sm:$0xf]  ;;  %v17695_v31 = vor.u32 %v20024_v10, %v17692_v11  ;;  %9611 = vmatpush.bf16.msrb.mxu3 %v17439_v29 }
 0x7a4   :  { %v17948_v24 = vld [vmem:[#allocation16 + $0x1de0] sm:$0xf0]  ;;  %9606 = vmatmul.bf16.vlgmr.msrb.gmra.mxu1 %v21309_v46 }
 0x7a5   :  { %v20152_v35 = vld [vmem:[#allocation16 + $0x1fc4] sm:$0xf]  ;;  %v17951_v55 = vor.u32 %v20088_v13, %v17948_v24  ;;  %9624 = vmatpush.bf16.msra.mxu0 %v17695_v31 }
 0x7a6   :  { %v18204_v25 = vld [vmem:[#allocation16 + $0x1fe0] sm:$0xf0] }
 0x7a7   :  { %v19952_v56 = vld [vmem:[#allocation16 + $0x1984] sm:$0xf]  ;;  %v18207_v32 = vor.u32 %v20152_v35, %v18204_v25  ;;  %9637 = vmatpush.bf16.msra.mxu2 %v17951_v55  ;;  %v9373_v25 = vpop.f32.mrf.mxu0 }
 0x7a8   :  { %v17404_v50 = vld [vmem:[#allocation16 + $0x19a0] sm:$0xf0] }
 0x7a9   :  { %v20016_v33 = vld [vmem:[#allocation16 + $0x1b84] sm:$0xf]  ;;  %v17407_v42 = vor.u32 %v19952_v56, %v17404_v50  ;;  %9650 = vmatpush.bf16.msra.mxu1 %v18207_v32 }
 0x7aa   :  { %v17660_v40 = vld [vmem:[#allocation16 + $0x1ba0] sm:$0xf0] }
 0x7ab   :  { %v20080_v18 = vld [vmem:[#allocation16 + $0x1d84] sm:$0xf]  ;;  %v17663_v48 = vor.u32 %v20016_v33, %v17660_v40  ;;  %9612 = vmatpush.bf16.msrb.mxu3 %v17407_v42 }
 0x7ac   :  { %v17916_v16 = vld [vmem:[#allocation16 + $0x1da0] sm:$0xf0] }
 0x7ad   :  { %v20144_v47 = vld [vmem:[#allocation16 + $0x1f84] sm:$0xf]  ;;  %v17919_v20 = vor.u32 %v20080_v18, %v17916_v16  ;;  %9625 = vmatpush.bf16.msra.mxu0 %v17663_v48 }
 0x7ae   :  { %v18172_v21 = vld [vmem:[#allocation16 + $0x1fa0] sm:$0xf0] }
 0x7af   :  { %v19944_v38 = vld [vmem:[#allocation16 + $0x1944] sm:$0xf]  ;;  %v18175_v57 = vor.u32 %v20144_v47, %v18172_v21  ;;  %9638 = vmatpush.bf16.msra.mxu2 %v17919_v20 }
 0x7b0   :  { %v17372_v49 = vld [vmem:[#allocation16 + $0x1960] sm:$0xf0] }
 0x7b1   :  { %v20008_v28 = vld [vmem:[#allocation16 + $0x1b44] sm:$0xf]  ;;  %v17375_v5 = vor.u32 %v19944_v38, %v17372_v49  ;;  %9651 = vmatpush.bf16.msra.mxu1 %v18175_v57  ;;  %v9360_v57 = vpop.f32.mrf.mxu3 }
 0x7b2   :  { %v17628_v59 = vld [vmem:[#allocation16 + $0x1b60] sm:$0xf0] }
 0x7b3   :  { %v20072_v63 = vld [vmem:[#allocation16 + $0x1d44] sm:$0xf]  ;;  %v17631_v4 = vor.u32 %v20008_v28, %v17628_v59  ;;  %9613 = vmatpush.bf16.msrb.mxu3 %v17375_v5 }
 0x7b4   :  { %v17884_v54 = vld [vmem:[#allocation16 + $0x1d60] sm:$0xf0] }
 0x7b5   :  { %v20136_v0 = vld [vmem:[#allocation16 + $0x1f44] sm:$0xf]  ;;  %v17887_v8 = vor.u32 %v20072_v63, %v17884_v54  ;;  %9626 = vmatpush.bf16.msra.mxu0 %v17631_v4  ;;  %v9361_v54 = vadd.f32 %v9360_v57, %v21401_v58 }
 0x7b6   :  { %v18140_v12 = vld [vmem:[#allocation16 + $0x1f60] sm:$0xf0] }
 0x7b7   :  { %v19936_v6 = vld [vmem:[#allocation16 + $0x1904] sm:$0xf]  ;;  %v18143_v10 = vor.u32 %v20136_v0, %v18140_v12  ;;  %9639 = vmatpush.bf16.msra.mxu2 %v17887_v8  ;;  %v9386_v0 = vpop.f32.mrf.mxu2  ;;  %v9401_v8 = vpop.f32.mrf.mxu1 }
 0x7b8   :  { %v17340_v7 = vld [vmem:[#allocation16 + $0x1920] sm:$0xf0] }
 0x7b9   :  { %v20000_v11 = vld [vmem:[#allocation16 + $0x1b04] sm:$0xf]  ;;  %v17343_v44 = vor.u32 %v19936_v6, %v17340_v7  ;;  %9652 = vmatpush.bf16.msra.mxu1 %v18143_v10  ;;  %v9375_v6 = vpop.f32.mrf.mxu0  ;;  %v9374_v7 = vadd.f32 %v9373_v25, %v9361_v54  ;;  %v19261_v54 = vld [vmem:[#allocation16 + $0x3e4] sm:$0xf0] }
 0x7ba   :  { %v17596_v13 = vld [vmem:[#allocation16 + $0x1b20] sm:$0xf0]  ;;  %v19389_v6 = vld [vmem:[#allocation16 + $0x7e4] sm:$0xf0] }
 0x7bb   :  { %v20064_v34 = vld [vmem:[#allocation16 + $0x1d04] sm:$0xf]  ;;  %v17599_v29 = vor.u32 %v20000_v11, %v17596_v13  ;;  %9614 = vmatpush.bf16.msrb.mxu3 %v17343_v44 }
 0x7bc   :  { %v17852_v52 = vld [vmem:[#allocation16 + $0x1d20] sm:$0xf0] }
 0x7bd   :  { %v20128_v24 = vld [vmem:[#allocation16 + $0x1f04] sm:$0xf]  ;;  %v17855_v50 = vor.u32 %v20064_v34, %v17852_v52  ;;  %9627 = vmatpush.bf16.msra.mxu0 %v17599_v29  ;;  %v9387_v29 = vadd.f32 %v9386_v0, %v9374_v7  ;;  %v14882_v0 = vld [vmem:[#allocation16 + $0x5c8] sm:$0xf] }
 0x7be   :  { %v18108_v35 = vld [vmem:[#allocation16 + $0x1f20] sm:$0xf0] }
 0x7bf   :  { %v19928_v31 = vld [vmem:[#allocation16 + $0x18c4] sm:$0xf]  ;;  %v18111_v55 = vor.u32 %v20128_v24, %v18108_v35  ;;  %9640 = vmatpush.bf16.msra.mxu2 %v17855_v50 }
 0x7c0   :  { %v17308_v56 = vld [vmem:[#allocation16 + $0x18e0] sm:$0xf0] }
 0x7c1   :  { %v19992_v32 = vld [vmem:[#allocation16 + $0x1ac4] sm:$0xf]  ;;  %v17311_v21 = vor.u32 %v19928_v31, %v17308_v56  ;;  %9653 = vmatpush.bf16.msra.mxu1 %v18111_v55 }
 0x7c2   :  { %v17564_v33 = vld [vmem:[#allocation16 + $0x1ae0] sm:$0xf0] }
 0x7c3   :  { %v20056_v40 = vld [vmem:[#allocation16 + $0x1cc4] sm:$0xf]  ;;  %v17567_v42 = vor.u32 %v19992_v32, %v17564_v33  ;;  %9615 = vmatpush.bf16.msrb.mxu3 %v17311_v21 }
 0x7c4   :  { %v17820_v18 = vld [vmem:[#allocation16 + $0x1ce0] sm:$0xf0] }
 0x7c5   :  { %v20120_v16 = vld [vmem:[#allocation16 + $0x1ec4] sm:$0xf]  ;;  %v17823_v49 = vor.u32 %v20056_v40, %v17820_v18  ;;  %9628 = vmatpush.bf16.msra.mxu0 %v17567_v42  ;;  %v9362_v42 = vpop.f32.mrf.mxu3 }
 0x7c6   :  { %v18076_v47 = vld [vmem:[#allocation16 + $0x1ee0] sm:$0xf0]  ;;  %v19309_v42 = vld [vmem:[#allocation16 + $0x564] sm:$0xf0] }
 0x7c7   :  { %v19920_v48 = vld [vmem:[#allocation16 + $0x1884] sm:$0xf]  ;;  %v18079_v20 = vor.u32 %v20120_v16, %v18076_v47  ;;  %9641 = vmatpush.bf16.msra.mxu2 %v17823_v49  ;;  %v21408_v16 = vadd.f32 %v9399_v39, %v9387_v29  ;;  %v19317_v29 = vld [vmem:[#allocation16 + $0x5a4] sm:$0xf0] }
 0x7c8   :  { %v17276_v38 = vld [vmem:[#allocation16 + $0x18a0] sm:$0xf0] }
 0x7c9   :  { %v19984_v28 = vld [vmem:[#allocation16 + $0x1a84] sm:$0xf]  ;;  %v17279_v10 = vor.u32 %v19920_v48, %v17276_v38  ;;  %9654 = vmatpush.bf16.msra.mxu1 %v18079_v20  ;;  %v9388_v20 = vpop.f32.mrf.mxu2 }
 0x7ca   :  { %v17532_v59 = vld [vmem:[#allocation16 + $0x1aa0] sm:$0xf0] }
 0x7cb   :  { %v20048_v63 = vld [vmem:[#allocation16 + $0x1c84] sm:$0xf]  ;;  %v17535_v11 = vor.u32 %v19984_v28, %v17532_v59  ;;  %9616 = vmatpush.bf16.msrb.mxu3 %v17279_v10  ;;  %v14370_v28 = vld [vmem:[#allocation16 + $0x1c8] sm:$0xf] }
 0x7cc   :  { %v17788_v12 = vld [vmem:[#allocation16 + $0x1ca0] sm:$0xf0]  ;;  %v19197_v59 = vld [vmem:[#allocation16 + $0x1e4] sm:$0xf0] }
 0x7cd   :  { %v20112_v5 = vld [vmem:[#allocation16 + $0x1e84] sm:$0xf]  ;;  %v17791_v52 = vor.u32 %v20048_v63, %v17788_v12  ;;  %9629 = vmatpush.bf16.msra.mxu0 %v17535_v11  ;;  %v14626_v63 = vld [vmem:[#allocation16 + $0x3c8] sm:$0xf]  ;;  %v14371_v10 = vor.u32 %v19197_v59, %v14370_v28 }
 0x7ce   :  { %v18044_v4 = vld [vmem:[#allocation16 + $0x1ea0] sm:$0xf0]  ;;  %v14627_v11 = vor.u32 %v19261_v54, %v14626_v63  ;;  %v19173_v28 = vld [vmem:[#allocation16 + $0x124] sm:$0xf0] }
 0x7cf   :  { %v19912_v13 = vld [vmem:[#allocation16 + $0x1844] sm:$0xf]  ;;  %v18047_v24 = vor.u32 %v20112_v5, %v18044_v4  ;;  %9642 = vmatpush.bf16.msra.mxu2 %v17791_v52  ;;  %v19325_v5 = vld [vmem:[#allocation16 + $0x5e4] sm:$0xf0] }
 0x7d0   :  { %v17244_v34 = vld [vmem:[#allocation16 + $0x1860] sm:$0xf0]  ;;  %v15138_v4 = vld [vmem:[#allocation16 + $0x7c8] sm:$0xf]  ;;  %v14883_v52 = vor.u32 %v19325_v5, %v14882_v0 }
 0x7d1   :  { %v19976_v35 = vld [vmem:[#allocation16 + $0x1a44] sm:$0xf]  ;;  %v17247_v25 = vor.u32 %v19912_v13, %v17244_v34  ;;  %9655 = vmatpush.bf16.msra.mxu1 %v18047_v24  ;;  %v14338_v13 = vld [vmem:[#allocation16 + $0x188] sm:$0xf]  ;;  %v15139_v24 = vor.u32 %v19389_v6, %v15138_v4  ;;  %v9425_v6 = vpop.f32.mrf.mxu0 }
 0x7d2   :  { %v17500_v44 = vld [vmem:[#allocation16 + $0x1a60] sm:$0xf0]  ;;  %v19189_v34 = vld [vmem:[#allocation16 + $0x1a4] sm:$0xf0] }
 0x7d3   :  { %v20040_v58 = vld [vmem:[#allocation16 + $0x1c44] sm:$0xf]  ;;  %v17503_v32 = vor.u32 %v19976_v35, %v17500_v44  ;;  %9617 = vmatpush.bf16.msrb.mxu3 %v17247_v25  ;;  %v14594_v35 = vld [vmem:[#allocation16 + $0x388] sm:$0xf] }
 0x7d4   :  { %v17756_v31 = vld [vmem:[#allocation16 + $0x1c60] sm:$0xf0]  ;;  %v19253_v44 = vld [vmem:[#allocation16 + $0x3a4] sm:$0xf0] }
 0x7d5   :  { %v20104_v56 = vld [vmem:[#allocation16 + $0x1e44] sm:$0xf]  ;;  %v17759_v47 = vor.u32 %v20040_v58, %v17756_v31  ;;  %9630 = vmatpush.bf16.msra.mxu0 %v17503_v32  ;;  %v14850_v58 = vld [vmem:[#allocation16 + $0x588] sm:$0xf] }
 0x7d6   :  { %v18012_v50 = vld [vmem:[#allocation16 + $0x1e60] sm:$0xf0]  ;;  %v15106_v31 = vld [vmem:[#allocation16 + $0x788] sm:$0xf] }
 0x7d7   :  { %v19904_v55 = vld [vmem:[#allocation16 + $0x1804] sm:$0xf]  ;;  %v18015_v21 = vor.u32 %v20104_v56, %v18012_v50  ;;  %9643 = vmatpush.bf16.msra.mxu2 %v17759_v47  ;;  %v19381_v56 = vld [vmem:[#allocation16 + $0x7a4] sm:$0xf0]  ;;  %v14339_v50 = vor.u32 %v19189_v34, %v14338_v13 }
 0x7d8   :  { %v17212_v33 = vld [vmem:[#allocation16 + $0x1820] sm:$0xf0]  ;;  %v14306_v25 = vld [vmem:[#allocation16 + $0x148] sm:$0xf] }
 0x7d9   :  { %v19968_v40 = vld [vmem:[#allocation16 + $0x1a04] sm:$0xf]  ;;  %v17215_v12 = vor.u32 %v19904_v55, %v17212_v33  ;;  %9656 = vmatpush.bf16.msra.mxu1 %v18015_v21  ;;  %v14595_v55 = vor.u32 %v19253_v44, %v14594_v35  ;;  %v19181_v32 = vld [vmem:[#allocation16 + $0x164] sm:$0xf0]  ;;  %v14851_v33 = vor.u32 %v19317_v29, %v14850_v58 }
 0x7da   :  { %v17468_v18 = vld [vmem:[#allocation16 + $0x1a20] sm:$0xf0]  ;;  %v19245_v47 = vld [vmem:[#allocation16 + $0x364] sm:$0xf0] }
 0x7db   :  { %v20032_v48 = vld [vmem:[#allocation16 + $0x1c04] sm:$0xf]  ;;  %v17471_v39 = vor.u32 %v19968_v40, %v17468_v18  ;;  %9618 = vmatpush.bf16.msrb.mxu3 %v17215_v12  ;;  %v15107_v40 = vor.u32 %v19381_v56, %v15106_v31  ;;  %v14562_v18 = vld [vmem:[#allocation16 + $0x348] sm:$0xf] }
 0x7dc   :  { %v17724_v38 = vld [vmem:[#allocation16 + $0x1c20] sm:$0xf0]  ;;  %v14818_v21 = vld [vmem:[#allocation16 + $0x548] sm:$0xf]  ;;  %v14563_v20 = vor.u32 %v19245_v47, %v14562_v18 }
 0x7dd   :  { %v20096_v49 = vld [vmem:[#allocation16 + $0x1e04] sm:$0xf]  ;;  %v17727_v7 = vor.u32 %v20032_v48, %v17724_v38  ;;  %9631 = vmatpush.bf16.msra.mxu0 %v17471_v39  ;;  %v15074_v48 = vld [vmem:[#allocation16 + $0x748] sm:$0xf]  ;;  %v14819_v59 = vor.u32 %v19309_v42, %v14818_v21 }
 0x7de   :  { %v17980_v57 = vld [vmem:[#allocation16 + $0x1e20] sm:$0xf0]  ;;  %9619 = vmatmul.bf16.vlgmr.msrb.gmra.mxu3 %v21317_v43  ;;  %v19373_v38 = vld [vmem:[#allocation16 + $0x764] sm:$0xf0] }
 0x7df   :  { %v17983_v8 = vor.u32 %v20096_v49, %v17980_v57  ;;  %9644 = vmatpush.bf16.msra.mxu2 %v17727_v7  ;;  %9663 = vmatpush.bf16.msra.mxu3 %v14371_v10  ;;  %v14307_v49 = vor.u32 %v19181_v32, %v14306_v25  ;;  %v14274_v57 = vld [vmem:[#allocation16 + $0x108] sm:$0xf]  ;;  %v15075_v63 = vor.u32 %v19373_v38, %v15074_v48  ;;  %v9451_v7 = vpop.f32.mrf.mxu1  ;;  %v9438_v48 = vpop.f32.mrf.mxu2 }
 0x7e0   :  { %9632 = vmatmul.bf16.vlgmr.msra.gmra.mxu0 %v21321_v45  ;;  %v14530_v54 = vld [vmem:[#allocation16 + $0x308] sm:$0xf] }
 0x7e1   :  { %9657 = vmatpush.bf16.msra.mxu1 %v17983_v8  ;;  %9676 = vmatpush.bf16.msrb.mxu0 %v14627_v11  ;;  %v19237_v0 = vld [vmem:[#allocation16 + $0x324] sm:$0xf0]  ;;  %v14275_v8 = vor.u32 %v19173_v28, %v14274_v57  ;;  %v9427_v57 = vpop.f32.mrf.mxu0 }
 0x7e2   :  { %9645 = vmatmul.bf16.vlgmr.msra.gmra.mxu2 %v21325_v26  ;;  %v14786_v12 = vld [vmem:[#allocation16 + $0x508] sm:$0xf]  ;;  %v14531_v10 = vor.u32 %v19237_v0, %v14530_v54 }
 0x7e3   :  { %9689 = vmatpush.bf16.msrb.mxu2 %v14883_v52  ;;  %9664 = vmatpush.bf16.msra.mxu3 %v14339_v50  ;;  %v19301_v39 = vld [vmem:[#allocation16 + $0x524] sm:$0xf0] }
 0x7e4   :  { %9658 = vmatmul.bf16.vlgmr.msra.gmra.mxu1 %v21329_v27  ;;  %v15042_v5 = vld [vmem:[#allocation16 + $0x708] sm:$0xf]  ;;  %v14787_v34 = vor.u32 %v19301_v39, %v14786_v12 }
 0x7e5   :  { %9702 = vmatpush.bf16.msrb.mxu1 %v15139_v24  ;;  %9677 = vmatpush.bf16.msrb.mxu0 %v14595_v55  ;;  %v19365_v4 = vld [vmem:[#allocation16 + $0x724] sm:$0xf0] }
 0x7e6   :  { %v14242_v11 = vld [vmem:[#allocation16 + $0xc8] sm:$0xf]  ;;  %v15043_v52 = vor.u32 %v19365_v4, %v15042_v5 }
 0x7e7   :  { %9690 = vmatpush.bf16.msrb.mxu2 %v14851_v33  ;;  %9665 = vmatpush.bf16.msra.mxu3 %v14307_v49  ;;  %v19165_v13 = vld [vmem:[#allocation16 + $0xe4] sm:$0xf0] }
 0x7e8   :  { %v14498_v24 = vld [vmem:[#allocation16 + $0x2c8] sm:$0xf]  ;;  %v14243_v56 = vor.u32 %v19165_v13, %v14242_v11 }
 0x7e9   :  { %9703 = vmatpush.bf16.msrb.mxu1 %v15107_v40  ;;  %9678 = vmatpush.bf16.msrb.mxu0 %v14563_v20  ;;  %v19229_v35 = vld [vmem:[#allocation16 + $0x2e4] sm:$0xf0]  ;;  %v9412_v40 = vpop.f32.mrf.mxu3 }
 0x7ea   :  { %v14754_v44 = vld [vmem:[#allocation16 + $0x4c8] sm:$0xf]  ;;  %v14499_v50 = vor.u32 %v19229_v35, %v14498_v24  ;;  %v9413_v42 = vadd.f32 %v9412_v40, %v21408_v16 }
 0x7eb   :  { %9691 = vmatpush.bf16.msrb.mxu2 %v14819_v59  ;;  %v19293_v58 = vld [vmem:[#allocation16 + $0x4e4] sm:$0xf0]  ;;  %9666 = vmatpush.bf16.msra.mxu3 %v14275_v8  ;;  %v9453_v59 = vpop.f32.mrf.mxu1 }
 0x7ec   :  { %v15010_v29 = vld [vmem:[#allocation16 + $0x6c8] sm:$0xf]  ;;  %v14755_v32 = vor.u32 %v19293_v58, %v14754_v44  ;;  %v9426_v28 = vadd.f32 %v9425_v6, %v9413_v42 }
 0x7ed   :  { %9704 = vmatpush.bf16.msrb.mxu1 %v15075_v63  ;;  %v19357_v31 = vld [vmem:[#allocation16 + $0x6e4] sm:$0xf0]  ;;  %9679 = vmatpush.bf16.msrb.mxu0 %v14531_v10 }
 0x7ee   :  { %v14210_v55 = vld [vmem:[#allocation16 + $0x88] sm:$0xf]  ;;  %v15011_v33 = vor.u32 %v19357_v31, %v15010_v29  ;;  %v9439_v10 = vadd.f32 %v9438_v48, %v9426_v28 }
 0x7ef   :  { %v19157_v25 = vld [vmem:[#allocation16 + $0xa4] sm:$0xf0]  ;;  %9692 = vmatpush.bf16.msrb.mxu2 %v14787_v34  ;;  %9667 = vmatpush.bf16.msra.mxu3 %v14243_v56 }
 0x7f0   :  { %v14466_v18 = vld [vmem:[#allocation16 + $0x288] sm:$0xf]  ;;  %v14211_v63 = vor.u32 %v19157_v25, %v14210_v55  ;;  %v21415_v24 = vadd.f32 %v9451_v7, %v9439_v10 }
 0x7f1   :  { %9705 = vmatpush.bf16.msrb.mxu1 %v15043_v52  ;;  %v19221_v47 = vld [vmem:[#allocation16 + $0x2a4] sm:$0xf0]  ;;  %9680 = vmatpush.bf16.msrb.mxu0 %v14499_v50  ;;  %v9414_v50 = vpop.f32.mrf.mxu3 }
 0x7f2   :  { %v14722_v21 = vld [vmem:[#allocation16 + $0x488] sm:$0xf]  ;;  %v14467_v54 = vor.u32 %v19221_v47, %v14466_v18 }
 0x7f3   :  { %v19285_v38 = vld [vmem:[#allocation16 + $0x4a4] sm:$0xf0]  ;;  %9693 = vmatpush.bf16.msrb.mxu2 %v14755_v32  ;;  %9668 = vmatpush.bf16.msra.mxu3 %v14211_v63 }
 0x7f4   :  { %v14978_v49 = vld [vmem:[#allocation16 + $0x688] sm:$0xf]  ;;  %v14723_v39 = vor.u32 %v19285_v38, %v14722_v21 }
 0x7f5   :  { %v19349_v20 = vld [vmem:[#allocation16 + $0x6a4] sm:$0xf0]  ;;  %9706 = vmatpush.bf16.msrb.mxu1 %v15011_v33  ;;  %9681 = vmatpush.bf16.msrb.mxu0 %v14467_v54  ;;  %v9440_v33 = vpop.f32.mrf.mxu2 }
 0x7f6   :  { %v14178_v0 = vld [vmem:[#allocation16 + $0x48] sm:$0xf]  ;;  %v14979_v5 = vor.u32 %v19349_v20, %v14978_v49 }
 0x7f7   :  { %v19149_v12 = vld [vmem:[#allocation16 + $0x64] sm:$0xf0]  ;;  %9694 = vmatpush.bf16.msrb.mxu2 %v14723_v39 }
 0x7f8   :  { %v14434_v4 = vld [vmem:[#allocation16 + $0x248] sm:$0xf]  ;;  %v14179_v6 = vor.u32 %v19149_v12, %v14178_v0 }
 0x7f9   :  { %v19213_v8 = vld [vmem:[#allocation16 + $0x264] sm:$0xf0]  ;;  %9707 = vmatpush.bf16.msrb.mxu1 %v14979_v5 }
 0x7fa   :  { %v14690_v16 = vld [vmem:[#allocation16 + $0x448] sm:$0xf]  ;;  %v14435_v35 = vor.u32 %v19213_v8, %v14434_v4  ;;  %9669 = vmatpush.bf16.msra.mxu3 %v14179_v6 }
 0x7fb   :  { %v19277_v11 = vld [vmem:[#allocation16 + $0x464] sm:$0xf0] }
 0x7fc   :  { %v14946_v13 = vld [vmem:[#allocation16 + $0x648] sm:$0xf]  ;;  %v14691_v31 = vor.u32 %v19277_v11, %v14690_v16  ;;  %9682 = vmatpush.bf16.msrb.mxu0 %v14435_v35 }
 0x7fd   :  { %v19341_v34 = vld [vmem:[#allocation16 + $0x664] sm:$0xf0] }
 0x7fe   :  { %v14146_v52 = vld [vmem:[#allocation16 + $0x8] sm:$0xf]  ;;  %v14947_v56 = vor.u32 %v19341_v34, %v14946_v13  ;;  %9695 = vmatpush.bf16.msrb.mxu2 %v14691_v31 }
 0x7ff   :  { %v19141_v44 = vld [vmem:[#allocation16 + $0x24] sm:$0xf0] }
 0x800   :  { %v14402_v58 = vld [vmem:[#allocation16 + $0x208] sm:$0xf]  ;;  %v14147_v48 = vor.u32 %v19141_v44, %v14146_v52  ;;  %9708 = vmatpush.bf16.msrb.mxu1 %v14947_v56 }
 0x801   :  { %v19205_v29 = vld [vmem:[#allocation16 + $0x224] sm:$0xf0] }
 0x802   :  { %v14658_v55 = vld [vmem:[#allocation16 + $0x408] sm:$0xf]  ;;  %v14403_v38 = vor.u32 %v19205_v29, %v14402_v58  ;;  %9670 = vmatpush.bf16.msra.mxu3 %v14147_v48 }
 0x803   :  { %v19269_v25 = vld [vmem:[#allocation16 + $0x424] sm:$0xf0] }
 0x804   :  { %v14914_v32 = vld [vmem:[#allocation16 + $0x608] sm:$0xf]  ;;  %v14659_v28 = vor.u32 %v19269_v25, %v14658_v55  ;;  %9683 = vmatpush.bf16.msrb.mxu0 %v14403_v38 }
 0x805   :  { %v19333_v40 = vld [vmem:[#allocation16 + $0x624] sm:$0xf0]  ;;  %9671 = vmatmul.bf16.vlgmr.msra.gmra.mxu3 %v21257_v14 }
 0x806   :  { %v15394_v18 = vld [vmem:[#allocation16 + $0x9c8] sm:$0xf]  ;;  %v14915_v59 = vor.u32 %v19333_v40, %v14914_v32  ;;  %9696 = vmatpush.bf16.msrb.mxu2 %v14659_v28  ;;  %v9503_v28 = vpop.f32.mrf.mxu1 }
 0x807   :  { %v19453_v7 = vld [vmem:[#allocation16 + $0x9e4] sm:$0xf0]  ;;  %9684 = vmatmul.bf16.vlgmr.msrb.gmra.mxu0 %v21261_v15 }
 0x808   :  { %v15650_v47 = vld [vmem:[#allocation16 + $0xbc8] sm:$0xf]  ;;  %v15395_v63 = vor.u32 %v19453_v7, %v15394_v18  ;;  %9709 = vmatpush.bf16.msrb.mxu1 %v14915_v59 }
 0x809   :  { %v19517_v21 = vld [vmem:[#allocation16 + $0xbe4] sm:$0xf0]  ;;  %9697 = vmatmul.bf16.vlgmr.msrb.gmra.mxu2 %v21265_v22 }
 0x80a   :  { %v15906_v42 = vld [vmem:[#allocation16 + $0xdc8] sm:$0xf]  ;;  %v15651_v54 = vor.u32 %v19517_v21, %v15650_v47  ;;  %9715 = vmatpush.bf16.msrb.mxu3 %v15395_v63 }
 0x80b   :  { %v19581_v49 = vld [vmem:[#allocation16 + $0xde4] sm:$0xf0]  ;;  %9710 = vmatmul.bf16.vlgmr.msrb.gmra.mxu1 %v21269_v23 }
 0x80c   :  { %v16162_v20 = vld [vmem:[#allocation16 + $0xfc8] sm:$0xf]  ;;  %v15907_v39 = vor.u32 %v19581_v49, %v15906_v42  ;;  %9728 = vmatpush.bf16.msra.mxu0 %v15651_v54 }
 0x80d   :  { %v19645_v57 = vld [vmem:[#allocation16 + $0xfe4] sm:$0xf0] }
 0x80e   :  { %v15362_v0 = vld [vmem:[#allocation16 + $0x988] sm:$0xf]  ;;  %v16163_v5 = vor.u32 %v19645_v57, %v16162_v20  ;;  %9741 = vmatpush.bf16.msra.mxu2 %v15907_v39  ;;  %v9477_v57 = vpop.f32.mrf.mxu0 }
 0x80f   :  { %v19445_v12 = vld [vmem:[#allocation16 + $0x9a4] sm:$0xf0] }
 0x810   :  { %v15618_v4 = vld [vmem:[#allocation16 + $0xb88] sm:$0xf]  ;;  %v15363_v34 = vor.u32 %v19445_v12, %v15362_v0  ;;  %9754 = vmatpush.bf16.msra.mxu1 %v16163_v5 }
 0x811   :  { %v19509_v8 = vld [vmem:[#allocation16 + $0xba4] sm:$0xf0] }
 0x812   :  { %v15874_v16 = vld [vmem:[#allocation16 + $0xd88] sm:$0xf]  ;;  %v15619_v52 = vor.u32 %v19509_v8, %v15618_v4  ;;  %9716 = vmatpush.bf16.msrb.mxu3 %v15363_v34 }
 0x813   :  { %v19573_v10 = vld [vmem:[#allocation16 + $0xda4] sm:$0xf0] }
 0x814   :  { %v16130_v11 = vld [vmem:[#allocation16 + $0xf88] sm:$0xf]  ;;  %v15875_v44 = vor.u32 %v19573_v10, %v15874_v16  ;;  %9729 = vmatpush.bf16.msra.mxu0 %v15619_v52 }
 0x815   :  { %v19637_v13 = vld [vmem:[#allocation16 + $0xfa4] sm:$0xf0] }
 0x816   :  { %v15330_v6 = vld [vmem:[#allocation16 + $0x948] sm:$0xf]  ;;  %v16131_v58 = vor.u32 %v19637_v13, %v16130_v11  ;;  %9742 = vmatpush.bf16.msra.mxu2 %v15875_v44 }
 0x817   :  { %v19437_v35 = vld [vmem:[#allocation16 + $0x964] sm:$0xf0] }
 0x818   :  { %v15586_v29 = vld [vmem:[#allocation16 + $0xb48] sm:$0xf]  ;;  %v15331_v32 = vor.u32 %v19437_v35, %v15330_v6  ;;  %9755 = vmatpush.bf16.msra.mxu1 %v16131_v58  ;;  %v9464_v58 = vpop.f32.mrf.mxu3 }
 0x819   :  { %v19501_v31 = vld [vmem:[#allocation16 + $0xb64] sm:$0xf0] }
 0x81a   :  { %v15842_v56 = vld [vmem:[#allocation16 + $0xd48] sm:$0xf]  ;;  %v15587_v33 = vor.u32 %v19501_v31, %v15586_v29  ;;  %9717 = vmatpush.bf16.msrb.mxu3 %v15331_v32 }
 0x81b   :  { %v19565_v50 = vld [vmem:[#allocation16 + $0xd64] sm:$0xf0] }
 0x81c   :  { %v16098_v55 = vld [vmem:[#allocation16 + $0xf48] sm:$0xf]  ;;  %v15843_v7 = vor.u32 %v19565_v50, %v15842_v56  ;;  %9730 = vmatpush.bf16.msra.mxu0 %v15587_v33  ;;  %v9465_v50 = vadd.f32 %v9464_v58, %v21373_v62 }
 0x81d   :  { %v19629_v25 = vld [vmem:[#allocation16 + $0xf64] sm:$0xf0] }
 0x81e   :  { %v15298_v40 = vld [vmem:[#allocation16 + $0x908] sm:$0xf]  ;;  %v16099_v47 = vor.u32 %v19629_v25, %v16098_v55  ;;  %9743 = vmatpush.bf16.msra.mxu2 %v15843_v7  ;;  %v9490_v55 = vpop.f32.mrf.mxu2  ;;  %v9505_v7 = vpop.f32.mrf.mxu1 }
 0x81f   :  { %v19429_v18 = vld [vmem:[#allocation16 + $0x924] sm:$0xf0] }
 0x820   :  { %v15554_v21 = vld [vmem:[#allocation16 + $0xb08] sm:$0xf]  ;;  %v15299_v59 = vor.u32 %v19429_v18, %v15298_v40  ;;  %9756 = vmatpush.bf16.msra.mxu1 %v16099_v47  ;;  %v9479_v40 = vpop.f32.mrf.mxu0  ;;  %v9478_v18 = vadd.f32 %v9477_v57, %v9465_v50 }
 0x821   :  { %v19493_v42 = vld [vmem:[#allocation16 + $0xb24] sm:$0xf0] }
 0x822   :  { %v15810_v48 = vld [vmem:[#allocation16 + $0xd08] sm:$0xf]  ;;  %v15555_v63 = vor.u32 %v19493_v42, %v15554_v21  ;;  %9718 = vmatpush.bf16.msrb.mxu3 %v15299_v59 }
 0x823   :  { %v19557_v38 = vld [vmem:[#allocation16 + $0xd24] sm:$0xf0] }
 0x824   :  { %v16066_v49 = vld [vmem:[#allocation16 + $0xf08] sm:$0xf]  ;;  %v15811_v12 = vor.u32 %v19557_v38, %v15810_v48  ;;  %9731 = vmatpush.bf16.msra.mxu0 %v15555_v63  ;;  %v9491_v63 = vadd.f32 %v9490_v55, %v9478_v18 }
 0x825   :  { %v19621_v20 = vld [vmem:[#allocation16 + $0xf24] sm:$0xf0] }
 0x826   :  { %v15266_v54 = vld [vmem:[#allocation16 + $0x8c8] sm:$0xf]  ;;  %v16067_v39 = vor.u32 %v19621_v20, %v16066_v49  ;;  %9744 = vmatpush.bf16.msra.mxu2 %v15811_v12 }
 0x827   :  { %v19421_v0 = vld [vmem:[#allocation16 + $0x8e4] sm:$0xf0] }
 0x828   :  { %v15522_v5 = vld [vmem:[#allocation16 + $0xac8] sm:$0xf]  ;;  %v15267_v13 = vor.u32 %v19421_v0, %v15266_v54  ;;  %9757 = vmatpush.bf16.msra.mxu1 %v16067_v39 }
 0x829   :  { %v19485_v4 = vld [vmem:[#allocation16 + $0xae4] sm:$0xf0] }
 0x82a   :  { %v15778_v8 = vld [vmem:[#allocation16 + $0xcc8] sm:$0xf]  ;;  %v15523_v34 = vor.u32 %v19485_v4, %v15522_v5  ;;  %9719 = vmatpush.bf16.msrb.mxu3 %v15267_v13 }
 0x82b   :  { %v19549_v16 = vld [vmem:[#allocation16 + $0xce4] sm:$0xf0] }
 0x82c   :  { %v16034_v10 = vld [vmem:[#allocation16 + $0xec8] sm:$0xf]  ;;  %v15779_v35 = vor.u32 %v19549_v16, %v15778_v8  ;;  %9732 = vmatpush.bf16.msra.mxu0 %v15523_v34  ;;  %v9466_v34 = vpop.f32.mrf.mxu3 }
 0x82d   :  { %v19613_v11 = vld [vmem:[#allocation16 + $0xee4] sm:$0xf0] }
 0x82e   :  { %v15234_v52 = vld [vmem:[#allocation16 + $0x888] sm:$0xf]  ;;  %v16035_v44 = vor.u32 %v19613_v11, %v16034_v10  ;;  %9745 = vmatpush.bf16.msra.mxu2 %v15779_v35  ;;  %v21422_v10 = vadd.f32 %v9503_v28, %v9491_v63 }
 0x82f   :  { %v19413_v6 = vld [vmem:[#allocation16 + $0x8a4] sm:$0xf0] }
 0x830   :  { %v15490_v29 = vld [vmem:[#allocation16 + $0xa88] sm:$0xf]  ;;  %v15235_v47 = vor.u32 %v19413_v6, %v15234_v52  ;;  %9758 = vmatpush.bf16.msra.mxu1 %v16035_v44  ;;  %v9492_v44 = vpop.f32.mrf.mxu2 }
 0x831   :  { %v19477_v31 = vld [vmem:[#allocation16 + $0xaa4] sm:$0xf0] }
 0x832   :  { %v15746_v56 = vld [vmem:[#allocation16 + $0xc88] sm:$0xf]  ;;  %v15491_v21 = vor.u32 %v19477_v31, %v15490_v29  ;;  %9720 = vmatpush.bf16.msrb.mxu3 %v15235_v47 }
 0x833   :  { %v19541_v25 = vld [vmem:[#allocation16 + $0xca4] sm:$0xf0] }
 0x834   :  { %v16002_v32 = vld [vmem:[#allocation16 + $0xe88] sm:$0xf]  ;;  %v15747_v38 = vor.u32 %v19541_v25, %v15746_v56  ;;  %9733 = vmatpush.bf16.msra.mxu0 %v15491_v21 }
 0x835   :  { %v19605_v33 = vld [vmem:[#allocation16 + $0xea4] sm:$0xf0] }
 0x836   :  { %v15202_v42 = vld [vmem:[#allocation16 + $0x848] sm:$0xf]  ;;  %v16003_v49 = vor.u32 %v19605_v33, %v16002_v32  ;;  %9746 = vmatpush.bf16.msra.mxu2 %v15747_v38 }
 0x837   :  { %v19405_v48 = vld [vmem:[#allocation16 + $0x864] sm:$0xf0] }
 0x838   :  { %v15458_v20 = vld [vmem:[#allocation16 + $0xa48] sm:$0xf]  ;;  %v15203_v57 = vor.u32 %v19405_v48, %v15202_v42  ;;  %9759 = vmatpush.bf16.msra.mxu1 %v16003_v49 }
 0x839   :  { %v19469_v59 = vld [vmem:[#allocation16 + $0xa64] sm:$0xf0] }
 0x83a   :  { %v15714_v62 = vld [vmem:[#allocation16 + $0xc48] sm:$0xf]  ;;  %v15459_v5 = vor.u32 %v19469_v59, %v15458_v20  ;;  %9721 = vmatpush.bf16.msrb.mxu3 %v15203_v57 }
 0x83b   :  { %v19533_v54 = vld [vmem:[#allocation16 + $0xc64] sm:$0xf0] }
 0x83c   :  { %v15970_v0 = vld [vmem:[#allocation16 + $0xe48] sm:$0xf]  ;;  %v15715_v11 = vor.u32 %v19533_v54, %v15714_v62  ;;  %9734 = vmatpush.bf16.msra.mxu0 %v15459_v5 }
 0x83d   :  { %v19597_v12 = vld [vmem:[#allocation16 + $0xe64] sm:$0xf0] }
 0x83e   :  { %v15170_v39 = vld [vmem:[#allocation16 + $0x808] sm:$0xf]  ;;  %v15971_v13 = vor.u32 %v19597_v12, %v15970_v0  ;;  %9747 = vmatpush.bf16.msra.mxu2 %v15715_v11 }
 0x83f   :  { %v19397_v4 = vld [vmem:[#allocation16 + $0x824] sm:$0xf0] }
 0x840   :  { %v15426_v8 = vld [vmem:[#allocation16 + $0xa08] sm:$0xf]  ;;  %v15171_v25 = vor.u32 %v19397_v4, %v15170_v39  ;;  %9760 = vmatpush.bf16.msra.mxu1 %v15971_v13 }
 0x841   :  { %v19461_v16 = vld [vmem:[#allocation16 + $0xa24] sm:$0xf0] }
 0x842   :  { %v15682_v52 = vld [vmem:[#allocation16 + $0xc08] sm:$0xf]  ;;  %v15427_v28 = vor.u32 %v19461_v16, %v15426_v8  ;;  %9722 = vmatpush.bf16.msrb.mxu3 %v15171_v25 }
 0x843   :  { %v19525_v6 = vld [vmem:[#allocation16 + $0xc24] sm:$0xf0] }
 0x844   :  { %v15938_v35 = vld [vmem:[#allocation16 + $0xe08] sm:$0xf]  ;;  %v15683_v18 = vor.u32 %v19525_v6, %v15682_v52  ;;  %9735 = vmatpush.bf16.msra.mxu0 %v15427_v28 }
 0x845   :  { %v19589_v58 = vld [vmem:[#allocation16 + $0xe24] sm:$0xf0]  ;;  %9723 = vmatmul.bf16.vlgmr.msrb.gmra.mxu3 %v21277_v60 }
 0x846   :  { %v16418_v29 = vld [vmem:[#allocation16 + $0x11c8] sm:$0xf]  ;;  %v15939_v7 = vor.u32 %v19589_v58, %v15938_v35  ;;  %9748 = vmatpush.bf16.msra.mxu2 %v15683_v18  ;;  %v9555_v18 = vpop.f32.mrf.mxu1 }
 0x847   :  { %v19709_v31 = vld [vmem:[#allocation16 + $0x11e4] sm:$0xf0]  ;;  %9736 = vmatmul.bf16.vlgmr.msra.gmra.mxu0 %v21281_v61 }
 0x848   :  { %v16674_v56 = vld [vmem:[#allocation16 + $0x13c8] sm:$0xf]  ;;  %v16419_v47 = vor.u32 %v19709_v31, %v16418_v29  ;;  %9761 = vmatpush.bf16.msra.mxu1 %v15939_v7 }
 0x849   :  { %v19773_v50 = vld [vmem:[#allocation16 + $0x13e4] sm:$0xf0]  ;;  %9749 = vmatmul.bf16.vlgmr.msra.gmra.mxu2 %v21285_v1 }
 0x84a   :  { %v16930_v55 = vld [vmem:[#allocation16 + $0x15c8] sm:$0xf]  ;;  %v16675_v21 = vor.u32 %v19773_v50, %v16674_v56  ;;  %9767 = vmatpush.bf16.msra.mxu3 %v16419_v47 }
 0x84b   :  { %v19837_v32 = vld [vmem:[#allocation16 + $0x15e4] sm:$0xf0]  ;;  %9762 = vmatmul.bf16.vlgmr.msra.gmra.mxu1 %v21289_v2 }
 0x84c   :  { %v17186_v33 = vld [vmem:[#allocation16 + $0x17c8] sm:$0xf]  ;;  %v16931_v38 = vor.u32 %v19837_v32, %v16930_v55  ;;  %9780 = vmatpush.bf16.msrb.mxu0 %v16675_v21 }
 0x84d   :  { %v19901_v40 = vld [vmem:[#allocation16 + $0x17e4] sm:$0xf0] }
 0x84e   :  { %v16386_v42 = vld [vmem:[#allocation16 + $0x1188] sm:$0xf]  ;;  %v17187_v49 = vor.u32 %v19901_v40, %v17186_v33  ;;  %9793 = vmatpush.bf16.msrb.mxu2 %v16931_v38  ;;  %v9529_v40 = vpop.f32.mrf.mxu0 }
 0x84f   :  { %v19701_v48 = vld [vmem:[#allocation16 + $0x11a4] sm:$0xf0] }
 0x850   :  { %v16642_v20 = vld [vmem:[#allocation16 + $0x1388] sm:$0xf]  ;;  %v16387_v12 = vor.u32 %v19701_v48, %v16386_v42  ;;  %9806 = vmatpush.bf16.msrb.mxu1 %v17187_v49 }
 0x851   :  { %v19765_v59 = vld [vmem:[#allocation16 + $0x13a4] sm:$0xf0] }
 0x852   :  { %v16898_v62 = vld [vmem:[#allocation16 + $0x1588] sm:$0xf]  ;;  %v16643_v39 = vor.u32 %v19765_v59, %v16642_v20  ;;  %9768 = vmatpush.bf16.msra.mxu3 %v16387_v12 }
 0x853   :  { %v19829_v63 = vld [vmem:[#allocation16 + $0x15a4] sm:$0xf0] }
 0x854   :  { %v17154_v54 = vld [vmem:[#allocation16 + $0x1788] sm:$0xf]  ;;  %v16899_v4 = vor.u32 %v19829_v63, %v16898_v62  ;;  %9781 = vmatpush.bf16.msrb.mxu0 %v16643_v39 }
 0x855   :  { %v19893_v0 = vld [vmem:[#allocation16 + $0x17a4] sm:$0xf0] }
 0x856   :  { %v16354_v57 = vld [vmem:[#allocation16 + $0x1148] sm:$0xf]  ;;  %v17155_v8 = vor.u32 %v19893_v0, %v17154_v54  ;;  %9794 = vmatpush.bf16.msrb.mxu2 %v16899_v4 }
 0x857   :  { %v19693_v5 = vld [vmem:[#allocation16 + $0x1164] sm:$0xf0] }
 0x858   :  { %v16610_v16 = vld [vmem:[#allocation16 + $0x1348] sm:$0xf]  ;;  %v16355_v35 = vor.u32 %v19693_v5, %v16354_v57  ;;  %9807 = vmatpush.bf16.msrb.mxu1 %v17155_v8  ;;  %v9516_v8 = vpop.f32.mrf.mxu3 }
 0x859   :  { %v19757_v11 = vld [vmem:[#allocation16 + $0x1364] sm:$0xf0] }
 0x85a   :  { %v16866_v13 = vld [vmem:[#allocation16 + $0x1548] sm:$0xf]  ;;  %v16611_v44 = vor.u32 %v19757_v11, %v16610_v16  ;;  %9769 = vmatpush.bf16.msra.mxu3 %v16355_v35 }
 0x85b   :  { %v19821_v34 = vld [vmem:[#allocation16 + $0x1564] sm:$0xf0] }
 0x85c   :  { %v17122_v52 = vld [vmem:[#allocation16 + $0x1748] sm:$0xf]  ;;  %v16867_v31 = vor.u32 %v19821_v34, %v16866_v13  ;;  %9782 = vmatpush.bf16.msrb.mxu0 %v16611_v44  ;;  %v9517_v34 = vadd.f32 %v9516_v8, %v21422_v10 }
 0x85d   :  { %v19885_v6 = vld [vmem:[#allocation16 + $0x1764] sm:$0xf0] }
 0x85e   :  { %v16322_v58 = vld [vmem:[#allocation16 + $0x1108] sm:$0xf]  ;;  %v17123_v56 = vor.u32 %v19885_v6, %v17122_v52  ;;  %9795 = vmatpush.bf16.msrb.mxu2 %v16867_v31  ;;  %v9542_v52 = vpop.f32.mrf.mxu2  ;;  %v9557_v31 = vpop.f32.mrf.mxu1 }
 0x85f   :  { %v19685_v29 = vld [vmem:[#allocation16 + $0x1124] sm:$0xf0] }
 0x860   :  { %v16578_v50 = vld [vmem:[#allocation16 + $0x1308] sm:$0xf]  ;;  %v16323_v7 = vor.u32 %v19685_v29, %v16322_v58  ;;  %9808 = vmatpush.bf16.msrb.mxu1 %v17123_v56  ;;  %v9531_v58 = vpop.f32.mrf.mxu0  ;;  %v9530_v29 = vadd.f32 %v9529_v40, %v9517_v34 }
 0x861   :  { %v19749_v55 = vld [vmem:[#allocation16 + $0x1324] sm:$0xf0] }
 0x862   :  { %v16834_v25 = vld [vmem:[#allocation16 + $0x1508] sm:$0xf]  ;;  %v16579_v47 = vor.u32 %v19749_v55, %v16578_v50  ;;  %9770 = vmatpush.bf16.msra.mxu3 %v16323_v7 }
 0x863   :  { %v19813_v28 = vld [vmem:[#allocation16 + $0x1524] sm:$0xf0] }
 0x864   :  { %v17090_v32 = vld [vmem:[#allocation16 + $0x1708] sm:$0xf]  ;;  %v16835_v48 = vor.u32 %v19813_v28, %v16834_v25  ;;  %9783 = vmatpush.bf16.msrb.mxu0 %v16579_v47  ;;  %v9543_v47 = vadd.f32 %v9542_v52, %v9530_v29 }
 0x865   :  { %v19877_v33 = vld [vmem:[#allocation16 + $0x1724] sm:$0xf0] }
 0x866   :  { %v16290_v21 = vld [vmem:[#allocation16 + $0x10c8] sm:$0xf]  ;;  %v17091_v38 = vor.u32 %v19877_v33, %v17090_v32  ;;  %9796 = vmatpush.bf16.msrb.mxu2 %v16835_v48 }
 0x867   :  { %v19677_v42 = vld [vmem:[#allocation16 + $0x10e4] sm:$0xf0] }
 0x868   :  { %v16546_v49 = vld [vmem:[#allocation16 + $0x12c8] sm:$0xf]  ;;  %v16291_v0 = vor.u32 %v19677_v42, %v16290_v21  ;;  %9809 = vmatpush.bf16.msrb.mxu1 %v17091_v38 }
 0x869   :  { %v19741_v20 = vld [vmem:[#allocation16 + $0x12e4] sm:$0xf0] }
 0x86a   :  { %v16802_v59 = vld [vmem:[#allocation16 + $0x14c8] sm:$0xf]  ;;  %v16547_v12 = vor.u32 %v19741_v20, %v16546_v49  ;;  %9771 = vmatpush.bf16.msra.mxu3 %v16291_v0 }
 0x86b   :  { %v19805_v62 = vld [vmem:[#allocation16 + $0x14e4] sm:$0xf0] }
 0x86c   :  { %v17058_v63 = vld [vmem:[#allocation16 + $0x16c8] sm:$0xf]  ;;  %v16803_v5 = vor.u32 %v19805_v62, %v16802_v59  ;;  %9784 = vmatpush.bf16.msrb.mxu0 %v16547_v12  ;;  %v9518_v12 = vpop.f32.mrf.mxu3 }
 0x86d   :  { %v19869_v54 = vld [vmem:[#allocation16 + $0x16e4] sm:$0xf0] }
 0x86e   :  { %v16258_v39 = vld [vmem:[#allocation16 + $0x1088] sm:$0xf]  ;;  %v17059_v4 = vor.u32 %v19869_v54, %v17058_v63  ;;  %9797 = vmatpush.bf16.msrb.mxu2 %v16803_v5  ;;  %v21429_v63 = vadd.f32 %v9555_v18, %v9543_v47 }
 0x86f   :  { %v19669_v57 = vld [vmem:[#allocation16 + $0x10a4] sm:$0xf0] }
 0x870   :  { %v16514_v16 = vld [vmem:[#allocation16 + $0x1288] sm:$0xf]  ;;  %v16259_v56 = vor.u32 %v19669_v57, %v16258_v39  ;;  %9810 = vmatpush.bf16.msrb.mxu1 %v17059_v4  ;;  %v9544_v4 = vpop.f32.mrf.mxu2 }
 0x871   :  { %v19733_v11 = vld [vmem:[#allocation16 + $0x12a4] sm:$0xf0] }
 0x872   :  { %v16770_v13 = vld [vmem:[#allocation16 + $0x1488] sm:$0xf]  ;;  %v16515_v50 = vor.u32 %v19733_v11, %v16514_v16  ;;  %9772 = vmatpush.bf16.msra.mxu3 %v16259_v56 }
 0x873   :  { %v19797_v6 = vld [vmem:[#allocation16 + $0x14a4] sm:$0xf0] }
 0x874   :  { %v17026_v35 = vld [vmem:[#allocation16 + $0x1688] sm:$0xf]  ;;  %v16771_v28 = vor.u32 %v19797_v6, %v16770_v13  ;;  %9785 = vmatpush.bf16.msrb.mxu0 %v16515_v50 }
 0x875   :  { %v19861_v44 = vld [vmem:[#allocation16 + $0x16a4] sm:$0xf0] }
 0x876   :  { %v16226_v55 = vld [vmem:[#allocation16 + $0x1048] sm:$0xf]  ;;  %v17027_v32 = vor.u32 %v19861_v44, %v17026_v35  ;;  %9798 = vmatpush.bf16.msrb.mxu2 %v16771_v28 }
 0x877   :  { %v19661_v25 = vld [vmem:[#allocation16 + $0x1064] sm:$0xf0] }
 0x878   :  { %v16482_v33 = vld [vmem:[#allocation16 + $0x1248] sm:$0xf]  ;;  %v16227_v40 = vor.u32 %v19661_v25, %v16226_v55  ;;  %9811 = vmatpush.bf16.msrb.mxu1 %v17027_v32 }
 0x879   :  { %v19725_v7 = vld [vmem:[#allocation16 + $0x1264] sm:$0xf0] }
 0x87a   :  { %v16738_v10 = vld [vmem:[#allocation16 + $0x1448] sm:$0xf]  ;;  %v16483_v49 = vor.u32 %v19725_v7, %v16482_v33  ;;  %9773 = vmatpush.bf16.msra.mxu3 %v16227_v40 }
 0x87b   :  { %v19789_v21 = vld [vmem:[#allocation16 + $0x1464] sm:$0xf0] }
 0x87c   :  { %v16994_v42 = vld [vmem:[#allocation16 + $0x1648] sm:$0xf]  ;;  %v16739_v54 = vor.u32 %v19789_v21, %v16738_v10  ;;  %9786 = vmatpush.bf16.msrb.mxu0 %v16483_v49 }
 0x87d   :  { %v19853_v48 = vld [vmem:[#allocation16 + $0x1664] sm:$0xf0] }
 0x87e   :  { %v16194_v38 = vld [vmem:[#allocation16 + $0x1008] sm:$0xf]  ;;  %v16995_v0 = vor.u32 %v19853_v48, %v16994_v42  ;;  %9799 = vmatpush.bf16.msrb.mxu2 %v16739_v54 }
 0x87f   :  { %v19653_v20 = vld [vmem:[#allocation16 + $0x1024] sm:$0xf0] }
 0x880   :  { %v16450_v59 = vld [vmem:[#allocation16 + $0x1208] sm:$0xf]  ;;  %v16195_v6 = vor.u32 %v19653_v20, %v16194_v38  ;;  %9812 = vmatpush.bf16.msrb.mxu1 %v16995_v0 }
 0x881   :  { %v19717_v62 = vld [vmem:[#allocation16 + $0x1224] sm:$0xf0] }
 0x882   :  { %v16706_v39 = vld [vmem:[#allocation16 + $0x1408] sm:$0xf]  ;;  %v16451_v18 = vor.u32 %v19717_v62, %v16450_v59  ;;  %9774 = vmatpush.bf16.msra.mxu3 %v16195_v6 }
 0x883   :  { %v19781_v57 = vld [vmem:[#allocation16 + $0x1424] sm:$0xf0] }
 0x884   :  { %v16962_v5 = vld [vmem:[#allocation16 + $0x1608] sm:$0xf]  ;;  %v16707_v29 = vor.u32 %v19781_v57, %v16706_v39  ;;  %9787 = vmatpush.bf16.msrb.mxu0 %v16451_v18 }
 0x885   :  { %v19845_v8 = vld [vmem:[#allocation16 + $0x1624] sm:$0xf0]  ;;  %9775 = vmatmul.bf16.vlgmr.msra.gmra.mxu3 %v21297_v36 }
 0x886   :  { %v17442_v16 = vld [vmem:[#allocation16 + $0x19c8] sm:$0xf]  ;;  %v16963_v31 = vor.u32 %v19845_v8, %v16962_v5  ;;  %9800 = vmatpush.bf16.msrb.mxu2 %v16707_v29  ;;  %v9607_v29 = vpop.f32.mrf.mxu1 }
 0x887   :  { %v19965_v11 = vld [vmem:[#allocation16 + $0x19e4] sm:$0xf0]  ;;  %9788 = vmatmul.bf16.vlgmr.msrb.gmra.mxu0 %v21301_v37 }
 0x888   :  { %v17698_v13 = vld [vmem:[#allocation16 + $0x1bc8] sm:$0xf]  ;;  %v17443_v56 = vor.u32 %v19965_v11, %v17442_v16  ;;  %9813 = vmatpush.bf16.msrb.mxu1 %v16963_v31 }
 0x889   :  { %v20029_v34 = vld [vmem:[#allocation16 + $0x1be4] sm:$0xf0]  ;;  %9801 = vmatmul.bf16.vlgmr.msrb.gmra.mxu2 %v21305_v41 }
 0x88a   :  { %v17954_v52 = vld [vmem:[#allocation16 + $0x1dc8] sm:$0xf]  ;;  %v17699_v50 = vor.u32 %v20029_v34, %v17698_v13  ;;  %9819 = vmatpush.bf16.msrb.mxu3 %v17443_v56 }
 0x88b   :  { %v20093_v35 = vld [vmem:[#allocation16 + $0x1de4] sm:$0xf0]  ;;  %9814 = vmatmul.bf16.vlgmr.msrb.gmra.mxu1 %v21309_v46 }
 0x88c   :  { %v18210_v44 = vld [vmem:[#allocation16 + $0x1fc8] sm:$0xf]  ;;  %v17955_v28 = vor.u32 %v20093_v35, %v17954_v52  ;;  %9832 = vmatpush.bf16.msra.mxu0 %v17699_v50 }
 0x88d   :  { %v20157_v58 = vld [vmem:[#allocation16 + $0x1fe4] sm:$0xf0] }
 0x88e   :  { %v17410_v55 = vld [vmem:[#allocation16 + $0x1988] sm:$0xf]  ;;  %v18211_v32 = vor.u32 %v20157_v58, %v18210_v44  ;;  %9845 = vmatpush.bf16.msra.mxu2 %v17955_v28  ;;  %v9581_v58 = vpop.f32.mrf.mxu0 }
 0x88f   :  { %v19957_v25 = vld [vmem:[#allocation16 + $0x19a4] sm:$0xf0] }
 0x890   :  { %v17666_v33 = vld [vmem:[#allocation16 + $0x1b88] sm:$0xf]  ;;  %v17411_v48 = vor.u32 %v19957_v25, %v17410_v55  ;;  %9858 = vmatpush.bf16.msra.mxu1 %v18211_v32 }
 0x891   :  { %v20021_v7 = vld [vmem:[#allocation16 + $0x1ba4] sm:$0xf0] }
 0x892   :  { %v17922_v10 = vld [vmem:[#allocation16 + $0x1d88] sm:$0xf]  ;;  %v17667_v38 = vor.u32 %v20021_v7, %v17666_v33  ;;  %9820 = vmatpush.bf16.msrb.mxu3 %v17411_v48 }
 0x893   :  { %v20085_v47 = vld [vmem:[#allocation16 + $0x1da4] sm:$0xf0] }
 0x894   :  { %v18178_v21 = vld [vmem:[#allocation16 + $0x1f88] sm:$0xf]  ;;  %v17923_v20 = vor.u32 %v20085_v47, %v17922_v10  ;;  %9833 = vmatpush.bf16.msra.mxu0 %v17667_v38 }
 0x895   :  { %v20149_v42 = vld [vmem:[#allocation16 + $0x1fa4] sm:$0xf0] }
 0x896   :  { %v17378_v40 = vld [vmem:[#allocation16 + $0x1948] sm:$0xf]  ;;  %v18179_v59 = vor.u32 %v20149_v42, %v18178_v21  ;;  %9846 = vmatpush.bf16.msra.mxu2 %v17923_v20 }
 0x897   :  { %v19949_v49 = vld [vmem:[#allocation16 + $0x1964] sm:$0xf0] }
 0x898   :  { %v17634_v62 = vld [vmem:[#allocation16 + $0x1b48] sm:$0xf]  ;;  %v17379_v5 = vor.u32 %v19949_v49, %v17378_v40  ;;  %9859 = vmatpush.bf16.msra.mxu1 %v18179_v59  ;;  %v9568_v59 = vpop.f32.mrf.mxu3 }
 0x899   :  { %v20013_v54 = vld [vmem:[#allocation16 + $0x1b64] sm:$0xf0] }
 0x89a   :  { %v17890_v0 = vld [vmem:[#allocation16 + $0x1d48] sm:$0xf]  ;;  %v17635_v4 = vor.u32 %v20013_v54, %v17634_v62  ;;  %9821 = vmatpush.bf16.msrb.mxu3 %v17379_v5 }
 0x89b   :  { %v20077_v12 = vld [vmem:[#allocation16 + $0x1d64] sm:$0xf0] }
 0x89c   :  { %v18146_v39 = vld [vmem:[#allocation16 + $0x1f48] sm:$0xf]  ;;  %v17891_v11 = vor.u32 %v20077_v12, %v17890_v0  ;;  %9834 = vmatpush.bf16.msra.mxu0 %v17635_v4  ;;  %v9569_v12 = vadd.f32 %v9568_v59, %v21429_v63 }
 0x89d   :  { %v20141_v57 = vld [vmem:[#allocation16 + $0x1f64] sm:$0xf0] }
 0x89e   :  { %v17346_v8 = vld [vmem:[#allocation16 + $0x1908] sm:$0xf]  ;;  %v18147_v13 = vor.u32 %v20141_v57, %v18146_v39  ;;  %9847 = vmatpush.bf16.msra.mxu2 %v17891_v11  ;;  %v9594_v39 = vpop.f32.mrf.mxu2  ;;  %v9609_v11 = vpop.f32.mrf.mxu1 }
 0x89f   :  { %v19941_v16 = vld [vmem:[#allocation16 + $0x1924] sm:$0xf0] }
 0x8a0   :  { %v17602_v34 = vld [vmem:[#allocation16 + $0x1b08] sm:$0xf]  ;;  %v17347_v31 = vor.u32 %v19941_v16, %v17346_v8  ;;  %9860 = vmatpush.bf16.msra.mxu1 %v18147_v13  ;;  %v9583_v8 = vpop.f32.mrf.mxu0  ;;  %v9582_v16 = vadd.f32 %v9581_v58, %v9569_v12  ;;  %v14628_v12 = vld [vmem:[#allocation16 + $0x3e8] sm:$0xf0] }
 0x8a1   :  { %v20005_v52 = vld [vmem:[#allocation16 + $0x1b24] sm:$0xf0]  ;;  %v15140_v8 = vld [vmem:[#allocation16 + $0x7e8] sm:$0xf0] }
 0x8a2   :  { %v17858_v6 = vld [vmem:[#allocation16 + $0x1d08] sm:$0xf]  ;;  %v17603_v56 = vor.u32 %v20005_v52, %v17602_v34  ;;  %9822 = vmatpush.bf16.msrb.mxu3 %v17347_v31 }
 0x8a3   :  { %v20069_v18 = vld [vmem:[#allocation16 + $0x1d24] sm:$0xf0] }
 0x8a4   :  { %v18114_v35 = vld [vmem:[#allocation16 + $0x1f08] sm:$0xf]  ;;  %v17859_v25 = vor.u32 %v20069_v18, %v17858_v6  ;;  %9835 = vmatpush.bf16.msra.mxu0 %v17603_v56  ;;  %v9595_v56 = vadd.f32 %v9594_v39, %v9582_v16  ;;  %v19321_v39 = vld [vmem:[#allocation16 + $0x5cc] sm:$0xf] }
 0x8a5   :  { %v20133_v44 = vld [vmem:[#allocation16 + $0x1f24] sm:$0xf0] }
 0x8a6   :  { %v17314_v50 = vld [vmem:[#allocation16 + $0x18c8] sm:$0xf]  ;;  %v18115_v28 = vor.u32 %v20133_v44, %v18114_v35  ;;  %9848 = vmatpush.bf16.msra.mxu2 %v17859_v25 }
 0x8a7   :  { %v19933_v55 = vld [vmem:[#allocation16 + $0x18e4] sm:$0xf0] }
 0x8a8   :  { %v17570_v32 = vld [vmem:[#allocation16 + $0x1ac8] sm:$0xf]  ;;  %v17315_v42 = vor.u32 %v19933_v55, %v17314_v50  ;;  %9861 = vmatpush.bf16.msra.mxu1 %v18115_v28 }
 0x8a9   :  { %v19997_v33 = vld [vmem:[#allocation16 + $0x1ae4] sm:$0xf0] }
 0x8aa   :  { %v17826_v7 = vld [vmem:[#allocation16 + $0x1cc8] sm:$0xf]  ;;  %v17571_v48 = vor.u32 %v19997_v33, %v17570_v32  ;;  %9823 = vmatpush.bf16.msrb.mxu3 %v17315_v42 }
 0x8ab   :  { %v20061_v10 = vld [vmem:[#allocation16 + $0x1ce4] sm:$0xf0] }
 0x8ac   :  { %v18082_v47 = vld [vmem:[#allocation16 + $0x1ec8] sm:$0xf]  ;;  %v17827_v49 = vor.u32 %v20061_v10, %v17826_v7  ;;  %9836 = vmatpush.bf16.msra.mxu0 %v17571_v48  ;;  %v9570_v48 = vpop.f32.mrf.mxu3 }
 0x8ad   :  { %v20125_v21 = vld [vmem:[#allocation16 + $0x1ee4] sm:$0xf0]  ;;  %v14820_v48 = vld [vmem:[#allocation16 + $0x568] sm:$0xf0] }
 0x8ae   :  { %v17282_v38 = vld [vmem:[#allocation16 + $0x1888] sm:$0xf]  ;;  %v18083_v20 = vor.u32 %v20125_v21, %v18082_v47  ;;  %9849 = vmatpush.bf16.msra.mxu2 %v17827_v49  ;;  %v21436_v47 = vadd.f32 %v9607_v29, %v9595_v56  ;;  %v14852_v56 = vld [vmem:[#allocation16 + $0x5a8] sm:$0xf0] }
 0x8af   :  { %v19925_v40 = vld [vmem:[#allocation16 + $0x18a4] sm:$0xf0] }
 0x8b0   :  { %v17538_v62 = vld [vmem:[#allocation16 + $0x1a88] sm:$0xf]  ;;  %v17283_v13 = vor.u32 %v19925_v40, %v17282_v38  ;;  %9862 = vmatpush.bf16.msra.mxu1 %v18083_v20  ;;  %v9596_v20 = vpop.f32.mrf.mxu2 }
 0x8b1   :  { %v19989_v54 = vld [vmem:[#allocation16 + $0x1aa4] sm:$0xf0] }
 0x8b2   :  { %v17794_v0 = vld [vmem:[#allocation16 + $0x1c88] sm:$0xf]  ;;  %v17539_v34 = vor.u32 %v19989_v54, %v17538_v62  ;;  %9824 = vmatpush.bf16.msrb.mxu3 %v17283_v13  ;;  %v19193_v62 = vld [vmem:[#allocation16 + $0x1cc] sm:$0xf] }
 0x8b3   :  { %v20053_v57 = vld [vmem:[#allocation16 + $0x1ca4] sm:$0xf0]  ;;  %v14372_v54 = vld [vmem:[#allocation16 + $0x1e8] sm:$0xf0] }
 0x8b4   :  { %v18050_v5 = vld [vmem:[#allocation16 + $0x1e88] sm:$0xf]  ;;  %v17795_v18 = vor.u32 %v20053_v57, %v17794_v0  ;;  %9837 = vmatpush.bf16.msra.mxu0 %v17539_v34  ;;  %v19257_v0 = vld [vmem:[#allocation16 + $0x3cc] sm:$0xf]  ;;  %v14375_v13 = vor.u32 %v19193_v62, %v14372_v54 }
 0x8b5   :  { %v20117_v4 = vld [vmem:[#allocation16 + $0x1ea4] sm:$0xf0]  ;;  %v14631_v34 = vor.u32 %v19257_v0, %v14628_v12  ;;  %v14276_v62 = vld [vmem:[#allocation16 + $0x128] sm:$0xf0] }
 0x8b6   :  { %v17250_v52 = vld [vmem:[#allocation16 + $0x1848] sm:$0xf]  ;;  %v18051_v35 = vor.u32 %v20117_v4, %v18050_v5  ;;  %9850 = vmatpush.bf16.msra.mxu2 %v17795_v18  ;;  %v14884_v5 = vld [vmem:[#allocation16 + $0x5e8] sm:$0xf0] }
 0x8b7   :  { %v19917_v6 = vld [vmem:[#allocation16 + $0x1864] sm:$0xf0]  ;;  %v19385_v4 = vld [vmem:[#allocation16 + $0x7cc] sm:$0xf]  ;;  %v14887_v18 = vor.u32 %v19321_v39, %v14884_v5 }
 0x8b8   :  { %v17506_v44 = vld [vmem:[#allocation16 + $0x1a48] sm:$0xf]  ;;  %v17251_v58 = vor.u32 %v19917_v6, %v17250_v52  ;;  %9863 = vmatpush.bf16.msra.mxu1 %v18051_v35  ;;  %v19185_v52 = vld [vmem:[#allocation16 + $0x18c] sm:$0xf]  ;;  %v15143_v35 = vor.u32 %v19385_v4, %v15140_v8  ;;  %v9633_v8 = vpop.f32.mrf.mxu0 }
 0x8b9   :  { %v19981_v31 = vld [vmem:[#allocation16 + $0x1a64] sm:$0xf0]  ;;  %v14340_v6 = vld [vmem:[#allocation16 + $0x1a8] sm:$0xf0] }
 0x8ba   :  { %v17762_v63 = vld [vmem:[#allocation16 + $0x1c48] sm:$0xf]  ;;  %v17507_v32 = vor.u32 %v19981_v31, %v17506_v44  ;;  %9825 = vmatpush.bf16.msrb.mxu3 %v17251_v58  ;;  %v19249_v44 = vld [vmem:[#allocation16 + $0x38c] sm:$0xf] }
 0x8bb   :  { %v20045_v50 = vld [vmem:[#allocation16 + $0x1c64] sm:$0xf0]  ;;  %v14596_v31 = vld [vmem:[#allocation16 + $0x3a8] sm:$0xf0] }
 0x8bc   :  { %v18018_v55 = vld [vmem:[#allocation16 + $0x1e48] sm:$0xf]  ;;  %v17763_v21 = vor.u32 %v20045_v50, %v17762_v63  ;;  %9838 = vmatpush.bf16.msra.mxu0 %v17507_v32  ;;  %v19313_v63 = vld [vmem:[#allocation16 + $0x58c] sm:$0xf] }
 0x8bd   :  { %v20109_v25 = vld [vmem:[#allocation16 + $0x1e64] sm:$0xf0]  ;;  %v19377_v50 = vld [vmem:[#allocation16 + $0x78c] sm:$0xf] }
 0x8be   :  { %v17218_v28 = vld [vmem:[#allocation16 + $0x1808] sm:$0xf]  ;;  %v18019_v42 = vor.u32 %v20109_v25, %v18018_v55  ;;  %9851 = vmatpush.bf16.msra.mxu2 %v17763_v21  ;;  %v15108_v55 = vld [vmem:[#allocation16 + $0x7a8] sm:$0xf0]  ;;  %v14343_v25 = vor.u32 %v19185_v52, %v14340_v6 }
 0x8bf   :  { %v19909_v33 = vld [vmem:[#allocation16 + $0x1824] sm:$0xf0]  ;;  %v19177_v58 = vld [vmem:[#allocation16 + $0x14c] sm:$0xf] }
 0x8c0   :  { %v17474_v7 = vld [vmem:[#allocation16 + $0x1a08] sm:$0xf]  ;;  %v17219_v57 = vor.u32 %v19909_v33, %v17218_v28  ;;  %9864 = vmatpush.bf16.msra.mxu1 %v18019_v42  ;;  %v14599_v28 = vor.u32 %v19249_v44, %v14596_v31  ;;  %v14308_v32 = vld [vmem:[#allocation16 + $0x168] sm:$0xf0]  ;;  %v14855_v33 = vor.u32 %v19313_v63, %v14852_v56 }
 0x8c1   :  { %v19973_v10 = vld [vmem:[#allocation16 + $0x1a24] sm:$0xf0]  ;;  %v14564_v21 = vld [vmem:[#allocation16 + $0x368] sm:$0xf0] }
 0x8c2   :  { %v17730_v38 = vld [vmem:[#allocation16 + $0x1c08] sm:$0xf]  ;;  %v17475_v29 = vor.u32 %v19973_v10, %v17474_v7  ;;  %9826 = vmatpush.bf16.msrb.mxu3 %v17219_v57  ;;  %v15111_v7 = vor.u32 %v19377_v50, %v15108_v55  ;;  %v19241_v10 = vld [vmem:[#allocation16 + $0x34c] sm:$0xf] }
 0x8c3   :  { %v20037_v40 = vld [vmem:[#allocation16 + $0x1c24] sm:$0xf0]  ;;  %v19305_v42 = vld [vmem:[#allocation16 + $0x54c] sm:$0xf]  ;;  %v14567_v20 = vor.u32 %v19241_v10, %v14564_v21 }
 0x8c4   :  { %v17986_v49 = vld [vmem:[#allocation16 + $0x1e08] sm:$0xf]  ;;  %v17731_v16 = vor.u32 %v20037_v40, %v17730_v38  ;;  %9839 = vmatpush.bf16.msra.mxu0 %v17475_v29  ;;  %v19369_v38 = vld [vmem:[#allocation16 + $0x74c] sm:$0xf]  ;;  %v14823_v54 = vor.u32 %v19305_v42, %v14820_v48 }
 0x8c5   :  { %v20101_v59 = vld [vmem:[#allocation16 + $0x1e24] sm:$0xf0]  ;;  %9827 = vmatmul.bf16.vlgmr.msrb.gmra.mxu3 %v21317_v43  ;;  %v15076_v40 = vld [vmem:[#allocation16 + $0x768] sm:$0xf0] }
 0x8c6   :  { %v17987_v11 = vor.u32 %v20101_v59, %v17986_v49  ;;  %9852 = vmatpush.bf16.msra.mxu2 %v17731_v16  ;;  %9871 = vmatpush.bf16.msra.mxu3 %v14375_v13  ;;  %v14311_v49 = vor.u32 %v19177_v58, %v14308_v32  ;;  %v19169_v59 = vld [vmem:[#allocation16 + $0x10c] sm:$0xf]  ;;  %v15079_v0 = vor.u32 %v19369_v38, %v15076_v40  ;;  %v9659_v16 = vpop.f32.mrf.mxu1  ;;  %v9646_v38 = vpop.f32.mrf.mxu2 }
 0x8c7   :  { %9840 = vmatmul.bf16.vlgmr.msra.gmra.mxu0 %v21321_v45  ;;  %v19233_v12 = vld [vmem:[#allocation16 + $0x30c] sm:$0xf] }
 0x8c8   :  { %9865 = vmatpush.bf16.msra.mxu1 %v17987_v11  ;;  %9884 = vmatpush.bf16.msrb.mxu0 %v14631_v34  ;;  %v14532_v39 = vld [vmem:[#allocation16 + $0x328] sm:$0xf0]  ;;  %v14279_v11 = vor.u32 %v19169_v59, %v14276_v62  ;;  %v9635_v59 = vpop.f32.mrf.mxu0 }
 0x8c9   :  { %9853 = vmatmul.bf16.vlgmr.msra.gmra.mxu2 %v21325_v26  ;;  %v19297_v57 = vld [vmem:[#allocation16 + $0x50c] sm:$0xf]  ;;  %v14535_v13 = vor.u32 %v19233_v12, %v14532_v39 }
 0x8ca   :  { %9897 = vmatpush.bf16.msrb.mxu2 %v14887_v18  ;;  %9872 = vmatpush.bf16.msra.mxu3 %v14343_v25  ;;  %v14788_v29 = vld [vmem:[#allocation16 + $0x528] sm:$0xf0] }
 0x8cb   :  { %9866 = vmatmul.bf16.vlgmr.msra.gmra.mxu1 %v21329_v27  ;;  %v19361_v5 = vld [vmem:[#allocation16 + $0x70c] sm:$0xf]  ;;  %v14791_v6 = vor.u32 %v19297_v57, %v14788_v29 }
 0x8cc   :  { %9910 = vmatpush.bf16.msrb.mxu1 %v15143_v35  ;;  %9885 = vmatpush.bf16.msrb.mxu0 %v14599_v28  ;;  %v15044_v4 = vld [vmem:[#allocation16 + $0x728] sm:$0xf0] }
 0x8cd   :  { %v19161_v34 = vld [vmem:[#allocation16 + $0xcc] sm:$0xf]  ;;  %v15047_v18 = vor.u32 %v19361_v5, %v15044_v4 }
 0x8ce   :  { %9898 = vmatpush.bf16.msrb.mxu2 %v14855_v33  ;;  %9873 = vmatpush.bf16.msra.mxu3 %v14311_v49  ;;  %v14244_v52 = vld [vmem:[#allocation16 + $0xe8] sm:$0xf0] }
 0x8cf   :  { %v19225_v35 = vld [vmem:[#allocation16 + $0x2cc] sm:$0xf]  ;;  %v14247_v55 = vor.u32 %v19161_v34, %v14244_v52 }
 0x8d0   :  { %9911 = vmatpush.bf16.msrb.mxu1 %v15111_v7  ;;  %9886 = vmatpush.bf16.msrb.mxu0 %v14567_v20  ;;  %v14500_v44 = vld [vmem:[#allocation16 + $0x2e8] sm:$0xf0]  ;;  %v9620_v7 = vpop.f32.mrf.mxu3 }
 0x8d1   :  { %v19289_v31 = vld [vmem:[#allocation16 + $0x4cc] sm:$0xf]  ;;  %v14503_v25 = vor.u32 %v19225_v35, %v14500_v44  ;;  %v9621_v48 = vadd.f32 %v9620_v7, %v21436_v47 }
 0x8d2   :  { %9899 = vmatpush.bf16.msrb.mxu2 %v14823_v54  ;;  %v14756_v63 = vld [vmem:[#allocation16 + $0x4e8] sm:$0xf0]  ;;  %9874 = vmatpush.bf16.msra.mxu3 %v14279_v11  ;;  %v9661_v54 = vpop.f32.mrf.mxu1 }
 0x8d3   :  { %v19353_v56 = vld [vmem:[#allocation16 + $0x6cc] sm:$0xf]  ;;  %v14759_v32 = vor.u32 %v19289_v31, %v14756_v63  ;;  %v9634_v62 = vadd.f32 %v9633_v8, %v9621_v48 }
 0x8d4   :  { %9912 = vmatpush.bf16.msrb.mxu1 %v15079_v0  ;;  %v15012_v50 = vld [vmem:[#allocation16 + $0x6e8] sm:$0xf0]  ;;  %9887 = vmatpush.bf16.msrb.mxu0 %v14535_v13 }
 0x8d5   :  { %v19153_v28 = vld [vmem:[#allocation16 + $0x8c] sm:$0xf]  ;;  %v15015_v33 = vor.u32 %v19353_v56, %v15012_v50  ;;  %v9647_v13 = vadd.f32 %v9646_v38, %v9634_v62 }
 0x8d6   :  { %v14212_v58 = vld [vmem:[#allocation16 + $0xa8] sm:$0xf0]  ;;  %9900 = vmatpush.bf16.msrb.mxu2 %v14791_v6  ;;  %9875 = vmatpush.bf16.msra.mxu3 %v14247_v55 }
 0x8d7   :  { %v19217_v10 = vld [vmem:[#allocation16 + $0x28c] sm:$0xf]  ;;  %v14215_v0 = vor.u32 %v19153_v28, %v14212_v58  ;;  %v21443_v35 = vadd.f32 %v9659_v16, %v9647_v13 }
 0x8d8   :  { %9913 = vmatpush.bf16.msrb.mxu1 %v15047_v18  ;;  %v14468_v21 = vld [vmem:[#allocation16 + $0x2a8] sm:$0xf0]  ;;  %9888 = vmatpush.bf16.msrb.mxu0 %v14503_v25  ;;  %v9622_v25 = vpop.f32.mrf.mxu3 }
 0x8d9   :  { %v19281_v42 = vld [vmem:[#allocation16 + $0x48c] sm:$0xf]  ;;  %v14471_v12 = vor.u32 %v19217_v10, %v14468_v21 }
 0x8da   :  { %v14724_v40 = vld [vmem:[#allocation16 + $0x4a8] sm:$0xf0]  ;;  %9901 = vmatpush.bf16.msrb.mxu2 %v14759_v32  ;;  %9876 = vmatpush.bf16.msra.mxu3 %v14215_v0 }
 0x8db   :  { %v19345_v49 = vld [vmem:[#allocation16 + $0x68c] sm:$0xf]  ;;  %v14727_v29 = vor.u32 %v19281_v42, %v14724_v40 }
 0x8dc   :  { %v14980_v20 = vld [vmem:[#allocation16 + $0x6a8] sm:$0xf0]  ;;  %9914 = vmatpush.bf16.msrb.mxu1 %v15015_v33  ;;  %9889 = vmatpush.bf16.msrb.mxu0 %v14471_v12  ;;  %v9648_v33 = vpop.f32.mrf.mxu2 }
 0x8dd   :  { %v19145_v39 = vld [vmem:[#allocation16 + $0x4c] sm:$0xf]  ;;  %v14983_v5 = vor.u32 %v19345_v49, %v14980_v20 }
 0x8de   :  { %v14180_v57 = vld [vmem:[#allocation16 + $0x68] sm:$0xf0]  ;;  %9902 = vmatpush.bf16.msrb.mxu2 %v14727_v29 }
 0x8df   :  { %v19209_v4 = vld [vmem:[#allocation16 + $0x24c] sm:$0xf]  ;;  %v14183_v8 = vor.u32 %v19145_v39, %v14180_v57 }
 0x8e0   :  { %v14436_v11 = vld [vmem:[#allocation16 + $0x268] sm:$0xf0]  ;;  %9915 = vmatpush.bf16.msrb.mxu1 %v14983_v5 }
 0x8e1   :  { %v19273_v47 = vld [vmem:[#allocation16 + $0x44c] sm:$0xf]  ;;  %v14439_v44 = vor.u32 %v19209_v4, %v14436_v11  ;;  %9877 = vmatpush.bf16.msra.mxu3 %v14183_v8 }
 0x8e2   :  { %v14692_v34 = vld [vmem:[#allocation16 + $0x468] sm:$0xf0] }
 0x8e3   :  { %v19337_v52 = vld [vmem:[#allocation16 + $0x64c] sm:$0xf]  ;;  %v14695_v50 = vor.u32 %v19273_v47, %v14692_v34  ;;  %9890 = vmatpush.bf16.msrb.mxu0 %v14439_v44 }
 0x8e4   :  { %v14948_v6 = vld [vmem:[#allocation16 + $0x668] sm:$0xf0] }
 0x8e5   :  { %v19137_v18 = vld [vmem:[#allocation16 + $0xc] sm:$0xf]  ;;  %v14951_v55 = vor.u32 %v19337_v52, %v14948_v6  ;;  %9903 = vmatpush.bf16.msrb.mxu2 %v14695_v50 }
 0x8e6   :  { %v14148_v31 = vld [vmem:[#allocation16 + $0x28] sm:$0xf0] }
 0x8e7   :  { %v19201_v63 = vld [vmem:[#allocation16 + $0x20c] sm:$0xf]  ;;  %v14151_v38 = vor.u32 %v19137_v18, %v14148_v31  ;;  %9916 = vmatpush.bf16.msrb.mxu1 %v14951_v55 }
 0x8e8   :  { %v14404_v56 = vld [vmem:[#allocation16 + $0x228] sm:$0xf0] }
 0x8e9   :  { %v19265_v28 = vld [vmem:[#allocation16 + $0x40c] sm:$0xf]  ;;  %v14407_v40 = vor.u32 %v19201_v63, %v14404_v56  ;;  %9878 = vmatpush.bf16.msra.mxu3 %v14151_v38 }
 0x8ea   :  { %v14660_v58 = vld [vmem:[#allocation16 + $0x428] sm:$0xf0] }
 0x8eb   :  { %v19329_v32 = vld [vmem:[#allocation16 + $0x60c] sm:$0xf]  ;;  %v14663_v62 = vor.u32 %v19265_v28, %v14660_v58  ;;  %9891 = vmatpush.bf16.msrb.mxu0 %v14407_v40 }
 0x8ec   :  { %v14916_v7 = vld [vmem:[#allocation16 + $0x628] sm:$0xf0]  ;;  %9879 = vmatmul.bf16.vlgmr.msra.gmra.mxu3 %v21257_v14 }
 0x8ed   :  { %v19449_v10 = vld [vmem:[#allocation16 + $0x9cc] sm:$0xf]  ;;  %v14919_v54 = vor.u32 %v19329_v32, %v14916_v7  ;;  %9904 = vmatpush.bf16.msrb.mxu2 %v14663_v62  ;;  %v9711_v62 = vpop.f32.mrf.mxu1 }
 0x8ee   :  { %v15396_v16 = vld [vmem:[#allocation16 + $0x9e8] sm:$0xf0]  ;;  %9892 = vmatmul.bf16.vlgmr.msrb.gmra.mxu0 %v21261_v15 }
 0x8ef   :  { %v19513_v21 = vld [vmem:[#allocation16 + $0xbcc] sm:$0xf]  ;;  %v15399_v0 = vor.u32 %v19449_v10, %v15396_v16  ;;  %9917 = vmatpush.bf16.msrb.mxu1 %v14919_v54 }
 0x8f0   :  { %v15652_v42 = vld [vmem:[#allocation16 + $0xbe8] sm:$0xf0]  ;;  %9905 = vmatmul.bf16.vlgmr.msrb.gmra.mxu2 %v21265_v22 }
 0x8f1   :  { %v19577_v48 = vld [vmem:[#allocation16 + $0xdcc] sm:$0xf]  ;;  %v15655_v12 = vor.u32 %v19513_v21, %v15652_v42  ;;  %9923 = vmatpush.bf16.msrb.mxu3 %v15399_v0 }
 0x8f2   :  { %v15908_v49 = vld [vmem:[#allocation16 + $0xde8] sm:$0xf0]  ;;  %9918 = vmatmul.bf16.vlgmr.msrb.gmra.mxu1 %v21269_v23 }
 0x8f3   :  { %v19641_v20 = vld [vmem:[#allocation16 + $0xfcc] sm:$0xf]  ;;  %v15911_v29 = vor.u32 %v19577_v48, %v15908_v49  ;;  %9936 = vmatpush.bf16.msra.mxu0 %v15655_v12 }
 0x8f4   :  { %v16164_v59 = vld [vmem:[#allocation16 + $0xfe8] sm:$0xf0] }
 0x8f5   :  { %v19441_v39 = vld [vmem:[#allocation16 + $0x98c] sm:$0xf]  ;;  %v16167_v5 = vor.u32 %v19641_v20, %v16164_v59  ;;  %9949 = vmatpush.bf16.msra.mxu2 %v15911_v29  ;;  %v9685_v59 = vpop.f32.mrf.mxu0 }
 0x8f6   :  { %v15364_v57 = vld [vmem:[#allocation16 + $0x9a8] sm:$0xf0] }
 0x8f7   :  { %v19505_v4 = vld [vmem:[#allocation16 + $0xb8c] sm:$0xf]  ;;  %v15367_v6 = vor.u32 %v19441_v39, %v15364_v57  ;;  %9962 = vmatpush.bf16.msra.mxu1 %v16167_v5 }
 0x8f8   :  { %v15620_v11 = vld [vmem:[#allocation16 + $0xba8] sm:$0xf0] }
 0x8f9   :  { %v19569_v47 = vld [vmem:[#allocation16 + $0xd8c] sm:$0xf]  ;;  %v15623_v18 = vor.u32 %v19505_v4, %v15620_v11  ;;  %9924 = vmatpush.bf16.msrb.mxu3 %v15367_v6 }
 0x8fa   :  { %v15876_v13 = vld [vmem:[#allocation16 + $0xda8] sm:$0xf0] }
 0x8fb   :  { %v19633_v34 = vld [vmem:[#allocation16 + $0xf8c] sm:$0xf]  ;;  %v15879_v31 = vor.u32 %v19569_v47, %v15876_v13  ;;  %9937 = vmatpush.bf16.msra.mxu0 %v15623_v18 }
 0x8fc   :  { %v16132_v52 = vld [vmem:[#allocation16 + $0xfa8] sm:$0xf0] }
 0x8fd   :  { %v19433_v8 = vld [vmem:[#allocation16 + $0x94c] sm:$0xf]  ;;  %v16135_v63 = vor.u32 %v19633_v34, %v16132_v52  ;;  %9950 = vmatpush.bf16.msra.mxu2 %v15879_v31 }
 0x8fe   :  { %v15332_v44 = vld [vmem:[#allocation16 + $0x968] sm:$0xf0] }
 0x8ff   :  { %v19497_v56 = vld [vmem:[#allocation16 + $0xb4c] sm:$0xf]  ;;  %v15335_v32 = vor.u32 %v19433_v8, %v15332_v44  ;;  %9963 = vmatpush.bf16.msra.mxu1 %v16135_v63  ;;  %v9672_v63 = vpop.f32.mrf.mxu3 }
 0x900   :  { %v15588_v50 = vld [vmem:[#allocation16 + $0xb68] sm:$0xf0] }
 0x901   :  { %v19561_v55 = vld [vmem:[#allocation16 + $0xd4c] sm:$0xf]  ;;  %v15591_v33 = vor.u32 %v19497_v56, %v15588_v50  ;;  %9925 = vmatpush.bf16.msrb.mxu3 %v15335_v32 }
 0x902   :  { %v15844_v25 = vld [vmem:[#allocation16 + $0xd68] sm:$0xf0] }
 0x903   :  { %v19625_v28 = vld [vmem:[#allocation16 + $0xf4c] sm:$0xf]  ;;  %v15847_v16 = vor.u32 %v19561_v55, %v15844_v25  ;;  %9938 = vmatpush.bf16.msra.mxu0 %v15591_v33  ;;  %v9673_v25 = vadd.f32 %v9672_v63, %v21379_v30 }
 0x904   :  { %v16100_v58 = vld [vmem:[#allocation16 + $0xf68] sm:$0xf0] }
 0x905   :  { %v19425_v7 = vld [vmem:[#allocation16 + $0x90c] sm:$0xf]  ;;  %v16103_v21 = vor.u32 %v19625_v28, %v16100_v58  ;;  %9951 = vmatpush.bf16.msra.mxu2 %v15847_v16  ;;  %v9698_v28 = vpop.f32.mrf.mxu2  ;;  %v9713_v16 = vpop.f32.mrf.mxu1 }
 0x906   :  { %v15300_v10 = vld [vmem:[#allocation16 + $0x928] sm:$0xf0] }
 0x907   :  { %v19489_v42 = vld [vmem:[#allocation16 + $0xb0c] sm:$0xf]  ;;  %v15303_v54 = vor.u32 %v19425_v7, %v15300_v10  ;;  %9964 = vmatpush.bf16.msra.mxu1 %v16103_v21  ;;  %v9687_v7 = vpop.f32.mrf.mxu0  ;;  %v9686_v10 = vadd.f32 %v9685_v59, %v9673_v25 }
 0x908   :  { %v15556_v48 = vld [vmem:[#allocation16 + $0xb28] sm:$0xf0] }
 0x909   :  { %v19553_v38 = vld [vmem:[#allocation16 + $0xd0c] sm:$0xf]  ;;  %v15559_v0 = vor.u32 %v19489_v42, %v15556_v48  ;;  %9926 = vmatpush.bf16.msrb.mxu3 %v15303_v54 }
 0x90a   :  { %v15812_v40 = vld [vmem:[#allocation16 + $0xd28] sm:$0xf0] }
 0x90b   :  { %v19617_v49 = vld [vmem:[#allocation16 + $0xf0c] sm:$0xf]  ;;  %v15815_v57 = vor.u32 %v19553_v38, %v15812_v40  ;;  %9939 = vmatpush.bf16.msra.mxu0 %v15559_v0  ;;  %v9699_v0 = vadd.f32 %v9698_v28, %v9686_v10 }
 0x90c   :  { %v16068_v20 = vld [vmem:[#allocation16 + $0xf28] sm:$0xf0] }
 0x90d   :  { %v19417_v12 = vld [vmem:[#allocation16 + $0x8cc] sm:$0xf]  ;;  %v16071_v29 = vor.u32 %v19617_v49, %v16068_v20  ;;  %9952 = vmatpush.bf16.msra.mxu2 %v15815_v57 }
 0x90e   :  { %v15268_v39 = vld [vmem:[#allocation16 + $0x8e8] sm:$0xf0] }
 0x90f   :  { %v19481_v5 = vld [vmem:[#allocation16 + $0xacc] sm:$0xf]  ;;  %v15271_v52 = vor.u32 %v19417_v12, %v15268_v39  ;;  %9965 = vmatpush.bf16.msra.mxu1 %v16071_v29 }
 0x910   :  { %v15524_v4 = vld [vmem:[#allocation16 + $0xae8] sm:$0xf0] }
 0x911   :  { %v19545_v11 = vld [vmem:[#allocation16 + $0xccc] sm:$0xf]  ;;  %v15527_v6 = vor.u32 %v19481_v5, %v15524_v4  ;;  %9927 = vmatpush.bf16.msrb.mxu3 %v15271_v52 }
 0x912   :  { %v15780_v47 = vld [vmem:[#allocation16 + $0xce8] sm:$0xf0] }
 0x913   :  { %v19609_v13 = vld [vmem:[#allocation16 + $0xecc] sm:$0xf]  ;;  %v15783_v44 = vor.u32 %v19545_v11, %v15780_v47  ;;  %9940 = vmatpush.bf16.msra.mxu0 %v15527_v6  ;;  %v9674_v6 = vpop.f32.mrf.mxu3 }
 0x914   :  { %v16036_v34 = vld [vmem:[#allocation16 + $0xee8] sm:$0xf0] }
 0x915   :  { %v19409_v18 = vld [vmem:[#allocation16 + $0x88c] sm:$0xf]  ;;  %v16039_v31 = vor.u32 %v19609_v13, %v16036_v34  ;;  %9953 = vmatpush.bf16.msra.mxu2 %v15783_v44  ;;  %v21450_v13 = vadd.f32 %v9711_v62, %v9699_v0 }
 0x916   :  { %v15236_v8 = vld [vmem:[#allocation16 + $0x8a8] sm:$0xf0] }
 0x917   :  { %v19473_v56 = vld [vmem:[#allocation16 + $0xa8c] sm:$0xf]  ;;  %v15239_v21 = vor.u32 %v19409_v18, %v15236_v8  ;;  %9966 = vmatpush.bf16.msra.mxu1 %v16039_v31  ;;  %v9700_v31 = vpop.f32.mrf.mxu2 }
 0x918   :  { %v15492_v50 = vld [vmem:[#allocation16 + $0xaa8] sm:$0xf0] }
 0x919   :  { %v19537_v55 = vld [vmem:[#allocation16 + $0xc8c] sm:$0xf]  ;;  %v15495_v42 = vor.u32 %v19473_v56, %v15492_v50  ;;  %9928 = vmatpush.bf16.msrb.mxu3 %v15239_v21 }
 0x91a   :  { %v15748_v58 = vld [vmem:[#allocation16 + $0xca8] sm:$0xf0] }
 0x91b   :  { %v19601_v32 = vld [vmem:[#allocation16 + $0xe8c] sm:$0xf]  ;;  %v15751_v40 = vor.u32 %v19537_v55, %v15748_v58  ;;  %9941 = vmatpush.bf16.msra.mxu0 %v15495_v42 }
 0x91c   :  { %v16004_v33 = vld [vmem:[#allocation16 + $0xea8] sm:$0xf0] }
 0x91d   :  { %v19401_v48 = vld [vmem:[#allocation16 + $0x84c] sm:$0xf]  ;;  %v16007_v49 = vor.u32 %v19601_v32, %v16004_v33  ;;  %9954 = vmatpush.bf16.msra.mxu2 %v15751_v40 }
 0x91e   :  { %v15204_v38 = vld [vmem:[#allocation16 + $0x868] sm:$0xf0] }
 0x91f   :  { %v19465_v20 = vld [vmem:[#allocation16 + $0xa4c] sm:$0xf]  ;;  %v15207_v59 = vor.u32 %v19401_v48, %v15204_v38  ;;  %9967 = vmatpush.bf16.msra.mxu1 %v16007_v49 }
 0x920   :  { %v15460_v54 = vld [vmem:[#allocation16 + $0xa68] sm:$0xf0] }
 0x921   :  { %v19529_v30 = vld [vmem:[#allocation16 + $0xc4c] sm:$0xf]  ;;  %v15463_v5 = vor.u32 %v19465_v20, %v15460_v54  ;;  %9929 = vmatpush.bf16.msrb.mxu3 %v15207_v59 }
 0x922   :  { %v15716_v12 = vld [vmem:[#allocation16 + $0xc68] sm:$0xf0] }
 0x923   :  { %v19593_v39 = vld [vmem:[#allocation16 + $0xe4c] sm:$0xf]  ;;  %v15719_v34 = vor.u32 %v19529_v30, %v15716_v12  ;;  %9942 = vmatpush.bf16.msra.mxu0 %v15463_v5 }
 0x924   :  { %v15972_v57 = vld [vmem:[#allocation16 + $0xe68] sm:$0xf0] }
 0x925   :  { %v19393_v29 = vld [vmem:[#allocation16 + $0x80c] sm:$0xf]  ;;  %v15975_v52 = vor.u32 %v19593_v39, %v15972_v57  ;;  %9955 = vmatpush.bf16.msra.mxu2 %v15719_v34 }
 0x926   :  { %v15172_v4 = vld [vmem:[#allocation16 + $0x828] sm:$0xf0] }
 0x927   :  { %v19457_v11 = vld [vmem:[#allocation16 + $0xa0c] sm:$0xf]  ;;  %v15175_v58 = vor.u32 %v19393_v29, %v15172_v4  ;;  %9968 = vmatpush.bf16.msra.mxu1 %v15975_v52 }
 0x928   :  { %v15428_v47 = vld [vmem:[#allocation16 + $0xa28] sm:$0xf0] }
 0x929   :  { %v19521_v18 = vld [vmem:[#allocation16 + $0xc0c] sm:$0xf]  ;;  %v15431_v62 = vor.u32 %v19457_v11, %v15428_v47  ;;  %9930 = vmatpush.bf16.msrb.mxu3 %v15175_v58 }
 0x92a   :  { %v15684_v8 = vld [vmem:[#allocation16 + $0xc28] sm:$0xf0] }
 0x92b   :  { %v19585_v44 = vld [vmem:[#allocation16 + $0xe0c] sm:$0xf]  ;;  %v15687_v10 = vor.u32 %v19521_v18, %v15684_v8  ;;  %9943 = vmatpush.bf16.msra.mxu0 %v15431_v62 }
 0x92c   :  { %v15940_v63 = vld [vmem:[#allocation16 + $0xe28] sm:$0xf0]  ;;  %9931 = vmatmul.bf16.vlgmr.msrb.gmra.mxu3 %v21277_v60 }
 0x92d   :  { %v19705_v56 = vld [vmem:[#allocation16 + $0x11cc] sm:$0xf]  ;;  %v15943_v16 = vor.u32 %v19585_v44, %v15940_v63  ;;  %9956 = vmatpush.bf16.msra.mxu2 %v15687_v10  ;;  %v9763_v10 = vpop.f32.mrf.mxu1 }
 0x92e   :  { %v16420_v50 = vld [vmem:[#allocation16 + $0x11e8] sm:$0xf0]  ;;  %9944 = vmatmul.bf16.vlgmr.msra.gmra.mxu0 %v21281_v61 }
 0x92f   :  { %v19769_v55 = vld [vmem:[#allocation16 + $0x13cc] sm:$0xf]  ;;  %v16423_v21 = vor.u32 %v19705_v56, %v16420_v50  ;;  %9969 = vmatpush.bf16.msra.mxu1 %v15943_v16 }
 0x930   :  { %v16676_v25 = vld [vmem:[#allocation16 + $0x13e8] sm:$0xf0]  ;;  %9957 = vmatmul.bf16.vlgmr.msra.gmra.mxu2 %v21285_v1 }
 0x931   :  { %v19833_v28 = vld [vmem:[#allocation16 + $0x15cc] sm:$0xf]  ;;  %v16679_v42 = vor.u32 %v19769_v55, %v16676_v25  ;;  %9975 = vmatpush.bf16.msra.mxu3 %v16423_v21 }
 0x932   :  { %v16932_v32 = vld [vmem:[#allocation16 + $0x15e8] sm:$0xf0]  ;;  %9970 = vmatmul.bf16.vlgmr.msra.gmra.mxu1 %v21289_v2 }
 0x933   :  { %v19897_v33 = vld [vmem:[#allocation16 + $0x17cc] sm:$0xf]  ;;  %v16935_v40 = vor.u32 %v19833_v28, %v16932_v32  ;;  %9988 = vmatpush.bf16.msrb.mxu0 %v16679_v42 }
 0x934   :  { %v17188_v7 = vld [vmem:[#allocation16 + $0x17e8] sm:$0xf0] }
 0x935   :  { %v19697_v48 = vld [vmem:[#allocation16 + $0x118c] sm:$0xf]  ;;  %v17191_v49 = vor.u32 %v19897_v33, %v17188_v7  ;;  %10001 = vmatpush.bf16.msrb.mxu2 %v16935_v40  ;;  %v9737_v7 = vpop.f32.mrf.mxu0 }
 0x936   :  { %v16388_v38 = vld [vmem:[#allocation16 + $0x11a8] sm:$0xf0] }
 0x937   :  { %v19761_v20 = vld [vmem:[#allocation16 + $0x138c] sm:$0xf]  ;;  %v16391_v57 = vor.u32 %v19697_v48, %v16388_v38  ;;  %10014 = vmatpush.bf16.msrb.mxu1 %v17191_v49 }
 0x938   :  { %v16644_v54 = vld [vmem:[#allocation16 + $0x13a8] sm:$0xf0] }
 0x939   :  { %v19825_v30 = vld [vmem:[#allocation16 + $0x158c] sm:$0xf]  ;;  %v16647_v29 = vor.u32 %v19761_v20, %v16644_v54  ;;  %9976 = vmatpush.bf16.msra.mxu3 %v16391_v57 }
 0x93a   :  { %v16900_v0 = vld [vmem:[#allocation16 + $0x15a8] sm:$0xf0] }
 0x93b   :  { %v19889_v12 = vld [vmem:[#allocation16 + $0x178c] sm:$0xf]  ;;  %v16903_v4 = vor.u32 %v19825_v30, %v16900_v0  ;;  %9989 = vmatpush.bf16.msrb.mxu0 %v16647_v29 }
 0x93c   :  { %v17156_v39 = vld [vmem:[#allocation16 + $0x17a8] sm:$0xf0] }
 0x93d   :  { %v19689_v59 = vld [vmem:[#allocation16 + $0x114c] sm:$0xf]  ;;  %v17159_v11 = vor.u32 %v19889_v12, %v17156_v39  ;;  %10002 = vmatpush.bf16.msrb.mxu2 %v16903_v4 }
 0x93e   :  { %v16356_v5 = vld [vmem:[#allocation16 + $0x1168] sm:$0xf0] }
 0x93f   :  { %v19753_v47 = vld [vmem:[#allocation16 + $0x134c] sm:$0xf]  ;;  %v16359_v44 = vor.u32 %v19689_v59, %v16356_v5  ;;  %10015 = vmatpush.bf16.msrb.mxu1 %v17159_v11  ;;  %v9724_v11 = vpop.f32.mrf.mxu3 }
 0x940   :  { %v16612_v34 = vld [vmem:[#allocation16 + $0x1368] sm:$0xf0] }
 0x941   :  { %v19817_v52 = vld [vmem:[#allocation16 + $0x154c] sm:$0xf]  ;;  %v16615_v31 = vor.u32 %v19753_v47, %v16612_v34  ;;  %9977 = vmatpush.bf16.msra.mxu3 %v16359_v44 }
 0x942   :  { %v16868_v6 = vld [vmem:[#allocation16 + $0x1568] sm:$0xf0] }
 0x943   :  { %v19881_v18 = vld [vmem:[#allocation16 + $0x174c] sm:$0xf]  ;;  %v16871_v50 = vor.u32 %v19817_v52, %v16868_v6  ;;  %9990 = vmatpush.bf16.msrb.mxu0 %v16615_v31  ;;  %v9725_v6 = vadd.f32 %v9724_v11, %v21450_v13 }
 0x944   :  { %v17124_v8 = vld [vmem:[#allocation16 + $0x1768] sm:$0xf0] }
 0x945   :  { %v19681_v63 = vld [vmem:[#allocation16 + $0x110c] sm:$0xf]  ;;  %v17127_v55 = vor.u32 %v19881_v18, %v17124_v8  ;;  %10003 = vmatpush.bf16.msrb.mxu2 %v16871_v50  ;;  %v9750_v18 = vpop.f32.mrf.mxu2  ;;  %v9765_v50 = vpop.f32.mrf.mxu1 }
 0x946   :  { %v16324_v56 = vld [vmem:[#allocation16 + $0x1128] sm:$0xf0] }
 0x947   :  { %v19745_v25 = vld [vmem:[#allocation16 + $0x130c] sm:$0xf]  ;;  %v16327_v16 = vor.u32 %v19681_v63, %v16324_v56  ;;  %10016 = vmatpush.bf16.msrb.mxu1 %v17127_v55  ;;  %v9739_v63 = vpop.f32.mrf.mxu0  ;;  %v9738_v56 = vadd.f32 %v9737_v7, %v9725_v6 }
 0x948   :  { %v16580_v28 = vld [vmem:[#allocation16 + $0x1328] sm:$0xf0] }
 0x949   :  { %v19809_v58 = vld [vmem:[#allocation16 + $0x150c] sm:$0xf]  ;;  %v16583_v21 = vor.u32 %v19745_v25, %v16580_v28  ;;  %9978 = vmatpush.bf16.msra.mxu3 %v16327_v16 }
 0x94a   :  { %v16836_v62 = vld [vmem:[#allocation16 + $0x1528] sm:$0xf0] }
 0x94b   :  { %v19873_v32 = vld [vmem:[#allocation16 + $0x170c] sm:$0xf]  ;;  %v16839_v38 = vor.u32 %v19809_v58, %v16836_v62  ;;  %9991 = vmatpush.bf16.msrb.mxu0 %v16583_v21  ;;  %v9751_v21 = vadd.f32 %v9750_v18, %v9738_v56 }
 0x94c   :  { %v17092_v33 = vld [vmem:[#allocation16 + $0x1728] sm:$0xf0] }
 0x94d   :  { %v19673_v42 = vld [vmem:[#allocation16 + $0x10cc] sm:$0xf]  ;;  %v17095_v40 = vor.u32 %v19873_v32, %v17092_v33  ;;  %10004 = vmatpush.bf16.msrb.mxu2 %v16839_v38 }
 0x94e   :  { %v16292_v48 = vld [vmem:[#allocation16 + $0x10e8] sm:$0xf0] }
 0x94f   :  { %v19737_v49 = vld [vmem:[#allocation16 + $0x12cc] sm:$0xf]  ;;  %v16295_v39 = vor.u32 %v19673_v42, %v16292_v48  ;;  %10017 = vmatpush.bf16.msrb.mxu1 %v17095_v40 }
 0x950   :  { %v16548_v20 = vld [vmem:[#allocation16 + $0x12e8] sm:$0xf0] }
 0x951   :  { %v19801_v54 = vld [vmem:[#allocation16 + $0x14cc] sm:$0xf]  ;;  %v16551_v57 = vor.u32 %v19737_v49, %v16548_v20  ;;  %9979 = vmatpush.bf16.msra.mxu3 %v16295_v39 }
 0x952   :  { %v16804_v30 = vld [vmem:[#allocation16 + $0x14e8] sm:$0xf0] }
 0x953   :  { %v19865_v0 = vld [vmem:[#allocation16 + $0x16cc] sm:$0xf]  ;;  %v16807_v5 = vor.u32 %v19801_v54, %v16804_v30  ;;  %9992 = vmatpush.bf16.msrb.mxu0 %v16551_v57  ;;  %v9726_v57 = vpop.f32.mrf.mxu3 }
 0x954   :  { %v17060_v12 = vld [vmem:[#allocation16 + $0x16e8] sm:$0xf0] }
 0x955   :  { %v19665_v29 = vld [vmem:[#allocation16 + $0x108c] sm:$0xf]  ;;  %v17063_v4 = vor.u32 %v19865_v0, %v17060_v12  ;;  %10005 = vmatpush.bf16.msrb.mxu2 %v16807_v5  ;;  %v21457_v0 = vadd.f32 %v9763_v10, %v9751_v21 }
 0x956   :  { %v16260_v59 = vld [vmem:[#allocation16 + $0x10a8] sm:$0xf0] }
 0x957   :  { %v19729_v47 = vld [vmem:[#allocation16 + $0x128c] sm:$0xf]  ;;  %v16263_v55 = vor.u32 %v19665_v29, %v16260_v59  ;;  %10018 = vmatpush.bf16.msrb.mxu1 %v17063_v4  ;;  %v9752_v4 = vpop.f32.mrf.mxu2 }
 0x958   :  { %v16516_v34 = vld [vmem:[#allocation16 + $0x12a8] sm:$0xf0] }
 0x959   :  { %v19793_v52 = vld [vmem:[#allocation16 + $0x148c] sm:$0xf]  ;;  %v16519_v25 = vor.u32 %v19729_v47, %v16516_v34  ;;  %9980 = vmatpush.bf16.msra.mxu3 %v16263_v55 }
 0x95a   :  { %v16772_v8 = vld [vmem:[#allocation16 + $0x14a8] sm:$0xf0] }
 0x95b   :  { %v19857_v44 = vld [vmem:[#allocation16 + $0x168c] sm:$0xf]  ;;  %v16775_v62 = vor.u32 %v19793_v52, %v16772_v8  ;;  %9993 = vmatpush.bf16.msrb.mxu0 %v16519_v25 }
 0x95c   :  { %v17028_v31 = vld [vmem:[#allocation16 + $0x16a8] sm:$0xf0] }
 0x95d   :  { %v19657_v28 = vld [vmem:[#allocation16 + $0x104c] sm:$0xf]  ;;  %v17031_v32 = vor.u32 %v19857_v44, %v17028_v31  ;;  %10006 = vmatpush.bf16.msrb.mxu2 %v16775_v62 }
 0x95e   :  { %v16228_v58 = vld [vmem:[#allocation16 + $0x1068] sm:$0xf0] }
 0x95f   :  { %v19721_v33 = vld [vmem:[#allocation16 + $0x124c] sm:$0xf]  ;;  %v16231_v7 = vor.u32 %v19657_v28, %v16228_v58  ;;  %10019 = vmatpush.bf16.msrb.mxu1 %v17031_v32 }
 0x960   :  { %v16484_v16 = vld [vmem:[#allocation16 + $0x1268] sm:$0xf0] }
 0x961   :  { %v19785_v13 = vld [vmem:[#allocation16 + $0x144c] sm:$0xf]  ;;  %v16487_v49 = vor.u32 %v19721_v33, %v16484_v16  ;;  %9981 = vmatpush.bf16.msra.mxu3 %v16231_v7 }
 0x962   :  { %v16740_v42 = vld [vmem:[#allocation16 + $0x1468] sm:$0xf0] }
 0x963   :  { %v19849_v48 = vld [vmem:[#allocation16 + $0x164c] sm:$0xf]  ;;  %v16743_v12 = vor.u32 %v19785_v13, %v16740_v42  ;;  %9994 = vmatpush.bf16.msrb.mxu0 %v16487_v49 }
 0x964   :  { %v16996_v38 = vld [vmem:[#allocation16 + $0x1668] sm:$0xf0] }
 0x965   :  { %v19649_v40 = vld [vmem:[#allocation16 + $0x100c] sm:$0xf]  ;;  %v16999_v39 = vor.u32 %v19849_v48, %v16996_v38  ;;  %10007 = vmatpush.bf16.msrb.mxu2 %v16743_v12 }
 0x966   :  { %v16196_v20 = vld [vmem:[#allocation16 + $0x1028] sm:$0xf0] }
 0x967   :  { %v19713_v54 = vld [vmem:[#allocation16 + $0x120c] sm:$0xf]  ;;  %v16199_v8 = vor.u32 %v19649_v40, %v16196_v20  ;;  %10020 = vmatpush.bf16.msrb.mxu1 %v16999_v39 }
 0x968   :  { %v16452_v30 = vld [vmem:[#allocation16 + $0x1228] sm:$0xf0] }
 0x969   :  { %v19777_v29 = vld [vmem:[#allocation16 + $0x140c] sm:$0xf]  ;;  %v16455_v10 = vor.u32 %v19713_v54, %v16452_v30  ;;  %9982 = vmatpush.bf16.msra.mxu3 %v16199_v8 }
 0x96a   :  { %v16708_v59 = vld [vmem:[#allocation16 + $0x1428] sm:$0xf0] }
 0x96b   :  { %v19841_v5 = vld [vmem:[#allocation16 + $0x160c] sm:$0xf]  ;;  %v16711_v56 = vor.u32 %v19777_v29, %v16708_v59  ;;  %9995 = vmatpush.bf16.msrb.mxu0 %v16455_v10 }
 0x96c   :  { %v16964_v11 = vld [vmem:[#allocation16 + $0x1628] sm:$0xf0]  ;;  %9983 = vmatmul.bf16.vlgmr.msra.gmra.mxu3 %v21297_v36 }
 0x96d   :  { %v19961_v47 = vld [vmem:[#allocation16 + $0x19cc] sm:$0xf]  ;;  %v16967_v50 = vor.u32 %v19841_v5, %v16964_v11  ;;  %10008 = vmatpush.bf16.msrb.mxu2 %v16711_v56  ;;  %v9815_v56 = vpop.f32.mrf.mxu1 }
 0x96e   :  { %v17444_v34 = vld [vmem:[#allocation16 + $0x19e8] sm:$0xf0]  ;;  %9996 = vmatmul.bf16.vlgmr.msrb.gmra.mxu0 %v21301_v37 }
 0x96f   :  { %v20025_v52 = vld [vmem:[#allocation16 + $0x1bcc] sm:$0xf]  ;;  %v17447_v55 = vor.u32 %v19961_v47, %v17444_v34  ;;  %10021 = vmatpush.bf16.msrb.mxu1 %v16967_v50 }
 0x970   :  { %v17700_v6 = vld [vmem:[#allocation16 + $0x1be8] sm:$0xf0]  ;;  %10009 = vmatmul.bf16.vlgmr.msrb.gmra.mxu2 %v21305_v41 }
 0x971   :  { %v20089_v18 = vld [vmem:[#allocation16 + $0x1dcc] sm:$0xf]  ;;  %v17703_v25 = vor.u32 %v20025_v52, %v17700_v6  ;;  %10027 = vmatpush.bf16.msrb.mxu3 %v17447_v55 }
 0x972   :  { %v17956_v44 = vld [vmem:[#allocation16 + $0x1de8] sm:$0xf0]  ;;  %10022 = vmatmul.bf16.vlgmr.msrb.gmra.mxu1 %v21309_v46 }
 0x973   :  { %v20153_v31 = vld [vmem:[#allocation16 + $0x1fcc] sm:$0xf]  ;;  %v17959_v62 = vor.u32 %v20089_v18, %v17956_v44  ;;  %10040 = vmatpush.bf16.msra.mxu0 %v17703_v25 }
 0x974   :  { %v18212_v63 = vld [vmem:[#allocation16 + $0x1fe8] sm:$0xf0] }
 0x975   :  { %v19953_v28 = vld [vmem:[#allocation16 + $0x198c] sm:$0xf]  ;;  %v18215_v32 = vor.u32 %v20153_v31, %v18212_v63  ;;  %10053 = vmatpush.bf16.msra.mxu2 %v17959_v62  ;;  %v9789_v63 = vpop.f32.mrf.mxu0 }
 0x976   :  { %v17412_v58 = vld [vmem:[#allocation16 + $0x19a8] sm:$0xf0] }
 0x977   :  { %v20017_v33 = vld [vmem:[#allocation16 + $0x1b8c] sm:$0xf]  ;;  %v17415_v38 = vor.u32 %v19953_v28, %v17412_v58  ;;  %10066 = vmatpush.bf16.msra.mxu1 %v18215_v32 }
 0x978   :  { %v17668_v16 = vld [vmem:[#allocation16 + $0x1ba8] sm:$0xf0] }
 0x979   :  { %v20081_v13 = vld [vmem:[#allocation16 + $0x1d8c] sm:$0xf]  ;;  %v17671_v40 = vor.u32 %v20017_v33, %v17668_v16  ;;  %10028 = vmatpush.bf16.msrb.mxu3 %v17415_v38 }
 0x97a   :  { %v17924_v21 = vld [vmem:[#allocation16 + $0x1da8] sm:$0xf0] }
 0x97b   :  { %v20145_v42 = vld [vmem:[#allocation16 + $0x1f8c] sm:$0xf]  ;;  %v17927_v20 = vor.u32 %v20081_v13, %v17924_v21  ;;  %10041 = vmatpush.bf16.msra.mxu0 %v17671_v40 }
 0x97c   :  { %v18180_v48 = vld [vmem:[#allocation16 + $0x1fa8] sm:$0xf0] }
 0x97d   :  { %v19945_v7 = vld [vmem:[#allocation16 + $0x194c] sm:$0xf]  ;;  %v18183_v54 = vor.u32 %v20145_v42, %v18180_v48  ;;  %10054 = vmatpush.bf16.msra.mxu2 %v17927_v20 }
 0x97e   :  { %v17380_v49 = vld [vmem:[#allocation16 + $0x1968] sm:$0xf0] }
 0x97f   :  { %v20009_v30 = vld [vmem:[#allocation16 + $0x1b4c] sm:$0xf]  ;;  %v17383_v5 = vor.u32 %v19945_v7, %v17380_v49  ;;  %10067 = vmatpush.bf16.msra.mxu1 %v18183_v54  ;;  %v9776_v54 = vpop.f32.mrf.mxu3 }
 0x980   :  { %v17636_v12 = vld [vmem:[#allocation16 + $0x1b68] sm:$0xf0] }
 0x981   :  { %v20073_v39 = vld [vmem:[#allocation16 + $0x1d4c] sm:$0xf]  ;;  %v17639_v4 = vor.u32 %v20009_v30, %v17636_v12  ;;  %10029 = vmatpush.bf16.msrb.mxu3 %v17383_v5 }
 0x982   :  { %v17892_v57 = vld [vmem:[#allocation16 + $0x1d68] sm:$0xf0] }
 0x983   :  { %v20137_v29 = vld [vmem:[#allocation16 + $0x1f4c] sm:$0xf]  ;;  %v17895_v34 = vor.u32 %v20073_v39, %v17892_v57  ;;  %10042 = vmatpush.bf16.msra.mxu0 %v17639_v4  ;;  %v9777_v57 = vadd.f32 %v9776_v54, %v21457_v0 }
 0x984   :  { %v18148_v59 = vld [vmem:[#allocation16 + $0x1f68] sm:$0xf0] }
 0x985   :  { %v19937_v11 = vld [vmem:[#allocation16 + $0x190c] sm:$0xf]  ;;  %v18151_v52 = vor.u32 %v20137_v29, %v18148_v59  ;;  %10055 = vmatpush.bf16.msra.mxu2 %v17895_v34  ;;  %v9802_v29 = vpop.f32.mrf.mxu2  ;;  %v9817_v34 = vpop.f32.mrf.mxu1 }
 0x986   :  { %v17348_v47 = vld [vmem:[#allocation16 + $0x1928] sm:$0xf0] }
 0x987   :  { %v20001_v6 = vld [vmem:[#allocation16 + $0x1b0c] sm:$0xf]  ;;  %v17351_v50 = vor.u32 %v19937_v11, %v17348_v47  ;;  %10068 = vmatpush.bf16.msra.mxu1 %v18151_v52  ;;  %v9791_v11 = vpop.f32.mrf.mxu0  ;;  %v9790_v47 = vadd.f32 %v9789_v63, %v9777_v57  ;;  %v19262_v57 = vld [vmem:[#allocation16 + $0x3ec] sm:$0xf0] }
 0x988   :  { %v17604_v18 = vld [vmem:[#allocation16 + $0x1b28] sm:$0xf0]  ;;  %v19390_v11 = vld [vmem:[#allocation16 + $0x7ec] sm:$0xf0] }
 0x989   :  { %v20065_v8 = vld [vmem:[#allocation16 + $0x1d0c] sm:$0xf]  ;;  %v17607_v55 = vor.u32 %v20001_v6, %v17604_v18  ;;  %10030 = vmatpush.bf16.msrb.mxu3 %v17351_v50 }
 0x98a   :  { %v17860_v10 = vld [vmem:[#allocation16 + $0x1d28] sm:$0xf0] }
 0x98b   :  { %v20129_v44 = vld [vmem:[#allocation16 + $0x1f0c] sm:$0xf]  ;;  %v17863_v58 = vor.u32 %v20065_v8, %v17860_v10  ;;  %10043 = vmatpush.bf16.msra.mxu0 %v17607_v55  ;;  %v9803_v55 = vadd.f32 %v9802_v29, %v9790_v47  ;;  %v14890_v29 = vld [vmem:[#allocation16 + $0x5d0] sm:$0xf] }
 0x98c   :  { %v18116_v31 = vld [vmem:[#allocation16 + $0x1f28] sm:$0xf0] }
 0x98d   :  { %v19929_v25 = vld [vmem:[#allocation16 + $0x18cc] sm:$0xf]  ;;  %v18119_v62 = vor.u32 %v20129_v44, %v18116_v31  ;;  %10056 = vmatpush.bf16.msra.mxu2 %v17863_v58 }
 0x98e   :  { %v17316_v28 = vld [vmem:[#allocation16 + $0x18e8] sm:$0xf0] }
 0x98f   :  { %v19993_v32 = vld [vmem:[#allocation16 + $0x1acc] sm:$0xf]  ;;  %v17319_v48 = vor.u32 %v19929_v25, %v17316_v28  ;;  %10069 = vmatpush.bf16.msra.mxu1 %v18119_v62 }
 0x990   :  { %v17572_v33 = vld [vmem:[#allocation16 + $0x1ae8] sm:$0xf0] }
 0x991   :  { %v20057_v16 = vld [vmem:[#allocation16 + $0x1ccc] sm:$0xf]  ;;  %v17575_v38 = vor.u32 %v19993_v32, %v17572_v33  ;;  %10031 = vmatpush.bf16.msrb.mxu3 %v17319_v48 }
 0x992   :  { %v17828_v13 = vld [vmem:[#allocation16 + $0x1ce8] sm:$0xf0] }
 0x993   :  { %v20121_v21 = vld [vmem:[#allocation16 + $0x1ecc] sm:$0xf]  ;;  %v17831_v49 = vor.u32 %v20057_v16, %v17828_v13  ;;  %10044 = vmatpush.bf16.msra.mxu0 %v17575_v38  ;;  %v9778_v38 = vpop.f32.mrf.mxu3 }
 0x994   :  { %v18084_v42 = vld [vmem:[#allocation16 + $0x1ee8] sm:$0xf0]  ;;  %v19310_v38 = vld [vmem:[#allocation16 + $0x56c] sm:$0xf0] }
 0x995   :  { %v19921_v40 = vld [vmem:[#allocation16 + $0x188c] sm:$0xf]  ;;  %v18087_v20 = vor.u32 %v20121_v21, %v18084_v42  ;;  %10057 = vmatpush.bf16.msra.mxu2 %v17831_v49  ;;  %v21464_v21 = vadd.f32 %v9815_v56, %v9803_v55  ;;  %v19318_v55 = vld [vmem:[#allocation16 + $0x5ac] sm:$0xf0] }
 0x996   :  { %v17284_v7 = vld [vmem:[#allocation16 + $0x18a8] sm:$0xf0] }
 0x997   :  { %v19985_v30 = vld [vmem:[#allocation16 + $0x1a8c] sm:$0xf]  ;;  %v17287_v52 = vor.u32 %v19921_v40, %v17284_v7  ;;  %10070 = vmatpush.bf16.msra.mxu1 %v18087_v20  ;;  %v9804_v20 = vpop.f32.mrf.mxu2 }
 0x998   :  { %v17540_v12 = vld [vmem:[#allocation16 + $0x1aa8] sm:$0xf0] }
 0x999   :  { %v20049_v39 = vld [vmem:[#allocation16 + $0x1c8c] sm:$0xf]  ;;  %v17543_v6 = vor.u32 %v19985_v30, %v17540_v12  ;;  %10032 = vmatpush.bf16.msrb.mxu3 %v17287_v52  ;;  %v14378_v30 = vld [vmem:[#allocation16 + $0x1d0] sm:$0xf] }
 0x99a   :  { %v17796_v59 = vld [vmem:[#allocation16 + $0x1ca8] sm:$0xf0]  ;;  %v19198_v12 = vld [vmem:[#allocation16 + $0x1ec] sm:$0xf0] }
 0x99b   :  { %v20113_v5 = vld [vmem:[#allocation16 + $0x1e8c] sm:$0xf]  ;;  %v17799_v10 = vor.u32 %v20049_v39, %v17796_v59  ;;  %10045 = vmatpush.bf16.msra.mxu0 %v17543_v6  ;;  %v14634_v39 = vld [vmem:[#allocation16 + $0x3d0] sm:$0xf]  ;;  %v14379_v52 = vor.u32 %v19198_v12, %v14378_v30 }
 0x99c   :  { %v18052_v4 = vld [vmem:[#allocation16 + $0x1ea8] sm:$0xf0]  ;;  %v14635_v6 = vor.u32 %v19262_v57, %v14634_v39  ;;  %v19174_v30 = vld [vmem:[#allocation16 + $0x12c] sm:$0xf0] }
 0x99d   :  { %v19913_v18 = vld [vmem:[#allocation16 + $0x184c] sm:$0xf]  ;;  %v18055_v44 = vor.u32 %v20113_v5, %v18052_v4  ;;  %10058 = vmatpush.bf16.msra.mxu2 %v17799_v10  ;;  %v19326_v5 = vld [vmem:[#allocation16 + $0x5ec] sm:$0xf0] }
 0x99e   :  { %v17252_v8 = vld [vmem:[#allocation16 + $0x1868] sm:$0xf0]  ;;  %v15146_v4 = vld [vmem:[#allocation16 + $0x7d0] sm:$0xf]  ;;  %v14891_v10 = vor.u32 %v19326_v5, %v14890_v29 }
 0x99f   :  { %v19977_v31 = vld [vmem:[#allocation16 + $0x1a4c] sm:$0xf]  ;;  %v17255_v63 = vor.u32 %v19913_v18, %v17252_v8  ;;  %10071 = vmatpush.bf16.msra.mxu1 %v18055_v44  ;;  %v14346_v18 = vld [vmem:[#allocation16 + $0x190] sm:$0xf]  ;;  %v15147_v44 = vor.u32 %v19390_v11, %v15146_v4  ;;  %v9841_v11 = vpop.f32.mrf.mxu0 }
 0x9a0   :  { %v17508_v50 = vld [vmem:[#allocation16 + $0x1a68] sm:$0xf0]  ;;  %v19190_v8 = vld [vmem:[#allocation16 + $0x1ac] sm:$0xf0] }
 0x9a1   :  { %v20041_v0 = vld [vmem:[#allocation16 + $0x1c4c] sm:$0xf]  ;;  %v17511_v32 = vor.u32 %v19977_v31, %v17508_v50  ;;  %10033 = vmatpush.bf16.msrb.mxu3 %v17255_v63  ;;  %v14602_v31 = vld [vmem:[#allocation16 + $0x390] sm:$0xf] }
 0x9a2   :  { %v17764_v25 = vld [vmem:[#allocation16 + $0x1c68] sm:$0xf0]  ;;  %v19254_v50 = vld [vmem:[#allocation16 + $0x3ac] sm:$0xf0] }
 0x9a3   :  { %v20105_v28 = vld [vmem:[#allocation16 + $0x1e4c] sm:$0xf]  ;;  %v17767_v42 = vor.u32 %v20041_v0, %v17764_v25  ;;  %10046 = vmatpush.bf16.msra.mxu0 %v17511_v32  ;;  %v14858_v0 = vld [vmem:[#allocation16 + $0x590] sm:$0xf] }
 0x9a4   :  { %v18020_v58 = vld [vmem:[#allocation16 + $0x1e68] sm:$0xf0]  ;;  %v15114_v25 = vld [vmem:[#allocation16 + $0x790] sm:$0xf] }
 0x9a5   :  { %v19905_v62 = vld [vmem:[#allocation16 + $0x180c] sm:$0xf]  ;;  %v18023_v48 = vor.u32 %v20105_v28, %v18020_v58  ;;  %10059 = vmatpush.bf16.msra.mxu2 %v17767_v42  ;;  %v19382_v28 = vld [vmem:[#allocation16 + $0x7ac] sm:$0xf0]  ;;  %v14347_v58 = vor.u32 %v19190_v8, %v14346_v18 }
 0x9a6   :  { %v17220_v33 = vld [vmem:[#allocation16 + $0x1828] sm:$0xf0]  ;;  %v14314_v63 = vld [vmem:[#allocation16 + $0x150] sm:$0xf] }
 0x9a7   :  { %v19969_v16 = vld [vmem:[#allocation16 + $0x1a0c] sm:$0xf]  ;;  %v17223_v59 = vor.u32 %v19905_v62, %v17220_v33  ;;  %10072 = vmatpush.bf16.msra.mxu1 %v18023_v48  ;;  %v14603_v62 = vor.u32 %v19254_v50, %v14602_v31  ;;  %v19182_v32 = vld [vmem:[#allocation16 + $0x16c] sm:$0xf0]  ;;  %v14859_v33 = vor.u32 %v19318_v55, %v14858_v0 }
 0x9a8   :  { %v17476_v13 = vld [vmem:[#allocation16 + $0x1a28] sm:$0xf0]  ;;  %v19246_v42 = vld [vmem:[#allocation16 + $0x36c] sm:$0xf0] }
 0x9a9   :  { %v20033_v40 = vld [vmem:[#allocation16 + $0x1c0c] sm:$0xf]  ;;  %v17479_v56 = vor.u32 %v19969_v16, %v17476_v13  ;;  %10034 = vmatpush.bf16.msrb.mxu3 %v17223_v59  ;;  %v15115_v16 = vor.u32 %v19382_v28, %v15114_v25  ;;  %v14570_v13 = vld [vmem:[#allocation16 + $0x350] sm:$0xf] }
 0x9aa   :  { %v17732_v7 = vld [vmem:[#allocation16 + $0x1c28] sm:$0xf0]  ;;  %v14826_v48 = vld [vmem:[#allocation16 + $0x550] sm:$0xf]  ;;  %v14571_v20 = vor.u32 %v19246_v42, %v14570_v13 }
 0x9ab   :  { %v20097_v49 = vld [vmem:[#allocation16 + $0x1e0c] sm:$0xf]  ;;  %v17735_v47 = vor.u32 %v20033_v40, %v17732_v7  ;;  %10047 = vmatpush.bf16.msra.mxu0 %v17479_v56  ;;  %v15082_v40 = vld [vmem:[#allocation16 + $0x750] sm:$0xf]  ;;  %v14827_v12 = vor.u32 %v19310_v38, %v14826_v48 }
 0x9ac   :  { %v17988_v54 = vld [vmem:[#allocation16 + $0x1e28] sm:$0xf0]  ;;  %10035 = vmatmul.bf16.vlgmr.msrb.gmra.mxu3 %v21317_v43  ;;  %v19374_v7 = vld [vmem:[#allocation16 + $0x76c] sm:$0xf0] }
 0x9ad   :  { %v17991_v34 = vor.u32 %v20097_v49, %v17988_v54  ;;  %10060 = vmatpush.bf16.msra.mxu2 %v17735_v47  ;;  %10079 = vmatpush.bf16.msra.mxu3 %v14379_v52  ;;  %v14315_v49 = vor.u32 %v19182_v32, %v14314_v63  ;;  %v14282_v54 = vld [vmem:[#allocation16 + $0x110] sm:$0xf]  ;;  %v15083_v39 = vor.u32 %v19374_v7, %v15082_v40  ;;  %v9867_v47 = vpop.f32.mrf.mxu1  ;;  %v9854_v40 = vpop.f32.mrf.mxu2 }
 0x9ae   :  { %10048 = vmatmul.bf16.vlgmr.msra.gmra.mxu0 %v21321_v45  ;;  %v14538_v57 = vld [vmem:[#allocation16 + $0x310] sm:$0xf] }
 0x9af   :  { %10073 = vmatpush.bf16.msra.mxu1 %v17991_v34  ;;  %10092 = vmatpush.bf16.msrb.mxu0 %v14635_v6  ;;  %v19238_v29 = vld [vmem:[#allocation16 + $0x32c] sm:$0xf0]  ;;  %v14283_v34 = vor.u32 %v19174_v30, %v14282_v54  ;;  %v9843_v54 = vpop.f32.mrf.mxu0 }
 0x9b0   :  { %10061 = vmatmul.bf16.vlgmr.msra.gmra.mxu2 %v21325_v26  ;;  %v14794_v59 = vld [vmem:[#allocation16 + $0x510] sm:$0xf]  ;;  %v14539_v52 = vor.u32 %v19238_v29, %v14538_v57 }
 0x9b1   :  { %10105 = vmatpush.bf16.msrb.mxu2 %v14891_v10  ;;  %10080 = vmatpush.bf16.msra.mxu3 %v14347_v58  ;;  %v19302_v56 = vld [vmem:[#allocation16 + $0x52c] sm:$0xf0] }
 0x9b2   :  { %10074 = vmatmul.bf16.vlgmr.msra.gmra.mxu1 %v21329_v27  ;;  %v15050_v5 = vld [vmem:[#allocation16 + $0x710] sm:$0xf]  ;;  %v14795_v8 = vor.u32 %v19302_v56, %v14794_v59 }
 0x9b3   :  { %10118 = vmatpush.bf16.msrb.mxu1 %v15147_v44  ;;  %10093 = vmatpush.bf16.msrb.mxu0 %v14603_v62  ;;  %v19366_v4 = vld [vmem:[#allocation16 + $0x72c] sm:$0xf0] }
 0x9b4   :  { %v14250_v6 = vld [vmem:[#allocation16 + $0xd0] sm:$0xf]  ;;  %v15051_v10 = vor.u32 %v19366_v4, %v15050_v5 }
 0x9b5   :  { %10106 = vmatpush.bf16.msrb.mxu2 %v14859_v33  ;;  %10081 = vmatpush.bf16.msra.mxu3 %v14315_v49  ;;  %v19166_v18 = vld [vmem:[#allocation16 + $0xec] sm:$0xf0] }
 0x9b6   :  { %v14506_v44 = vld [vmem:[#allocation16 + $0x2d0] sm:$0xf]  ;;  %v14251_v28 = vor.u32 %v19166_v18, %v14250_v6 }
 0x9b7   :  { %10119 = vmatpush.bf16.msrb.mxu1 %v15115_v16  ;;  %10094 = vmatpush.bf16.msrb.mxu0 %v14571_v20  ;;  %v19230_v31 = vld [vmem:[#allocation16 + $0x2ec] sm:$0xf0]  ;;  %v9828_v16 = vpop.f32.mrf.mxu3 }
 0x9b8   :  { %v14762_v50 = vld [vmem:[#allocation16 + $0x4d0] sm:$0xf]  ;;  %v14507_v58 = vor.u32 %v19230_v31, %v14506_v44  ;;  %v9829_v38 = vadd.f32 %v9828_v16, %v21464_v21 }
 0x9b9   :  { %10107 = vmatpush.bf16.msrb.mxu2 %v14827_v12  ;;  %v19294_v0 = vld [vmem:[#allocation16 + $0x4ec] sm:$0xf0]  ;;  %10082 = vmatpush.bf16.msra.mxu3 %v14283_v34  ;;  %v9869_v12 = vpop.f32.mrf.mxu1 }
 0x9ba   :  { %v15018_v55 = vld [vmem:[#allocation16 + $0x6d0] sm:$0xf]  ;;  %v14763_v32 = vor.u32 %v19294_v0, %v14762_v50  ;;  %v9842_v30 = vadd.f32 %v9841_v11, %v9829_v38 }
 0x9bb   :  { %10120 = vmatpush.bf16.msrb.mxu1 %v15083_v39  ;;  %v19358_v25 = vld [vmem:[#allocation16 + $0x6ec] sm:$0xf0]  ;;  %10095 = vmatpush.bf16.msrb.mxu0 %v14539_v52 }
 0x9bc   :  { %v14218_v62 = vld [vmem:[#allocation16 + $0x90] sm:$0xf]  ;;  %v15019_v33 = vor.u32 %v19358_v25, %v15018_v55  ;;  %v9855_v52 = vadd.f32 %v9854_v40, %v9842_v30 }
 0x9bd   :  { %v19158_v63 = vld [vmem:[#allocation16 + $0xac] sm:$0xf0]  ;;  %10108 = vmatpush.bf16.msrb.mxu2 %v14795_v8  ;;  %10083 = vmatpush.bf16.msra.mxu3 %v14251_v28 }
 0x9be   :  { %v14474_v13 = vld [vmem:[#allocation16 + $0x290] sm:$0xf]  ;;  %v14219_v39 = vor.u32 %v19158_v63, %v14218_v62  ;;  %v21471_v44 = vadd.f32 %v9867_v47, %v9855_v52 }
 0x9bf   :  { %10121 = vmatpush.bf16.msrb.mxu1 %v15051_v10  ;;  %v19222_v42 = vld [vmem:[#allocation16 + $0x2ac] sm:$0xf0]  ;;  %10096 = vmatpush.bf16.msrb.mxu0 %v14507_v58  ;;  %v9830_v58 = vpop.f32.mrf.mxu3 }
 0x9c0   :  { %v14730_v48 = vld [vmem:[#allocation16 + $0x490] sm:$0xf]  ;;  %v14475_v57 = vor.u32 %v19222_v42, %v14474_v13 }
 0x9c1   :  { %v19286_v7 = vld [vmem:[#allocation16 + $0x4ac] sm:$0xf0]  ;;  %10109 = vmatpush.bf16.msrb.mxu2 %v14763_v32  ;;  %10084 = vmatpush.bf16.msra.mxu3 %v14219_v39 }
 0x9c2   :  { %v14986_v49 = vld [vmem:[#allocation16 + $0x690] sm:$0xf]  ;;  %v14731_v56 = vor.u32 %v19286_v7, %v14730_v48 }
 0x9c3   :  { %v19350_v20 = vld [vmem:[#allocation16 + $0x6ac] sm:$0xf0]  ;;  %10122 = vmatpush.bf16.msrb.mxu1 %v15019_v33  ;;  %10097 = vmatpush.bf16.msrb.mxu0 %v14475_v57  ;;  %v9856_v33 = vpop.f32.mrf.mxu2 }
 0x9c4   :  { %v14186_v29 = vld [vmem:[#allocation16 + $0x50] sm:$0xf]  ;;  %v14987_v5 = vor.u32 %v19350_v20, %v14986_v49 }
 0x9c5   :  { %v19150_v59 = vld [vmem:[#allocation16 + $0x6c] sm:$0xf0]  ;;  %10110 = vmatpush.bf16.msrb.mxu2 %v14731_v56 }
 0x9c6   :  { %v14442_v4 = vld [vmem:[#allocation16 + $0x250] sm:$0xf]  ;;  %v14187_v11 = vor.u32 %v19150_v59, %v14186_v29 }
 0x9c7   :  { %v19214_v34 = vld [vmem:[#allocation16 + $0x26c] sm:$0xf0]  ;;  %10123 = vmatpush.bf16.msrb.mxu1 %v14987_v5 }
 0x9c8   :  { %v14698_v21 = vld [vmem:[#allocation16 + $0x450] sm:$0xf]  ;;  %v14443_v31 = vor.u32 %v19214_v34, %v14442_v4  ;;  %10085 = vmatpush.bf16.msra.mxu3 %v14187_v11 }
 0x9c9   :  { %v19278_v6 = vld [vmem:[#allocation16 + $0x46c] sm:$0xf0] }
 0x9ca   :  { %v14954_v18 = vld [vmem:[#allocation16 + $0x650] sm:$0xf]  ;;  %v14699_v25 = vor.u32 %v19278_v6, %v14698_v21  ;;  %10098 = vmatpush.bf16.msrb.mxu0 %v14443_v31 }
 0x9cb   :  { %v19342_v8 = vld [vmem:[#allocation16 + $0x66c] sm:$0xf0] }
 0x9cc   :  { %v14154_v10 = vld [vmem:[#allocation16 + $0x10] sm:$0xf]  ;;  %v14955_v28 = vor.u32 %v19342_v8, %v14954_v18  ;;  %10111 = vmatpush.bf16.msrb.mxu2 %v14699_v25 }
 0x9cd   :  { %v19142_v50 = vld [vmem:[#allocation16 + $0x2c] sm:$0xf0] }
 0x9ce   :  { %v14410_v0 = vld [vmem:[#allocation16 + $0x210] sm:$0xf]  ;;  %v14155_v40 = vor.u32 %v19142_v50, %v14154_v10  ;;  %10124 = vmatpush.bf16.msrb.mxu1 %v14955_v28 }
 0x9cf   :  { %v19206_v55 = vld [vmem:[#allocation16 + $0x22c] sm:$0xf0] }
 0x9d0   :  { %v14666_v62 = vld [vmem:[#allocation16 + $0x410] sm:$0xf]  ;;  %v14411_v7 = vor.u32 %v19206_v55, %v14410_v0  ;;  %10086 = vmatpush.bf16.msra.mxu3 %v14155_v40 }
 0x9d1   :  { %v19270_v63 = vld [vmem:[#allocation16 + $0x42c] sm:$0xf0] }
 0x9d2   :  { %v14922_v32 = vld [vmem:[#allocation16 + $0x610] sm:$0xf]  ;;  %v14667_v30 = vor.u32 %v19270_v63, %v14666_v62  ;;  %10099 = vmatpush.bf16.msrb.mxu0 %v14411_v7 }
 0x9d3   :  { %v19334_v16 = vld [vmem:[#allocation16 + $0x62c] sm:$0xf0]  ;;  %10087 = vmatmul.bf16.vlgmr.msra.gmra.mxu3 %v21257_v14 }
 0x9d4   :  { %v15402_v13 = vld [vmem:[#allocation16 + $0x9d0] sm:$0xf]  ;;  %v14923_v12 = vor.u32 %v19334_v16, %v14922_v32  ;;  %10112 = vmatpush.bf16.msrb.mxu2 %v14667_v30  ;;  %v9919_v30 = vpop.f32.mrf.mxu1 }
 0x9d5   :  { %v19454_v47 = vld [vmem:[#allocation16 + $0x9ec] sm:$0xf0]  ;;  %10100 = vmatmul.bf16.vlgmr.msrb.gmra.mxu0 %v21261_v15 }
 0x9d6   :  { %v15658_v42 = vld [vmem:[#allocation16 + $0xbd0] sm:$0xf]  ;;  %v15403_v39 = vor.u32 %v19454_v47, %v15402_v13  ;;  %10125 = vmatpush.bf16.msrb.mxu1 %v14923_v12 }
 0x9d7   :  { %v19518_v48 = vld [vmem:[#allocation16 + $0xbec] sm:$0xf0]  ;;  %10113 = vmatmul.bf16.vlgmr.msrb.gmra.mxu2 %v21265_v22 }
 0x9d8   :  { %v15914_v38 = vld [vmem:[#allocation16 + $0xdd0] sm:$0xf]  ;;  %v15659_v57 = vor.u32 %v19518_v48, %v15658_v42  ;;  %10131 = vmatpush.bf16.msrb.mxu3 %v15403_v39 }
 0x9d9   :  { %v19582_v49 = vld [vmem:[#allocation16 + $0xdec] sm:$0xf0]  ;;  %10126 = vmatmul.bf16.vlgmr.msrb.gmra.mxu1 %v21269_v23 }
 0x9da   :  { %v16170_v20 = vld [vmem:[#allocation16 + $0xfd0] sm:$0xf]  ;;  %v15915_v56 = vor.u32 %v19582_v49, %v15914_v38  ;;  %10144 = vmatpush.bf16.msra.mxu0 %v15659_v57 }
 0x9db   :  { %v19646_v54 = vld [vmem:[#allocation16 + $0xfec] sm:$0xf0] }
 0x9dc   :  { %v15370_v29 = vld [vmem:[#allocation16 + $0x990] sm:$0xf]  ;;  %v16171_v5 = vor.u32 %v19646_v54, %v16170_v20  ;;  %10157 = vmatpush.bf16.msra.mxu2 %v15915_v56  ;;  %v9893_v54 = vpop.f32.mrf.mxu0 }
 0x9dd   :  { %v19446_v59 = vld [vmem:[#allocation16 + $0x9ac] sm:$0xf0] }
 0x9de   :  { %v15626_v4 = vld [vmem:[#allocation16 + $0xb90] sm:$0xf]  ;;  %v15371_v8 = vor.u32 %v19446_v59, %v15370_v29  ;;  %10170 = vmatpush.bf16.msra.mxu1 %v16171_v5 }
 0x9df   :  { %v19510_v34 = vld [vmem:[#allocation16 + $0xbac] sm:$0xf0] }
 0x9e0   :  { %v15882_v21 = vld [vmem:[#allocation16 + $0xd90] sm:$0xf]  ;;  %v15627_v10 = vor.u32 %v19510_v34, %v15626_v4  ;;  %10132 = vmatpush.bf16.msrb.mxu3 %v15371_v8 }
 0x9e1   :  { %v19574_v52 = vld [vmem:[#allocation16 + $0xdac] sm:$0xf0] }
 0x9e2   :  { %v16138_v6 = vld [vmem:[#allocation16 + $0xf90] sm:$0xf]  ;;  %v15883_v50 = vor.u32 %v19574_v52, %v15882_v21  ;;  %10145 = vmatpush.bf16.msra.mxu0 %v15627_v10 }
 0x9e3   :  { %v19638_v18 = vld [vmem:[#allocation16 + $0xfac] sm:$0xf0] }
 0x9e4   :  { %v15338_v11 = vld [vmem:[#allocation16 + $0x950] sm:$0xf]  ;;  %v16139_v0 = vor.u32 %v19638_v18, %v16138_v6  ;;  %10158 = vmatpush.bf16.msra.mxu2 %v15883_v50 }
 0x9e5   :  { %v19438_v31 = vld [vmem:[#allocation16 + $0x96c] sm:$0xf0] }
 0x9e6   :  { %v15594_v55 = vld [vmem:[#allocation16 + $0xb50] sm:$0xf]  ;;  %v15339_v32 = vor.u32 %v19438_v31, %v15338_v11  ;;  %10171 = vmatpush.bf16.msra.mxu1 %v16139_v0  ;;  %v9880_v0 = vpop.f32.mrf.mxu3 }
 0x9e7   :  { %v19502_v25 = vld [vmem:[#allocation16 + $0xb6c] sm:$0xf0] }
 0x9e8   :  { %v15850_v28 = vld [vmem:[#allocation16 + $0xd50] sm:$0xf]  ;;  %v15595_v33 = vor.u32 %v19502_v25, %v15594_v55  ;;  %10133 = vmatpush.bf16.msrb.mxu3 %v15339_v32 }
 0x9e9   :  { %v19566_v58 = vld [vmem:[#allocation16 + $0xd6c] sm:$0xf0] }
 0x9ea   :  { %v16106_v62 = vld [vmem:[#allocation16 + $0xf50] sm:$0xf]  ;;  %v15851_v47 = vor.u32 %v19566_v58, %v15850_v28  ;;  %10146 = vmatpush.bf16.msra.mxu0 %v15595_v33  ;;  %v9881_v58 = vadd.f32 %v9880_v0, %v21375_v3 }
 0x9eb   :  { %v19630_v63 = vld [vmem:[#allocation16 + $0xf6c] sm:$0xf0] }
 0x9ec   :  { %v15306_v16 = vld [vmem:[#allocation16 + $0x910] sm:$0xf]  ;;  %v16107_v42 = vor.u32 %v19630_v63, %v16106_v62  ;;  %10159 = vmatpush.bf16.msra.mxu2 %v15851_v47  ;;  %v9906_v62 = vpop.f32.mrf.mxu2  ;;  %v9921_v47 = vpop.f32.mrf.mxu1 }
 0x9ed   :  { %v19430_v13 = vld [vmem:[#allocation16 + $0x92c] sm:$0xf0] }
 0x9ee   :  { %v15562_v48 = vld [vmem:[#allocation16 + $0xb10] sm:$0xf]  ;;  %v15307_v12 = vor.u32 %v19430_v13, %v15306_v16  ;;  %10172 = vmatpush.bf16.msra.mxu1 %v16107_v42  ;;  %v9895_v16 = vpop.f32.mrf.mxu0  ;;  %v9894_v13 = vadd.f32 %v9893_v54, %v9881_v58 }
 0x9ef   :  { %v19494_v38 = vld [vmem:[#allocation16 + $0xb2c] sm:$0xf0] }
 0x9f0   :  { %v15818_v40 = vld [vmem:[#allocation16 + $0xd10] sm:$0xf]  ;;  %v15563_v39 = vor.u32 %v19494_v38, %v15562_v48  ;;  %10134 = vmatpush.bf16.msrb.mxu3 %v15307_v12 }
 0x9f1   :  { %v19558_v7 = vld [vmem:[#allocation16 + $0xd2c] sm:$0xf0] }
 0x9f2   :  { %v16074_v49 = vld [vmem:[#allocation16 + $0xf10] sm:$0xf]  ;;  %v15819_v59 = vor.u32 %v19558_v7, %v15818_v40  ;;  %10147 = vmatpush.bf16.msra.mxu0 %v15563_v39  ;;  %v9907_v39 = vadd.f32 %v9906_v62, %v9894_v13 }
 0x9f3   :  { %v19622_v20 = vld [vmem:[#allocation16 + $0xf2c] sm:$0xf0] }
 0x9f4   :  { %v15274_v57 = vld [vmem:[#allocation16 + $0x8d0] sm:$0xf]  ;;  %v16075_v56 = vor.u32 %v19622_v20, %v16074_v49  ;;  %10160 = vmatpush.bf16.msra.mxu2 %v15819_v59 }
 0x9f5   :  { %v19422_v29 = vld [vmem:[#allocation16 + $0x8ec] sm:$0xf0] }
 0x9f6   :  { %v15530_v5 = vld [vmem:[#allocation16 + $0xad0] sm:$0xf]  ;;  %v15275_v18 = vor.u32 %v19422_v29, %v15274_v57  ;;  %10173 = vmatpush.bf16.msra.mxu1 %v16075_v56 }
 0x9f7   :  { %v19486_v4 = vld [vmem:[#allocation16 + $0xaec] sm:$0xf0] }
 0x9f8   :  { %v15786_v34 = vld [vmem:[#allocation16 + $0xcd0] sm:$0xf]  ;;  %v15531_v8 = vor.u32 %v19486_v4, %v15530_v5  ;;  %10135 = vmatpush.bf16.msrb.mxu3 %v15275_v18 }
 0x9f9   :  { %v19550_v21 = vld [vmem:[#allocation16 + $0xcec] sm:$0xf0] }
 0x9fa   :  { %v16042_v52 = vld [vmem:[#allocation16 + $0xed0] sm:$0xf]  ;;  %v15787_v31 = vor.u32 %v19550_v21, %v15786_v34  ;;  %10148 = vmatpush.bf16.msra.mxu0 %v15531_v8  ;;  %v9882_v8 = vpop.f32.mrf.mxu3 }
 0x9fb   :  { %v19614_v6 = vld [vmem:[#allocation16 + $0xeec] sm:$0xf0] }
 0x9fc   :  { %v15242_v10 = vld [vmem:[#allocation16 + $0x890] sm:$0xf]  ;;  %v16043_v50 = vor.u32 %v19614_v6, %v16042_v52  ;;  %10161 = vmatpush.bf16.msra.mxu2 %v15787_v31  ;;  %v21478_v52 = vadd.f32 %v9919_v30, %v9907_v39 }
 0x9fd   :  { %v19414_v11 = vld [vmem:[#allocation16 + $0x8ac] sm:$0xf0] }
 0x9fe   :  { %v15498_v55 = vld [vmem:[#allocation16 + $0xa90] sm:$0xf]  ;;  %v15243_v42 = vor.u32 %v19414_v11, %v15242_v10  ;;  %10174 = vmatpush.bf16.msra.mxu1 %v16043_v50  ;;  %v9908_v50 = vpop.f32.mrf.mxu2 }
 0x9ff   :  { %v19478_v25 = vld [vmem:[#allocation16 + $0xaac] sm:$0xf0] }
 0xa00   :  { %v15754_v28 = vld [vmem:[#allocation16 + $0xc90] sm:$0xf]  ;;  %v15499_v48 = vor.u32 %v19478_v25, %v15498_v55  ;;  %10136 = vmatpush.bf16.msrb.mxu3 %v15243_v42 }
 0xa01   :  { %v19542_v63 = vld [vmem:[#allocation16 + $0xcac] sm:$0xf0] }
 0xa02   :  { %v16010_v32 = vld [vmem:[#allocation16 + $0xe90] sm:$0xf]  ;;  %v15755_v7 = vor.u32 %v19542_v63, %v15754_v28  ;;  %10149 = vmatpush.bf16.msra.mxu0 %v15499_v48 }
 0xa03   :  { %v19606_v33 = vld [vmem:[#allocation16 + $0xeac] sm:$0xf0] }
 0xa04   :  { %v15210_v38 = vld [vmem:[#allocation16 + $0x850] sm:$0xf]  ;;  %v16011_v49 = vor.u32 %v19606_v33, %v16010_v32  ;;  %10162 = vmatpush.bf16.msra.mxu2 %v15755_v7 }
 0xa05   :  { %v19406_v40 = vld [vmem:[#allocation16 + $0x86c] sm:$0xf0] }
 0xa06   :  { %v15466_v20 = vld [vmem:[#allocation16 + $0xa50] sm:$0xf]  ;;  %v15211_v54 = vor.u32 %v19406_v40, %v15210_v38  ;;  %10175 = vmatpush.bf16.msra.mxu1 %v16011_v49 }
 0xa07   :  { %v19470_v12 = vld [vmem:[#allocation16 + $0xa6c] sm:$0xf0] }
 0xa08   :  { %v15722_v3 = vld [vmem:[#allocation16 + $0xc50] sm:$0xf]  ;;  %v15467_v5 = vor.u32 %v19470_v12, %v15466_v20  ;;  %10137 = vmatpush.bf16.msrb.mxu3 %v15211_v54 }
 0xa09   :  { %v19534_v57 = vld [vmem:[#allocation16 + $0xc6c] sm:$0xf0] }
 0xa0a   :  { %v15978_v29 = vld [vmem:[#allocation16 + $0xe50] sm:$0xf]  ;;  %v15723_v6 = vor.u32 %v19534_v57, %v15722_v3  ;;  %10150 = vmatpush.bf16.msra.mxu0 %v15467_v5 }
 0xa0b   :  { %v19598_v59 = vld [vmem:[#allocation16 + $0xe6c] sm:$0xf0] }
 0xa0c   :  { %v15178_v56 = vld [vmem:[#allocation16 + $0x810] sm:$0xf]  ;;  %v15979_v18 = vor.u32 %v19598_v59, %v15978_v29  ;;  %10163 = vmatpush.bf16.msra.mxu2 %v15723_v6 }
 0xa0d   :  { %v19398_v4 = vld [vmem:[#allocation16 + $0x82c] sm:$0xf0] }
 0xa0e   :  { %v15434_v34 = vld [vmem:[#allocation16 + $0xa10] sm:$0xf]  ;;  %v15179_v63 = vor.u32 %v19398_v4, %v15178_v56  ;;  %10176 = vmatpush.bf16.msra.mxu1 %v15979_v18 }
 0xa0f   :  { %v19462_v21 = vld [vmem:[#allocation16 + $0xa2c] sm:$0xf0] }
 0xa10   :  { %v15690_v10 = vld [vmem:[#allocation16 + $0xc10] sm:$0xf]  ;;  %v15435_v30 = vor.u32 %v19462_v21, %v15434_v34  ;;  %10138 = vmatpush.bf16.msrb.mxu3 %v15179_v63 }
 0xa11   :  { %v19526_v11 = vld [vmem:[#allocation16 + $0xc2c] sm:$0xf0] }
 0xa12   :  { %v15946_v31 = vld [vmem:[#allocation16 + $0xe10] sm:$0xf]  ;;  %v15691_v13 = vor.u32 %v19526_v11, %v15690_v10  ;;  %10151 = vmatpush.bf16.msra.mxu0 %v15435_v30 }
 0xa13   :  { %v19590_v0 = vld [vmem:[#allocation16 + $0xe2c] sm:$0xf0]  ;;  %10139 = vmatmul.bf16.vlgmr.msrb.gmra.mxu3 %v21277_v60 }
 0xa14   :  { %v16426_v55 = vld [vmem:[#allocation16 + $0x11d0] sm:$0xf]  ;;  %v15947_v47 = vor.u32 %v19590_v0, %v15946_v31  ;;  %10164 = vmatpush.bf16.msra.mxu2 %v15691_v13  ;;  %v9971_v13 = vpop.f32.mrf.mxu1 }
 0xa15   :  { %v19710_v25 = vld [vmem:[#allocation16 + $0x11ec] sm:$0xf0]  ;;  %10152 = vmatmul.bf16.vlgmr.msra.gmra.mxu0 %v21281_v61 }
 0xa16   :  { %v16682_v28 = vld [vmem:[#allocation16 + $0x13d0] sm:$0xf]  ;;  %v16427_v42 = vor.u32 %v19710_v25, %v16426_v55  ;;  %10177 = vmatpush.bf16.msra.mxu1 %v15947_v47 }
 0xa17   :  { %v19774_v58 = vld [vmem:[#allocation16 + $0x13ec] sm:$0xf0]  ;;  %10165 = vmatmul.bf16.vlgmr.msra.gmra.mxu2 %v21285_v1 }
 0xa18   :  { %v16938_v62 = vld [vmem:[#allocation16 + $0x15d0] sm:$0xf]  ;;  %v16683_v48 = vor.u32 %v19774_v58, %v16682_v28  ;;  %10183 = vmatpush.bf16.msra.mxu3 %v16427_v42 }
 0xa19   :  { %v19838_v32 = vld [vmem:[#allocation16 + $0x15ec] sm:$0xf0]  ;;  %10178 = vmatmul.bf16.vlgmr.msra.gmra.mxu1 %v21289_v2 }
 0xa1a   :  { %v17194_v33 = vld [vmem:[#allocation16 + $0x17d0] sm:$0xf]  ;;  %v16939_v7 = vor.u32 %v19838_v32, %v16938_v62  ;;  %10196 = vmatpush.bf16.msrb.mxu0 %v16683_v48 }
 0xa1b   :  { %v19902_v16 = vld [vmem:[#allocation16 + $0x17ec] sm:$0xf0] }
 0xa1c   :  { %v16394_v38 = vld [vmem:[#allocation16 + $0x1190] sm:$0xf]  ;;  %v17195_v49 = vor.u32 %v19902_v16, %v17194_v33  ;;  %10209 = vmatpush.bf16.msrb.mxu2 %v16939_v7  ;;  %v9945_v16 = vpop.f32.mrf.mxu0 }
 0xa1d   :  { %v19702_v40 = vld [vmem:[#allocation16 + $0x11ac] sm:$0xf0] }
 0xa1e   :  { %v16650_v20 = vld [vmem:[#allocation16 + $0x1390] sm:$0xf]  ;;  %v16395_v59 = vor.u32 %v19702_v40, %v16394_v38  ;;  %10222 = vmatpush.bf16.msrb.mxu1 %v17195_v49 }
 0xa1f   :  { %v19766_v12 = vld [vmem:[#allocation16 + $0x13ac] sm:$0xf0] }
 0xa20   :  { %v16906_v3 = vld [vmem:[#allocation16 + $0x1590] sm:$0xf]  ;;  %v16651_v56 = vor.u32 %v19766_v12, %v16650_v20  ;;  %10184 = vmatpush.bf16.msra.mxu3 %v16395_v59 }
 0xa21   :  { %v19830_v39 = vld [vmem:[#allocation16 + $0x15ac] sm:$0xf0] }
 0xa22   :  { %v17162_v57 = vld [vmem:[#allocation16 + $0x1790] sm:$0xf]  ;;  %v16907_v4 = vor.u32 %v19830_v39, %v16906_v3  ;;  %10197 = vmatpush.bf16.msrb.mxu0 %v16651_v56 }
 0xa23   :  { %v19894_v29 = vld [vmem:[#allocation16 + $0x17ac] sm:$0xf0] }
 0xa24   :  { %v16362_v54 = vld [vmem:[#allocation16 + $0x1150] sm:$0xf]  ;;  %v17163_v34 = vor.u32 %v19894_v29, %v17162_v57  ;;  %10210 = vmatpush.bf16.msrb.mxu2 %v16907_v4 }
 0xa25   :  { %v19694_v5 = vld [vmem:[#allocation16 + $0x116c] sm:$0xf0] }
 0xa26   :  { %v16618_v21 = vld [vmem:[#allocation16 + $0x1350] sm:$0xf]  ;;  %v16363_v31 = vor.u32 %v19694_v5, %v16362_v54  ;;  %10223 = vmatpush.bf16.msrb.mxu1 %v17163_v34  ;;  %v9932_v34 = vpop.f32.mrf.mxu3 }
 0xa27   :  { %v19758_v6 = vld [vmem:[#allocation16 + $0x136c] sm:$0xf0] }
 0xa28   :  { %v16874_v18 = vld [vmem:[#allocation16 + $0x1550] sm:$0xf]  ;;  %v16619_v50 = vor.u32 %v19758_v6, %v16618_v21  ;;  %10185 = vmatpush.bf16.msra.mxu3 %v16363_v31 }
 0xa29   :  { %v19822_v8 = vld [vmem:[#allocation16 + $0x156c] sm:$0xf0] }
 0xa2a   :  { %v17130_v10 = vld [vmem:[#allocation16 + $0x1750] sm:$0xf]  ;;  %v16875_v25 = vor.u32 %v19822_v8, %v16874_v18  ;;  %10198 = vmatpush.bf16.msrb.mxu0 %v16619_v50  ;;  %v9933_v8 = vadd.f32 %v9932_v34, %v21478_v52 }
 0xa2b   :  { %v19886_v11 = vld [vmem:[#allocation16 + $0x176c] sm:$0xf0] }
 0xa2c   :  { %v16330_v0 = vld [vmem:[#allocation16 + $0x1110] sm:$0xf]  ;;  %v17131_v28 = vor.u32 %v19886_v11, %v17130_v10  ;;  %10211 = vmatpush.bf16.msrb.mxu2 %v16875_v25  ;;  %v9958_v10 = vpop.f32.mrf.mxu2  ;;  %v9973_v25 = vpop.f32.mrf.mxu1 }
 0xa2d   :  { %v19686_v55 = vld [vmem:[#allocation16 + $0x112c] sm:$0xf0] }
 0xa2e   :  { %v16586_v58 = vld [vmem:[#allocation16 + $0x1310] sm:$0xf]  ;;  %v16331_v47 = vor.u32 %v19686_v55, %v16330_v0  ;;  %10224 = vmatpush.bf16.msrb.mxu1 %v17131_v28  ;;  %v9947_v0 = vpop.f32.mrf.mxu0  ;;  %v9946_v55 = vadd.f32 %v9945_v16, %v9933_v8 }
 0xa2f   :  { %v19750_v62 = vld [vmem:[#allocation16 + $0x132c] sm:$0xf0] }
 0xa30   :  { %v16842_v63 = vld [vmem:[#allocation16 + $0x1510] sm:$0xf]  ;;  %v16587_v42 = vor.u32 %v19750_v62, %v16586_v58  ;;  %10186 = vmatpush.bf16.msra.mxu3 %v16331_v47 }
 0xa31   :  { %v19814_v30 = vld [vmem:[#allocation16 + $0x152c] sm:$0xf0] }
 0xa32   :  { %v17098_v32 = vld [vmem:[#allocation16 + $0x1710] sm:$0xf]  ;;  %v16843_v40 = vor.u32 %v19814_v30, %v16842_v63  ;;  %10199 = vmatpush.bf16.msrb.mxu0 %v16587_v42  ;;  %v9959_v42 = vadd.f32 %v9958_v10, %v9946_v55 }
 0xa33   :  { %v19878_v33 = vld [vmem:[#allocation16 + $0x172c] sm:$0xf0] }
 0xa34   :  { %v16298_v48 = vld [vmem:[#allocation16 + $0x10d0] sm:$0xf]  ;;  %v17099_v7 = vor.u32 %v19878_v33, %v17098_v32  ;;  %10212 = vmatpush.bf16.msrb.mxu2 %v16843_v40 }
 0xa35   :  { %v19678_v38 = vld [vmem:[#allocation16 + $0x10ec] sm:$0xf0] }
 0xa36   :  { %v16554_v49 = vld [vmem:[#allocation16 + $0x12d0] sm:$0xf]  ;;  %v16299_v29 = vor.u32 %v19678_v38, %v16298_v48  ;;  %10225 = vmatpush.bf16.msrb.mxu1 %v17099_v7 }
 0xa37   :  { %v19742_v20 = vld [vmem:[#allocation16 + $0x12ec] sm:$0xf0] }
 0xa38   :  { %v16810_v12 = vld [vmem:[#allocation16 + $0x14d0] sm:$0xf]  ;;  %v16555_v59 = vor.u32 %v19742_v20, %v16554_v49  ;;  %10187 = vmatpush.bf16.msra.mxu3 %v16299_v29 }
 0xa39   :  { %v19806_v3 = vld [vmem:[#allocation16 + $0x14ec] sm:$0xf0] }
 0xa3a   :  { %v17066_v39 = vld [vmem:[#allocation16 + $0x16d0] sm:$0xf]  ;;  %v16811_v5 = vor.u32 %v19806_v3, %v16810_v12  ;;  %10200 = vmatpush.bf16.msrb.mxu0 %v16555_v59  ;;  %v9934_v59 = vpop.f32.mrf.mxu3 }
 0xa3b   :  { %v19870_v57 = vld [vmem:[#allocation16 + $0x16ec] sm:$0xf0] }
 0xa3c   :  { %v16266_v56 = vld [vmem:[#allocation16 + $0x1090] sm:$0xf]  ;;  %v17067_v4 = vor.u32 %v19870_v57, %v17066_v39  ;;  %10213 = vmatpush.bf16.msrb.mxu2 %v16811_v5  ;;  %v21485_v39 = vadd.f32 %v9971_v13, %v9959_v42 }
 0xa3d   :  { %v19670_v54 = vld [vmem:[#allocation16 + $0x10ac] sm:$0xf0] }
 0xa3e   :  { %v16522_v21 = vld [vmem:[#allocation16 + $0x1290] sm:$0xf]  ;;  %v16267_v28 = vor.u32 %v19670_v54, %v16266_v56  ;;  %10226 = vmatpush.bf16.msrb.mxu1 %v17067_v4  ;;  %v9960_v4 = vpop.f32.mrf.mxu2 }
 0xa3f   :  { %v19734_v6 = vld [vmem:[#allocation16 + $0x12ac] sm:$0xf0] }
 0xa40   :  { %v16778_v18 = vld [vmem:[#allocation16 + $0x1490] sm:$0xf]  ;;  %v16523_v58 = vor.u32 %v19734_v6, %v16522_v21  ;;  %10188 = vmatpush.bf16.msra.mxu3 %v16267_v28 }
 0xa41   :  { %v19798_v11 = vld [vmem:[#allocation16 + $0x14ac] sm:$0xf0] }
 0xa42   :  { %v17034_v31 = vld [vmem:[#allocation16 + $0x1690] sm:$0xf]  ;;  %v16779_v30 = vor.u32 %v19798_v11, %v16778_v18  ;;  %10201 = vmatpush.bf16.msrb.mxu0 %v16523_v58 }
 0xa43   :  { %v19862_v50 = vld [vmem:[#allocation16 + $0x16ac] sm:$0xf0] }
 0xa44   :  { %v16234_v62 = vld [vmem:[#allocation16 + $0x1050] sm:$0xf]  ;;  %v17035_v32 = vor.u32 %v19862_v50, %v17034_v31  ;;  %10214 = vmatpush.bf16.msrb.mxu2 %v16779_v30 }
 0xa45   :  { %v19662_v63 = vld [vmem:[#allocation16 + $0x106c] sm:$0xf0] }
 0xa46   :  { %v16490_v33 = vld [vmem:[#allocation16 + $0x1250] sm:$0xf]  ;;  %v16235_v16 = vor.u32 %v19662_v63, %v16234_v62  ;;  %10227 = vmatpush.bf16.msrb.mxu1 %v17035_v32 }
 0xa47   :  { %v19726_v47 = vld [vmem:[#allocation16 + $0x126c] sm:$0xf0] }
 0xa48   :  { %v16746_v52 = vld [vmem:[#allocation16 + $0x1450] sm:$0xf]  ;;  %v16491_v49 = vor.u32 %v19726_v47, %v16490_v33  ;;  %10189 = vmatpush.bf16.msra.mxu3 %v16235_v16 }
 0xa49   :  { %v19790_v48 = vld [vmem:[#allocation16 + $0x146c] sm:$0xf0] }
 0xa4a   :  { %v17002_v38 = vld [vmem:[#allocation16 + $0x1650] sm:$0xf]  ;;  %v16747_v57 = vor.u32 %v19790_v48, %v16746_v52  ;;  %10202 = vmatpush.bf16.msrb.mxu0 %v16491_v49 }
 0xa4b   :  { %v19854_v40 = vld [vmem:[#allocation16 + $0x166c] sm:$0xf0] }
 0xa4c   :  { %v16202_v7 = vld [vmem:[#allocation16 + $0x1010] sm:$0xf]  ;;  %v17003_v29 = vor.u32 %v19854_v40, %v17002_v38  ;;  %10215 = vmatpush.bf16.msrb.mxu2 %v16747_v57 }
 0xa4d   :  { %v19654_v20 = vld [vmem:[#allocation16 + $0x102c] sm:$0xf0] }
 0xa4e   :  { %v16458_v12 = vld [vmem:[#allocation16 + $0x1210] sm:$0xf]  ;;  %v16203_v11 = vor.u32 %v19654_v20, %v16202_v7  ;;  %10228 = vmatpush.bf16.msrb.mxu1 %v17003_v29 }
 0xa4f   :  { %v19718_v3 = vld [vmem:[#allocation16 + $0x122c] sm:$0xf0] }
 0xa50   :  { %v16714_v56 = vld [vmem:[#allocation16 + $0x1410] sm:$0xf]  ;;  %v16459_v13 = vor.u32 %v19718_v3, %v16458_v12  ;;  %10190 = vmatpush.bf16.msra.mxu3 %v16203_v11 }
 0xa51   :  { %v19782_v54 = vld [vmem:[#allocation16 + $0x142c] sm:$0xf0] }
 0xa52   :  { %v16970_v5 = vld [vmem:[#allocation16 + $0x1610] sm:$0xf]  ;;  %v16715_v55 = vor.u32 %v19782_v54, %v16714_v56  ;;  %10203 = vmatpush.bf16.msrb.mxu0 %v16459_v13 }
 0xa53   :  { %v19846_v34 = vld [vmem:[#allocation16 + $0x162c] sm:$0xf0]  ;;  %10191 = vmatmul.bf16.vlgmr.msra.gmra.mxu3 %v21297_v36 }
 0xa54   :  { %v17450_v21 = vld [vmem:[#allocation16 + $0x19d0] sm:$0xf]  ;;  %v16971_v25 = vor.u32 %v19846_v34, %v16970_v5  ;;  %10216 = vmatpush.bf16.msrb.mxu2 %v16715_v55  ;;  %v10023_v55 = vpop.f32.mrf.mxu1 }
 0xa55   :  { %v19966_v6 = vld [vmem:[#allocation16 + $0x19ec] sm:$0xf0]  ;;  %10204 = vmatmul.bf16.vlgmr.msrb.gmra.mxu0 %v21301_v37 }
 0xa56   :  { %v17706_v18 = vld [vmem:[#allocation16 + $0x1bd0] sm:$0xf]  ;;  %v17451_v28 = vor.u32 %v19966_v6, %v17450_v21  ;;  %10229 = vmatpush.bf16.msrb.mxu1 %v16971_v25 }
 0xa57   :  { %v20030_v8 = vld [vmem:[#allocation16 + $0x1bec] sm:$0xf0]  ;;  %10217 = vmatmul.bf16.vlgmr.msrb.gmra.mxu2 %v21305_v41 }
 0xa58   :  { %v17962_v10 = vld [vmem:[#allocation16 + $0x1dd0] sm:$0xf]  ;;  %v17707_v58 = vor.u32 %v20030_v8, %v17706_v18  ;;  %10235 = vmatpush.bf16.msrb.mxu3 %v17451_v28 }
 0xa59   :  { %v20094_v31 = vld [vmem:[#allocation16 + $0x1dec] sm:$0xf0]  ;;  %10230 = vmatmul.bf16.vlgmr.msrb.gmra.mxu1 %v21309_v46 }
 0xa5a   :  { %v18218_v50 = vld [vmem:[#allocation16 + $0x1fd0] sm:$0xf]  ;;  %v17963_v30 = vor.u32 %v20094_v31, %v17962_v10  ;;  %10248 = vmatpush.bf16.msra.mxu0 %v17707_v58 }
 0xa5b   :  { %v20158_v0 = vld [vmem:[#allocation16 + $0x1fec] sm:$0xf0] }
 0xa5c   :  { %v17418_v62 = vld [vmem:[#allocation16 + $0x1990] sm:$0xf]  ;;  %v18219_v32 = vor.u32 %v20158_v0, %v18218_v50  ;;  %10261 = vmatpush.bf16.msra.mxu2 %v17963_v30  ;;  %v9997_v0 = vpop.f32.mrf.mxu0 }
 0xa5d   :  { %v19958_v63 = vld [vmem:[#allocation16 + $0x19ac] sm:$0xf0] }
 0xa5e   :  { %v17674_v33 = vld [vmem:[#allocation16 + $0x1b90] sm:$0xf]  ;;  %v17419_v40 = vor.u32 %v19958_v63, %v17418_v62  ;;  %10274 = vmatpush.bf16.msra.mxu1 %v18219_v32 }
 0xa5f   :  { %v20022_v47 = vld [vmem:[#allocation16 + $0x1bac] sm:$0xf0] }
 0xa60   :  { %v17930_v52 = vld [vmem:[#allocation16 + $0x1d90] sm:$0xf]  ;;  %v17675_v7 = vor.u32 %v20022_v47, %v17674_v33  ;;  %10236 = vmatpush.bf16.msrb.mxu3 %v17419_v40 }
 0xa61   :  { %v20086_v42 = vld [vmem:[#allocation16 + $0x1dac] sm:$0xf0] }
 0xa62   :  { %v18186_v48 = vld [vmem:[#allocation16 + $0x1f90] sm:$0xf]  ;;  %v17931_v20 = vor.u32 %v20086_v42, %v17930_v52  ;;  %10249 = vmatpush.bf16.msra.mxu0 %v17675_v7 }
 0xa63   :  { %v20150_v38 = vld [vmem:[#allocation16 + $0x1fac] sm:$0xf0] }
 0xa64   :  { %v17386_v16 = vld [vmem:[#allocation16 + $0x1950] sm:$0xf]  ;;  %v18187_v12 = vor.u32 %v20150_v38, %v18186_v48  ;;  %10262 = vmatpush.bf16.msra.mxu2 %v17931_v20 }
 0xa65   :  { %v19950_v49 = vld [vmem:[#allocation16 + $0x196c] sm:$0xf0] }
 0xa66   :  { %v17642_v3 = vld [vmem:[#allocation16 + $0x1b50] sm:$0xf]  ;;  %v17387_v5 = vor.u32 %v19950_v49, %v17386_v16  ;;  %10275 = vmatpush.bf16.msra.mxu1 %v18187_v12  ;;  %v9984_v12 = vpop.f32.mrf.mxu3 }
 0xa67   :  { %v20014_v57 = vld [vmem:[#allocation16 + $0x1b6c] sm:$0xf0] }
 0xa68   :  { %v17898_v29 = vld [vmem:[#allocation16 + $0x1d50] sm:$0xf]  ;;  %v17643_v4 = vor.u32 %v20014_v57, %v17642_v3  ;;  %10237 = vmatpush.bf16.msrb.mxu3 %v17387_v5 }
 0xa69   :  { %v20078_v59 = vld [vmem:[#allocation16 + $0x1d6c] sm:$0xf0] }
 0xa6a   :  { %v18154_v56 = vld [vmem:[#allocation16 + $0x1f50] sm:$0xf]  ;;  %v17899_v6 = vor.u32 %v20078_v59, %v17898_v29  ;;  %10250 = vmatpush.bf16.msra.mxu0 %v17643_v4  ;;  %v9985_v59 = vadd.f32 %v9984_v12, %v21485_v39 }
 0xa6b   :  { %v20142_v54 = vld [vmem:[#allocation16 + $0x1f6c] sm:$0xf0] }
 0xa6c   :  { %v17354_v34 = vld [vmem:[#allocation16 + $0x1910] sm:$0xf]  ;;  %v18155_v18 = vor.u32 %v20142_v54, %v18154_v56  ;;  %10263 = vmatpush.bf16.msra.mxu2 %v17899_v6  ;;  %v10010_v56 = vpop.f32.mrf.mxu2  ;;  %v10025_v6 = vpop.f32.mrf.mxu1 }
 0xa6d   :  { %v19942_v21 = vld [vmem:[#allocation16 + $0x192c] sm:$0xf0] }
 0xa6e   :  { %v17610_v8 = vld [vmem:[#allocation16 + $0x1b10] sm:$0xf]  ;;  %v17355_v25 = vor.u32 %v19942_v21, %v17354_v34  ;;  %10276 = vmatpush.bf16.msra.mxu1 %v18155_v18  ;;  %v9999_v34 = vpop.f32.mrf.mxu0  ;;  %v9998_v21 = vadd.f32 %v9997_v0, %v9985_v59  ;;  %v14636_v59 = vld [vmem:[#allocation16 + $0x3f0] sm:$0xf0] }
 0xa6f   :  { %v20006_v10 = vld [vmem:[#allocation16 + $0x1b2c] sm:$0xf0]  ;;  %v15148_v34 = vld [vmem:[#allocation16 + $0x7f0] sm:$0xf0] }
 0xa70   :  { %v17866_v11 = vld [vmem:[#allocation16 + $0x1d10] sm:$0xf]  ;;  %v17611_v28 = vor.u32 %v20006_v10, %v17610_v8  ;;  %10238 = vmatpush.bf16.msrb.mxu3 %v17355_v25 }
 0xa71   :  { %v20070_v13 = vld [vmem:[#allocation16 + $0x1d2c] sm:$0xf0] }
 0xa72   :  { %v18122_v31 = vld [vmem:[#allocation16 + $0x1f10] sm:$0xf]  ;;  %v17867_v63 = vor.u32 %v20070_v13, %v17866_v11  ;;  %10251 = vmatpush.bf16.msra.mxu0 %v17611_v28  ;;  %v10011_v28 = vadd.f32 %v10010_v56, %v9998_v21  ;;  %v19322_v56 = vld [vmem:[#allocation16 + $0x5d4] sm:$0xf] }
 0xa73   :  { %v20134_v50 = vld [vmem:[#allocation16 + $0x1f2c] sm:$0xf0] }
 0xa74   :  { %v17322_v58 = vld [vmem:[#allocation16 + $0x18d0] sm:$0xf]  ;;  %v18123_v30 = vor.u32 %v20134_v50, %v18122_v31  ;;  %10264 = vmatpush.bf16.msra.mxu2 %v17867_v63 }
 0xa75   :  { %v19934_v62 = vld [vmem:[#allocation16 + $0x18ec] sm:$0xf0] }
 0xa76   :  { %v17578_v32 = vld [vmem:[#allocation16 + $0x1ad0] sm:$0xf]  ;;  %v17323_v38 = vor.u32 %v19934_v62, %v17322_v58  ;;  %10277 = vmatpush.bf16.msra.mxu1 %v18123_v30 }
 0xa77   :  { %v19998_v33 = vld [vmem:[#allocation16 + $0x1aec] sm:$0xf0] }
 0xa78   :  { %v17834_v47 = vld [vmem:[#allocation16 + $0x1cd0] sm:$0xf]  ;;  %v17579_v40 = vor.u32 %v19998_v33, %v17578_v32  ;;  %10239 = vmatpush.bf16.msrb.mxu3 %v17323_v38 }
 0xa79   :  { %v20062_v52 = vld [vmem:[#allocation16 + $0x1cec] sm:$0xf0] }
 0xa7a   :  { %v18090_v42 = vld [vmem:[#allocation16 + $0x1ed0] sm:$0xf]  ;;  %v17835_v49 = vor.u32 %v20062_v52, %v17834_v47  ;;  %10252 = vmatpush.bf16.msra.mxu0 %v17579_v40  ;;  %v9986_v40 = vpop.f32.mrf.mxu3 }
 0xa7b   :  { %v20126_v48 = vld [vmem:[#allocation16 + $0x1eec] sm:$0xf0]  ;;  %v14828_v40 = vld [vmem:[#allocation16 + $0x570] sm:$0xf0] }
 0xa7c   :  { %v17290_v7 = vld [vmem:[#allocation16 + $0x1890] sm:$0xf]  ;;  %v18091_v20 = vor.u32 %v20126_v48, %v18090_v42  ;;  %10265 = vmatpush.bf16.msra.mxu2 %v17835_v49  ;;  %v21492_v42 = vadd.f32 %v10023_v55, %v10011_v28  ;;  %v14860_v28 = vld [vmem:[#allocation16 + $0x5b0] sm:$0xf0] }
 0xa7d   :  { %v19926_v16 = vld [vmem:[#allocation16 + $0x18ac] sm:$0xf0] }
 0xa7e   :  { %v17546_v3 = vld [vmem:[#allocation16 + $0x1a90] sm:$0xf]  ;;  %v17291_v18 = vor.u32 %v19926_v16, %v17290_v7  ;;  %10278 = vmatpush.bf16.msra.mxu1 %v18091_v20  ;;  %v10012_v20 = vpop.f32.mrf.mxu2 }
 0xa7f   :  { %v19990_v57 = vld [vmem:[#allocation16 + $0x1aac] sm:$0xf0] }
 0xa80   :  { %v17802_v29 = vld [vmem:[#allocation16 + $0x1c90] sm:$0xf]  ;;  %v17547_v8 = vor.u32 %v19990_v57, %v17546_v3  ;;  %10240 = vmatpush.bf16.msrb.mxu3 %v17291_v18  ;;  %v19194_v3 = vld [vmem:[#allocation16 + $0x1d4] sm:$0xf] }
 0xa81   :  { %v20054_v54 = vld [vmem:[#allocation16 + $0x1cac] sm:$0xf0]  ;;  %v14380_v57 = vld [vmem:[#allocation16 + $0x1f0] sm:$0xf0] }
 0xa82   :  { %v18058_v5 = vld [vmem:[#allocation16 + $0x1e90] sm:$0xf]  ;;  %v17803_v13 = vor.u32 %v20054_v54, %v17802_v29  ;;  %10253 = vmatpush.bf16.msra.mxu0 %v17547_v8  ;;  %v19258_v29 = vld [vmem:[#allocation16 + $0x3d4] sm:$0xf]  ;;  %v14383_v18 = vor.u32 %v19194_v3, %v14380_v57 }
 0xa83   :  { %v20118_v4 = vld [vmem:[#allocation16 + $0x1eac] sm:$0xf0]  ;;  %v14639_v8 = vor.u32 %v19258_v29, %v14636_v59  ;;  %v14284_v3 = vld [vmem:[#allocation16 + $0x130] sm:$0xf0] }
 0xa84   :  { %v17258_v10 = vld [vmem:[#allocation16 + $0x1850] sm:$0xf]  ;;  %v18059_v31 = vor.u32 %v20118_v4, %v18058_v5  ;;  %10266 = vmatpush.bf16.msra.mxu2 %v17803_v13  ;;  %v14892_v5 = vld [vmem:[#allocation16 + $0x5f0] sm:$0xf0] }
 0xa85   :  { %v19918_v11 = vld [vmem:[#allocation16 + $0x186c] sm:$0xf0]  ;;  %v19386_v4 = vld [vmem:[#allocation16 + $0x7d4] sm:$0xf]  ;;  %v14895_v13 = vor.u32 %v19322_v56, %v14892_v5 }
 0xa86   :  { %v17514_v50 = vld [vmem:[#allocation16 + $0x1a50] sm:$0xf]  ;;  %v17259_v0 = vor.u32 %v19918_v11, %v17258_v10  ;;  %10279 = vmatpush.bf16.msra.mxu1 %v18059_v31  ;;  %v19186_v10 = vld [vmem:[#allocation16 + $0x194] sm:$0xf]  ;;  %v15151_v31 = vor.u32 %v19386_v4, %v15148_v34  ;;  %v10049_v34 = vpop.f32.mrf.mxu0 }
 0xa87   :  { %v19982_v25 = vld [vmem:[#allocation16 + $0x1a6c] sm:$0xf0]  ;;  %v14348_v11 = vld [vmem:[#allocation16 + $0x1b0] sm:$0xf0] }
 0xa88   :  { %v17770_v39 = vld [vmem:[#allocation16 + $0x1c50] sm:$0xf]  ;;  %v17515_v32 = vor.u32 %v19982_v25, %v17514_v50  ;;  %10241 = vmatpush.bf16.msrb.mxu3 %v17259_v0  ;;  %v19250_v50 = vld [vmem:[#allocation16 + $0x394] sm:$0xf] }
 0xa89   :  { %v20046_v58 = vld [vmem:[#allocation16 + $0x1c6c] sm:$0xf0]  ;;  %v14604_v25 = vld [vmem:[#allocation16 + $0x3b0] sm:$0xf0] }
 0xa8a   :  { %v18026_v62 = vld [vmem:[#allocation16 + $0x1e50] sm:$0xf]  ;;  %v17771_v48 = vor.u32 %v20046_v58, %v17770_v39  ;;  %10254 = vmatpush.bf16.msra.mxu0 %v17515_v32  ;;  %v19314_v39 = vld [vmem:[#allocation16 + $0x594] sm:$0xf] }
 0xa8b   :  { %v20110_v63 = vld [vmem:[#allocation16 + $0x1e6c] sm:$0xf0]  ;;  %v19378_v58 = vld [vmem:[#allocation16 + $0x794] sm:$0xf] }
 0xa8c   :  { %v17226_v30 = vld [vmem:[#allocation16 + $0x1810] sm:$0xf]  ;;  %v18027_v38 = vor.u32 %v20110_v63, %v18026_v62  ;;  %10267 = vmatpush.bf16.msra.mxu2 %v17771_v48  ;;  %v15116_v62 = vld [vmem:[#allocation16 + $0x7b0] sm:$0xf0]  ;;  %v14351_v63 = vor.u32 %v19186_v10, %v14348_v11 }
 0xa8d   :  { %v19910_v33 = vld [vmem:[#allocation16 + $0x182c] sm:$0xf0]  ;;  %v19178_v0 = vld [vmem:[#allocation16 + $0x154] sm:$0xf] }
 0xa8e   :  { %v17482_v47 = vld [vmem:[#allocation16 + $0x1a10] sm:$0xf]  ;;  %v17227_v54 = vor.u32 %v19910_v33, %v17226_v30  ;;  %10280 = vmatpush.bf16.msra.mxu1 %v18027_v38  ;;  %v14607_v30 = vor.u32 %v19250_v50, %v14604_v25  ;;  %v14316_v32 = vld [vmem:[#allocation16 + $0x170] sm:$0xf0]  ;;  %v14863_v33 = vor.u32 %v19314_v39, %v14860_v28 }
 0xa8f   :  { %v19974_v52 = vld [vmem:[#allocation16 + $0x1a2c] sm:$0xf0]  ;;  %v14572_v48 = vld [vmem:[#allocation16 + $0x370] sm:$0xf0] }
 0xa90   :  { %v17738_v7 = vld [vmem:[#allocation16 + $0x1c10] sm:$0xf]  ;;  %v17483_v55 = vor.u32 %v19974_v52, %v17482_v47  ;;  %10242 = vmatpush.bf16.msrb.mxu3 %v17227_v54  ;;  %v15119_v47 = vor.u32 %v19378_v58, %v15116_v62  ;;  %v19242_v52 = vld [vmem:[#allocation16 + $0x354] sm:$0xf] }
 0xa91   :  { %v20038_v16 = vld [vmem:[#allocation16 + $0x1c2c] sm:$0xf0]  ;;  %v19306_v38 = vld [vmem:[#allocation16 + $0x554] sm:$0xf]  ;;  %v14575_v20 = vor.u32 %v19242_v52, %v14572_v48 }
 0xa92   :  { %v17994_v49 = vld [vmem:[#allocation16 + $0x1e10] sm:$0xf]  ;;  %v17739_v21 = vor.u32 %v20038_v16, %v17738_v7  ;;  %10255 = vmatpush.bf16.msra.mxu0 %v17483_v55  ;;  %v19370_v7 = vld [vmem:[#allocation16 + $0x754] sm:$0xf]  ;;  %v14831_v57 = vor.u32 %v19306_v38, %v14828_v40 }
 0xa93   :  { %v20102_v12 = vld [vmem:[#allocation16 + $0x1e2c] sm:$0xf0]  ;;  %10243 = vmatmul.bf16.vlgmr.msrb.gmra.mxu3 %v21317_v43  ;;  %v15084_v16 = vld [vmem:[#allocation16 + $0x770] sm:$0xf0] }
 0xa94   :  { %v17995_v6 = vor.u32 %v20102_v12, %v17994_v49  ;;  %10268 = vmatpush.bf16.msra.mxu2 %v17739_v21  ;;  %10287 = vmatpush.bf16.msra.mxu3 %v14383_v18  ;;  %v14319_v49 = vor.u32 %v19178_v0, %v14316_v32  ;;  %v19170_v12 = vld [vmem:[#allocation16 + $0x114] sm:$0xf]  ;;  %v15087_v29 = vor.u32 %v19370_v7, %v15084_v16  ;;  %v10075_v21 = vpop.f32.mrf.mxu1  ;;  %v10062_v7 = vpop.f32.mrf.mxu2 }
 0xa95   :  { %10256 = vmatmul.bf16.vlgmr.msra.gmra.mxu0 %v21321_v45  ;;  %v19234_v59 = vld [vmem:[#allocation16 + $0x314] sm:$0xf] }
 0xa96   :  { %10281 = vmatpush.bf16.msra.mxu1 %v17995_v6  ;;  %10300 = vmatpush.bf16.msrb.mxu0 %v14639_v8  ;;  %v14540_v56 = vld [vmem:[#allocation16 + $0x330] sm:$0xf0]  ;;  %v14287_v6 = vor.u32 %v19170_v12, %v14284_v3  ;;  %v10051_v12 = vpop.f32.mrf.mxu0 }
 0xa97   :  { %10269 = vmatmul.bf16.vlgmr.msra.gmra.mxu2 %v21325_v26  ;;  %v19298_v54 = vld [vmem:[#allocation16 + $0x514] sm:$0xf]  ;;  %v14543_v18 = vor.u32 %v19234_v59, %v14540_v56 }
 0xa98   :  { %10313 = vmatpush.bf16.msrb.mxu2 %v14895_v13  ;;  %10288 = vmatpush.bf16.msra.mxu3 %v14351_v63  ;;  %v14796_v55 = vld [vmem:[#allocation16 + $0x530] sm:$0xf0] }
 0xa99   :  { %10282 = vmatmul.bf16.vlgmr.msra.gmra.mxu1 %v21329_v27  ;;  %v19362_v5 = vld [vmem:[#allocation16 + $0x714] sm:$0xf]  ;;  %v14799_v11 = vor.u32 %v19298_v54, %v14796_v55 }
 0xa9a   :  { %10326 = vmatpush.bf16.msrb.mxu1 %v15151_v31  ;;  %10301 = vmatpush.bf16.msrb.mxu0 %v14607_v30  ;;  %v15052_v4 = vld [vmem:[#allocation16 + $0x730] sm:$0xf0] }
 0xa9b   :  { %v19162_v8 = vld [vmem:[#allocation16 + $0xd4] sm:$0xf]  ;;  %v15055_v13 = vor.u32 %v19362_v5, %v15052_v4 }
 0xa9c   :  { %10314 = vmatpush.bf16.msrb.mxu2 %v14863_v33  ;;  %10289 = vmatpush.bf16.msra.mxu3 %v14319_v49  ;;  %v14252_v10 = vld [vmem:[#allocation16 + $0xf0] sm:$0xf0] }
 0xa9d   :  { %v19226_v31 = vld [vmem:[#allocation16 + $0x2d4] sm:$0xf]  ;;  %v14255_v62 = vor.u32 %v19162_v8, %v14252_v10 }
 0xa9e   :  { %10327 = vmatpush.bf16.msrb.mxu1 %v15119_v47  ;;  %10302 = vmatpush.bf16.msrb.mxu0 %v14575_v20  ;;  %v14508_v50 = vld [vmem:[#allocation16 + $0x2f0] sm:$0xf0]  ;;  %v10036_v47 = vpop.f32.mrf.mxu3 }
 0xa9f   :  { %v19290_v25 = vld [vmem:[#allocation16 + $0x4d4] sm:$0xf]  ;;  %v14511_v63 = vor.u32 %v19226_v31, %v14508_v50  ;;  %v10037_v40 = vadd.f32 %v10036_v47, %v21492_v42 }
 0xaa0   :  { %10315 = vmatpush.bf16.msrb.mxu2 %v14831_v57  ;;  %v14764_v39 = vld [vmem:[#allocation16 + $0x4f0] sm:$0xf0]  ;;  %10290 = vmatpush.bf16.msra.mxu3 %v14287_v6  ;;  %v10077_v57 = vpop.f32.mrf.mxu1 }
 0xaa1   :  { %v19354_v28 = vld [vmem:[#allocation16 + $0x6d4] sm:$0xf]  ;;  %v14767_v32 = vor.u32 %v19290_v25, %v14764_v39  ;;  %v10050_v3 = vadd.f32 %v10049_v34, %v10037_v40 }
 0xaa2   :  { %10328 = vmatpush.bf16.msrb.mxu1 %v15087_v29  ;;  %v15020_v58 = vld [vmem:[#allocation16 + $0x6f0] sm:$0xf0]  ;;  %10303 = vmatpush.bf16.msrb.mxu0 %v14543_v18 }
 0xaa3   :  { %v19154_v30 = vld [vmem:[#allocation16 + $0x94] sm:$0xf]  ;;  %v15023_v33 = vor.u32 %v19354_v28, %v15020_v58  ;;  %v10063_v18 = vadd.f32 %v10062_v7, %v10050_v3 }
 0xaa4   :  { %v14220_v0 = vld [vmem:[#allocation16 + $0xb0] sm:$0xf0]  ;;  %10316 = vmatpush.bf16.msrb.mxu2 %v14799_v11  ;;  %10291 = vmatpush.bf16.msra.mxu3 %v14255_v62 }
 0xaa5   :  { %v19218_v52 = vld [vmem:[#allocation16 + $0x294] sm:$0xf]  ;;  %v14223_v29 = vor.u32 %v19154_v30, %v14220_v0  ;;  %v21499_v31 = vadd.f32 %v10075_v21, %v10063_v18 }
 0xaa6   :  { %10329 = vmatpush.bf16.msrb.mxu1 %v15055_v13  ;;  %v14476_v48 = vld [vmem:[#allocation16 + $0x2b0] sm:$0xf0]  ;;  %10304 = vmatpush.bf16.msrb.mxu0 %v14511_v63  ;;  %v10038_v63 = vpop.f32.mrf.mxu3 }
 0xaa7   :  { %v19282_v38 = vld [vmem:[#allocation16 + $0x494] sm:$0xf]  ;;  %v14479_v59 = vor.u32 %v19218_v52, %v14476_v48 }
 0xaa8   :  { %v14732_v16 = vld [vmem:[#allocation16 + $0x4b0] sm:$0xf0]  ;;  %10317 = vmatpush.bf16.msrb.mxu2 %v14767_v32  ;;  %10292 = vmatpush.bf16.msra.mxu3 %v14223_v29 }
 0xaa9   :  { %v19346_v49 = vld [vmem:[#allocation16 + $0x694] sm:$0xf]  ;;  %v14735_v55 = vor.u32 %v19282_v38, %v14732_v16 }
 0xaaa   :  { %v14988_v20 = vld [vmem:[#allocation16 + $0x6b0] sm:$0xf0]  ;;  %10330 = vmatpush.bf16.msrb.mxu1 %v15023_v33  ;;  %10305 = vmatpush.bf16.msrb.mxu0 %v14479_v59  ;;  %v10064_v33 = vpop.f32.mrf.mxu2 }
 0xaab   :  { %v19146_v56 = vld [vmem:[#allocation16 + $0x54] sm:$0xf]  ;;  %v14991_v5 = vor.u32 %v19346_v49, %v14988_v20 }
 0xaac   :  { %v14188_v54 = vld [vmem:[#allocation16 + $0x70] sm:$0xf0]  ;;  %10318 = vmatpush.bf16.msrb.mxu2 %v14735_v55 }
 0xaad   :  { %v19210_v4 = vld [vmem:[#allocation16 + $0x254] sm:$0xf]  ;;  %v14191_v34 = vor.u32 %v19146_v56, %v14188_v54 }
 0xaae   :  { %v14444_v6 = vld [vmem:[#allocation16 + $0x270] sm:$0xf0]  ;;  %10331 = vmatpush.bf16.msrb.mxu1 %v14991_v5 }
 0xaaf   :  { %v19274_v42 = vld [vmem:[#allocation16 + $0x454] sm:$0xf]  ;;  %v14447_v50 = vor.u32 %v19210_v4, %v14444_v6  ;;  %10293 = vmatpush.bf16.msra.mxu3 %v14191_v34 }
 0xab0   :  { %v14700_v8 = vld [vmem:[#allocation16 + $0x470] sm:$0xf0] }
 0xab1   :  { %v19338_v10 = vld [vmem:[#allocation16 + $0x654] sm:$0xf]  ;;  %v14703_v58 = vor.u32 %v19274_v42, %v14700_v8  ;;  %10306 = vmatpush.bf16.msrb.mxu0 %v14447_v50 }
 0xab2   :  { %v14956_v11 = vld [vmem:[#allocation16 + $0x670] sm:$0xf0] }
 0xab3   :  { %v19138_v13 = vld [vmem:[#allocation16 + $0x14] sm:$0xf]  ;;  %v14959_v62 = vor.u32 %v19338_v10, %v14956_v11  ;;  %10319 = vmatpush.bf16.msrb.mxu2 %v14703_v58 }
 0xab4   :  { %v14156_v25 = vld [vmem:[#allocation16 + $0x30] sm:$0xf0] }
 0xab5   :  { %v19202_v39 = vld [vmem:[#allocation16 + $0x214] sm:$0xf]  ;;  %v14159_v7 = vor.u32 %v19138_v13, %v14156_v25  ;;  %10332 = vmatpush.bf16.msrb.mxu1 %v14959_v62 }
 0xab6   :  { %v14412_v28 = vld [vmem:[#allocation16 + $0x230] sm:$0xf0] }
 0xab7   :  { %v19266_v30 = vld [vmem:[#allocation16 + $0x414] sm:$0xf]  ;;  %v14415_v16 = vor.u32 %v19202_v39, %v14412_v28  ;;  %10294 = vmatpush.bf16.msra.mxu3 %v14159_v7 }
 0xab8   :  { %v14668_v0 = vld [vmem:[#allocation16 + $0x430] sm:$0xf0] }
 0xab9   :  { %v19330_v32 = vld [vmem:[#allocation16 + $0x614] sm:$0xf]  ;;  %v14671_v3 = vor.u32 %v19266_v30, %v14668_v0  ;;  %10307 = vmatpush.bf16.msrb.mxu0 %v14415_v16 }
 0xaba   :  { %v14924_v47 = vld [vmem:[#allocation16 + $0x630] sm:$0xf0]  ;;  %10295 = vmatmul.bf16.vlgmr.msra.gmra.mxu3 %v21257_v14 }
 0xabb   :  { %v19450_v52 = vld [vmem:[#allocation16 + $0x9d4] sm:$0xf]  ;;  %v14927_v57 = vor.u32 %v19330_v32, %v14924_v47  ;;  %10320 = vmatpush.bf16.msrb.mxu2 %v14671_v3  ;;  %v10127_v3 = vpop.f32.mrf.mxu1 }
 0xabc   :  { %v15404_v21 = vld [vmem:[#allocation16 + $0x9f0] sm:$0xf0]  ;;  %10308 = vmatmul.bf16.vlgmr.msrb.gmra.mxu0 %v21261_v15 }
 0xabd   :  { %v19514_v48 = vld [vmem:[#allocation16 + $0xbd4] sm:$0xf]  ;;  %v15407_v29 = vor.u32 %v19450_v52, %v15404_v21  ;;  %10333 = vmatpush.bf16.msrb.mxu1 %v14927_v57 }
 0xabe   :  { %v15660_v38 = vld [vmem:[#allocation16 + $0xbf0] sm:$0xf0]  ;;  %10321 = vmatmul.bf16.vlgmr.msrb.gmra.mxu2 %v21265_v22 }
 0xabf   :  { %v19578_v40 = vld [vmem:[#allocation16 + $0xdd4] sm:$0xf]  ;;  %v15663_v59 = vor.u32 %v19514_v48, %v15660_v38  ;;  %10339 = vmatpush.bf16.msrb.mxu3 %v15407_v29 }
 0xac0   :  { %v15916_v49 = vld [vmem:[#allocation16 + $0xdf0] sm:$0xf0]  ;;  %10334 = vmatmul.bf16.vlgmr.msrb.gmra.mxu1 %v21269_v23 }
 0xac1   :  { %v19642_v20 = vld [vmem:[#allocation16 + $0xfd4] sm:$0xf]  ;;  %v15919_v55 = vor.u32 %v19578_v40, %v15916_v49  ;;  %10352 = vmatpush.bf16.msra.mxu0 %v15663_v59 }
 0xac2   :  { %v16172_v12 = vld [vmem:[#allocation16 + $0xff0] sm:$0xf0] }
 0xac3   :  { %v19442_v56 = vld [vmem:[#allocation16 + $0x994] sm:$0xf]  ;;  %v16175_v5 = vor.u32 %v19642_v20, %v16172_v12  ;;  %10365 = vmatpush.bf16.msra.mxu2 %v15919_v55  ;;  %v10101_v12 = vpop.f32.mrf.mxu0 }
 0xac4   :  { %v15372_v54 = vld [vmem:[#allocation16 + $0x9b0] sm:$0xf0] }
 0xac5   :  { %v19506_v4 = vld [vmem:[#allocation16 + $0xb94] sm:$0xf]  ;;  %v15375_v11 = vor.u32 %v19442_v56, %v15372_v54  ;;  %10378 = vmatpush.bf16.msra.mxu1 %v16175_v5 }
 0xac6   :  { %v15628_v6 = vld [vmem:[#allocation16 + $0xbb0] sm:$0xf0] }
 0xac7   :  { %v19570_v42 = vld [vmem:[#allocation16 + $0xd94] sm:$0xf]  ;;  %v15631_v13 = vor.u32 %v19506_v4, %v15628_v6  ;;  %10340 = vmatpush.bf16.msrb.mxu3 %v15375_v11 }
 0xac8   :  { %v15884_v18 = vld [vmem:[#allocation16 + $0xdb0] sm:$0xf0] }
 0xac9   :  { %v19634_v8 = vld [vmem:[#allocation16 + $0xf94] sm:$0xf]  ;;  %v15887_v25 = vor.u32 %v19570_v42, %v15884_v18  ;;  %10353 = vmatpush.bf16.msra.mxu0 %v15631_v13 }
 0xaca   :  { %v16140_v10 = vld [vmem:[#allocation16 + $0xfb0] sm:$0xf0] }
 0xacb   :  { %v19434_v34 = vld [vmem:[#allocation16 + $0x954] sm:$0xf]  ;;  %v16143_v39 = vor.u32 %v19634_v8, %v16140_v10  ;;  %10366 = vmatpush.bf16.msra.mxu2 %v15887_v25 }
 0xacc   :  { %v15340_v50 = vld [vmem:[#allocation16 + $0x970] sm:$0xf0] }
 0xacd   :  { %v19498_v28 = vld [vmem:[#allocation16 + $0xb54] sm:$0xf]  ;;  %v15343_v32 = vor.u32 %v19434_v34, %v15340_v50  ;;  %10379 = vmatpush.bf16.msra.mxu1 %v16143_v39  ;;  %v10088_v39 = vpop.f32.mrf.mxu3 }
 0xace   :  { %v15596_v58 = vld [vmem:[#allocation16 + $0xb70] sm:$0xf0] }
 0xacf   :  { %v19562_v62 = vld [vmem:[#allocation16 + $0xd54] sm:$0xf]  ;;  %v15599_v33 = vor.u32 %v19498_v28, %v15596_v58  ;;  %10341 = vmatpush.bf16.msrb.mxu3 %v15343_v32 }
 0xad0   :  { %v15852_v63 = vld [vmem:[#allocation16 + $0xd70] sm:$0xf0] }
 0xad1   :  { %v19626_v30 = vld [vmem:[#allocation16 + $0xf54] sm:$0xf]  ;;  %v15855_v21 = vor.u32 %v19562_v62, %v15852_v63  ;;  %10354 = vmatpush.bf16.msra.mxu0 %v15599_v33  ;;  %v10089_v63 = vadd.f32 %v10088_v39, %v21385_v51 }
 0xad2   :  { %v16108_v0 = vld [vmem:[#allocation16 + $0xf70] sm:$0xf0] }
 0xad3   :  { %v19426_v47 = vld [vmem:[#allocation16 + $0x914] sm:$0xf]  ;;  %v16111_v48 = vor.u32 %v19626_v30, %v16108_v0  ;;  %10367 = vmatpush.bf16.msra.mxu2 %v15855_v21  ;;  %v10114_v30 = vpop.f32.mrf.mxu2  ;;  %v10129_v21 = vpop.f32.mrf.mxu1 }
 0xad4   :  { %v15308_v52 = vld [vmem:[#allocation16 + $0x930] sm:$0xf0] }
 0xad5   :  { %v19490_v38 = vld [vmem:[#allocation16 + $0xb14] sm:$0xf]  ;;  %v15311_v57 = vor.u32 %v19426_v47, %v15308_v52  ;;  %10380 = vmatpush.bf16.msra.mxu1 %v16111_v48  ;;  %v10103_v47 = vpop.f32.mrf.mxu0  ;;  %v10102_v52 = vadd.f32 %v10101_v12, %v10089_v63 }
 0xad6   :  { %v15564_v40 = vld [vmem:[#allocation16 + $0xb30] sm:$0xf0] }
 0xad7   :  { %v19554_v7 = vld [vmem:[#allocation16 + $0xd14] sm:$0xf]  ;;  %v15567_v29 = vor.u32 %v19490_v38, %v15564_v40  ;;  %10342 = vmatpush.bf16.msrb.mxu3 %v15311_v57 }
 0xad8   :  { %v15820_v16 = vld [vmem:[#allocation16 + $0xd30] sm:$0xf0] }
 0xad9   :  { %v19618_v49 = vld [vmem:[#allocation16 + $0xf14] sm:$0xf]  ;;  %v15823_v54 = vor.u32 %v19554_v7, %v15820_v16  ;;  %10355 = vmatpush.bf16.msra.mxu0 %v15567_v29  ;;  %v10115_v29 = vadd.f32 %v10114_v30, %v10102_v52 }
 0xada   :  { %v16076_v20 = vld [vmem:[#allocation16 + $0xf30] sm:$0xf0] }
 0xadb   :  { %v19418_v59 = vld [vmem:[#allocation16 + $0x8d4] sm:$0xf]  ;;  %v16079_v55 = vor.u32 %v19618_v49, %v16076_v20  ;;  %10368 = vmatpush.bf16.msra.mxu2 %v15823_v54 }
 0xadc   :  { %v15276_v56 = vld [vmem:[#allocation16 + $0x8f0] sm:$0xf0] }
 0xadd   :  { %v19482_v5 = vld [vmem:[#allocation16 + $0xad4] sm:$0xf]  ;;  %v15279_v10 = vor.u32 %v19418_v59, %v15276_v56  ;;  %10381 = vmatpush.bf16.msra.mxu1 %v16079_v55 }
 0xade   :  { %v15532_v4 = vld [vmem:[#allocation16 + $0xaf0] sm:$0xf0] }
 0xadf   :  { %v19546_v6 = vld [vmem:[#allocation16 + $0xcd4] sm:$0xf]  ;;  %v15535_v11 = vor.u32 %v19482_v5, %v15532_v4  ;;  %10343 = vmatpush.bf16.msrb.mxu3 %v15279_v10 }
 0xae0   :  { %v15788_v42 = vld [vmem:[#allocation16 + $0xcf0] sm:$0xf0] }
 0xae1   :  { %v19610_v18 = vld [vmem:[#allocation16 + $0xed4] sm:$0xf]  ;;  %v15791_v50 = vor.u32 %v19546_v6, %v15788_v42  ;;  %10356 = vmatpush.bf16.msra.mxu0 %v15535_v11  ;;  %v10090_v11 = vpop.f32.mrf.mxu3 }
 0xae2   :  { %v16044_v8 = vld [vmem:[#allocation16 + $0xef0] sm:$0xf0] }
 0xae3   :  { %v19410_v13 = vld [vmem:[#allocation16 + $0x894] sm:$0xf]  ;;  %v16047_v25 = vor.u32 %v19610_v18, %v16044_v8  ;;  %10369 = vmatpush.bf16.msra.mxu2 %v15791_v50  ;;  %v21506_v18 = vadd.f32 %v10127_v3, %v10115_v29 }
 0xae4   :  { %v15244_v34 = vld [vmem:[#allocation16 + $0x8b0] sm:$0xf0] }
 0xae5   :  { %v19474_v28 = vld [vmem:[#allocation16 + $0xa94] sm:$0xf]  ;;  %v15247_v48 = vor.u32 %v19410_v13, %v15244_v34  ;;  %10382 = vmatpush.bf16.msra.mxu1 %v16047_v25  ;;  %v10116_v25 = vpop.f32.mrf.mxu2 }
 0xae6   :  { %v15500_v58 = vld [vmem:[#allocation16 + $0xab0] sm:$0xf0] }
 0xae7   :  { %v19538_v62 = vld [vmem:[#allocation16 + $0xc94] sm:$0xf]  ;;  %v15503_v38 = vor.u32 %v19474_v28, %v15500_v58  ;;  %10344 = vmatpush.bf16.msrb.mxu3 %v15247_v48 }
 0xae8   :  { %v15756_v0 = vld [vmem:[#allocation16 + $0xcb0] sm:$0xf0] }
 0xae9   :  { %v19602_v32 = vld [vmem:[#allocation16 + $0xe94] sm:$0xf]  ;;  %v15759_v16 = vor.u32 %v19538_v62, %v15756_v0  ;;  %10357 = vmatpush.bf16.msra.mxu0 %v15503_v38 }
 0xaea   :  { %v16012_v33 = vld [vmem:[#allocation16 + $0xeb0] sm:$0xf0] }
 0xaeb   :  { %v19402_v40 = vld [vmem:[#allocation16 + $0x854] sm:$0xf]  ;;  %v16015_v49 = vor.u32 %v19602_v32, %v16012_v33  ;;  %10370 = vmatpush.bf16.msra.mxu2 %v15759_v16 }
 0xaec   :  { %v15212_v7 = vld [vmem:[#allocation16 + $0x870] sm:$0xf0] }
 0xaed   :  { %v19466_v20 = vld [vmem:[#allocation16 + $0xa54] sm:$0xf]  ;;  %v15215_v12 = vor.u32 %v19402_v40, %v15212_v7  ;;  %10383 = vmatpush.bf16.msra.mxu1 %v16015_v49 }
 0xaee   :  { %v15468_v57 = vld [vmem:[#allocation16 + $0xa70] sm:$0xf0] }
 0xaef   :  { %v19530_v51 = vld [vmem:[#allocation16 + $0xc54] sm:$0xf]  ;;  %v15471_v5 = vor.u32 %v19466_v20, %v15468_v57  ;;  %10345 = vmatpush.bf16.msrb.mxu3 %v15215_v12 }
 0xaf0   :  { %v15724_v59 = vld [vmem:[#allocation16 + $0xc70] sm:$0xf0] }
 0xaf1   :  { %v19594_v56 = vld [vmem:[#allocation16 + $0xe54] sm:$0xf]  ;;  %v15727_v8 = vor.u32 %v19530_v51, %v15724_v59  ;;  %10358 = vmatpush.bf16.msra.mxu0 %v15471_v5 }
 0xaf2   :  { %v15980_v54 = vld [vmem:[#allocation16 + $0xe70] sm:$0xf0] }
 0xaf3   :  { %v19394_v55 = vld [vmem:[#allocation16 + $0x814] sm:$0xf]  ;;  %v15983_v10 = vor.u32 %v19594_v56, %v15980_v54  ;;  %10371 = vmatpush.bf16.msra.mxu2 %v15727_v8 }
 0xaf4   :  { %v15180_v4 = vld [vmem:[#allocation16 + $0x830] sm:$0xf0] }
 0xaf5   :  { %v19458_v6 = vld [vmem:[#allocation16 + $0xa14] sm:$0xf]  ;;  %v15183_v0 = vor.u32 %v19394_v55, %v15180_v4  ;;  %10384 = vmatpush.bf16.msra.mxu1 %v15983_v10 }
 0xaf6   :  { %v15436_v42 = vld [vmem:[#allocation16 + $0xa30] sm:$0xf0] }
 0xaf7   :  { %v19522_v13 = vld [vmem:[#allocation16 + $0xc14] sm:$0xf]  ;;  %v15439_v3 = vor.u32 %v19458_v6, %v15436_v42  ;;  %10346 = vmatpush.bf16.msrb.mxu3 %v15183_v0 }
 0xaf8   :  { %v15692_v34 = vld [vmem:[#allocation16 + $0xc30] sm:$0xf0] }
 0xaf9   :  { %v19586_v50 = vld [vmem:[#allocation16 + $0xe14] sm:$0xf]  ;;  %v15695_v52 = vor.u32 %v19522_v13, %v15692_v34  ;;  %10359 = vmatpush.bf16.msra.mxu0 %v15439_v3 }
 0xafa   :  { %v15948_v39 = vld [vmem:[#allocation16 + $0xe30] sm:$0xf0]  ;;  %10347 = vmatmul.bf16.vlgmr.msrb.gmra.mxu3 %v21277_v60 }
 0xafb   :  { %v19706_v28 = vld [vmem:[#allocation16 + $0x11d4] sm:$0xf]  ;;  %v15951_v21 = vor.u32 %v19586_v50, %v15948_v39  ;;  %10372 = vmatpush.bf16.msra.mxu2 %v15695_v52  ;;  %v10179_v52 = vpop.f32.mrf.mxu1 }
 0xafc   :  { %v16428_v58 = vld [vmem:[#allocation16 + $0x11f0] sm:$0xf0]  ;;  %10360 = vmatmul.bf16.vlgmr.msra.gmra.mxu0 %v21281_v61 }
 0xafd   :  { %v19770_v62 = vld [vmem:[#allocation16 + $0x13d4] sm:$0xf]  ;;  %v16431_v48 = vor.u32 %v19706_v28, %v16428_v58  ;;  %10385 = vmatpush.bf16.msra.mxu1 %v15951_v21 }
 0xafe   :  { %v16684_v63 = vld [vmem:[#allocation16 + $0x13f0] sm:$0xf0]  ;;  %10373 = vmatmul.bf16.vlgmr.msra.gmra.mxu2 %v21285_v1 }
 0xaff   :  { %v19834_v30 = vld [vmem:[#allocation16 + $0x15d4] sm:$0xf]  ;;  %v16687_v38 = vor.u32 %v19770_v62, %v16684_v63  ;;  %10391 = vmatpush.bf16.msra.mxu3 %v16431_v48 }
 0xb00   :  { %v16940_v32 = vld [vmem:[#allocation16 + $0x15f0] sm:$0xf0]  ;;  %10386 = vmatmul.bf16.vlgmr.msra.gmra.mxu1 %v21289_v2 }
 0xb01   :  { %v19898_v33 = vld [vmem:[#allocation16 + $0x17d4] sm:$0xf]  ;;  %v16943_v16 = vor.u32 %v19834_v30, %v16940_v32  ;;  %10404 = vmatpush.bf16.msrb.mxu0 %v16687_v38 }
 0xb02   :  { %v17196_v47 = vld [vmem:[#allocation16 + $0x17f0] sm:$0xf0] }
 0xb03   :  { %v19698_v40 = vld [vmem:[#allocation16 + $0x1194] sm:$0xf]  ;;  %v17199_v49 = vor.u32 %v19898_v33, %v17196_v47  ;;  %10417 = vmatpush.bf16.msrb.mxu2 %v16943_v16  ;;  %v10153_v47 = vpop.f32.mrf.mxu0 }
 0xb04   :  { %v16396_v7 = vld [vmem:[#allocation16 + $0x11b0] sm:$0xf0] }
 0xb05   :  { %v19762_v20 = vld [vmem:[#allocation16 + $0x1394] sm:$0xf]  ;;  %v16399_v54 = vor.u32 %v19698_v40, %v16396_v7  ;;  %10430 = vmatpush.bf16.msrb.mxu1 %v17199_v49 }
 0xb06   :  { %v16652_v57 = vld [vmem:[#allocation16 + $0x13b0] sm:$0xf0] }
 0xb07   :  { %v19826_v51 = vld [vmem:[#allocation16 + $0x1594] sm:$0xf]  ;;  %v16655_v55 = vor.u32 %v19762_v20, %v16652_v57  ;;  %10392 = vmatpush.bf16.msra.mxu3 %v16399_v54 }
 0xb08   :  { %v16908_v29 = vld [vmem:[#allocation16 + $0x15b0] sm:$0xf0] }
 0xb09   :  { %v19890_v59 = vld [vmem:[#allocation16 + $0x1794] sm:$0xf]  ;;  %v16911_v4 = vor.u32 %v19826_v51, %v16908_v29  ;;  %10405 = vmatpush.bf16.msrb.mxu0 %v16655_v55 }
 0xb0a   :  { %v17164_v56 = vld [vmem:[#allocation16 + $0x17b0] sm:$0xf0] }
 0xb0b   :  { %v19690_v12 = vld [vmem:[#allocation16 + $0x1154] sm:$0xf]  ;;  %v17167_v6 = vor.u32 %v19890_v59, %v17164_v56  ;;  %10418 = vmatpush.bf16.msrb.mxu2 %v16911_v4 }
 0xb0c   :  { %v16364_v5 = vld [vmem:[#allocation16 + $0x1170] sm:$0xf0] }
 0xb0d   :  { %v19754_v42 = vld [vmem:[#allocation16 + $0x1354] sm:$0xf]  ;;  %v16367_v50 = vor.u32 %v19690_v12, %v16364_v5  ;;  %10431 = vmatpush.bf16.msrb.mxu1 %v17167_v6  ;;  %v10140_v6 = vpop.f32.mrf.mxu3 }
 0xb0e   :  { %v16620_v8 = vld [vmem:[#allocation16 + $0x1370] sm:$0xf0] }
 0xb0f   :  { %v19818_v10 = vld [vmem:[#allocation16 + $0x1554] sm:$0xf]  ;;  %v16623_v25 = vor.u32 %v19754_v42, %v16620_v8  ;;  %10393 = vmatpush.bf16.msra.mxu3 %v16367_v50 }
 0xb10   :  { %v16876_v11 = vld [vmem:[#allocation16 + $0x1570] sm:$0xf0] }
 0xb11   :  { %v19882_v13 = vld [vmem:[#allocation16 + $0x1754] sm:$0xf]  ;;  %v16879_v58 = vor.u32 %v19818_v10, %v16876_v11  ;;  %10406 = vmatpush.bf16.msrb.mxu0 %v16623_v25  ;;  %v10141_v11 = vadd.f32 %v10140_v6, %v21506_v18 }
 0xb12   :  { %v17132_v34 = vld [vmem:[#allocation16 + $0x1770] sm:$0xf0] }
 0xb13   :  { %v19682_v39 = vld [vmem:[#allocation16 + $0x1114] sm:$0xf]  ;;  %v17135_v62 = vor.u32 %v19882_v13, %v17132_v34  ;;  %10419 = vmatpush.bf16.msrb.mxu2 %v16879_v58  ;;  %v10166_v13 = vpop.f32.mrf.mxu2  ;;  %v10181_v58 = vpop.f32.mrf.mxu1 }
 0xb14   :  { %v16332_v28 = vld [vmem:[#allocation16 + $0x1130] sm:$0xf0] }
 0xb15   :  { %v19746_v63 = vld [vmem:[#allocation16 + $0x1314] sm:$0xf]  ;;  %v16335_v21 = vor.u32 %v19682_v39, %v16332_v28  ;;  %10432 = vmatpush.bf16.msrb.mxu1 %v17135_v62  ;;  %v10155_v39 = vpop.f32.mrf.mxu0  ;;  %v10154_v28 = vadd.f32 %v10153_v47, %v10141_v11 }
 0xb16   :  { %v16588_v30 = vld [vmem:[#allocation16 + $0x1330] sm:$0xf0] }
 0xb17   :  { %v19810_v0 = vld [vmem:[#allocation16 + $0x1514] sm:$0xf]  ;;  %v16591_v48 = vor.u32 %v19746_v63, %v16588_v30  ;;  %10394 = vmatpush.bf16.msra.mxu3 %v16335_v21 }
 0xb18   :  { %v16844_v3 = vld [vmem:[#allocation16 + $0x1530] sm:$0xf0] }
 0xb19   :  { %v19874_v32 = vld [vmem:[#allocation16 + $0x1714] sm:$0xf]  ;;  %v16847_v7 = vor.u32 %v19810_v0, %v16844_v3  ;;  %10407 = vmatpush.bf16.msrb.mxu0 %v16591_v48  ;;  %v10167_v48 = vadd.f32 %v10166_v13, %v10154_v28 }
 0xb1a   :  { %v17100_v33 = vld [vmem:[#allocation16 + $0x1730] sm:$0xf0] }
 0xb1b   :  { %v19674_v38 = vld [vmem:[#allocation16 + $0x10d4] sm:$0xf]  ;;  %v17103_v16 = vor.u32 %v19874_v32, %v17100_v33  ;;  %10420 = vmatpush.bf16.msrb.mxu2 %v16847_v7 }
 0xb1c   :  { %v16300_v40 = vld [vmem:[#allocation16 + $0x10f0] sm:$0xf0] }
 0xb1d   :  { %v19738_v49 = vld [vmem:[#allocation16 + $0x12d4] sm:$0xf]  ;;  %v16303_v56 = vor.u32 %v19674_v38, %v16300_v40  ;;  %10433 = vmatpush.bf16.msrb.mxu1 %v17103_v16 }
 0xb1e   :  { %v16556_v20 = vld [vmem:[#allocation16 + $0x12f0] sm:$0xf0] }
 0xb1f   :  { %v19802_v57 = vld [vmem:[#allocation16 + $0x14d4] sm:$0xf]  ;;  %v16559_v54 = vor.u32 %v19738_v49, %v16556_v20  ;;  %10395 = vmatpush.bf16.msra.mxu3 %v16303_v56 }
 0xb20   :  { %v16812_v51 = vld [vmem:[#allocation16 + $0x14f0] sm:$0xf0] }
 0xb21   :  { %v19866_v29 = vld [vmem:[#allocation16 + $0x16d4] sm:$0xf]  ;;  %v16815_v5 = vor.u32 %v19802_v57, %v16812_v51  ;;  %10408 = vmatpush.bf16.msrb.mxu0 %v16559_v54  ;;  %v10142_v54 = vpop.f32.mrf.mxu3 }
 0xb22   :  { %v17068_v59 = vld [vmem:[#allocation16 + $0x16f0] sm:$0xf0] }
 0xb23   :  { %v19666_v55 = vld [vmem:[#allocation16 + $0x1094] sm:$0xf]  ;;  %v17071_v4 = vor.u32 %v19866_v29, %v17068_v59  ;;  %10421 = vmatpush.bf16.msrb.mxu2 %v16815_v5  ;;  %v21513_v29 = vadd.f32 %v10179_v52, %v10167_v48 }
 0xb24   :  { %v16268_v12 = vld [vmem:[#allocation16 + $0x10b0] sm:$0xf0] }
 0xb25   :  { %v19730_v42 = vld [vmem:[#allocation16 + $0x1294] sm:$0xf]  ;;  %v16271_v62 = vor.u32 %v19666_v55, %v16268_v12  ;;  %10434 = vmatpush.bf16.msrb.mxu1 %v17071_v4  ;;  %v10168_v4 = vpop.f32.mrf.mxu2 }
 0xb26   :  { %v16524_v8 = vld [vmem:[#allocation16 + $0x12b0] sm:$0xf0] }
 0xb27   :  { %v19794_v10 = vld [vmem:[#allocation16 + $0x1494] sm:$0xf]  ;;  %v16527_v63 = vor.u32 %v19730_v42, %v16524_v8  ;;  %10396 = vmatpush.bf16.msra.mxu3 %v16271_v62 }
 0xb28   :  { %v16780_v34 = vld [vmem:[#allocation16 + $0x14b0] sm:$0xf0] }
 0xb29   :  { %v19858_v50 = vld [vmem:[#allocation16 + $0x1694] sm:$0xf]  ;;  %v16783_v3 = vor.u32 %v19794_v10, %v16780_v34  ;;  %10409 = vmatpush.bf16.msrb.mxu0 %v16527_v63 }
 0xb2a   :  { %v17036_v25 = vld [vmem:[#allocation16 + $0x16b0] sm:$0xf0] }
 0xb2b   :  { %v19658_v30 = vld [vmem:[#allocation16 + $0x1054] sm:$0xf]  ;;  %v17039_v32 = vor.u32 %v19858_v50, %v17036_v25  ;;  %10422 = vmatpush.bf16.msrb.mxu2 %v16783_v3 }
 0xb2c   :  { %v16236_v0 = vld [vmem:[#allocation16 + $0x1070] sm:$0xf0] }
 0xb2d   :  { %v19722_v33 = vld [vmem:[#allocation16 + $0x1254] sm:$0xf]  ;;  %v16239_v47 = vor.u32 %v19658_v30, %v16236_v0  ;;  %10435 = vmatpush.bf16.msrb.mxu1 %v17039_v32 }
 0xb2e   :  { %v16492_v21 = vld [vmem:[#allocation16 + $0x1270] sm:$0xf0] }
 0xb2f   :  { %v19786_v18 = vld [vmem:[#allocation16 + $0x1454] sm:$0xf]  ;;  %v16495_v49 = vor.u32 %v19722_v33, %v16492_v21  ;;  %10397 = vmatpush.bf16.msra.mxu3 %v16239_v47 }
 0xb30   :  { %v16748_v38 = vld [vmem:[#allocation16 + $0x1470] sm:$0xf0] }
 0xb31   :  { %v19850_v40 = vld [vmem:[#allocation16 + $0x1654] sm:$0xf]  ;;  %v16751_v59 = vor.u32 %v19786_v18, %v16748_v38  ;;  %10410 = vmatpush.bf16.msrb.mxu0 %v16495_v49 }
 0xb32   :  { %v17004_v7 = vld [vmem:[#allocation16 + $0x1670] sm:$0xf0] }
 0xb33   :  { %v19650_v16 = vld [vmem:[#allocation16 + $0x1014] sm:$0xf]  ;;  %v17007_v56 = vor.u32 %v19850_v40, %v17004_v7  ;;  %10423 = vmatpush.bf16.msrb.mxu2 %v16751_v59 }
 0xb34   :  { %v16204_v20 = vld [vmem:[#allocation16 + $0x1030] sm:$0xf0] }
 0xb35   :  { %v19714_v57 = vld [vmem:[#allocation16 + $0x1214] sm:$0xf]  ;;  %v16207_v34 = vor.u32 %v19650_v16, %v16204_v20  ;;  %10436 = vmatpush.bf16.msrb.mxu1 %v17007_v56 }
 0xb36   :  { %v16460_v51 = vld [vmem:[#allocation16 + $0x1230] sm:$0xf0] }
 0xb37   :  { %v19778_v55 = vld [vmem:[#allocation16 + $0x1414] sm:$0xf]  ;;  %v16463_v52 = vor.u32 %v19714_v57, %v16460_v51  ;;  %10398 = vmatpush.bf16.msra.mxu3 %v16207_v34 }
 0xb38   :  { %v16716_v12 = vld [vmem:[#allocation16 + $0x1430] sm:$0xf0] }
 0xb39   :  { %v19842_v5 = vld [vmem:[#allocation16 + $0x1614] sm:$0xf]  ;;  %v16719_v28 = vor.u32 %v19778_v55, %v16716_v12  ;;  %10411 = vmatpush.bf16.msrb.mxu0 %v16463_v52 }
 0xb3a   :  { %v16972_v6 = vld [vmem:[#allocation16 + $0x1630] sm:$0xf0]  ;;  %10399 = vmatmul.bf16.vlgmr.msra.gmra.mxu3 %v21297_v36 }
 0xb3b   :  { %v19962_v42 = vld [vmem:[#allocation16 + $0x19d4] sm:$0xf]  ;;  %v16975_v58 = vor.u32 %v19842_v5, %v16972_v6  ;;  %10424 = vmatpush.bf16.msrb.mxu2 %v16719_v28  ;;  %v10231_v28 = vpop.f32.mrf.mxu1 }
 0xb3c   :  { %v17452_v8 = vld [vmem:[#allocation16 + $0x19f0] sm:$0xf0]  ;;  %10412 = vmatmul.bf16.vlgmr.msrb.gmra.mxu0 %v21301_v37 }
 0xb3d   :  { %v20026_v10 = vld [vmem:[#allocation16 + $0x1bd4] sm:$0xf]  ;;  %v17455_v62 = vor.u32 %v19962_v42, %v17452_v8  ;;  %10437 = vmatpush.bf16.msrb.mxu1 %v16975_v58 }
 0xb3e   :  { %v17708_v11 = vld [vmem:[#allocation16 + $0x1bf0] sm:$0xf0]  ;;  %10425 = vmatmul.bf16.vlgmr.msrb.gmra.mxu2 %v21305_v41 }
 0xb3f   :  { %v20090_v13 = vld [vmem:[#allocation16 + $0x1dd4] sm:$0xf]  ;;  %v17711_v63 = vor.u32 %v20026_v10, %v17708_v11  ;;  %10443 = vmatpush.bf16.msrb.mxu3 %v17455_v62 }
 0xb40   :  { %v17964_v50 = vld [vmem:[#allocation16 + $0x1df0] sm:$0xf0]  ;;  %10438 = vmatmul.bf16.vlgmr.msrb.gmra.mxu1 %v21309_v46 }
 0xb41   :  { %v20154_v25 = vld [vmem:[#allocation16 + $0x1fd4] sm:$0xf]  ;;  %v17967_v3 = vor.u32 %v20090_v13, %v17964_v50  ;;  %10456 = vmatpush.bf16.msra.mxu0 %v17711_v63 }
 0xb42   :  { %v18220_v39 = vld [vmem:[#allocation16 + $0x1ff0] sm:$0xf0] }
 0xb43   :  { %v19954_v30 = vld [vmem:[#allocation16 + $0x1994] sm:$0xf]  ;;  %v18223_v32 = vor.u32 %v20154_v25, %v18220_v39  ;;  %10469 = vmatpush.bf16.msra.mxu2 %v17967_v3  ;;  %v10205_v39 = vpop.f32.mrf.mxu0 }
 0xb44   :  { %v17420_v0 = vld [vmem:[#allocation16 + $0x19b0] sm:$0xf0] }
 0xb45   :  { %v20018_v33 = vld [vmem:[#allocation16 + $0x1b94] sm:$0xf]  ;;  %v17423_v7 = vor.u32 %v19954_v30, %v17420_v0  ;;  %10482 = vmatpush.bf16.msra.mxu1 %v18223_v32 }
 0xb46   :  { %v17676_v21 = vld [vmem:[#allocation16 + $0x1bb0] sm:$0xf0] }
 0xb47   :  { %v20082_v18 = vld [vmem:[#allocation16 + $0x1d94] sm:$0xf]  ;;  %v17679_v16 = vor.u32 %v20018_v33, %v17676_v21  ;;  %10444 = vmatpush.bf16.msrb.mxu3 %v17423_v7 }
 0xb48   :  { %v17932_v48 = vld [vmem:[#allocation16 + $0x1db0] sm:$0xf0] }
 0xb49   :  { %v20146_v38 = vld [vmem:[#allocation16 + $0x1f94] sm:$0xf]  ;;  %v17935_v20 = vor.u32 %v20082_v18, %v17932_v48  ;;  %10457 = vmatpush.bf16.msra.mxu0 %v17679_v16 }
 0xb4a   :  { %v18188_v40 = vld [vmem:[#allocation16 + $0x1fb0] sm:$0xf0] }
 0xb4b   :  { %v19946_v47 = vld [vmem:[#allocation16 + $0x1954] sm:$0xf]  ;;  %v18191_v57 = vor.u32 %v20146_v38, %v18188_v40  ;;  %10470 = vmatpush.bf16.msra.mxu2 %v17935_v20 }
 0xb4c   :  { %v17388_v49 = vld [vmem:[#allocation16 + $0x1970] sm:$0xf0] }
 0xb4d   :  { %v20010_v51 = vld [vmem:[#allocation16 + $0x1b54] sm:$0xf]  ;;  %v17391_v5 = vor.u32 %v19946_v47, %v17388_v49  ;;  %10483 = vmatpush.bf16.msra.mxu1 %v18191_v57  ;;  %v10192_v57 = vpop.f32.mrf.mxu3 }
 0xb4e   :  { %v17644_v59 = vld [vmem:[#allocation16 + $0x1b70] sm:$0xf0] }
 0xb4f   :  { %v20074_v56 = vld [vmem:[#allocation16 + $0x1d54] sm:$0xf]  ;;  %v17647_v4 = vor.u32 %v20010_v51, %v17644_v59  ;;  %10445 = vmatpush.bf16.msrb.mxu3 %v17391_v5 }
 0xb50   :  { %v17900_v54 = vld [vmem:[#allocation16 + $0x1d70] sm:$0xf0] }
 0xb51   :  { %v20138_v55 = vld [vmem:[#allocation16 + $0x1f54] sm:$0xf]  ;;  %v17903_v8 = vor.u32 %v20074_v56, %v17900_v54  ;;  %10458 = vmatpush.bf16.msra.mxu0 %v17647_v4  ;;  %v10193_v54 = vadd.f32 %v10192_v57, %v21513_v29 }
 0xb52   :  { %v18156_v12 = vld [vmem:[#allocation16 + $0x1f70] sm:$0xf0] }
 0xb53   :  { %v19938_v6 = vld [vmem:[#allocation16 + $0x1914] sm:$0xf]  ;;  %v18159_v10 = vor.u32 %v20138_v55, %v18156_v12  ;;  %10471 = vmatpush.bf16.msra.mxu2 %v17903_v8  ;;  %v10218_v55 = vpop.f32.mrf.mxu2  ;;  %v10233_v8 = vpop.f32.mrf.mxu1 }
 0xb54   :  { %v17356_v42 = vld [vmem:[#allocation16 + $0x1930] sm:$0xf0] }
 0xb55   :  { %v20002_v11 = vld [vmem:[#allocation16 + $0x1b14] sm:$0xf]  ;;  %v17359_v58 = vor.u32 %v19938_v6, %v17356_v42  ;;  %10484 = vmatpush.bf16.msra.mxu1 %v18159_v10  ;;  %v10207_v6 = vpop.f32.mrf.mxu0  ;;  %v10206_v42 = vadd.f32 %v10205_v39, %v10193_v54  ;;  %v19263_v54 = vld [vmem:[#allocation16 + $0x3f4] sm:$0xf0] }
 0xb56   :  { %v17612_v13 = vld [vmem:[#allocation16 + $0x1b30] sm:$0xf0]  ;;  %v19391_v6 = vld [vmem:[#allocation16 + $0x7f4] sm:$0xf0] }
 0xb57   :  { %v20066_v34 = vld [vmem:[#allocation16 + $0x1d14] sm:$0xf]  ;;  %v17615_v62 = vor.u32 %v20002_v11, %v17612_v13  ;;  %10446 = vmatpush.bf16.msrb.mxu3 %v17359_v58 }
 0xb58   :  { %v17868_v52 = vld [vmem:[#allocation16 + $0x1d30] sm:$0xf0] }
 0xb59   :  { %v20130_v50 = vld [vmem:[#allocation16 + $0x1f14] sm:$0xf]  ;;  %v17871_v0 = vor.u32 %v20066_v34, %v17868_v52  ;;  %10459 = vmatpush.bf16.msra.mxu0 %v17615_v62  ;;  %v10219_v62 = vadd.f32 %v10218_v55, %v10206_v42  ;;  %v14898_v55 = vld [vmem:[#allocation16 + $0x5d8] sm:$0xf] }
 0xb5a   :  { %v18124_v25 = vld [vmem:[#allocation16 + $0x1f30] sm:$0xf0] }
 0xb5b   :  { %v19930_v63 = vld [vmem:[#allocation16 + $0x18d4] sm:$0xf]  ;;  %v18127_v3 = vor.u32 %v20130_v50, %v18124_v25  ;;  %10472 = vmatpush.bf16.msra.mxu2 %v17871_v0 }
 0xb5c   :  { %v17324_v30 = vld [vmem:[#allocation16 + $0x18f0] sm:$0xf0] }
 0xb5d   :  { %v19994_v32 = vld [vmem:[#allocation16 + $0x1ad4] sm:$0xf]  ;;  %v17327_v40 = vor.u32 %v19930_v63, %v17324_v30  ;;  %10485 = vmatpush.bf16.msra.mxu1 %v18127_v3 }
 0xb5e   :  { %v17580_v33 = vld [vmem:[#allocation16 + $0x1af0] sm:$0xf0] }
 0xb5f   :  { %v20058_v21 = vld [vmem:[#allocation16 + $0x1cd4] sm:$0xf]  ;;  %v17583_v7 = vor.u32 %v19994_v32, %v17580_v33  ;;  %10447 = vmatpush.bf16.msrb.mxu3 %v17327_v40 }
 0xb60   :  { %v17836_v18 = vld [vmem:[#allocation16 + $0x1cf0] sm:$0xf0] }
 0xb61   :  { %v20122_v48 = vld [vmem:[#allocation16 + $0x1ed4] sm:$0xf]  ;;  %v17839_v49 = vor.u32 %v20058_v21, %v17836_v18  ;;  %10460 = vmatpush.bf16.msra.mxu0 %v17583_v7  ;;  %v10194_v7 = vpop.f32.mrf.mxu3 }
 0xb62   :  { %v18092_v38 = vld [vmem:[#allocation16 + $0x1ef0] sm:$0xf0]  ;;  %v19311_v7 = vld [vmem:[#allocation16 + $0x574] sm:$0xf0] }
 0xb63   :  { %v19922_v16 = vld [vmem:[#allocation16 + $0x1894] sm:$0xf]  ;;  %v18095_v20 = vor.u32 %v20122_v48, %v18092_v38  ;;  %10473 = vmatpush.bf16.msra.mxu2 %v17839_v49  ;;  %v21520_v48 = vadd.f32 %v10231_v28, %v10219_v62  ;;  %v19319_v62 = vld [vmem:[#allocation16 + $0x5b4] sm:$0xf0] }
 0xb64   :  { %v17292_v47 = vld [vmem:[#allocation16 + $0x18b0] sm:$0xf0] }
 0xb65   :  { %v19986_v51 = vld [vmem:[#allocation16 + $0x1a94] sm:$0xf]  ;;  %v17295_v10 = vor.u32 %v19922_v16, %v17292_v47  ;;  %10486 = vmatpush.bf16.msra.mxu1 %v18095_v20  ;;  %v10220_v20 = vpop.f32.mrf.mxu2 }
 0xb66   :  { %v17548_v59 = vld [vmem:[#allocation16 + $0x1ab0] sm:$0xf0] }
 0xb67   :  { %v20050_v56 = vld [vmem:[#allocation16 + $0x1c94] sm:$0xf]  ;;  %v17551_v11 = vor.u32 %v19986_v51, %v17548_v59  ;;  %10448 = vmatpush.bf16.msrb.mxu3 %v17295_v10  ;;  %v14386_v51 = vld [vmem:[#allocation16 + $0x1d8] sm:$0xf] }
 0xb68   :  { %v17804_v12 = vld [vmem:[#allocation16 + $0x1cb0] sm:$0xf0]  ;;  %v19199_v59 = vld [vmem:[#allocation16 + $0x1f4] sm:$0xf0] }
 0xb69   :  { %v20114_v5 = vld [vmem:[#allocation16 + $0x1e94] sm:$0xf]  ;;  %v17807_v52 = vor.u32 %v20050_v56, %v17804_v12  ;;  %10461 = vmatpush.bf16.msra.mxu0 %v17551_v11  ;;  %v14642_v56 = vld [vmem:[#allocation16 + $0x3d8] sm:$0xf]  ;;  %v14387_v10 = vor.u32 %v19199_v59, %v14386_v51 }
 0xb6a   :  { %v18060_v4 = vld [vmem:[#allocation16 + $0x1eb0] sm:$0xf0]  ;;  %v14643_v11 = vor.u32 %v19263_v54, %v14642_v56  ;;  %v19175_v51 = vld [vmem:[#allocation16 + $0x134] sm:$0xf0] }
 0xb6b   :  { %v19914_v13 = vld [vmem:[#allocation16 + $0x1854] sm:$0xf]  ;;  %v18063_v50 = vor.u32 %v20114_v5, %v18060_v4  ;;  %10474 = vmatpush.bf16.msra.mxu2 %v17807_v52  ;;  %v19327_v5 = vld [vmem:[#allocation16 + $0x5f4] sm:$0xf0] }
 0xb6c   :  { %v17260_v34 = vld [vmem:[#allocation16 + $0x1870] sm:$0xf0]  ;;  %v15154_v4 = vld [vmem:[#allocation16 + $0x7d8] sm:$0xf]  ;;  %v14899_v52 = vor.u32 %v19327_v5, %v14898_v55 }
 0xb6d   :  { %v19978_v25 = vld [vmem:[#allocation16 + $0x1a54] sm:$0xf]  ;;  %v17263_v39 = vor.u32 %v19914_v13, %v17260_v34  ;;  %10487 = vmatpush.bf16.msra.mxu1 %v18063_v50  ;;  %v14354_v13 = vld [vmem:[#allocation16 + $0x198] sm:$0xf]  ;;  %v15155_v50 = vor.u32 %v19391_v6, %v15154_v4  ;;  %v10257_v6 = vpop.f32.mrf.mxu0 }
 0xb6e   :  { %v17516_v58 = vld [vmem:[#allocation16 + $0x1a70] sm:$0xf0]  ;;  %v19191_v34 = vld [vmem:[#allocation16 + $0x1b4] sm:$0xf0] }
 0xb6f   :  { %v20042_v29 = vld [vmem:[#allocation16 + $0x1c54] sm:$0xf]  ;;  %v17519_v32 = vor.u32 %v19978_v25, %v17516_v58  ;;  %10449 = vmatpush.bf16.msrb.mxu3 %v17263_v39  ;;  %v14610_v25 = vld [vmem:[#allocation16 + $0x398] sm:$0xf] }
 0xb70   :  { %v17772_v63 = vld [vmem:[#allocation16 + $0x1c70] sm:$0xf0]  ;;  %v19255_v58 = vld [vmem:[#allocation16 + $0x3b4] sm:$0xf0] }
 0xb71   :  { %v20106_v30 = vld [vmem:[#allocation16 + $0x1e54] sm:$0xf]  ;;  %v17775_v38 = vor.u32 %v20042_v29, %v17772_v63  ;;  %10462 = vmatpush.bf16.msra.mxu0 %v17519_v32  ;;  %v14866_v29 = vld [vmem:[#allocation16 + $0x598] sm:$0xf] }
 0xb72   :  { %v18028_v0 = vld [vmem:[#allocation16 + $0x1e70] sm:$0xf0]  ;;  %v15122_v63 = vld [vmem:[#allocation16 + $0x798] sm:$0xf] }
 0xb73   :  { %v19906_v3 = vld [vmem:[#allocation16 + $0x1814] sm:$0xf]  ;;  %v18031_v40 = vor.u32 %v20106_v30, %v18028_v0  ;;  %10475 = vmatpush.bf16.msra.mxu2 %v17775_v38  ;;  %v19383_v30 = vld [vmem:[#allocation16 + $0x7b4] sm:$0xf0]  ;;  %v14355_v0 = vor.u32 %v19191_v34, %v14354_v13 }
 0xb74   :  { %v17228_v33 = vld [vmem:[#allocation16 + $0x1830] sm:$0xf0]  ;;  %v14322_v39 = vld [vmem:[#allocation16 + $0x158] sm:$0xf] }
 0xb75   :  { %v19970_v21 = vld [vmem:[#allocation16 + $0x1a14] sm:$0xf]  ;;  %v17231_v12 = vor.u32 %v19906_v3, %v17228_v33  ;;  %10488 = vmatpush.bf16.msra.mxu1 %v18031_v40  ;;  %v14611_v3 = vor.u32 %v19255_v58, %v14610_v25  ;;  %v19183_v32 = vld [vmem:[#allocation16 + $0x174] sm:$0xf0]  ;;  %v14867_v33 = vor.u32 %v19319_v62, %v14866_v29 }
 0xb76   :  { %v17484_v18 = vld [vmem:[#allocation16 + $0x1a30] sm:$0xf0]  ;;  %v19247_v38 = vld [vmem:[#allocation16 + $0x374] sm:$0xf0] }
 0xb77   :  { %v20034_v16 = vld [vmem:[#allocation16 + $0x1c14] sm:$0xf]  ;;  %v17487_v28 = vor.u32 %v19970_v21, %v17484_v18  ;;  %10450 = vmatpush.bf16.msrb.mxu3 %v17231_v12  ;;  %v15123_v21 = vor.u32 %v19383_v30, %v15122_v63  ;;  %v14578_v18 = vld [vmem:[#allocation16 + $0x358] sm:$0xf] }
 0xb78   :  { %v17740_v47 = vld [vmem:[#allocation16 + $0x1c30] sm:$0xf0]  ;;  %v14834_v40 = vld [vmem:[#allocation16 + $0x558] sm:$0xf]  ;;  %v14579_v20 = vor.u32 %v19247_v38, %v14578_v18 }
 0xb79   :  { %v20098_v49 = vld [vmem:[#allocation16 + $0x1e14] sm:$0xf]  ;;  %v17743_v42 = vor.u32 %v20034_v16, %v17740_v47  ;;  %10463 = vmatpush.bf16.msra.mxu0 %v17487_v28  ;;  %v15090_v16 = vld [vmem:[#allocation16 + $0x758] sm:$0xf]  ;;  %v14835_v59 = vor.u32 %v19311_v7, %v14834_v40 }
 0xb7a   :  { %v17996_v57 = vld [vmem:[#allocation16 + $0x1e30] sm:$0xf0]  ;;  %10451 = vmatmul.bf16.vlgmr.msrb.gmra.mxu3 %v21317_v43  ;;  %v19375_v47 = vld [vmem:[#allocation16 + $0x774] sm:$0xf0] }
 0xb7b   :  { %v17999_v8 = vor.u32 %v20098_v49, %v17996_v57  ;;  %10476 = vmatpush.bf16.msra.mxu2 %v17743_v42  ;;  %10495 = vmatpush.bf16.msra.mxu3 %v14387_v10  ;;  %v14323_v49 = vor.u32 %v19183_v32, %v14322_v39  ;;  %v14290_v57 = vld [vmem:[#allocation16 + $0x118] sm:$0xf]  ;;  %v15091_v56 = vor.u32 %v19375_v47, %v15090_v16  ;;  %v10283_v42 = vpop.f32.mrf.mxu1  ;;  %v10270_v16 = vpop.f32.mrf.mxu2 }
 0xb7c   :  { %10464 = vmatmul.bf16.vlgmr.msra.gmra.mxu0 %v21321_v45  ;;  %v14546_v54 = vld [vmem:[#allocation16 + $0x318] sm:$0xf] }
 0xb7d   :  { %10489 = vmatpush.bf16.msra.mxu1 %v17999_v8  ;;  %10508 = vmatpush.bf16.msrb.mxu0 %v14643_v11  ;;  %v19239_v55 = vld [vmem:[#allocation16 + $0x334] sm:$0xf0]  ;;  %v14291_v8 = vor.u32 %v19175_v51, %v14290_v57  ;;  %v10259_v57 = vpop.f32.mrf.mxu0 }
 0xb7e   :  { %10477 = vmatmul.bf16.vlgmr.msra.gmra.mxu2 %v21325_v26  ;;  %v14802_v12 = vld [vmem:[#allocation16 + $0x518] sm:$0xf]  ;;  %v14547_v10 = vor.u32 %v19239_v55, %v14546_v54 }
 0xb7f   :  { %10521 = vmatpush.bf16.msrb.mxu2 %v14899_v52  ;;  %10496 = vmatpush.bf16.msra.mxu3 %v14355_v0  ;;  %v19303_v28 = vld [vmem:[#allocation16 + $0x534] sm:$0xf0] }
 0xb80   :  { %10490 = vmatmul.bf16.vlgmr.msra.gmra.mxu1 %v21329_v27  ;;  %v15058_v5 = vld [vmem:[#allocation16 + $0x718] sm:$0xf]  ;;  %v14803_v34 = vor.u32 %v19303_v28, %v14802_v12 }
 0xb81   :  { %10534 = vmatpush.bf16.msrb.mxu1 %v15155_v50  ;;  %10509 = vmatpush.bf16.msrb.mxu0 %v14611_v3  ;;  %v19367_v4 = vld [vmem:[#allocation16 + $0x734] sm:$0xf0] }
 0xb82   :  { %v14258_v11 = vld [vmem:[#allocation16 + $0xd8] sm:$0xf]  ;;  %v15059_v52 = vor.u32 %v19367_v4, %v15058_v5 }
 0xb83   :  { %10522 = vmatpush.bf16.msrb.mxu2 %v14867_v33  ;;  %10497 = vmatpush.bf16.msra.mxu3 %v14323_v49  ;;  %v19167_v13 = vld [vmem:[#allocation16 + $0xf4] sm:$0xf0] }
 0xb84   :  { %v14514_v50 = vld [vmem:[#allocation16 + $0x2d8] sm:$0xf]  ;;  %v14259_v30 = vor.u32 %v19167_v13, %v14258_v11 }
 0xb85   :  { %10535 = vmatpush.bf16.msrb.mxu1 %v15123_v21  ;;  %10510 = vmatpush.bf16.msrb.mxu0 %v14579_v20  ;;  %v19231_v25 = vld [vmem:[#allocation16 + $0x2f4] sm:$0xf0]  ;;  %v10244_v21 = vpop.f32.mrf.mxu3 }
 0xb86   :  { %v14770_v58 = vld [vmem:[#allocation16 + $0x4d8] sm:$0xf]  ;;  %v14515_v0 = vor.u32 %v19231_v25, %v14514_v50  ;;  %v10245_v7 = vadd.f32 %v10244_v21, %v21520_v48 }
 0xb87   :  { %10523 = vmatpush.bf16.msrb.mxu2 %v14835_v59  ;;  %v19295_v29 = vld [vmem:[#allocation16 + $0x4f4] sm:$0xf0]  ;;  %10498 = vmatpush.bf16.msra.mxu3 %v14291_v8  ;;  %v10285_v59 = vpop.f32.mrf.mxu1 }
 0xb88   :  { %v15026_v62 = vld [vmem:[#allocation16 + $0x6d8] sm:$0xf]  ;;  %v14771_v32 = vor.u32 %v19295_v29, %v14770_v58  ;;  %v10258_v51 = vadd.f32 %v10257_v6, %v10245_v7 }
 0xb89   :  { %10536 = vmatpush.bf16.msrb.mxu1 %v15091_v56  ;;  %v19359_v63 = vld [vmem:[#allocation16 + $0x6f4] sm:$0xf0]  ;;  %10511 = vmatpush.bf16.msrb.mxu0 %v14547_v10 }
 0xb8a   :  { %v14226_v3 = vld [vmem:[#allocation16 + $0x98] sm:$0xf]  ;;  %v15027_v33 = vor.u32 %v19359_v63, %v15026_v62  ;;  %v10271_v10 = vadd.f32 %v10270_v16, %v10258_v51 }
 0xb8b   :  { %v19159_v39 = vld [vmem:[#allocation16 + $0xb4] sm:$0xf0]  ;;  %10524 = vmatpush.bf16.msrb.mxu2 %v14803_v34  ;;  %10499 = vmatpush.bf16.msra.mxu3 %v14259_v30 }
 0xb8c   :  { %v14482_v18 = vld [vmem:[#allocation16 + $0x298] sm:$0xf]  ;;  %v14227_v56 = vor.u32 %v19159_v39, %v14226_v3  ;;  %v21527_v50 = vadd.f32 %v10283_v42, %v10271_v10 }
 0xb8d   :  { %10537 = vmatpush.bf16.msrb.mxu1 %v15059_v52  ;;  %v19223_v38 = vld [vmem:[#allocation16 + $0x2b4] sm:$0xf0]  ;;  %10512 = vmatpush.bf16.msrb.mxu0 %v14515_v0  ;;  %v10246_v0 = vpop.f32.mrf.mxu3 }
 0xb8e   :  { %v14738_v40 = vld [vmem:[#allocation16 + $0x498] sm:$0xf]  ;;  %v14483_v54 = vor.u32 %v19223_v38, %v14482_v18 }
 0xb8f   :  { %v19287_v47 = vld [vmem:[#allocation16 + $0x4b4] sm:$0xf0]  ;;  %10525 = vmatpush.bf16.msrb.mxu2 %v14771_v32  ;;  %10500 = vmatpush.bf16.msra.mxu3 %v14227_v56 }
 0xb90   :  { %v14994_v49 = vld [vmem:[#allocation16 + $0x698] sm:$0xf]  ;;  %v14739_v28 = vor.u32 %v19287_v47, %v14738_v40 }
 0xb91   :  { %v19351_v20 = vld [vmem:[#allocation16 + $0x6b4] sm:$0xf0]  ;;  %10538 = vmatpush.bf16.msrb.mxu1 %v15027_v33  ;;  %10513 = vmatpush.bf16.msrb.mxu0 %v14483_v54  ;;  %v10272_v33 = vpop.f32.mrf.mxu2 }
 0xb92   :  { %v14194_v55 = vld [vmem:[#allocation16 + $0x58] sm:$0xf]  ;;  %v14995_v5 = vor.u32 %v19351_v20, %v14994_v49 }
 0xb93   :  { %v19151_v12 = vld [vmem:[#allocation16 + $0x74] sm:$0xf0]  ;;  %10526 = vmatpush.bf16.msrb.mxu2 %v14739_v28 }
 0xb94   :  { %v14450_v4 = vld [vmem:[#allocation16 + $0x258] sm:$0xf]  ;;  %v14195_v6 = vor.u32 %v19151_v12, %v14194_v55 }
 0xb95   :  { %v19215_v8 = vld [vmem:[#allocation16 + $0x274] sm:$0xf0]  ;;  %10539 = vmatpush.bf16.msrb.mxu1 %v14995_v5 }
 0xb96   :  { %v14706_v48 = vld [vmem:[#allocation16 + $0x458] sm:$0xf]  ;;  %v14451_v25 = vor.u32 %v19215_v8, %v14450_v4  ;;  %10501 = vmatpush.bf16.msra.mxu3 %v14195_v6 }
 0xb97   :  { %v19279_v11 = vld [vmem:[#allocation16 + $0x474] sm:$0xf0] }
 0xb98   :  { %v14962_v13 = vld [vmem:[#allocation16 + $0x658] sm:$0xf]  ;;  %v14707_v63 = vor.u32 %v19279_v11, %v14706_v48  ;;  %10514 = vmatpush.bf16.msrb.mxu0 %v14451_v25 }
 0xb99   :  { %v19343_v34 = vld [vmem:[#allocation16 + $0x674] sm:$0xf0] }
 0xb9a   :  { %v14162_v52 = vld [vmem:[#allocation16 + $0x18] sm:$0xf]  ;;  %v14963_v30 = vor.u32 %v19343_v34, %v14962_v13  ;;  %10527 = vmatpush.bf16.msrb.mxu2 %v14707_v63 }
 0xb9b   :  { %v19143_v58 = vld [vmem:[#allocation16 + $0x34] sm:$0xf0] }
 0xb9c   :  { %v14418_v29 = vld [vmem:[#allocation16 + $0x218] sm:$0xf]  ;;  %v14163_v16 = vor.u32 %v19143_v58, %v14162_v52  ;;  %10540 = vmatpush.bf16.msrb.mxu1 %v14963_v30 }
 0xb9d   :  { %v19207_v62 = vld [vmem:[#allocation16 + $0x234] sm:$0xf0] }
 0xb9e   :  { %v14674_v3 = vld [vmem:[#allocation16 + $0x418] sm:$0xf]  ;;  %v14419_v47 = vor.u32 %v19207_v62, %v14418_v29  ;;  %10502 = vmatpush.bf16.msra.mxu3 %v14163_v16 }
 0xb9f   :  { %v19271_v39 = vld [vmem:[#allocation16 + $0x434] sm:$0xf0] }
 0xba0   :  { %v14930_v32 = vld [vmem:[#allocation16 + $0x618] sm:$0xf]  ;;  %v14675_v51 = vor.u32 %v19271_v39, %v14674_v3  ;;  %10515 = vmatpush.bf16.msrb.mxu0 %v14419_v47 }
 0xba1   :  { %v19335_v21 = vld [vmem:[#allocation16 + $0x634] sm:$0xf0]  ;;  %10503 = vmatmul.bf16.vlgmr.msra.gmra.mxu3 %v21257_v14 }
 0xba2   :  { %v15410_v18 = vld [vmem:[#allocation16 + $0x9d8] sm:$0xf]  ;;  %v14931_v59 = vor.u32 %v19335_v21, %v14930_v32  ;;  %10528 = vmatpush.bf16.msrb.mxu2 %v14675_v51  ;;  %v10335_v51 = vpop.f32.mrf.mxu1 }
 0xba3   :  { %v19455_v42 = vld [vmem:[#allocation16 + $0x9f4] sm:$0xf0]  ;;  %10516 = vmatmul.bf16.vlgmr.msrb.gmra.mxu0 %v21261_v15 }
 0xba4   :  { %v15666_v38 = vld [vmem:[#allocation16 + $0xbd8] sm:$0xf]  ;;  %v15411_v56 = vor.u32 %v19455_v42, %v15410_v18  ;;  %10541 = vmatpush.bf16.msrb.mxu1 %v14931_v59 }
 0xba5   :  { %v19519_v40 = vld [vmem:[#allocation16 + $0xbf4] sm:$0xf0]  ;;  %10529 = vmatmul.bf16.vlgmr.msrb.gmra.mxu2 %v21265_v22 }
 0xba6   :  { %v15922_v7 = vld [vmem:[#allocation16 + $0xdd8] sm:$0xf]  ;;  %v15667_v54 = vor.u32 %v19519_v40, %v15666_v38  ;;  %10547 = vmatpush.bf16.msrb.mxu3 %v15411_v56 }
 0xba7   :  { %v19583_v49 = vld [vmem:[#allocation16 + $0xdf4] sm:$0xf0]  ;;  %10542 = vmatmul.bf16.vlgmr.msrb.gmra.mxu1 %v21269_v23 }
 0xba8   :  { %v16178_v20 = vld [vmem:[#allocation16 + $0xfd8] sm:$0xf]  ;;  %v15923_v28 = vor.u32 %v19583_v49, %v15922_v7  ;;  %10560 = vmatpush.bf16.msra.mxu0 %v15667_v54 }
 0xba9   :  { %v19647_v57 = vld [vmem:[#allocation16 + $0xff4] sm:$0xf0] }
 0xbaa   :  { %v15378_v55 = vld [vmem:[#allocation16 + $0x998] sm:$0xf]  ;;  %v16179_v5 = vor.u32 %v19647_v57, %v16178_v20  ;;  %10573 = vmatpush.bf16.msra.mxu2 %v15923_v28  ;;  %v10309_v57 = vpop.f32.mrf.mxu0 }
 0xbab   :  { %v19447_v12 = vld [vmem:[#allocation16 + $0x9b4] sm:$0xf0] }
 0xbac   :  { %v15634_v4 = vld [vmem:[#allocation16 + $0xb98] sm:$0xf]  ;;  %v15379_v34 = vor.u32 %v19447_v12, %v15378_v55  ;;  %10586 = vmatpush.bf16.msra.mxu1 %v16179_v5 }
 0xbad   :  { %v19511_v8 = vld [vmem:[#allocation16 + $0xbb4] sm:$0xf0] }
 0xbae   :  { %v15890_v48 = vld [vmem:[#allocation16 + $0xd98] sm:$0xf]  ;;  %v15635_v52 = vor.u32 %v19511_v8, %v15634_v4  ;;  %10548 = vmatpush.bf16.msrb.mxu3 %v15379_v34 }
 0xbaf   :  { %v19575_v10 = vld [vmem:[#allocation16 + $0xdb4] sm:$0xf0] }
 0xbb0   :  { %v16146_v11 = vld [vmem:[#allocation16 + $0xf98] sm:$0xf]  ;;  %v15891_v58 = vor.u32 %v19575_v10, %v15890_v48  ;;  %10561 = vmatpush.bf16.msra.mxu0 %v15635_v52 }
 0xbb1   :  { %v19639_v13 = vld [vmem:[#allocation16 + $0xfb4] sm:$0xf0] }
 0xbb2   :  { %v15346_v6 = vld [vmem:[#allocation16 + $0x958] sm:$0xf]  ;;  %v16147_v29 = vor.u32 %v19639_v13, %v16146_v11  ;;  %10574 = vmatpush.bf16.msra.mxu2 %v15891_v58 }
 0xbb3   :  { %v19439_v25 = vld [vmem:[#allocation16 + $0x974] sm:$0xf0] }
 0xbb4   :  { %v15602_v62 = vld [vmem:[#allocation16 + $0xb58] sm:$0xf]  ;;  %v15347_v32 = vor.u32 %v19439_v25, %v15346_v6  ;;  %10587 = vmatpush.bf16.msra.mxu1 %v16147_v29  ;;  %v10296_v29 = vpop.f32.mrf.mxu3 }
 0xbb5   :  { %v19503_v63 = vld [vmem:[#allocation16 + $0xb74] sm:$0xf0] }
 0xbb6   :  { %v15858_v30 = vld [vmem:[#allocation16 + $0xd58] sm:$0xf]  ;;  %v15603_v33 = vor.u32 %v19503_v63, %v15602_v62  ;;  %10549 = vmatpush.bf16.msrb.mxu3 %v15347_v32 }
 0xbb7   :  { %v19567_v0 = vld [vmem:[#allocation16 + $0xd74] sm:$0xf0] }
 0xbb8   :  { %v16114_v3 = vld [vmem:[#allocation16 + $0xf58] sm:$0xf]  ;;  %v15859_v42 = vor.u32 %v19567_v0, %v15858_v30  ;;  %10562 = vmatpush.bf16.msra.mxu0 %v15603_v33  ;;  %v10297_v0 = vadd.f32 %v10296_v29, %v21381_v9 }
 0xbb9   :  { %v19631_v39 = vld [vmem:[#allocation16 + $0xf74] sm:$0xf0] }
 0xbba   :  { %v15314_v21 = vld [vmem:[#allocation16 + $0x918] sm:$0xf]  ;;  %v16115_v38 = vor.u32 %v19631_v39, %v16114_v3  ;;  %10575 = vmatpush.bf16.msra.mxu2 %v15859_v42  ;;  %v10322_v3 = vpop.f32.mrf.mxu2  ;;  %v10337_v42 = vpop.f32.mrf.mxu1 }
 0xbbb   :  { %v19431_v18 = vld [vmem:[#allocation16 + $0x934] sm:$0xf0] }
 0xbbc   :  { %v15570_v40 = vld [vmem:[#allocation16 + $0xb18] sm:$0xf]  ;;  %v15315_v59 = vor.u32 %v19431_v18, %v15314_v21  ;;  %10588 = vmatpush.bf16.msra.mxu1 %v16115_v38  ;;  %v10311_v21 = vpop.f32.mrf.mxu0  ;;  %v10310_v18 = vadd.f32 %v10309_v57, %v10297_v0 }
 0xbbd   :  { %v19495_v7 = vld [vmem:[#allocation16 + $0xb34] sm:$0xf0] }
 0xbbe   :  { %v15826_v16 = vld [vmem:[#allocation16 + $0xd18] sm:$0xf]  ;;  %v15571_v56 = vor.u32 %v19495_v7, %v15570_v40  ;;  %10550 = vmatpush.bf16.msrb.mxu3 %v15315_v59 }
 0xbbf   :  { %v19559_v47 = vld [vmem:[#allocation16 + $0xd34] sm:$0xf0] }
 0xbc0   :  { %v16082_v49 = vld [vmem:[#allocation16 + $0xf18] sm:$0xf]  ;;  %v15827_v12 = vor.u32 %v19559_v47, %v15826_v16  ;;  %10563 = vmatpush.bf16.msra.mxu0 %v15571_v56  ;;  %v10323_v56 = vadd.f32 %v10322_v3, %v10310_v18 }
 0xbc1   :  { %v19623_v20 = vld [vmem:[#allocation16 + $0xf34] sm:$0xf0] }
 0xbc2   :  { %v15282_v54 = vld [vmem:[#allocation16 + $0x8d8] sm:$0xf]  ;;  %v16083_v28 = vor.u32 %v19623_v20, %v16082_v49  ;;  %10576 = vmatpush.bf16.msra.mxu2 %v15827_v12 }
 0xbc3   :  { %v19423_v55 = vld [vmem:[#allocation16 + $0x8f4] sm:$0xf0] }
 0xbc4   :  { %v15538_v5 = vld [vmem:[#allocation16 + $0xad8] sm:$0xf]  ;;  %v15283_v13 = vor.u32 %v19423_v55, %v15282_v54  ;;  %10589 = vmatpush.bf16.msra.mxu1 %v16083_v28 }
 0xbc5   :  { %v19487_v4 = vld [vmem:[#allocation16 + $0xaf4] sm:$0xf0] }
 0xbc6   :  { %v15794_v8 = vld [vmem:[#allocation16 + $0xcd8] sm:$0xf]  ;;  %v15539_v34 = vor.u32 %v19487_v4, %v15538_v5  ;;  %10551 = vmatpush.bf16.msrb.mxu3 %v15283_v13 }
 0xbc7   :  { %v19551_v48 = vld [vmem:[#allocation16 + $0xcf4] sm:$0xf0] }
 0xbc8   :  { %v16050_v10 = vld [vmem:[#allocation16 + $0xed8] sm:$0xf]  ;;  %v15795_v25 = vor.u32 %v19551_v48, %v15794_v8  ;;  %10564 = vmatpush.bf16.msra.mxu0 %v15539_v34  ;;  %v10298_v34 = vpop.f32.mrf.mxu3 }
 0xbc9   :  { %v19615_v11 = vld [vmem:[#allocation16 + $0xef4] sm:$0xf0] }
 0xbca   :  { %v15250_v52 = vld [vmem:[#allocation16 + $0x898] sm:$0xf]  ;;  %v16051_v58 = vor.u32 %v19615_v11, %v16050_v10  ;;  %10577 = vmatpush.bf16.msra.mxu2 %v15795_v25  ;;  %v21534_v10 = vadd.f32 %v10335_v51, %v10323_v56 }
 0xbcb   :  { %v19415_v6 = vld [vmem:[#allocation16 + $0x8b4] sm:$0xf0] }
 0xbcc   :  { %v15506_v62 = vld [vmem:[#allocation16 + $0xa98] sm:$0xf]  ;;  %v15251_v38 = vor.u32 %v19415_v6, %v15250_v52  ;;  %10590 = vmatpush.bf16.msra.mxu1 %v16051_v58  ;;  %v10324_v58 = vpop.f32.mrf.mxu2 }
 0xbcd   :  { %v19479_v63 = vld [vmem:[#allocation16 + $0xab4] sm:$0xf0] }
 0xbce   :  { %v15762_v30 = vld [vmem:[#allocation16 + $0xc98] sm:$0xf]  ;;  %v15507_v40 = vor.u32 %v19479_v63, %v15506_v62  ;;  %10552 = vmatpush.bf16.msrb.mxu3 %v15251_v38 }
 0xbcf   :  { %v19543_v39 = vld [vmem:[#allocation16 + $0xcb4] sm:$0xf0] }
 0xbd0   :  { %v16018_v32 = vld [vmem:[#allocation16 + $0xe98] sm:$0xf]  ;;  %v15763_v47 = vor.u32 %v19543_v39, %v15762_v30  ;;  %10565 = vmatpush.bf16.msra.mxu0 %v15507_v40 }
 0xbd1   :  { %v19607_v33 = vld [vmem:[#allocation16 + $0xeb4] sm:$0xf0] }
 0xbd2   :  { %v15218_v7 = vld [vmem:[#allocation16 + $0x858] sm:$0xf]  ;;  %v16019_v49 = vor.u32 %v19607_v33, %v16018_v32  ;;  %10578 = vmatpush.bf16.msra.mxu2 %v15763_v47 }
 0xbd3   :  { %v19407_v16 = vld [vmem:[#allocation16 + $0x874] sm:$0xf0] }
 0xbd4   :  { %v15474_v20 = vld [vmem:[#allocation16 + $0xa58] sm:$0xf]  ;;  %v15219_v57 = vor.u32 %v19407_v16, %v15218_v7  ;;  %10591 = vmatpush.bf16.msra.mxu1 %v16019_v49 }
 0xbd5   :  { %v19471_v59 = vld [vmem:[#allocation16 + $0xa74] sm:$0xf0] }
 0xbd6   :  { %v15730_v9 = vld [vmem:[#allocation16 + $0xc58] sm:$0xf]  ;;  %v15475_v5 = vor.u32 %v19471_v59, %v15474_v20  ;;  %10553 = vmatpush.bf16.msrb.mxu3 %v15219_v57 }
 0xbd7   :  { %v19535_v54 = vld [vmem:[#allocation16 + $0xc74] sm:$0xf0] }
 0xbd8   :  { %v15986_v55 = vld [vmem:[#allocation16 + $0xe58] sm:$0xf]  ;;  %v15731_v11 = vor.u32 %v19535_v54, %v15730_v9  ;;  %10566 = vmatpush.bf16.msra.mxu0 %v15475_v5 }
 0xbd9   :  { %v19599_v12 = vld [vmem:[#allocation16 + $0xe74] sm:$0xf0] }
 0xbda   :  { %v15186_v28 = vld [vmem:[#allocation16 + $0x818] sm:$0xf]  ;;  %v15987_v13 = vor.u32 %v19599_v12, %v15986_v55  ;;  %10579 = vmatpush.bf16.msra.mxu2 %v15731_v11 }
 0xbdb   :  { %v19399_v4 = vld [vmem:[#allocation16 + $0x834] sm:$0xf0] }
 0xbdc   :  { %v15442_v8 = vld [vmem:[#allocation16 + $0xa18] sm:$0xf]  ;;  %v15187_v39 = vor.u32 %v19399_v4, %v15186_v28  ;;  %10592 = vmatpush.bf16.msra.mxu1 %v15987_v13 }
 0xbdd   :  { %v19463_v48 = vld [vmem:[#allocation16 + $0xa34] sm:$0xf0] }
 0xbde   :  { %v15698_v52 = vld [vmem:[#allocation16 + $0xc18] sm:$0xf]  ;;  %v15443_v51 = vor.u32 %v19463_v48, %v15442_v8  ;;  %10554 = vmatpush.bf16.msrb.mxu3 %v15187_v39 }
 0xbdf   :  { %v19527_v6 = vld [vmem:[#allocation16 + $0xc34] sm:$0xf0] }
 0xbe0   :  { %v15954_v25 = vld [vmem:[#allocation16 + $0xe18] sm:$0xf]  ;;  %v15699_v18 = vor.u32 %v19527_v6, %v15698_v52  ;;  %10567 = vmatpush.bf16.msra.mxu0 %v15443_v51 }
 0xbe1   :  { %v19591_v29 = vld [vmem:[#allocation16 + $0xe34] sm:$0xf0]  ;;  %10555 = vmatmul.bf16.vlgmr.msrb.gmra.mxu3 %v21277_v60 }
 0xbe2   :  { %v16434_v62 = vld [vmem:[#allocation16 + $0x11d8] sm:$0xf]  ;;  %v15955_v42 = vor.u32 %v19591_v29, %v15954_v25  ;;  %10580 = vmatpush.bf16.msra.mxu2 %v15699_v18  ;;  %v10387_v18 = vpop.f32.mrf.mxu1 }
 0xbe3   :  { %v19711_v63 = vld [vmem:[#allocation16 + $0x11f4] sm:$0xf0]  ;;  %10568 = vmatmul.bf16.vlgmr.msra.gmra.mxu0 %v21281_v61 }
 0xbe4   :  { %v16690_v30 = vld [vmem:[#allocation16 + $0x13d8] sm:$0xf]  ;;  %v16435_v38 = vor.u32 %v19711_v63, %v16434_v62  ;;  %10593 = vmatpush.bf16.msra.mxu1 %v15955_v42 }
 0xbe5   :  { %v19775_v0 = vld [vmem:[#allocation16 + $0x13f4] sm:$0xf0]  ;;  %10581 = vmatmul.bf16.vlgmr.msra.gmra.mxu2 %v21285_v1 }
 0xbe6   :  { %v16946_v3 = vld [vmem:[#allocation16 + $0x15d8] sm:$0xf]  ;;  %v16691_v40 = vor.u32 %v19775_v0, %v16690_v30  ;;  %10599 = vmatpush.bf16.msra.mxu3 %v16435_v38 }
 0xbe7   :  { %v19839_v32 = vld [vmem:[#allocation16 + $0x15f4] sm:$0xf0]  ;;  %10594 = vmatmul.bf16.vlgmr.msra.gmra.mxu1 %v21289_v2 }
 0xbe8   :  { %v17202_v33 = vld [vmem:[#allocation16 + $0x17d8] sm:$0xf]  ;;  %v16947_v47 = vor.u32 %v19839_v32, %v16946_v3  ;;  %10612 = vmatpush.bf16.msrb.mxu0 %v16691_v40 }
 0xbe9   :  { %v19903_v21 = vld [vmem:[#allocation16 + $0x17f4] sm:$0xf0] }
 0xbea   :  { %v16402_v7 = vld [vmem:[#allocation16 + $0x1198] sm:$0xf]  ;;  %v17203_v49 = vor.u32 %v19903_v21, %v17202_v33  ;;  %10625 = vmatpush.bf16.msrb.mxu2 %v16947_v47  ;;  %v10361_v21 = vpop.f32.mrf.mxu0 }
 0xbeb   :  { %v19703_v16 = vld [vmem:[#allocation16 + $0x11b4] sm:$0xf0] }
 0xbec   :  { %v16658_v20 = vld [vmem:[#allocation16 + $0x1398] sm:$0xf]  ;;  %v16403_v12 = vor.u32 %v19703_v16, %v16402_v7  ;;  %10638 = vmatpush.bf16.msrb.mxu1 %v17203_v49 }
 0xbed   :  { %v19767_v59 = vld [vmem:[#allocation16 + $0x13b4] sm:$0xf0] }
 0xbee   :  { %v16914_v9 = vld [vmem:[#allocation16 + $0x1598] sm:$0xf]  ;;  %v16659_v28 = vor.u32 %v19767_v59, %v16658_v20  ;;  %10600 = vmatpush.bf16.msra.mxu3 %v16403_v12 }
 0xbef   :  { %v19831_v56 = vld [vmem:[#allocation16 + $0x15b4] sm:$0xf0] }
 0xbf0   :  { %v17170_v54 = vld [vmem:[#allocation16 + $0x1798] sm:$0xf]  ;;  %v16915_v4 = vor.u32 %v19831_v56, %v16914_v9  ;;  %10613 = vmatpush.bf16.msrb.mxu0 %v16659_v28 }
 0xbf1   :  { %v19895_v55 = vld [vmem:[#allocation16 + $0x17b4] sm:$0xf0] }
 0xbf2   :  { %v16370_v57 = vld [vmem:[#allocation16 + $0x1158] sm:$0xf]  ;;  %v17171_v8 = vor.u32 %v19895_v55, %v17170_v54  ;;  %10626 = vmatpush.bf16.msrb.mxu2 %v16915_v4 }
 0xbf3   :  { %v19695_v5 = vld [vmem:[#allocation16 + $0x1174] sm:$0xf0] }
 0xbf4   :  { %v16626_v48 = vld [vmem:[#allocation16 + $0x1358] sm:$0xf]  ;;  %v16371_v25 = vor.u32 %v19695_v5, %v16370_v57  ;;  %10639 = vmatpush.bf16.msrb.mxu1 %v17171_v8  ;;  %v10348_v8 = vpop.f32.mrf.mxu3 }
 0xbf5   :  { %v19759_v11 = vld [vmem:[#allocation16 + $0x1374] sm:$0xf0] }
 0xbf6   :  { %v16882_v13 = vld [vmem:[#allocation16 + $0x1558] sm:$0xf]  ;;  %v16627_v58 = vor.u32 %v19759_v11, %v16626_v48  ;;  %10601 = vmatpush.bf16.msra.mxu3 %v16371_v25 }
 0xbf7   :  { %v19823_v34 = vld [vmem:[#allocation16 + $0x1574] sm:$0xf0] }
 0xbf8   :  { %v17138_v52 = vld [vmem:[#allocation16 + $0x1758] sm:$0xf]  ;;  %v16883_v63 = vor.u32 %v19823_v34, %v16882_v13  ;;  %10614 = vmatpush.bf16.msrb.mxu0 %v16627_v58  ;;  %v10349_v34 = vadd.f32 %v10348_v8, %v21534_v10 }
 0xbf9   :  { %v19887_v6 = vld [vmem:[#allocation16 + $0x1774] sm:$0xf0] }
 0xbfa   :  { %v16338_v29 = vld [vmem:[#allocation16 + $0x1118] sm:$0xf]  ;;  %v17139_v30 = vor.u32 %v19887_v6, %v17138_v52  ;;  %10627 = vmatpush.bf16.msrb.mxu2 %v16883_v63  ;;  %v10374_v52 = vpop.f32.mrf.mxu2  ;;  %v10389_v63 = vpop.f32.mrf.mxu1 }
 0xbfb   :  { %v19687_v62 = vld [vmem:[#allocation16 + $0x1134] sm:$0xf0] }
 0xbfc   :  { %v16594_v0 = vld [vmem:[#allocation16 + $0x1318] sm:$0xf]  ;;  %v16339_v42 = vor.u32 %v19687_v62, %v16338_v29  ;;  %10640 = vmatpush.bf16.msrb.mxu1 %v17139_v30  ;;  %v10363_v29 = vpop.f32.mrf.mxu0  ;;  %v10362_v62 = vadd.f32 %v10361_v21, %v10349_v34 }
 0xbfd   :  { %v19751_v3 = vld [vmem:[#allocation16 + $0x1334] sm:$0xf0] }
 0xbfe   :  { %v16850_v39 = vld [vmem:[#allocation16 + $0x1518] sm:$0xf]  ;;  %v16595_v38 = vor.u32 %v19751_v3, %v16594_v0  ;;  %10602 = vmatpush.bf16.msra.mxu3 %v16339_v42 }
 0xbff   :  { %v19815_v51 = vld [vmem:[#allocation16 + $0x1534] sm:$0xf0] }
 0xc00   :  { %v17106_v32 = vld [vmem:[#allocation16 + $0x1718] sm:$0xf]  ;;  %v16851_v16 = vor.u32 %v19815_v51, %v16850_v39  ;;  %10615 = vmatpush.bf16.msrb.mxu0 %v16595_v38  ;;  %v10375_v38 = vadd.f32 %v10374_v52, %v10362_v62 }
 0xc01   :  { %v19879_v33 = vld [vmem:[#allocation16 + $0x1734] sm:$0xf0] }
 0xc02   :  { %v16306_v40 = vld [vmem:[#allocation16 + $0x10d8] sm:$0xf]  ;;  %v17107_v47 = vor.u32 %v19879_v33, %v17106_v32  ;;  %10628 = vmatpush.bf16.msrb.mxu2 %v16851_v16 }
 0xc03   :  { %v19679_v7 = vld [vmem:[#allocation16 + $0x10f4] sm:$0xf0] }
 0xc04   :  { %v16562_v49 = vld [vmem:[#allocation16 + $0x12d8] sm:$0xf]  ;;  %v16307_v55 = vor.u32 %v19679_v7, %v16306_v40  ;;  %10641 = vmatpush.bf16.msrb.mxu1 %v17107_v47 }
 0xc05   :  { %v19743_v20 = vld [vmem:[#allocation16 + $0x12f4] sm:$0xf0] }
 0xc06   :  { %v16818_v59 = vld [vmem:[#allocation16 + $0x14d8] sm:$0xf]  ;;  %v16563_v12 = vor.u32 %v19743_v20, %v16562_v49  ;;  %10603 = vmatpush.bf16.msra.mxu3 %v16307_v55 }
 0xc07   :  { %v19807_v9 = vld [vmem:[#allocation16 + $0x14f4] sm:$0xf0] }
 0xc08   :  { %v17074_v56 = vld [vmem:[#allocation16 + $0x16d8] sm:$0xf]  ;;  %v16819_v5 = vor.u32 %v19807_v9, %v16818_v59  ;;  %10616 = vmatpush.bf16.msrb.mxu0 %v16563_v12  ;;  %v10350_v12 = vpop.f32.mrf.mxu3 }
 0xc09   :  { %v19871_v54 = vld [vmem:[#allocation16 + $0x16f4] sm:$0xf0] }
 0xc0a   :  { %v16274_v28 = vld [vmem:[#allocation16 + $0x1098] sm:$0xf]  ;;  %v17075_v4 = vor.u32 %v19871_v54, %v17074_v56  ;;  %10629 = vmatpush.bf16.msrb.mxu2 %v16819_v5  ;;  %v21541_v56 = vadd.f32 %v10387_v18, %v10375_v38 }
 0xc0b   :  { %v19671_v57 = vld [vmem:[#allocation16 + $0x10b4] sm:$0xf0] }
 0xc0c   :  { %v16530_v48 = vld [vmem:[#allocation16 + $0x1298] sm:$0xf]  ;;  %v16275_v30 = vor.u32 %v19671_v57, %v16274_v28  ;;  %10642 = vmatpush.bf16.msrb.mxu1 %v17075_v4  ;;  %v10376_v4 = vpop.f32.mrf.mxu2 }
 0xc0d   :  { %v19735_v11 = vld [vmem:[#allocation16 + $0x12b4] sm:$0xf0] }
 0xc0e   :  { %v16786_v13 = vld [vmem:[#allocation16 + $0x1498] sm:$0xf]  ;;  %v16531_v0 = vor.u32 %v19735_v11, %v16530_v48  ;;  %10604 = vmatpush.bf16.msra.mxu3 %v16275_v30 }
 0xc0f   :  { %v19799_v6 = vld [vmem:[#allocation16 + $0x14b4] sm:$0xf0] }
 0xc10   :  { %v17042_v25 = vld [vmem:[#allocation16 + $0x1698] sm:$0xf]  ;;  %v16787_v51 = vor.u32 %v19799_v6, %v16786_v13  ;;  %10617 = vmatpush.bf16.msrb.mxu0 %v16531_v0 }
 0xc11   :  { %v19863_v58 = vld [vmem:[#allocation16 + $0x16b4] sm:$0xf0] }
 0xc12   :  { %v16242_v3 = vld [vmem:[#allocation16 + $0x1058] sm:$0xf]  ;;  %v17043_v32 = vor.u32 %v19863_v58, %v17042_v25  ;;  %10630 = vmatpush.bf16.msrb.mxu2 %v16787_v51 }
 0xc13   :  { %v19663_v39 = vld [vmem:[#allocation16 + $0x1074] sm:$0xf0] }
 0xc14   :  { %v16498_v33 = vld [vmem:[#allocation16 + $0x1258] sm:$0xf]  ;;  %v16243_v21 = vor.u32 %v19663_v39, %v16242_v3  ;;  %10643 = vmatpush.bf16.msrb.mxu1 %v17043_v32 }
 0xc15   :  { %v19727_v42 = vld [vmem:[#allocation16 + $0x1274] sm:$0xf0] }
 0xc16   :  { %v16754_v10 = vld [vmem:[#allocation16 + $0x1458] sm:$0xf]  ;;  %v16499_v49 = vor.u32 %v19727_v42, %v16498_v33  ;;  %10605 = vmatpush.bf16.msra.mxu3 %v16243_v21 }
 0xc17   :  { %v19791_v40 = vld [vmem:[#allocation16 + $0x1474] sm:$0xf0] }
 0xc18   :  { %v17010_v7 = vld [vmem:[#allocation16 + $0x1658] sm:$0xf]  ;;  %v16755_v54 = vor.u32 %v19791_v40, %v16754_v10  ;;  %10618 = vmatpush.bf16.msrb.mxu0 %v16499_v49 }
 0xc19   :  { %v19855_v16 = vld [vmem:[#allocation16 + $0x1674] sm:$0xf0] }
 0xc1a   :  { %v16210_v47 = vld [vmem:[#allocation16 + $0x1018] sm:$0xf]  ;;  %v17011_v55 = vor.u32 %v19855_v16, %v17010_v7  ;;  %10631 = vmatpush.bf16.msrb.mxu2 %v16755_v54 }
 0xc1b   :  { %v19655_v20 = vld [vmem:[#allocation16 + $0x1034] sm:$0xf0] }
 0xc1c   :  { %v16466_v59 = vld [vmem:[#allocation16 + $0x1218] sm:$0xf]  ;;  %v16211_v6 = vor.u32 %v19655_v20, %v16210_v47  ;;  %10644 = vmatpush.bf16.msrb.mxu1 %v17011_v55 }
 0xc1d   :  { %v19719_v9 = vld [vmem:[#allocation16 + $0x1234] sm:$0xf0] }
 0xc1e   :  { %v16722_v28 = vld [vmem:[#allocation16 + $0x1418] sm:$0xf]  ;;  %v16467_v18 = vor.u32 %v19719_v9, %v16466_v59  ;;  %10606 = vmatpush.bf16.msra.mxu3 %v16211_v6 }
 0xc1f   :  { %v19783_v57 = vld [vmem:[#allocation16 + $0x1434] sm:$0xf0] }
 0xc20   :  { %v16978_v5 = vld [vmem:[#allocation16 + $0x1618] sm:$0xf]  ;;  %v16723_v62 = vor.u32 %v19783_v57, %v16722_v28  ;;  %10619 = vmatpush.bf16.msrb.mxu0 %v16467_v18 }
 0xc21   :  { %v19847_v8 = vld [vmem:[#allocation16 + $0x1634] sm:$0xf0]  ;;  %10607 = vmatmul.bf16.vlgmr.msra.gmra.mxu3 %v21297_v36 }
 0xc22   :  { %v17458_v48 = vld [vmem:[#allocation16 + $0x19d8] sm:$0xf]  ;;  %v16979_v63 = vor.u32 %v19847_v8, %v16978_v5  ;;  %10632 = vmatpush.bf16.msrb.mxu2 %v16723_v62  ;;  %v10439_v62 = vpop.f32.mrf.mxu1 }
 0xc23   :  { %v19967_v11 = vld [vmem:[#allocation16 + $0x19f4] sm:$0xf0]  ;;  %10620 = vmatmul.bf16.vlgmr.msrb.gmra.mxu0 %v21301_v37 }
 0xc24   :  { %v17714_v13 = vld [vmem:[#allocation16 + $0x1bd8] sm:$0xf]  ;;  %v17459_v30 = vor.u32 %v19967_v11, %v17458_v48  ;;  %10645 = vmatpush.bf16.msrb.mxu1 %v16979_v63 }
 0xc25   :  { %v20031_v34 = vld [vmem:[#allocation16 + $0x1bf4] sm:$0xf0]  ;;  %10633 = vmatmul.bf16.vlgmr.msrb.gmra.mxu2 %v21305_v41 }
 0xc26   :  { %v17970_v52 = vld [vmem:[#allocation16 + $0x1dd8] sm:$0xf]  ;;  %v17715_v0 = vor.u32 %v20031_v34, %v17714_v13  ;;  %10651 = vmatpush.bf16.msrb.mxu3 %v17459_v30 }
 0xc27   :  { %v20095_v25 = vld [vmem:[#allocation16 + $0x1df4] sm:$0xf0]  ;;  %10646 = vmatmul.bf16.vlgmr.msrb.gmra.mxu1 %v21309_v46 }
 0xc28   :  { %v18226_v58 = vld [vmem:[#allocation16 + $0x1fd8] sm:$0xf]  ;;  %v17971_v51 = vor.u32 %v20095_v25, %v17970_v52  ;;  %10664 = vmatpush.bf16.msra.mxu0 %v17715_v0 }
 0xc29   :  { %v20159_v29 = vld [vmem:[#allocation16 + $0x1ff4] sm:$0xf0] }
 0xc2a   :  { %v17426_v3 = vld [vmem:[#allocation16 + $0x1998] sm:$0xf]  ;;  %v18227_v32 = vor.u32 %v20159_v29, %v18226_v58  ;;  %10677 = vmatpush.bf16.msra.mxu2 %v17971_v51  ;;  %v10413_v29 = vpop.f32.mrf.mxu0 }
 0xc2b   :  { %v19959_v39 = vld [vmem:[#allocation16 + $0x19b4] sm:$0xf0] }
 0xc2c   :  { %v17682_v33 = vld [vmem:[#allocation16 + $0x1b98] sm:$0xf]  ;;  %v17427_v16 = vor.u32 %v19959_v39, %v17426_v3  ;;  %10690 = vmatpush.bf16.msra.mxu1 %v18227_v32 }
 0xc2d   :  { %v20023_v42 = vld [vmem:[#allocation16 + $0x1bb4] sm:$0xf0] }
 0xc2e   :  { %v17938_v10 = vld [vmem:[#allocation16 + $0x1d98] sm:$0xf]  ;;  %v17683_v47 = vor.u32 %v20023_v42, %v17682_v33  ;;  %10652 = vmatpush.bf16.msrb.mxu3 %v17427_v16 }
 0xc2f   :  { %v20087_v38 = vld [vmem:[#allocation16 + $0x1db4] sm:$0xf0] }
 0xc30   :  { %v18194_v40 = vld [vmem:[#allocation16 + $0x1f98] sm:$0xf]  ;;  %v17939_v20 = vor.u32 %v20087_v38, %v17938_v10  ;;  %10665 = vmatpush.bf16.msra.mxu0 %v17683_v47 }
 0xc31   :  { %v20151_v7 = vld [vmem:[#allocation16 + $0x1fb4] sm:$0xf0] }
 0xc32   :  { %v17394_v21 = vld [vmem:[#allocation16 + $0x1958] sm:$0xf]  ;;  %v18195_v59 = vor.u32 %v20151_v7, %v18194_v40  ;;  %10678 = vmatpush.bf16.msra.mxu2 %v17939_v20 }
 0xc33   :  { %v19951_v49 = vld [vmem:[#allocation16 + $0x1974] sm:$0xf0] }
 0xc34   :  { %v17650_v9 = vld [vmem:[#allocation16 + $0x1b58] sm:$0xf]  ;;  %v17395_v5 = vor.u32 %v19951_v49, %v17394_v21  ;;  %10691 = vmatpush.bf16.msra.mxu1 %v18195_v59  ;;  %v10400_v59 = vpop.f32.mrf.mxu3 }
 0xc35   :  { %v20015_v54 = vld [vmem:[#allocation16 + $0x1b74] sm:$0xf0] }
 0xc36   :  { %v17906_v55 = vld [vmem:[#allocation16 + $0x1d58] sm:$0xf]  ;;  %v17651_v4 = vor.u32 %v20015_v54, %v17650_v9  ;;  %10653 = vmatpush.bf16.msrb.mxu3 %v17395_v5 }
 0xc37   :  { %v20079_v12 = vld [vmem:[#allocation16 + $0x1d74] sm:$0xf0] }
 0xc38   :  { %v18162_v28 = vld [vmem:[#allocation16 + $0x1f58] sm:$0xf]  ;;  %v17907_v11 = vor.u32 %v20079_v12, %v17906_v55  ;;  %10666 = vmatpush.bf16.msra.mxu0 %v17651_v4  ;;  %v10401_v12 = vadd.f32 %v10400_v59, %v21541_v56 }
 0xc39   :  { %v20143_v57 = vld [vmem:[#allocation16 + $0x1f74] sm:$0xf0] }
 0xc3a   :  { %v17362_v8 = vld [vmem:[#allocation16 + $0x1918] sm:$0xf]  ;;  %v18163_v13 = vor.u32 %v20143_v57, %v18162_v28  ;;  %10679 = vmatpush.bf16.msra.mxu2 %v17907_v11  ;;  %v10426_v28 = vpop.f32.mrf.mxu2  ;;  %v10441_v11 = vpop.f32.mrf.mxu1 }
 0xc3b   :  { %v19943_v48 = vld [vmem:[#allocation16 + $0x1934] sm:$0xf0] }
 0xc3c   :  { %v17618_v34 = vld [vmem:[#allocation16 + $0x1b18] sm:$0xf]  ;;  %v17363_v63 = vor.u32 %v19943_v48, %v17362_v8  ;;  %10692 = vmatpush.bf16.msra.mxu1 %v18163_v13  ;;  %v10415_v8 = vpop.f32.mrf.mxu0  ;;  %v10414_v48 = vadd.f32 %v10413_v29, %v10401_v12  ;;  %v14644_v12 = vld [vmem:[#allocation16 + $0x3f8] sm:$0xf0] }
 0xc3d   :  { %v20007_v52 = vld [vmem:[#allocation16 + $0x1b34] sm:$0xf0]  ;;  %v15156_v8 = vld [vmem:[#allocation16 + $0x7f8] sm:$0xf0] }
 0xc3e   :  { %v17874_v6 = vld [vmem:[#allocation16 + $0x1d18] sm:$0xf]  ;;  %v17619_v30 = vor.u32 %v20007_v52, %v17618_v34  ;;  %10654 = vmatpush.bf16.msrb.mxu3 %v17363_v63 }
 0xc3f   :  { %v20071_v18 = vld [vmem:[#allocation16 + $0x1d34] sm:$0xf0] }
 0xc40   :  { %v18130_v25 = vld [vmem:[#allocation16 + $0x1f18] sm:$0xf]  ;;  %v17875_v39 = vor.u32 %v20071_v18, %v17874_v6  ;;  %10667 = vmatpush.bf16.msra.mxu0 %v17619_v30  ;;  %v10427_v30 = vadd.f32 %v10426_v28, %v10414_v48  ;;  %v19323_v28 = vld [vmem:[#allocation16 + $0x5dc] sm:$0xf] }
 0xc41   :  { %v20135_v58 = vld [vmem:[#allocation16 + $0x1f34] sm:$0xf0] }
 0xc42   :  { %v17330_v0 = vld [vmem:[#allocation16 + $0x18d8] sm:$0xf]  ;;  %v18131_v51 = vor.u32 %v20135_v58, %v18130_v25  ;;  %10680 = vmatpush.bf16.msra.mxu2 %v17875_v39 }
 0xc43   :  { %v19935_v3 = vld [vmem:[#allocation16 + $0x18f4] sm:$0xf0] }
 0xc44   :  { %v17586_v32 = vld [vmem:[#allocation16 + $0x1ad8] sm:$0xf]  ;;  %v17331_v7 = vor.u32 %v19935_v3, %v17330_v0  ;;  %10693 = vmatpush.bf16.msra.mxu1 %v18131_v51 }
 0xc45   :  { %v19999_v33 = vld [vmem:[#allocation16 + $0x1af4] sm:$0xf0] }
 0xc46   :  { %v17842_v42 = vld [vmem:[#allocation16 + $0x1cd8] sm:$0xf]  ;;  %v17587_v16 = vor.u32 %v19999_v33, %v17586_v32  ;;  %10655 = vmatpush.bf16.msrb.mxu3 %v17331_v7 }
 0xc47   :  { %v20063_v10 = vld [vmem:[#allocation16 + $0x1cf4] sm:$0xf0] }
 0xc48   :  { %v18098_v38 = vld [vmem:[#allocation16 + $0x1ed8] sm:$0xf]  ;;  %v17843_v49 = vor.u32 %v20063_v10, %v17842_v42  ;;  %10668 = vmatpush.bf16.msra.mxu0 %v17587_v16  ;;  %v10402_v16 = vpop.f32.mrf.mxu3 }
 0xc49   :  { %v20127_v40 = vld [vmem:[#allocation16 + $0x1ef4] sm:$0xf0]  ;;  %v14836_v16 = vld [vmem:[#allocation16 + $0x578] sm:$0xf0] }
 0xc4a   :  { %v17298_v47 = vld [vmem:[#allocation16 + $0x1898] sm:$0xf]  ;;  %v18099_v20 = vor.u32 %v20127_v40, %v18098_v38  ;;  %10681 = vmatpush.bf16.msra.mxu2 %v17843_v49  ;;  %v21548_v38 = vadd.f32 %v10439_v62, %v10427_v30  ;;  %v14868_v30 = vld [vmem:[#allocation16 + $0x5b8] sm:$0xf0] }
 0xc4b   :  { %v19927_v21 = vld [vmem:[#allocation16 + $0x18b4] sm:$0xf0] }
 0xc4c   :  { %v17554_v9 = vld [vmem:[#allocation16 + $0x1a98] sm:$0xf]  ;;  %v17299_v13 = vor.u32 %v19927_v21, %v17298_v47  ;;  %10694 = vmatpush.bf16.msra.mxu1 %v18099_v20  ;;  %v10428_v20 = vpop.f32.mrf.mxu2 }
 0xc4d   :  { %v19991_v54 = vld [vmem:[#allocation16 + $0x1ab4] sm:$0xf0] }
 0xc4e   :  { %v17810_v55 = vld [vmem:[#allocation16 + $0x1c98] sm:$0xf]  ;;  %v17555_v34 = vor.u32 %v19991_v54, %v17554_v9  ;;  %10656 = vmatpush.bf16.msrb.mxu3 %v17299_v13  ;;  %v19195_v9 = vld [vmem:[#allocation16 + $0x1dc] sm:$0xf] }
 0xc4f   :  { %v20055_v57 = vld [vmem:[#allocation16 + $0x1cb4] sm:$0xf0]  ;;  %v14388_v54 = vld [vmem:[#allocation16 + $0x1f8] sm:$0xf0] }
 0xc50   :  { %v18066_v5 = vld [vmem:[#allocation16 + $0x1e98] sm:$0xf]  ;;  %v17811_v18 = vor.u32 %v20055_v57, %v17810_v55  ;;  %10669 = vmatpush.bf16.msra.mxu0 %v17555_v34  ;;  %v19259_v55 = vld [vmem:[#allocation16 + $0x3dc] sm:$0xf]  ;;  %v14391_v13 = vor.u32 %v19195_v9, %v14388_v54 }
 0xc51   :  { %v20119_v4 = vld [vmem:[#allocation16 + $0x1eb4] sm:$0xf0]  ;;  %v14647_v34 = vor.u32 %v19259_v55, %v14644_v12  ;;  %v14292_v9 = vld [vmem:[#allocation16 + $0x138] sm:$0xf0] }
 0xc52   :  { %v17266_v52 = vld [vmem:[#allocation16 + $0x1858] sm:$0xf]  ;;  %v18067_v25 = vor.u32 %v20119_v4, %v18066_v5  ;;  %10682 = vmatpush.bf16.msra.mxu2 %v17811_v18  ;;  %v14900_v5 = vld [vmem:[#allocation16 + $0x5f8] sm:$0xf0] }
 0xc53   :  { %v19919_v6 = vld [vmem:[#allocation16 + $0x1874] sm:$0xf0]  ;;  %v19387_v4 = vld [vmem:[#allocation16 + $0x7dc] sm:$0xf]  ;;  %v14903_v18 = vor.u32 %v19323_v28, %v14900_v5 }
 0xc54   :  { %v17522_v58 = vld [vmem:[#allocation16 + $0x1a58] sm:$0xf]  ;;  %v17267_v29 = vor.u32 %v19919_v6, %v17266_v52  ;;  %10695 = vmatpush.bf16.msra.mxu1 %v18067_v25  ;;  %v19187_v52 = vld [vmem:[#allocation16 + $0x19c] sm:$0xf]  ;;  %v15159_v25 = vor.u32 %v19387_v4, %v15156_v8  ;;  %v10465_v8 = vpop.f32.mrf.mxu0 }
 0xc55   :  { %v19983_v63 = vld [vmem:[#allocation16 + $0x1a74] sm:$0xf0]  ;;  %v14356_v6 = vld [vmem:[#allocation16 + $0x1b8] sm:$0xf0] }
 0xc56   :  { %v17778_v56 = vld [vmem:[#allocation16 + $0x1c58] sm:$0xf]  ;;  %v17523_v32 = vor.u32 %v19983_v63, %v17522_v58  ;;  %10657 = vmatpush.bf16.msrb.mxu3 %v17267_v29  ;;  %v19251_v58 = vld [vmem:[#allocation16 + $0x39c] sm:$0xf] }
 0xc57   :  { %v20047_v0 = vld [vmem:[#allocation16 + $0x1c74] sm:$0xf0]  ;;  %v14612_v63 = vld [vmem:[#allocation16 + $0x3b8] sm:$0xf0] }
 0xc58   :  { %v18034_v3 = vld [vmem:[#allocation16 + $0x1e58] sm:$0xf]  ;;  %v17779_v40 = vor.u32 %v20047_v0, %v17778_v56  ;;  %10670 = vmatpush.bf16.msra.mxu0 %v17523_v32  ;;  %v19315_v56 = vld [vmem:[#allocation16 + $0x59c] sm:$0xf] }
 0xc59   :  { %v20111_v39 = vld [vmem:[#allocation16 + $0x1e74] sm:$0xf0]  ;;  %v19379_v0 = vld [vmem:[#allocation16 + $0x79c] sm:$0xf] }
 0xc5a   :  { %v17234_v51 = vld [vmem:[#allocation16 + $0x1818] sm:$0xf]  ;;  %v18035_v7 = vor.u32 %v20111_v39, %v18034_v3  ;;  %10683 = vmatpush.bf16.msra.mxu2 %v17779_v40  ;;  %v15124_v3 = vld [vmem:[#allocation16 + $0x7b8] sm:$0xf0]  ;;  %v14359_v39 = vor.u32 %v19187_v52, %v14356_v6 }
 0xc5b   :  { %v19911_v33 = vld [vmem:[#allocation16 + $0x1834] sm:$0xf0]  ;;  %v19179_v29 = vld [vmem:[#allocation16 + $0x15c] sm:$0xf] }
 0xc5c   :  { %v17490_v42 = vld [vmem:[#allocation16 + $0x1a18] sm:$0xf]  ;;  %v17235_v57 = vor.u32 %v19911_v33, %v17234_v51  ;;  %10696 = vmatpush.bf16.msra.mxu1 %v18035_v7  ;;  %v14615_v51 = vor.u32 %v19251_v58, %v14612_v63  ;;  %v14324_v32 = vld [vmem:[#allocation16 + $0x178] sm:$0xf0]  ;;  %v14871_v33 = vor.u32 %v19315_v56, %v14868_v30 }
 0xc5d   :  { %v19975_v10 = vld [vmem:[#allocation16 + $0x1a34] sm:$0xf0]  ;;  %v14580_v40 = vld [vmem:[#allocation16 + $0x378] sm:$0xf0] }
 0xc5e   :  { %v17746_v47 = vld [vmem:[#allocation16 + $0x1c18] sm:$0xf]  ;;  %v17491_v62 = vor.u32 %v19975_v10, %v17490_v42  ;;  %10658 = vmatpush.bf16.msrb.mxu3 %v17235_v57  ;;  %v15127_v42 = vor.u32 %v19379_v0, %v15124_v3  ;;  %v19243_v10 = vld [vmem:[#allocation16 + $0x35c] sm:$0xf] }
 0xc5f   :  { %v20039_v21 = vld [vmem:[#allocation16 + $0x1c34] sm:$0xf0]  ;;  %v19307_v7 = vld [vmem:[#allocation16 + $0x55c] sm:$0xf]  ;;  %v14583_v20 = vor.u32 %v19243_v10, %v14580_v40 }
 0xc60   :  { %v18002_v49 = vld [vmem:[#allocation16 + $0x1e18] sm:$0xf]  ;;  %v17747_v48 = vor.u32 %v20039_v21, %v17746_v47  ;;  %10671 = vmatpush.bf16.msra.mxu0 %v17491_v62  ;;  %v19371_v47 = vld [vmem:[#allocation16 + $0x75c] sm:$0xf]  ;;  %v14839_v54 = vor.u32 %v19307_v7, %v14836_v16 }
 0xc61   :  { %v20103_v59 = vld [vmem:[#allocation16 + $0x1e34] sm:$0xf0]  ;;  %10659 = vmatmul.bf16.vlgmr.msrb.gmra.mxu3 %v21317_v43  ;;  %v15092_v21 = vld [vmem:[#allocation16 + $0x778] sm:$0xf0] }
 0xc62   :  { %v18003_v11 = vor.u32 %v20103_v59, %v18002_v49  ;;  %10684 = vmatpush.bf16.msra.mxu2 %v17747_v48  ;;  %10703 = vmatpush.bf16.msra.mxu3 %v14391_v13  ;;  %v14327_v49 = vor.u32 %v19179_v29, %v14324_v32  ;;  %v19171_v59 = vld [vmem:[#allocation16 + $0x11c] sm:$0xf]  ;;  %v15095_v55 = vor.u32 %v19371_v47, %v15092_v21  ;;  %v10491_v48 = vpop.f32.mrf.mxu1  ;;  %v10478_v47 = vpop.f32.mrf.mxu2 }
 0xc63   :  { %10672 = vmatmul.bf16.vlgmr.msra.gmra.mxu0 %v21321_v45  ;;  %v19235_v12 = vld [vmem:[#allocation16 + $0x31c] sm:$0xf] }
 0xc64   :  { %10697 = vmatpush.bf16.msra.mxu1 %v18003_v11  ;;  %10716 = vmatpush.bf16.msrb.mxu0 %v14647_v34  ;;  %v14548_v28 = vld [vmem:[#allocation16 + $0x338] sm:$0xf0]  ;;  %v14295_v11 = vor.u32 %v19171_v59, %v14292_v9  ;;  %v10467_v59 = vpop.f32.mrf.mxu0 }
 0xc65   :  { %10685 = vmatmul.bf16.vlgmr.msra.gmra.mxu2 %v21325_v26  ;;  %v19299_v57 = vld [vmem:[#allocation16 + $0x51c] sm:$0xf]  ;;  %v14551_v13 = vor.u32 %v19235_v12, %v14548_v28 }
 0xc66   :  { %10729 = vmatpush.bf16.msrb.mxu2 %v14903_v18  ;;  %10704 = vmatpush.bf16.msra.mxu3 %v14359_v39  ;;  %v14804_v62 = vld [vmem:[#allocation16 + $0x538] sm:$0xf0] }
 0xc67   :  { %10698 = vmatmul.bf16.vlgmr.msra.gmra.mxu1 %v21329_v27  ;;  %v19363_v5 = vld [vmem:[#allocation16 + $0x71c] sm:$0xf]  ;;  %v14807_v6 = vor.u32 %v19299_v57, %v14804_v62 }
 0xc68   :  { %10742 = vmatpush.bf16.msrb.mxu1 %v15159_v25  ;;  %10717 = vmatpush.bf16.msrb.mxu0 %v14615_v51  ;;  %v15060_v4 = vld [vmem:[#allocation16 + $0x738] sm:$0xf0] }
 0xc69   :  { %v19163_v34 = vld [vmem:[#allocation16 + $0xdc] sm:$0xf]  ;;  %v15063_v18 = vor.u32 %v19363_v5, %v15060_v4 }
 0xc6a   :  { %10730 = vmatpush.bf16.msrb.mxu2 %v14871_v33  ;;  %10705 = vmatpush.bf16.msra.mxu3 %v14327_v49  ;;  %v14260_v52 = vld [vmem:[#allocation16 + $0xf8] sm:$0xf0] }
 0xc6b   :  { %v19227_v25 = vld [vmem:[#allocation16 + $0x2dc] sm:$0xf]  ;;  %v14263_v3 = vor.u32 %v19163_v34, %v14260_v52 }
 0xc6c   :  { %10743 = vmatpush.bf16.msrb.mxu1 %v15127_v42  ;;  %10718 = vmatpush.bf16.msrb.mxu0 %v14583_v20  ;;  %v14516_v58 = vld [vmem:[#allocation16 + $0x2f8] sm:$0xf0]  ;;  %v10452_v42 = vpop.f32.mrf.mxu3 }
 0xc6d   :  { %v19291_v63 = vld [vmem:[#allocation16 + $0x4dc] sm:$0xf]  ;;  %v14519_v39 = vor.u32 %v19227_v25, %v14516_v58  ;;  %v10453_v16 = vadd.f32 %v10452_v42, %v21548_v38 }
 0xc6e   :  { %10731 = vmatpush.bf16.msrb.mxu2 %v14839_v54  ;;  %v14772_v56 = vld [vmem:[#allocation16 + $0x4f8] sm:$0xf0]  ;;  %10706 = vmatpush.bf16.msra.mxu3 %v14295_v11  ;;  %v10493_v54 = vpop.f32.mrf.mxu1 }
 0xc6f   :  { %v19355_v30 = vld [vmem:[#allocation16 + $0x6dc] sm:$0xf]  ;;  %v14775_v32 = vor.u32 %v19291_v63, %v14772_v56  ;;  %v10466_v9 = vadd.f32 %v10465_v8, %v10453_v16 }
 0xc70   :  { %10744 = vmatpush.bf16.msrb.mxu1 %v15095_v55  ;;  %v15028_v0 = vld [vmem:[#allocation16 + $0x6f8] sm:$0xf0]  ;;  %10719 = vmatpush.bf16.msrb.mxu0 %v14551_v13 }
 0xc71   :  { %v19155_v51 = vld [vmem:[#allocation16 + $0x9c] sm:$0xf]  ;;  %v15031_v33 = vor.u32 %v19355_v30, %v15028_v0  ;;  %v10479_v13 = vadd.f32 %v10478_v47, %v10466_v9 }
 0xc72   :  { %v14228_v29 = vld [vmem:[#allocation16 + $0xb8] sm:$0xf0]  ;;  %10732 = vmatpush.bf16.msrb.mxu2 %v14807_v6  ;;  %10707 = vmatpush.bf16.msra.mxu3 %v14263_v3 }
 0xc73   :  { %v19219_v10 = vld [vmem:[#allocation16 + $0x29c] sm:$0xf]  ;;  %v14231_v55 = vor.u32 %v19155_v51, %v14228_v29  ;;  %v21555_v25 = vadd.f32 %v10491_v48, %v10479_v13 }
 0xc74   :  { %10745 = vmatpush.bf16.msrb.mxu1 %v15063_v18  ;;  %v14484_v40 = vld [vmem:[#allocation16 + $0x2b8] sm:$0xf0]  ;;  %10720 = vmatpush.bf16.msrb.mxu0 %v14519_v39  ;;  %v10454_v39 = vpop.f32.mrf.mxu3 }
 0xc75   :  { %v19283_v7 = vld [vmem:[#allocation16 + $0x49c] sm:$0xf]  ;;  %v14487_v12 = vor.u32 %v19219_v10, %v14484_v40 }
 0xc76   :  { %v14740_v21 = vld [vmem:[#allocation16 + $0x4b8] sm:$0xf0]  ;;  %10733 = vmatpush.bf16.msrb.mxu2 %v14775_v32  ;;  %10708 = vmatpush.bf16.msra.mxu3 %v14231_v55 }
 0xc77   :  { %v19347_v49 = vld [vmem:[#allocation16 + $0x69c] sm:$0xf]  ;;  %v14743_v62 = vor.u32 %v19283_v7, %v14740_v21 }
 0xc78   :  { %v14996_v20 = vld [vmem:[#allocation16 + $0x6b8] sm:$0xf0]  ;;  %10746 = vmatpush.bf16.msrb.mxu1 %v15031_v33  ;;  %10721 = vmatpush.bf16.msrb.mxu0 %v14487_v12  ;;  %v10480_v33 = vpop.f32.mrf.mxu2 }
 0xc79   :  { %v19147_v28 = vld [vmem:[#allocation16 + $0x5c] sm:$0xf]  ;;  %v14999_v5 = vor.u32 %v19347_v49, %v14996_v20 }
 0xc7a   :  { %v14196_v57 = vld [vmem:[#allocation16 + $0x78] sm:$0xf0]  ;;  %10734 = vmatpush.bf16.msrb.mxu2 %v14743_v62 }
 0xc7b   :  { %v19211_v4 = vld [vmem:[#allocation16 + $0x25c] sm:$0xf]  ;;  %v14199_v8 = vor.u32 %v19147_v28, %v14196_v57 }
 0xc7c   :  { %v14452_v11 = vld [vmem:[#allocation16 + $0x278] sm:$0xf0]  ;;  %10747 = vmatpush.bf16.msrb.mxu1 %v14999_v5 }
 0xc7d   :  { %v19275_v38 = vld [vmem:[#allocation16 + $0x45c] sm:$0xf]  ;;  %v14455_v58 = vor.u32 %v19211_v4, %v14452_v11  ;;  %10709 = vmatpush.bf16.msra.mxu3 %v14199_v8 }
 0xc7e   :  { %v14708_v34 = vld [vmem:[#allocation16 + $0x478] sm:$0xf0] }
 0xc7f   :  { %v19339_v52 = vld [vmem:[#allocation16 + $0x65c] sm:$0xf]  ;;  %v14711_v0 = vor.u32 %v19275_v38, %v14708_v34  ;;  %10722 = vmatpush.bf16.msrb.mxu0 %v14455_v58 }
 0xc80   :  { %v14964_v6 = vld [vmem:[#allocation16 + $0x678] sm:$0xf0] }
 0xc81   :  { %v19139_v18 = vld [vmem:[#allocation16 + $0x1c] sm:$0xf]  ;;  %v14967_v3 = vor.u32 %v19339_v52, %v14964_v6  ;;  %10735 = vmatpush.bf16.msrb.mxu2 %v14711_v0 }
 0xc82   :  { %v14164_v63 = vld [vmem:[#allocation16 + $0x38] sm:$0xf0] }
 0xc83   :  { %v19203_v56 = vld [vmem:[#allocation16 + $0x21c] sm:$0xf]  ;;  %v14167_v47 = vor.u32 %v19139_v18, %v14164_v63  ;;  %10748 = vmatpush.bf16.msrb.mxu1 %v14967_v3 }
 0xc84   :  { %v14420_v30 = vld [vmem:[#allocation16 + $0x238] sm:$0xf0] }
 0xc85   :  { %v19267_v51 = vld [vmem:[#allocation16 + $0x41c] sm:$0xf]  ;;  %v14423_v21 = vor.u32 %v19203_v56, %v14420_v30  ;;  %10710 = vmatpush.bf16.msra.mxu3 %v14167_v47 }
 0xc86   :  { %v14676_v29 = vld [vmem:[#allocation16 + $0x438] sm:$0xf0] }
 0xc87   :  { %v19331_v32 = vld [vmem:[#allocation16 + $0x61c] sm:$0xf]  ;;  %v14679_v9 = vor.u32 %v19267_v51, %v14676_v29  ;;  %10723 = vmatpush.bf16.msrb.mxu0 %v14423_v21 }
 0xc88   :  { %v14932_v42 = vld [vmem:[#allocation16 + $0x638] sm:$0xf0]  ;;  %10711 = vmatmul.bf16.vlgmr.msra.gmra.mxu3 %v21257_v14 }
 0xc89   :  { %v19451_v10 = vld [vmem:[#allocation16 + $0x9dc] sm:$0xf]  ;;  %v14935_v54 = vor.u32 %v19331_v32, %v14932_v42  ;;  %10736 = vmatpush.bf16.msrb.mxu2 %v14679_v9  ;;  %v10543_v9 = vpop.f32.mrf.mxu1 }
 0xc8a   :  { %v15412_v48 = vld [vmem:[#allocation16 + $0x9f8] sm:$0xf0]  ;;  %10724 = vmatmul.bf16.vlgmr.msrb.gmra.mxu0 %v21261_v15 }
 0xc8b   :  { %v19515_v40 = vld [vmem:[#allocation16 + $0xbdc] sm:$0xf]  ;;  %v15415_v55 = vor.u32 %v19451_v10, %v15412_v48  ;;  %10749 = vmatpush.bf16.msrb.mxu1 %v14935_v54 }
 0xc8c   :  { %v15668_v7 = vld [vmem:[#allocation16 + $0xbf8] sm:$0xf0]  ;;  %10737 = vmatmul.bf16.vlgmr.msrb.gmra.mxu2 %v21265_v22 }
 0xc8d   :  { %v19579_v16 = vld [vmem:[#allocation16 + $0xddc] sm:$0xf]  ;;  %v15671_v12 = vor.u32 %v19515_v40, %v15668_v7  ;;  %10755 = vmatpush.bf16.msrb.mxu3 %v15415_v55 }
 0xc8e   :  { %v15924_v49 = vld [vmem:[#allocation16 + $0xdf8] sm:$0xf0]  ;;  %10750 = vmatmul.bf16.vlgmr.msrb.gmra.mxu1 %v21269_v23 }
 0xc8f   :  { %v19643_v20 = vld [vmem:[#allocation16 + $0xfdc] sm:$0xf]  ;;  %v15927_v62 = vor.u32 %v19579_v16, %v15924_v49  ;;  %10768 = vmatpush.bf16.msra.mxu0 %v15671_v12 }
 0xc90   :  { %v16180_v59 = vld [vmem:[#allocation16 + $0xff8] sm:$0xf0] }
 0xc91   :  { %v19443_v28 = vld [vmem:[#allocation16 + $0x99c] sm:$0xf]  ;;  %v16183_v5 = vor.u32 %v19643_v20, %v16180_v59  ;;  %10781 = vmatpush.bf16.msra.mxu2 %v15927_v62  ;;  %v10517_v59 = vpop.f32.mrf.mxu0 }
 0xc92   :  { %v15380_v57 = vld [vmem:[#allocation16 + $0x9b8] sm:$0xf0] }
 0xc93   :  { %v19507_v4 = vld [vmem:[#allocation16 + $0xb9c] sm:$0xf]  ;;  %v15383_v6 = vor.u32 %v19443_v28, %v15380_v57  ;;  %10794 = vmatpush.bf16.msra.mxu1 %v16183_v5 }
 0xc94   :  { %v15636_v11 = vld [vmem:[#allocation16 + $0xbb8] sm:$0xf0] }
 0xc95   :  { %v19571_v38 = vld [vmem:[#allocation16 + $0xd9c] sm:$0xf]  ;;  %v15639_v18 = vor.u32 %v19507_v4, %v15636_v11  ;;  %10756 = vmatpush.bf16.msrb.mxu3 %v15383_v6 }
 0xc96   :  { %v15892_v13 = vld [vmem:[#allocation16 + $0xdb8] sm:$0xf0] }
 0xc97   :  { %v19635_v34 = vld [vmem:[#allocation16 + $0xf9c] sm:$0xf]  ;;  %v15895_v63 = vor.u32 %v19571_v38, %v15892_v13  ;;  %10769 = vmatpush.bf16.msra.mxu0 %v15639_v18 }
 0xc98   :  { %v16148_v52 = vld [vmem:[#allocation16 + $0xfb8] sm:$0xf0] }
 0xc99   :  { %v19435_v8 = vld [vmem:[#allocation16 + $0x95c] sm:$0xf]  ;;  %v16151_v56 = vor.u32 %v19635_v34, %v16148_v52  ;;  %10782 = vmatpush.bf16.msra.mxu2 %v15895_v63 }
 0xc9a   :  { %v15348_v58 = vld [vmem:[#allocation16 + $0x978] sm:$0xf0] }
 0xc9b   :  { %v19499_v30 = vld [vmem:[#allocation16 + $0xb5c] sm:$0xf]  ;;  %v15351_v32 = vor.u32 %v19435_v8, %v15348_v58  ;;  %10795 = vmatpush.bf16.msra.mxu1 %v16151_v56  ;;  %v10504_v56 = vpop.f32.mrf.mxu3 }
 0xc9c   :  { %v15604_v0 = vld [vmem:[#allocation16 + $0xb78] sm:$0xf0] }
 0xc9d   :  { %v19563_v3 = vld [vmem:[#allocation16 + $0xd5c] sm:$0xf]  ;;  %v15607_v33 = vor.u32 %v19499_v30, %v15604_v0  ;;  %10757 = vmatpush.bf16.msrb.mxu3 %v15351_v32 }
 0xc9e   :  { %v15860_v39 = vld [vmem:[#allocation16 + $0xd78] sm:$0xf0] }
 0xc9f   :  { %v19627_v51 = vld [vmem:[#allocation16 + $0xf5c] sm:$0xf]  ;;  %v15863_v48 = vor.u32 %v19563_v3, %v15860_v39  ;;  %10770 = vmatpush.bf16.msra.mxu0 %v15607_v33  ;;  %v10505_v39 = vadd.f32 %v10504_v56, %v21387_v53 }
 0xca0   :  { %v16116_v29 = vld [vmem:[#allocation16 + $0xf78] sm:$0xf0] }
 0xca1   :  { %v19427_v42 = vld [vmem:[#allocation16 + $0x91c] sm:$0xf]  ;;  %v16119_v40 = vor.u32 %v19627_v51, %v16116_v29  ;;  %10783 = vmatpush.bf16.msra.mxu2 %v15863_v48  ;;  %v10530_v51 = vpop.f32.mrf.mxu2  ;;  %v10545_v48 = vpop.f32.mrf.mxu1 }
 0xca2   :  { %v15316_v10 = vld [vmem:[#allocation16 + $0x938] sm:$0xf0] }
 0xca3   :  { %v19491_v7 = vld [vmem:[#allocation16 + $0xb1c] sm:$0xf]  ;;  %v15319_v54 = vor.u32 %v19427_v42, %v15316_v10  ;;  %10796 = vmatpush.bf16.msra.mxu1 %v16119_v40  ;;  %v10519_v42 = vpop.f32.mrf.mxu0  ;;  %v10518_v10 = vadd.f32 %v10517_v59, %v10505_v39 }
 0xca4   :  { %v15572_v16 = vld [vmem:[#allocation16 + $0xb38] sm:$0xf0] }
 0xca5   :  { %v19555_v47 = vld [vmem:[#allocation16 + $0xd1c] sm:$0xf]  ;;  %v15575_v55 = vor.u32 %v19491_v7, %v15572_v16  ;;  %10758 = vmatpush.bf16.msrb.mxu3 %v15319_v54 }
 0xca6   :  { %v15828_v21 = vld [vmem:[#allocation16 + $0xd38] sm:$0xf0] }
 0xca7   :  { %v19619_v49 = vld [vmem:[#allocation16 + $0xf1c] sm:$0xf]  ;;  %v15831_v57 = vor.u32 %v19555_v47, %v15828_v21  ;;  %10771 = vmatpush.bf16.msra.mxu0 %v15575_v55  ;;  %v10531_v55 = vadd.f32 %v10530_v51, %v10518_v10 }
 0xca8   :  { %v16084_v20 = vld [vmem:[#allocation16 + $0xf38] sm:$0xf0] }
 0xca9   :  { %v19419_v12 = vld [vmem:[#allocation16 + $0x8dc] sm:$0xf]  ;;  %v16087_v62 = vor.u32 %v19619_v49, %v16084_v20  ;;  %10784 = vmatpush.bf16.msra.mxu2 %v15831_v57 }
 0xcaa   :  { %v15284_v28 = vld [vmem:[#allocation16 + $0x8f8] sm:$0xf0] }
 0xcab   :  { %v19483_v5 = vld [vmem:[#allocation16 + $0xadc] sm:$0xf]  ;;  %v15287_v52 = vor.u32 %v19419_v12, %v15284_v28  ;;  %10797 = vmatpush.bf16.msra.mxu1 %v16087_v62 }
 0xcac   :  { %v15540_v4 = vld [vmem:[#allocation16 + $0xaf8] sm:$0xf0] }
 0xcad   :  { %v19547_v11 = vld [vmem:[#allocation16 + $0xcdc] sm:$0xf]  ;;  %v15543_v6 = vor.u32 %v19483_v5, %v15540_v4  ;;  %10759 = vmatpush.bf16.msrb.mxu3 %v15287_v52 }
 0xcae   :  { %v15796_v38 = vld [vmem:[#allocation16 + $0xcf8] sm:$0xf0] }
 0xcaf   :  { %v19611_v13 = vld [vmem:[#allocation16 + $0xedc] sm:$0xf]  ;;  %v15799_v58 = vor.u32 %v19547_v11, %v15796_v38  ;;  %10772 = vmatpush.bf16.msra.mxu0 %v15543_v6  ;;  %v10506_v6 = vpop.f32.mrf.mxu3 }
 0xcb0   :  { %v16052_v34 = vld [vmem:[#allocation16 + $0xef8] sm:$0xf0] }
 0xcb1   :  { %v19411_v18 = vld [vmem:[#allocation16 + $0x89c] sm:$0xf]  ;;  %v16055_v63 = vor.u32 %v19611_v13, %v16052_v34  ;;  %10785 = vmatpush.bf16.msra.mxu2 %v15799_v58  ;;  %v21562_v13 = vadd.f32 %v10543_v9, %v10531_v55 }
 0xcb2   :  { %v15252_v8 = vld [vmem:[#allocation16 + $0x8b8] sm:$0xf0] }
 0xcb3   :  { %v19475_v30 = vld [vmem:[#allocation16 + $0xa9c] sm:$0xf]  ;;  %v15255_v40 = vor.u32 %v19411_v18, %v15252_v8  ;;  %10798 = vmatpush.bf16.msra.mxu1 %v16055_v63  ;;  %v10532_v63 = vpop.f32.mrf.mxu2 }
 0xcb4   :  { %v15508_v0 = vld [vmem:[#allocation16 + $0xab8] sm:$0xf0] }
 0xcb5   :  { %v19539_v3 = vld [vmem:[#allocation16 + $0xc9c] sm:$0xf]  ;;  %v15511_v7 = vor.u32 %v19475_v30, %v15508_v0  ;;  %10760 = vmatpush.bf16.msrb.mxu3 %v15255_v40 }
 0xcb6   :  { %v15764_v29 = vld [vmem:[#allocation16 + $0xcb8] sm:$0xf0] }
 0xcb7   :  { %v19603_v32 = vld [vmem:[#allocation16 + $0xe9c] sm:$0xf]  ;;  %v15767_v21 = vor.u32 %v19539_v3, %v15764_v29  ;;  %10773 = vmatpush.bf16.msra.mxu0 %v15511_v7 }
 0xcb8   :  { %v16020_v33 = vld [vmem:[#allocation16 + $0xeb8] sm:$0xf0] }
 0xcb9   :  { %v19403_v16 = vld [vmem:[#allocation16 + $0x85c] sm:$0xf]  ;;  %v16023_v49 = vor.u32 %v19603_v32, %v16020_v33  ;;  %10786 = vmatpush.bf16.msra.mxu2 %v15767_v21 }
 0xcba   :  { %v15220_v47 = vld [vmem:[#allocation16 + $0x878] sm:$0xf0] }
 0xcbb   :  { %v19467_v20 = vld [vmem:[#allocation16 + $0xa5c] sm:$0xf]  ;;  %v15223_v59 = vor.u32 %v19403_v16, %v15220_v47  ;;  %10799 = vmatpush.bf16.msra.mxu1 %v16023_v49 }
 0xcbc   :  { %v15476_v54 = vld [vmem:[#allocation16 + $0xa78] sm:$0xf0] }
 0xcbd   :  { %v19531_v53 = vld [vmem:[#allocation16 + $0xc5c] sm:$0xf]  ;;  %v15479_v5 = vor.u32 %v19467_v20, %v15476_v54  ;;  %10761 = vmatpush.bf16.msrb.mxu3 %v15223_v59 }
 0xcbe   :  { %v15732_v12 = vld [vmem:[#allocation16 + $0xc78] sm:$0xf0] }
 0xcbf   :  { %v19595_v28 = vld [vmem:[#allocation16 + $0xe5c] sm:$0xf]  ;;  %v15735_v34 = vor.u32 %v19531_v53, %v15732_v12  ;;  %10774 = vmatpush.bf16.msra.mxu0 %v15479_v5 }
 0xcc0   :  { %v15988_v57 = vld [vmem:[#allocation16 + $0xe78] sm:$0xf0] }
 0xcc1   :  { %v19395_v62 = vld [vmem:[#allocation16 + $0x81c] sm:$0xf]  ;;  %v15991_v52 = vor.u32 %v19595_v28, %v15988_v57  ;;  %10787 = vmatpush.bf16.msra.mxu2 %v15735_v34 }
 0xcc2   :  { %v15188_v4 = vld [vmem:[#allocation16 + $0x838] sm:$0xf0] }
 0xcc3   :  { %v19459_v11 = vld [vmem:[#allocation16 + $0xa1c] sm:$0xf]  ;;  %v15191_v29 = vor.u32 %v19395_v62, %v15188_v4  ;;  %10800 = vmatpush.bf16.msra.mxu1 %v15991_v52 }
 0xcc4   :  { %v15444_v38 = vld [vmem:[#allocation16 + $0xa38] sm:$0xf0] }
 0xcc5   :  { %v19523_v18 = vld [vmem:[#allocation16 + $0xc1c] sm:$0xf]  ;;  %v15447_v9 = vor.u32 %v19459_v11, %v15444_v38  ;;  %10762 = vmatpush.bf16.msrb.mxu3 %v15191_v29 }
 0xcc6   :  { %v15700_v8 = vld [vmem:[#allocation16 + $0xc38] sm:$0xf0] }
 0xcc7   :  { %v19587_v58 = vld [vmem:[#allocation16 + $0xe1c] sm:$0xf]  ;;  %v15703_v10 = vor.u32 %v19523_v18, %v15700_v8  ;;  %10775 = vmatpush.bf16.msra.mxu0 %v15447_v9 }
 0xcc8   :  { %v15956_v56 = vld [vmem:[#allocation16 + $0xe38] sm:$0xf0]  ;;  %10763 = vmatmul.bf16.vlgmr.msrb.gmra.mxu3 %v21277_v60 }
 0xcc9   :  { %v19707_v30 = vld [vmem:[#allocation16 + $0x11dc] sm:$0xf]  ;;  %v15959_v48 = vor.u32 %v19587_v58, %v15956_v56  ;;  %10788 = vmatpush.bf16.msra.mxu2 %v15703_v10  ;;  %v10595_v10 = vpop.f32.mrf.mxu1 }
 0xcca   :  { %v16436_v0 = vld [vmem:[#allocation16 + $0x11f8] sm:$0xf0]  ;;  %10776 = vmatmul.bf16.vlgmr.msra.gmra.mxu0 %v21281_v61 }
 0xccb   :  { %v19771_v3 = vld [vmem:[#allocation16 + $0x13dc] sm:$0xf]  ;;  %v16439_v40 = vor.u32 %v19707_v30, %v16436_v0  ;;  %10801 = vmatpush.bf16.msra.mxu1 %v15959_v48 }
 0xccc   :  { %v16692_v39 = vld [vmem:[#allocation16 + $0x13f8] sm:$0xf0]  ;;  %10789 = vmatmul.bf16.vlgmr.msra.gmra.mxu2 %v21285_v1 }
 0xccd   :  { %v19835_v51 = vld [vmem:[#allocation16 + $0x15dc] sm:$0xf]  ;;  %v16695_v7 = vor.u32 %v19771_v3, %v16692_v39  ;;  %10807 = vmatpush.bf16.msra.mxu3 %v16439_v40 }
 0xcce   :  { %v16948_v32 = vld [vmem:[#allocation16 + $0x15f8] sm:$0xf0]  ;;  %10802 = vmatmul.bf16.vlgmr.msra.gmra.mxu1 %v21289_v2 }
 0xccf   :  { %v19899_v33 = vld [vmem:[#allocation16 + $0x17dc] sm:$0xf]  ;;  %v16951_v21 = vor.u32 %v19835_v51, %v16948_v32  ;;  %10820 = vmatpush.bf16.msrb.mxu0 %v16695_v7 }
 0xcd0   :  { %v17204_v42 = vld [vmem:[#allocation16 + $0x17f8] sm:$0xf0] }
 0xcd1   :  { %v19699_v16 = vld [vmem:[#allocation16 + $0x119c] sm:$0xf]  ;;  %v17207_v49 = vor.u32 %v19899_v33, %v17204_v42  ;;  %10833 = vmatpush.bf16.msrb.mxu2 %v16951_v21  ;;  %v10569_v42 = vpop.f32.mrf.mxu0 }
 0xcd2   :  { %v16404_v47 = vld [vmem:[#allocation16 + $0x11b8] sm:$0xf0] }
 0xcd3   :  { %v19763_v20 = vld [vmem:[#allocation16 + $0x139c] sm:$0xf]  ;;  %v16407_v57 = vor.u32 %v19699_v16, %v16404_v47  ;;  %10846 = vmatpush.bf16.msrb.mxu1 %v17207_v49 }
 0xcd4   :  { %v16660_v54 = vld [vmem:[#allocation16 + $0x13b8] sm:$0xf0] }
 0xcd5   :  { %v19827_v53 = vld [vmem:[#allocation16 + $0x159c] sm:$0xf]  ;;  %v16663_v62 = vor.u32 %v19763_v20, %v16660_v54  ;;  %10808 = vmatpush.bf16.msra.mxu3 %v16407_v57 }
 0xcd6   :  { %v16916_v55 = vld [vmem:[#allocation16 + $0x15b8] sm:$0xf0] }
 0xcd7   :  { %v19891_v12 = vld [vmem:[#allocation16 + $0x179c] sm:$0xf]  ;;  %v16919_v4 = vor.u32 %v19827_v53, %v16916_v55  ;;  %10821 = vmatpush.bf16.msrb.mxu0 %v16663_v62 }
 0xcd8   :  { %v17172_v28 = vld [vmem:[#allocation16 + $0x17b8] sm:$0xf0] }
 0xcd9   :  { %v19691_v59 = vld [vmem:[#allocation16 + $0x115c] sm:$0xf]  ;;  %v17175_v11 = vor.u32 %v19891_v12, %v17172_v28  ;;  %10834 = vmatpush.bf16.msrb.mxu2 %v16919_v4 }
 0xcda   :  { %v16372_v5 = vld [vmem:[#allocation16 + $0x1178] sm:$0xf0] }
 0xcdb   :  { %v19755_v38 = vld [vmem:[#allocation16 + $0x135c] sm:$0xf]  ;;  %v16375_v58 = vor.u32 %v19691_v59, %v16372_v5  ;;  %10847 = vmatpush.bf16.msrb.mxu1 %v17175_v11  ;;  %v10556_v11 = vpop.f32.mrf.mxu3 }
 0xcdc   :  { %v16628_v34 = vld [vmem:[#allocation16 + $0x1378] sm:$0xf0] }
 0xcdd   :  { %v19819_v52 = vld [vmem:[#allocation16 + $0x155c] sm:$0xf]  ;;  %v16631_v63 = vor.u32 %v19755_v38, %v16628_v34  ;;  %10809 = vmatpush.bf16.msra.mxu3 %v16375_v58 }
 0xcde   :  { %v16884_v6 = vld [vmem:[#allocation16 + $0x1578] sm:$0xf0] }
 0xcdf   :  { %v19883_v18 = vld [vmem:[#allocation16 + $0x175c] sm:$0xf]  ;;  %v16887_v0 = vor.u32 %v19819_v52, %v16884_v6  ;;  %10822 = vmatpush.bf16.msrb.mxu0 %v16631_v63  ;;  %v10557_v6 = vadd.f32 %v10556_v11, %v21562_v13 }
 0xce0   :  { %v17140_v8 = vld [vmem:[#allocation16 + $0x1778] sm:$0xf0] }
 0xce1   :  { %v19683_v56 = vld [vmem:[#allocation16 + $0x111c] sm:$0xf]  ;;  %v17143_v3 = vor.u32 %v19883_v18, %v17140_v8  ;;  %10835 = vmatpush.bf16.msrb.mxu2 %v16887_v0  ;;  %v10582_v18 = vpop.f32.mrf.mxu2  ;;  %v10597_v0 = vpop.f32.mrf.mxu1 }
 0xce2   :  { %v16340_v30 = vld [vmem:[#allocation16 + $0x1138] sm:$0xf0] }
 0xce3   :  { %v19747_v39 = vld [vmem:[#allocation16 + $0x131c] sm:$0xf]  ;;  %v16343_v48 = vor.u32 %v19683_v56, %v16340_v30  ;;  %10848 = vmatpush.bf16.msrb.mxu1 %v17143_v3  ;;  %v10571_v56 = vpop.f32.mrf.mxu0  ;;  %v10570_v30 = vadd.f32 %v10569_v42, %v10557_v6 }
 0xce4   :  { %v16596_v51 = vld [vmem:[#allocation16 + $0x1338] sm:$0xf0] }
 0xce5   :  { %v19811_v29 = vld [vmem:[#allocation16 + $0x151c] sm:$0xf]  ;;  %v16599_v40 = vor.u32 %v19747_v39, %v16596_v51  ;;  %10810 = vmatpush.bf16.msra.mxu3 %v16343_v48 }
 0xce6   :  { %v16852_v9 = vld [vmem:[#allocation16 + $0x1538] sm:$0xf0] }
 0xce7   :  { %v19875_v32 = vld [vmem:[#allocation16 + $0x171c] sm:$0xf]  ;;  %v16855_v47 = vor.u32 %v19811_v29, %v16852_v9  ;;  %10823 = vmatpush.bf16.msrb.mxu0 %v16599_v40  ;;  %v10583_v40 = vadd.f32 %v10582_v18, %v10570_v30 }
 0xce8   :  { %v17108_v33 = vld [vmem:[#allocation16 + $0x1738] sm:$0xf0] }
 0xce9   :  { %v19675_v7 = vld [vmem:[#allocation16 + $0x10dc] sm:$0xf]  ;;  %v17111_v21 = vor.u32 %v19875_v32, %v17108_v33  ;;  %10836 = vmatpush.bf16.msrb.mxu2 %v16855_v47 }
 0xcea   :  { %v16308_v16 = vld [vmem:[#allocation16 + $0x10f8] sm:$0xf0] }
 0xceb   :  { %v19739_v49 = vld [vmem:[#allocation16 + $0x12dc] sm:$0xf]  ;;  %v16311_v28 = vor.u32 %v19675_v7, %v16308_v16  ;;  %10849 = vmatpush.bf16.msrb.mxu1 %v17111_v21 }
 0xcec   :  { %v16564_v20 = vld [vmem:[#allocation16 + $0x12f8] sm:$0xf0] }
 0xced   :  { %v19803_v54 = vld [vmem:[#allocation16 + $0x14dc] sm:$0xf]  ;;  %v16567_v57 = vor.u32 %v19739_v49, %v16564_v20  ;;  %10811 = vmatpush.bf16.msra.mxu3 %v16311_v28 }
 0xcee   :  { %v16820_v53 = vld [vmem:[#allocation16 + $0x14f8] sm:$0xf0] }
 0xcef   :  { %v19867_v55 = vld [vmem:[#allocation16 + $0x16dc] sm:$0xf]  ;;  %v16823_v5 = vor.u32 %v19803_v54, %v16820_v53  ;;  %10824 = vmatpush.bf16.msrb.mxu0 %v16567_v57  ;;  %v10558_v57 = vpop.f32.mrf.mxu3 }
 0xcf0   :  { %v17076_v12 = vld [vmem:[#allocation16 + $0x16f8] sm:$0xf0] }
 0xcf1   :  { %v19667_v62 = vld [vmem:[#allocation16 + $0x109c] sm:$0xf]  ;;  %v17079_v4 = vor.u32 %v19867_v55, %v17076_v12  ;;  %10837 = vmatpush.bf16.msrb.mxu2 %v16823_v5  ;;  %v21569_v55 = vadd.f32 %v10595_v10, %v10583_v40 }
 0xcf2   :  { %v16276_v59 = vld [vmem:[#allocation16 + $0x10b8] sm:$0xf0] }
 0xcf3   :  { %v19731_v38 = vld [vmem:[#allocation16 + $0x129c] sm:$0xf]  ;;  %v16279_v3 = vor.u32 %v19667_v62, %v16276_v59  ;;  %10850 = vmatpush.bf16.msrb.mxu1 %v17079_v4  ;;  %v10584_v4 = vpop.f32.mrf.mxu2 }
 0xcf4   :  { %v16532_v34 = vld [vmem:[#allocation16 + $0x12b8] sm:$0xf0] }
 0xcf5   :  { %v19795_v52 = vld [vmem:[#allocation16 + $0x149c] sm:$0xf]  ;;  %v16535_v39 = vor.u32 %v19731_v38, %v16532_v34  ;;  %10812 = vmatpush.bf16.msra.mxu3 %v16279_v3 }
 0xcf6   :  { %v16788_v8 = vld [vmem:[#allocation16 + $0x14b8] sm:$0xf0] }
 0xcf7   :  { %v19859_v58 = vld [vmem:[#allocation16 + $0x169c] sm:$0xf]  ;;  %v16791_v9 = vor.u32 %v19795_v52, %v16788_v8  ;;  %10825 = vmatpush.bf16.msrb.mxu0 %v16535_v39 }
 0xcf8   :  { %v17044_v63 = vld [vmem:[#allocation16 + $0x16b8] sm:$0xf0] }
 0xcf9   :  { %v19659_v51 = vld [vmem:[#allocation16 + $0x105c] sm:$0xf]  ;;  %v17047_v32 = vor.u32 %v19859_v58, %v17044_v63  ;;  %10838 = vmatpush.bf16.msrb.mxu2 %v16791_v9 }
 0xcfa   :  { %v16244_v29 = vld [vmem:[#allocation16 + $0x1078] sm:$0xf0] }
 0xcfb   :  { %v19723_v33 = vld [vmem:[#allocation16 + $0x125c] sm:$0xf]  ;;  %v16247_v42 = vor.u32 %v19659_v51, %v16244_v29  ;;  %10851 = vmatpush.bf16.msrb.mxu1 %v17047_v32 }
 0xcfc   :  { %v16500_v48 = vld [vmem:[#allocation16 + $0x1278] sm:$0xf0] }
 0xcfd   :  { %v19787_v13 = vld [vmem:[#allocation16 + $0x145c] sm:$0xf]  ;;  %v16503_v49 = vor.u32 %v19723_v33, %v16500_v48  ;;  %10813 = vmatpush.bf16.msra.mxu3 %v16247_v42 }
 0xcfe   :  { %v16756_v7 = vld [vmem:[#allocation16 + $0x1478] sm:$0xf0] }
 0xcff   :  { %v19851_v16 = vld [vmem:[#allocation16 + $0x165c] sm:$0xf]  ;;  %v16759_v12 = vor.u32 %v19787_v13, %v16756_v7  ;;  %10826 = vmatpush.bf16.msrb.mxu0 %v16503_v49 }
 0xd00   :  { %v17012_v47 = vld [vmem:[#allocation16 + $0x1678] sm:$0xf0] }
 0xd01   :  { %v19651_v21 = vld [vmem:[#allocation16 + $0x101c] sm:$0xf]  ;;  %v17015_v28 = vor.u32 %v19851_v16, %v17012_v47  ;;  %10839 = vmatpush.bf16.msrb.mxu2 %v16759_v12 }
 0xd02   :  { %v16212_v20 = vld [vmem:[#allocation16 + $0x1038] sm:$0xf0] }
 0xd03   :  { %v19715_v54 = vld [vmem:[#allocation16 + $0x121c] sm:$0xf]  ;;  %v16215_v8 = vor.u32 %v19651_v21, %v16212_v20  ;;  %10852 = vmatpush.bf16.msrb.mxu1 %v17015_v28 }
 0xd04   :  { %v16468_v53 = vld [vmem:[#allocation16 + $0x1238] sm:$0xf0] }
 0xd05   :  { %v19779_v62 = vld [vmem:[#allocation16 + $0x141c] sm:$0xf]  ;;  %v16471_v10 = vor.u32 %v19715_v54, %v16468_v53  ;;  %10814 = vmatpush.bf16.msra.mxu3 %v16215_v8 }
 0xd06   :  { %v16724_v59 = vld [vmem:[#allocation16 + $0x1438] sm:$0xf0] }
 0xd07   :  { %v19843_v5 = vld [vmem:[#allocation16 + $0x161c] sm:$0xf]  ;;  %v16727_v30 = vor.u32 %v19779_v62, %v16724_v59  ;;  %10827 = vmatpush.bf16.msrb.mxu0 %v16471_v10 }
 0xd08   :  { %v16980_v11 = vld [vmem:[#allocation16 + $0x1638] sm:$0xf0]  ;;  %10815 = vmatmul.bf16.vlgmr.msra.gmra.mxu3 %v21297_v36 }
 0xd09   :  { %v19963_v38 = vld [vmem:[#allocation16 + $0x19dc] sm:$0xf]  ;;  %v16983_v0 = vor.u32 %v19843_v5, %v16980_v11  ;;  %10840 = vmatpush.bf16.msrb.mxu2 %v16727_v30  ;;  %v10647_v30 = vpop.f32.mrf.mxu1 }
 0xd0a   :  { %v17460_v34 = vld [vmem:[#allocation16 + $0x19f8] sm:$0xf0]  ;;  %10828 = vmatmul.bf16.vlgmr.msrb.gmra.mxu0 %v21301_v37 }
 0xd0b   :  { %v20027_v52 = vld [vmem:[#allocation16 + $0x1bdc] sm:$0xf]  ;;  %v17463_v3 = vor.u32 %v19963_v38, %v17460_v34  ;;  %10853 = vmatpush.bf16.msrb.mxu1 %v16983_v0 }
 0xd0c   :  { %v17716_v6 = vld [vmem:[#allocation16 + $0x1bf8] sm:$0xf0]  ;;  %10841 = vmatmul.bf16.vlgmr.msrb.gmra.mxu2 %v21305_v41 }
 0xd0d   :  { %v20091_v18 = vld [vmem:[#allocation16 + $0x1ddc] sm:$0xf]  ;;  %v17719_v39 = vor.u32 %v20027_v52, %v17716_v6  ;;  %10859 = vmatpush.bf16.msrb.mxu3 %v17463_v3 }
 0xd0e   :  { %v17972_v58 = vld [vmem:[#allocation16 + $0x1df8] sm:$0xf0]  ;;  %10854 = vmatmul.bf16.vlgmr.msrb.gmra.mxu1 %v21309_v46 }
 0xd0f   :  { %v20155_v63 = vld [vmem:[#allocation16 + $0x1fdc] sm:$0xf]  ;;  %v17975_v9 = vor.u32 %v20091_v18, %v17972_v58  ;;  %10872 = vmatpush.bf16.msra.mxu0 %v17719_v39 }
 0xd10   :  { %v18228_v56 = vld [vmem:[#allocation16 + $0x1ff8] sm:$0xf0] }
 0xd11   :  { %v19955_v51 = vld [vmem:[#allocation16 + $0x199c] sm:$0xf]  ;;  %v18231_v32 = vor.u32 %v20155_v63, %v18228_v56  ;;  %10885 = vmatpush.bf16.msra.mxu2 %v17975_v9  ;;  %v10621_v56 = vpop.f32.mrf.mxu0 }
 0xd12   :  { %v17428_v29 = vld [vmem:[#allocation16 + $0x19b8] sm:$0xf0] }
 0xd13   :  { %v20019_v33 = vld [vmem:[#allocation16 + $0x1b9c] sm:$0xf]  ;;  %v17431_v47 = vor.u32 %v19955_v51, %v17428_v29  ;;  %10898 = vmatpush.bf16.msra.mxu1 %v18231_v32 }
 0xd14   :  { %v17684_v48 = vld [vmem:[#allocation16 + $0x1bb8] sm:$0xf0] }
 0xd15   :  { %v20083_v13 = vld [vmem:[#allocation16 + $0x1d9c] sm:$0xf]  ;;  %v17687_v21 = vor.u32 %v20019_v33, %v17684_v48  ;;  %10860 = vmatpush.bf16.msrb.mxu3 %v17431_v47 }
 0xd16   :  { %v17940_v40 = vld [vmem:[#allocation16 + $0x1db8] sm:$0xf0] }
 0xd17   :  { %v20147_v7 = vld [vmem:[#allocation16 + $0x1f9c] sm:$0xf]  ;;  %v17943_v20 = vor.u32 %v20083_v13, %v17940_v40  ;;  %10873 = vmatpush.bf16.msra.mxu0 %v17687_v21 }
 0xd18   :  { %v18196_v16 = vld [vmem:[#allocation16 + $0x1fb8] sm:$0xf0] }
 0xd19   :  { %v19947_v42 = vld [vmem:[#allocation16 + $0x195c] sm:$0xf]  ;;  %v18199_v54 = vor.u32 %v20147_v7, %v18196_v16  ;;  %10886 = vmatpush.bf16.msra.mxu2 %v17943_v20 }
 0xd1a   :  { %v17396_v49 = vld [vmem:[#allocation16 + $0x1978] sm:$0xf0] }
 0xd1b   :  { %v20011_v53 = vld [vmem:[#allocation16 + $0x1b5c] sm:$0xf]  ;;  %v17399_v5 = vor.u32 %v19947_v42, %v17396_v49  ;;  %10899 = vmatpush.bf16.msra.mxu1 %v18199_v54  ;;  %v10608_v54 = vpop.f32.mrf.mxu3 }
 0xd1c   :  { %v17652_v12 = vld [vmem:[#allocation16 + $0x1b78] sm:$0xf0] }
 0xd1d   :  { %v20075_v28 = vld [vmem:[#allocation16 + $0x1d5c] sm:$0xf]  ;;  %v17655_v4 = vor.u32 %v20011_v53, %v17652_v12  ;;  %10861 = vmatpush.bf16.msrb.mxu3 %v17399_v5 }
 0xd1e   :  { %v17908_v57 = vld [vmem:[#allocation16 + $0x1d78] sm:$0xf0] }
 0xd1f   :  { %v20139_v62 = vld [vmem:[#allocation16 + $0x1f5c] sm:$0xf]  ;;  %v17911_v34 = vor.u32 %v20075_v28, %v17908_v57  ;;  %10874 = vmatpush.bf16.msra.mxu0 %v17655_v4  ;;  %v10609_v57 = vadd.f32 %v10608_v54, %v21569_v55 }
 0xd20   :  { %v18164_v59 = vld [vmem:[#allocation16 + $0x1f78] sm:$0xf0] }
 0xd21   :  { %v19939_v11 = vld [vmem:[#allocation16 + $0x191c] sm:$0xf]  ;;  %v18167_v52 = vor.u32 %v20139_v62, %v18164_v59  ;;  %10887 = vmatpush.bf16.msra.mxu2 %v17911_v34  ;;  %v10634_v62 = vpop.f32.mrf.mxu2  ;;  %v10649_v34 = vpop.f32.mrf.mxu1 }
 0xd22   :  { %v17364_v38 = vld [vmem:[#allocation16 + $0x1938] sm:$0xf0] }
 0xd23   :  { %v20003_v6 = vld [vmem:[#allocation16 + $0x1b1c] sm:$0xf]  ;;  %v17367_v0 = vor.u32 %v19939_v11, %v17364_v38  ;;  %10900 = vmatpush.bf16.msra.mxu1 %v18167_v52  ;;  %v10623_v11 = vpop.f32.mrf.mxu0  ;;  %v10622_v38 = vadd.f32 %v10621_v56, %v10609_v57 }
 0xd24   :  { %v17620_v18 = vld [vmem:[#allocation16 + $0x1b38] sm:$0xf0] }
 0xd25   :  { %v20067_v8 = vld [vmem:[#allocation16 + $0x1d1c] sm:$0xf]  ;;  %v17623_v3 = vor.u32 %v20003_v6, %v17620_v18  ;;  %10862 = vmatpush.bf16.msrb.mxu3 %v17367_v0 }
 0xd26   :  { %v17876_v10 = vld [vmem:[#allocation16 + $0x1d38] sm:$0xf0] }
 0xd27   :  { %v20131_v58 = vld [vmem:[#allocation16 + $0x1f1c] sm:$0xf]  ;;  %v17879_v29 = vor.u32 %v20067_v8, %v17876_v10  ;;  %10875 = vmatpush.bf16.msra.mxu0 %v17623_v3  ;;  %v10635_v3 = vadd.f32 %v10634_v62, %v10622_v38 }
 0xd28   :  { %v18132_v63 = vld [vmem:[#allocation16 + $0x1f38] sm:$0xf0] }
 0xd29   :  { %v19931_v39 = vld [vmem:[#allocation16 + $0x18dc] sm:$0xf]  ;;  %v18135_v9 = vor.u32 %v20131_v58, %v18132_v63  ;;  %10888 = vmatpush.bf16.msra.mxu2 %v17879_v29  ;;  %v10699_v62 = vpop.f32.mrf.mxu1 }
 0xd2a   :  { %v17332_v51 = vld [vmem:[#allocation16 + $0x18f8] sm:$0xf0] }
 0xd2b   :  { %v19995_v32 = vld [vmem:[#allocation16 + $0x1adc] sm:$0xf]  ;;  %v17335_v16 = vor.u32 %v19931_v39, %v17332_v51  ;;  %10901 = vmatpush.bf16.msra.mxu1 %v18135_v9  ;;  %v10673_v57 = vpop.f32.mrf.mxu0 }
 0xd2c   :  { %v17588_v33 = vld [vmem:[#allocation16 + $0x1af8] sm:$0xf0] }
 0xd2d   :  { %v20059_v48 = vld [vmem:[#allocation16 + $0x1cdc] sm:$0xf]  ;;  %v17591_v47 = vor.u32 %v19995_v32, %v17588_v33  ;;  %10863 = vmatpush.bf16.msrb.mxu3 %v17335_v16 }
 0xd2e   :  { %v17844_v13 = vld [vmem:[#allocation16 + $0x1cf8] sm:$0xf0] }
 0xd2f   :  { %v20123_v40 = vld [vmem:[#allocation16 + $0x1edc] sm:$0xf]  ;;  %v17847_v49 = vor.u32 %v20059_v48, %v17844_v13  ;;  %10876 = vmatpush.bf16.msra.mxu0 %v17591_v47  ;;  %v10648_v48 = vadd.f32 %v10647_v30, %v10635_v3 }
 0xd30   :  { %v18100_v7 = vld [vmem:[#allocation16 + $0x1ef8] sm:$0xf0] }
 0xd31   :  { %v19923_v21 = vld [vmem:[#allocation16 + $0x189c] sm:$0xf]  ;;  %v18103_v20 = vor.u32 %v20123_v40, %v18100_v7  ;;  %10889 = vmatpush.bf16.msra.mxu2 %v17847_v49  ;;  %v10610_v7 = vpop.f32.mrf.mxu3  ;;  %v10701_v34 = vpop.f32.mrf.mxu1 }
 0xd32   :  { %v17300_v42 = vld [vmem:[#allocation16 + $0x18b8] sm:$0xf0] }
 0xd33   :  { %v19987_v53 = vld [vmem:[#allocation16 + $0x1a9c] sm:$0xf]  ;;  %v17303_v52 = vor.u32 %v19923_v21, %v17300_v42  ;;  %10902 = vmatpush.bf16.msra.mxu1 %v18103_v20  ;;  %v10636_v42 = vpop.f32.mrf.mxu2  ;;  %v10675_v11 = vpop.f32.mrf.mxu0 }
 0xd34   :  { %v17556_v12 = vld [vmem:[#allocation16 + $0x1ab8] sm:$0xf0] }
 0xd35   :  { %v20051_v28 = vld [vmem:[#allocation16 + $0x1c9c] sm:$0xf]  ;;  %v17559_v6 = vor.u32 %v19987_v53, %v17556_v12  ;;  %10864 = vmatpush.bf16.msrb.mxu3 %v17303_v52 }
 0xd36   :  { %v17812_v59 = vld [vmem:[#allocation16 + $0x1cb8] sm:$0xf0] }
 0xd37   :  { %v20115_v5 = vld [vmem:[#allocation16 + $0x1e9c] sm:$0xf]  ;;  %v17815_v10 = vor.u32 %v20051_v28, %v17812_v59  ;;  %10877 = vmatpush.bf16.msra.mxu0 %v17559_v6 }
 0xd38   :  { %v18068_v4 = vld [vmem:[#allocation16 + $0x1eb8] sm:$0xf0] }
 0xd39   :  { %v19915_v18 = vld [vmem:[#allocation16 + $0x185c] sm:$0xf]  ;;  %v18071_v58 = vor.u32 %v20115_v5, %v18068_v4  ;;  %10890 = vmatpush.bf16.msra.mxu2 %v17815_v10  ;;  %v10660_v59 = vpop.f32.mrf.mxu3 }
 0xd3a   :  { %v17268_v8 = vld [vmem:[#allocation16 + $0x1878] sm:$0xf0]  ;;  %v10661_v5 = vadd.f32 %v10660_v59, %v10648_v48 }
 0xd3b   :  { %v19979_v63 = vld [vmem:[#allocation16 + $0x1a5c] sm:$0xf]  ;;  %v17271_v9 = vor.u32 %v19915_v18, %v17268_v8  ;;  %10903 = vmatpush.bf16.msra.mxu1 %v18071_v58  ;;  %v10686_v4 = vpop.f32.mrf.mxu2  ;;  %v10725_v10 = vpop.f32.mrf.mxu0 }
 0xd3c   :  { %v17524_v0 = vld [vmem:[#allocation16 + $0x1a78] sm:$0xf0]  ;;  %v10674_v38 = vadd.f32 %v10673_v57, %v10661_v5  ;;  %v10751_v58 = vpop.f32.mrf.mxu1 }
 0xd3d   :  { %v20043_v55 = vld [vmem:[#allocation16 + $0x1c5c] sm:$0xf]  ;;  %v17527_v56 = vor.u32 %v19979_v63, %v17524_v0  ;;  %10865 = vmatpush.bf16.msrb.mxu3 %v17271_v9 }
 0xd3e   :  { %v17780_v39 = vld [vmem:[#allocation16 + $0x1c78] sm:$0xf0]  ;;  %v10687_v52 = vadd.f32 %v10686_v4, %v10674_v38 }
 0xd3f   :  { %v20107_v51 = vld [vmem:[#allocation16 + $0x1e5c] sm:$0xf]  ;;  %v17783_v13 = vor.u32 %v20043_v55, %v17780_v39  ;;  %10878 = vmatpush.bf16.msra.mxu0 %v17527_v56 }
 0xd40   :  { %v18036_v29 = vld [vmem:[#allocation16 + $0x1e78] sm:$0xf0]  ;;  %v10700_v6 = vadd.f32 %v10699_v62, %v10687_v52 }
 0xd41   :  { %v19907_v32 = vld [vmem:[#allocation16 + $0x181c] sm:$0xf]  ;;  %v18039_v40 = vor.u32 %v20107_v51, %v18036_v29  ;;  %10891 = vmatpush.bf16.msra.mxu2 %v17783_v13  ;;  %v10662_v18 = vpop.f32.mrf.mxu3 }
 0xd42   :  { %v17236_v33 = vld [vmem:[#allocation16 + $0x1838] sm:$0xf0] }
 0xd43   :  { %v19971_v16 = vld [vmem:[#allocation16 + $0x1a1c] sm:$0xf]  ;;  %v17239_v53 = vor.u32 %v19907_v32, %v17236_v33  ;;  %10904 = vmatpush.bf16.msra.mxu1 %v18039_v40  ;;  %v10688_v8 = vpop.f32.mrf.mxu2  ;;  %v10727_v3 = vpop.f32.mrf.mxu0  ;;  %v21583_v33 = vld [vmem:[#allocation19] sm:$0xff] }
 0xd44   :  { %v17492_v47 = vld [vmem:[#allocation16 + $0x1a38] sm:$0xf0]  ;;  %v10753_v51 = vpop.f32.mrf.mxu1  ;;  %v10914_v48 = vperm.slane %v21583_v33, 1  ;;  %v10913_v13 = vperm.slane %v21583_v33, 0  ;;  %v10917_v57 = vperm.slane %v21583_v33, 4  ;;  %v10918_v59 = vperm.slane %v21583_v33, 5 }
 0xd45   :  { %v20035_v21 = vld [vmem:[#allocation16 + $0x1c1c] sm:$0xf]  ;;  %v17495_v12 = vor.u32 %v19971_v16, %v17492_v47  ;;  %10866 = vmatpush.bf16.msrb.mxu3 %v17239_v53  ;;  %v10915_v16 = vperm.slane %v21583_v33, 2  ;;  %v10919_v52 = vperm.slane %v21583_v33, 6 }
 0xd46   :  { %v17748_v49 = vld [vmem:[#allocation16 + $0x1c38] sm:$0xf0]  ;;  %v21596_v47 = vadd.f32 %v10913_v13, %v21415_v24  ;;  %v21632_v11 = vadd.f32 %v10917_v57, %v21527_v50  ;;  %v21640_v8 = vadd.f32 %v10918_v59, %v21555_v25 }
 0xd47   :  { %v20099_v20 = vld [vmem:[#allocation16 + $0x1e1c] sm:$0xf]  ;;  %v17751_v28 = vor.u32 %v20035_v21, %v17748_v49  ;;  %10879 = vmatpush.bf16.msra.mxu0 %v17495_v12  ;;  %v10916_v21 = vperm.slane %v21583_v33, 3 }
 0xd48   :  { %v18004_v54 = vld [vmem:[#allocation16 + $0x1e38] sm:$0xf0]  ;;  %10867 = vmatmul.bf16.vlgmr.msrb.gmra.mxu3 %v21317_v43  ;;  %v21608_v53 = vmul.f32 0.70710677, %v21596_v47  ;;  %v21654_v3 = vmul.f32 0.70710677, %v21640_v8 }
 0xd49   :  { %v18007_v30 = vor.u32 %v20099_v20, %v18004_v54  ;;  %10892 = vmatpush.bf16.msra.mxu2 %v17751_v28  ;;  %v10712_v63 = vpop.f32.mrf.mxu3  ;;  %v21603_v20 = vadd.f32 %v10915_v16, %v21471_v44  ;;  %v21611_v28 = vadd.f32 %v10916_v21, %v21499_v31 }
 0xd4a   :  { %10880 = vmatmul.bf16.vlgmr.msra.gmra.mxu0 %v21321_v45  ;;  %v10713_v0 = vadd.f32 %v10712_v63, %v21383_v17  ;;  %v21592_v17 = vadd.f32 %v10914_v48, %v21443_v35  ;;  %v21621_v44 = vand.u32 2147483647, %v21608_v53  ;;  %v21646_v63 = vmul.f32 0.70710677, %v21632_v11 }
 0xd4b   :  { %10905 = vmatpush.bf16.msra.mxu1 %v18007_v30  ;;  %v10738_v55 = vpop.f32.mrf.mxu2  ;;  %v21587_v40 = vpop.f32.mrf.mxu0  ;;  %v21617_v30 = vmul.f32 0.70710677, %v21603_v20  ;;  %v21624_v62 = vmul.f32 0.70710677, %v21611_v28 }
 0xd4c   :  { %10893 = vmatmul.bf16.vlgmr.msra.gmra.mxu2 %v21325_v26  ;;  %v10726_v39 = vadd.f32 %v10725_v10, %v10713_v0  ;;  %v21589_v7 = vpop.f32.mrf.mxu1  ;;  %v21600_v49 = vmul.f32 0.70710677, %v21592_v17  ;;  %v10977_v34 = vmul.f32 0.3275911, %v21621_v44  ;;  %v21650_v0 = vadd.f32 %v10919_v52, %v10700_v6 }
 0xd4d   :  { %v21629_v4 = vand.u32 2147483647, %v21617_v30  ;;  %v21637_v18 = vand.u32 2147483647, %v21624_v62  ;;  %v21669_v6 = vand.u32 2147483647, %v21654_v3 }
 0xd4e   :  { %10906 = vmatmul.bf16.vlgmr.msra.gmra.mxu1 %v21329_v27  ;;  %v10739_v29 = vadd.f32 %v10738_v55, %v10726_v39  ;;  %v21614_v24 = vand.u32 2147483647, %v21600_v49  ;;  %v21648_v50 = vadd.f32 1.0, %v10977_v34  ;;  %v21660_v39 = vand.u32 2147483647, %v21646_v63 }
 0xd4f   :  { %v10980_v55 = vmul.f32 0.3275911, %v21637_v18  ;;  %v21664_v51 = vmul.f32 0.70710677, %v21650_v0  ;;  %v10982_v16 = vmul.f32 0.3275911, %v21669_v6 }
 0xd50   :  { %v21581_v9 = vadd.f32 %v10751_v58, %v10739_v29  ;;  %v10978_v31 = vmul.f32 0.3275911, %v21614_v24  ;;  %v10979_v58 = vmul.f32 0.3275911, %v21629_v4  ;;  %v11002_v37 = vand.u32 2147483647, %v21648_v50 }
 0xd51   :  { %v10714_v56 = vpop.f32.mrf.mxu3  ;;  %v21666_v29 = vadd.f32 1.0, %v10980_v55  ;;  %vm10998_vm6 = vweird.f32 %v21648_v50 }
 0xd52   :  { %v21642_v10 = vadd.f32 1.0, %v10978_v31  ;;  %v21657_v25 = vadd.f32 1.0, %v10979_v58  ;;  %v10981_v56 = vmul.f32 0.3275911, %v21660_v39  ;;  %vm21733_vm8 = vcmp.eq.f32.partialorder %v11002_v37, 8.507059e+37 }
 0xd53   :  { %v10740_v32 = vpop.f32.mrf.mxu2  ;;  %v10779_v35 = vpop.f32.mrf.mxu0  ;;  %vm11043_vm0 = vweird.f32 %v21666_v29 }
 0xd54   :  { %v10805_v12 = vpop.f32.mrf.mxu1  ;;  %20460 = vrcp.f32 %v21642_v10  ;;  %v21674_v32 = vand.u32 2147483647, %v21664_v51  ;;  %v21684_v35 = vadd.f32 1.0, %v10981_v56  ;;  %vm11013_vm7 = vweird.f32 %v21642_v10 }
 0xd55   :  { %20462 = vrcp.f32 %v21648_v50  ;;  %v11034_v1 = vand.u32 2147483648, %v21657_v25  ;;  %vm11028_vm13 = vweird.f32 %v21657_v25 }
 0xd56   :  { %20464 = vrcp.f32 %v21657_v25  ;;  %v10983_v59 = vmul.f32 0.3275911, %v21674_v32 }
 0xd57   :  { %20466 = vrcp.f32 %v21666_v29 }
 0xd58   :  { %20468 = vrcp.f32 %v21684_v35  ;;  %v21702_v55 = vadd.f32 1.0, %v10983_v59 }
 0xd59   :  { %v10764_v42 = vpop.f32.mrf.mxu3 }
 0xd5a   :  { %v21676_v48 = vpop.eup %20460  ;;  %v10765_v26 = vadd.f32 %v10764_v42, %v21581_v9 }
 0xd5b   :  { %v21605_v54 = vpop.f32.mrf.mxu2  ;;  %v21678_v13 = vpop.eup %20462  ;;  %v11009_v57 = vmul.f32 %v21676_v48, %v21642_v10  ;;  %vm11014_vm4 = vweird.f32 %v21676_v48 }
 0xd5c   :  { %v10994_v31 = vmul.f32 %v21678_v13, %v21648_v50  ;;  %v10778_v41 = vadd.f32 %v21587_v40, %v10765_v26  ;;  %vm10999_vm5 = vweird.f32 %v21678_v13  ;;  %v11019_v26 = vand.u32 2147483648, %v21642_v10  ;;  %vm21740_vm9 = vmor %vm11013_vm7, %vm11014_vm4 }
 0xd5d   :  { %v11010_v52 = vsub.f32 1.0, %v11009_v57  ;;  %v11017_v40 = vand.u32 2147483647, %v21642_v10  ;;  %vm21747_vm10 = vmor %vm10998_vm6, %vm10999_vm5  ;;  %vm11058_vm5 = vweird.f32 %v21684_v35 }
 0xd5e   :  { %v10995_v19 = vsub.f32 1.0, %v10994_v31 }
 0xd5f   :  { %v11011_v57 = vmul.f32 %v21676_v48, %v11010_v52  ;;  %vm11018_vm12 = vcmp.eq.f32.partialorder %v11017_v40, 8.507059e+37 }
 0xd60   :  { %v10996_v31 = vmul.f32 %v21678_v13, %v10995_v19 }
 0xd61   :  { %v10766_v5 = vpop.f32.mrf.mxu3  ;;  %v11012_v42 = vadd.f32 %v21676_v48, %v11011_v57 }
 0xd62   :  { %v21691_v5 = vpop.eup %20464 }
 0xd63   :  { %v10792_v38 = vpop.f32.mrf.mxu2  ;;  %v21698_v34 = vpop.eup %20466  ;;  %v11024_v58 = vmul.f32 %v21691_v5, %v21657_v25  ;;  %v11016_v37 = vsel %vm21740_vm9, %v21676_v48, %v11012_v42  ;;  %vm11029_vm11 = vweird.f32 %v21691_v5  ;;  %v11032_v48 = vand.u32 2147483647, %v21657_v25 }
 0xd64   :  { %v21695_v38 = vadd.f32 1.0, %v10982_v16  ;;  %v11039_v45 = vmul.f32 %v21698_v34, %v21666_v29  ;;  %v21712_v59 = vpop.eup %20468  ;;  %vm21767_vm14 = vmor %vm11028_vm13, %vm11029_vm11  ;;  %vm11044_vm15 = vweird.f32 %v21698_v34 }
 0xd65   :  { %v11025_v46 = vsub.f32 1.0, %v11024_v58  ;;  %v11054_v52 = vmul.f32 %v21712_v59, %v21684_v35  ;;  %vm11033_vm1 = vcmp.eq.f32.partialorder %v11032_v48, 8.507059e+37  ;;  %vm21784_vm2 = vmor %vm11043_vm0, %vm11044_vm15  ;;  %vm11059_vm3 = vweird.f32 %v21712_v59 }
 0xd66   :  { %20470 = vrcp.f32 %v21695_v38  ;;  %v11040_v36 = vsub.f32 1.0, %v11039_v45  ;;  %vm21806_vm6 = vmor %vm11058_vm5, %vm11059_vm3  ;;  %vm10953_vm5 = vcmp.ge.f32.partialorder %v21608_v53, 0.0 }
 0xd67   :  { %20472 = vrcp.f32 %v21702_v55 }
 0xd6c   :  { %v21717_v9 = vpop.eup %20470 }
 0xd6d   :  { %v21727_v45 = vpop.eup %20472  ;;  %v11069_v2 = vmul.f32 %v21717_v9, %v21695_v38  ;;  %vm11074_vm7 = vweird.f32 %v21717_v9 }
 0xd6e   :  { %v11084_v61 = vmul.f32 %v21727_v45, %v21702_v55  ;;  %vm11089_vm9 = vweird.f32 %v21727_v45 }
 0xd70   :  { %v11085_v10 = vsub.f32 1.0, %v11084_v61 }
 0xd87   :  { %v21682_v21 = vpop.f32.mrf.mxu0 }
 0xd8b   :  { %v21686_v12 = vpop.f32.mrf.mxu1  ;;  %v10816_v56 = vpop.f32.mrf.mxu3 }
 0xd8f   :  { %v21704_v27 = vpop.f32.mrf.mxu2  ;;  %v10831_v16 = vpop.f32.mrf.mxu0 }
 0xd90   :  { %v10997_v16 = vadd.f32 %v21678_v13, %v10996_v31  ;;  %v11004_v31 = vand.u32 2147483648, %v21648_v50  ;;  %v11020_v50 = vor.u32 1.1754944e-38, %v11019_v26 }
 0xd92   :  { %v11005_v26 = vor.u32 1.1754944e-38, %v11004_v31 }
 0xd93   :  { %v10857_v43 = vpop.f32.mrf.mxu1  ;;  %v10818_v58 = vpop.f32.mrf.mxu3 }
 0xd94   :  { %v11026_v43 = vmul.f32 %v21691_v5, %v11025_v46  ;;  %v10791_v46 = vadd.f32 %v21605_v54, %v10778_v41  ;;  %v11055_v54 = vsub.f32 1.0, %v11054_v52 }
 0xd96   :  { %v11027_v41 = vadd.f32 %v21691_v5, %v11026_v43  ;;  %v10804_v42 = vadd.f32 %v21589_v7, %v10791_v46  ;;  %v21765_v43 = vsel %vm11018_vm12, %v11020_v50, %v11016_v37  ;;  %v11056_v25 = vmul.f32 %v21712_v59, %v11055_v54 }
 0xd97   :  { %v10844_v19 = vpop.f32.mrf.mxu2  ;;  %v11035_v7 = vor.u32 1.1754944e-38, %v11034_v1  ;;  %v11049_v46 = vand.u32 2147483648, %v21666_v29  ;;  %v11064_v37 = vand.u32 2147483648, %v21684_v35  ;;  %vm11088_vm12 = vweird.f32 %v21702_v55 }
 0xd98   :  { %v11041_v19 = vmul.f32 %v21698_v34, %v11040_v36  ;;  %v11001_v36 = vsel %vm21747_vm10, %v21678_v13, %v10997_v16  ;;  %v11070_v16 = vsub.f32 1.0, %v11069_v2  ;;  %v11031_v40 = vsel %vm21767_vm14, %v21691_v5, %v11027_v41  ;;  %vm21836_vm13 = vmor %vm11088_vm12, %vm11089_vm9 }
 0xd99   :  { %v10817_v58 = vadd.f32 %v10816_v56, %v10804_v42  ;;  %v11114_v2 = vmul.f32 1.0614054, %v21765_v43  ;;  %v11047_v5 = vand.u32 2147483647, %v21666_v29  ;;  %v21789_v56 = vsel %vm11033_vm1, %v11035_v7, %v11031_v40 }
 0xd9a   :  { %v11042_v13 = vadd.f32 %v21698_v34, %v11041_v19  ;;  %v21781_v19 = vsel %vm21733_vm8, %v11005_v26, %v11001_v36  ;;  %v11071_v61 = vmul.f32 %v21717_v9, %v11070_v16  ;;  %v11057_v57 = vadd.f32 %v21712_v59, %v11056_v25 }
 0xd9b   :  { %v10830_v41 = vadd.f32 %v21682_v21, %v10817_v58  ;;  %v11113_v54 = vmul.f32 1.0614054, %v21781_v19  ;;  %v11050_v36 = vor.u32 1.1754944e-38, %v11049_v46  ;;  %v11086_v29 = vmul.f32 %v21727_v45, %v11085_v10 }
 0xd9c   :  { %v11046_v1 = vsel %vm21784_vm2, %v21698_v34, %v11042_v13  ;;  %v11122_v50 = vadd.f32 -1.4531521, %v11114_v2  ;;  %vm11048_vm4 = vcmp.eq.f32.partialorder %v11047_v5, 8.507059e+37  ;;  %v11062_v34 = vand.u32 2147483647, %v21684_v35 }
 0xd9d   :  { %v11115_v48 = vmul.f32 1.0614054, %v21789_v56  ;;  %v21804_v42 = vsel %vm11048_vm4, %v11050_v36, %v11046_v1  ;;  %v11072_v13 = vadd.f32 %v21717_v9, %v11071_v61  ;;  %v11061_v16 = vsel %vm21806_vm6, %v21712_v59, %v11057_v57 }
 0xd9e   :  { %v11065_v26 = vor.u32 1.1754944e-38, %v11064_v37  ;;  %v10843_v35 = vadd.f32 %v21704_v27, %v10830_v41  ;;  %v11079_v25 = vand.u32 2147483648, %v21695_v38  ;;  %vm11073_vm8 = vweird.f32 %v21695_v38 }
 0xd9f   :  { %v11077_v58 = vand.u32 2147483647, %v21695_v38  ;;  %v11087_v7 = vadd.f32 %v21727_v45, %v11086_v29  ;;  %v11121_v46 = vadd.f32 -1.4531521, %v11113_v54  ;;  %vm11063_vm10 = vcmp.eq.f32.partialorder %v11062_v34, 8.507059e+37  ;;  %vm21821_vm11 = vmor %vm11073_vm8, %vm11074_vm7 }
 0xda0   :  { %v11094_v59 = vand.u32 2147483648, %v21702_v55  ;;  %v21826_v27 = vsel %vm11063_vm10, %v11065_v26, %v11061_v16  ;;  %v11076_v2 = vsel %vm21821_vm11, %v21717_v9, %v11072_v13  ;;  %v11092_v38 = vand.u32 2147483647, %v21702_v55 }
 0xda1   :  { %v11130_v31 = vmul.f32 %v11122_v50, %v21765_v43  ;;  %v11116_v5 = vmul.f32 1.0614054, %v21804_v42  ;;  %v10856_v1 = vadd.f32 %v21686_v12, %v10843_v35  ;;  %v11080_v61 = vor.u32 1.1754944e-38, %v11079_v25 }
 0xda2   :  { %v11123_v37 = vadd.f32 -1.4531521, %v11115_v48  ;;  %vm11078_vm14 = vcmp.eq.f32.partialorder %v11077_v58, 8.507059e+37  ;;  %v11091_v9 = vsel %vm21836_vm13, %v21727_v45, %v11087_v7  ;;  %v11117_v55 = vmul.f32 1.0614054, %v21826_v27 }
 0xda3   :  { %v21844_v29 = vsel %vm11078_vm14, %v11080_v61, %v11076_v2  ;;  %v11095_v50 = vor.u32 1.1754944e-38, %v11094_v59  ;;  %v11129_v12 = vmul.f32 %v11121_v46, %v21781_v19  ;;  %vm11093_vm15 = vcmp.eq.f32.partialorder %v11092_v38, 8.507059e+37 }
 0xda4   :  { %v11138_v52 = vadd.f32 1.4214138, %v11130_v31  ;;  %v11124_v13 = vadd.f32 -1.4531521, %v11116_v5  ;;  %v11131_v35 = vmul.f32 %v11123_v37, %v21789_v56  ;;  %v11118_v45 = vmul.f32 1.0614054, %v21844_v29 }
 0xda5   :  { %v21847_v26 = vsel %vm11093_vm15, %v11095_v50, %v11091_v9  ;;  %v11125_v25 = vadd.f32 -1.4531521, %v11117_v55  ;;  %v10920_v7 = vperm.slane %v21583_v33, 7  ;;  %v11137_v10 = vadd.f32 1.4214138, %v11129_v12 }
 0xda6   :  { %v11119_v59 = vmul.f32 1.0614054, %v21847_v26  ;;  %v11146_v46 = vmul.f32 %v11138_v52, %v21765_v43  ;;  %v11186_v2 = vsub.f32 0.0, %v21614_v24  ;;  %v11139_v31 = vadd.f32 1.4214138, %v11131_v35 }
 0xda7   :  { %v11133_v61 = vmul.f32 %v11125_v25, %v21826_v27  ;;  %v11145_v33 = vmul.f32 %v11137_v10, %v21781_v19  ;;  %v11188_v10 = vsub.f32 0.0, %v21637_v18  ;;  %vm10954_vm1 = vcmp.ge.f32.partialorder %v21600_v49, 0.0 }
 0xda8   :  { %v11127_v9 = vadd.f32 -1.4531521, %v11119_v59  ;;  %v11154_v55 = vadd.f32 -0.28449672, %v11146_v46  ;;  %vm10955_vm6 = vcmp.ge.f32.partialorder %v21617_v30, 0.0  ;;  %vm10956_vm7 = vcmp.ge.f32.partialorder %v21624_v62, 0.0 }
 0xda9   :  { %vm10957_vm8 = vcmp.ge.f32.partialorder %v21646_v63, 0.0  ;;  %vm10958_vm9 = vcmp.ge.f32.partialorder %v21654_v3, 0.0  ;;  %v10937_v63 = vmul.f32 0.5, %v21596_v47  ;;  %vm10959_vm10 = vcmp.ge.f32.partialorder %v21664_v51, 0.0 }
 0xdaa   :  { %v11135_v35 = vmul.f32 %v11127_v9, %v21847_v26  ;;  %v10940_v51 = vmul.f32 0.5, %v21611_v28 }
 0xdc7   :  { %v10881_v21 = vpop.f32.mrf.mxu0 }
 0xdcb   :  { %v10907_v40 = vpop.f32.mrf.mxu1  ;;  %v10868_v41 = vpop.f32.mrf.mxu3 }
 0xdcc   :  { %v10869_v54 = vadd.f32 %v10868_v41, %v10856_v1  ;;  %v11126_v1 = vadd.f32 -1.4531521, %v11118_v45  ;;  %v11185_v41 = vsub.f32 0.0, %v21621_v44 }
 0xdce   :  { %v10882_v48 = vadd.f32 %v10881_v21, %v10869_v54  ;;  %v11132_v21 = vmul.f32 %v11124_v13, %v21804_v42  ;;  %v11194_v54 = vmul.f32 %v11186_v2, %v21614_v24  ;;  %v11134_v12 = vmul.f32 %v11126_v1, %v21844_v29 }
 0xdcf   :  { %v10894_v36 = vpop.f32.mrf.mxu2  ;;  %v10883_v34 = vpop.f32.mrf.mxu0  ;;  %v11153_v13 = vadd.f32 -0.28449672, %v11145_v33  ;;  %v11162_v24 = vmul.f32 %v11154_v55, %v21765_v43  ;;  %v11189_v2 = vsub.f32 0.0, %v21660_v39  ;;  %v11196_v33 = vmul.f32 %v11188_v10, %v21637_v18 }
 0xdd0   :  { %v10895_v58 = vadd.f32 %v10894_v36, %v10882_v48  ;;  %v11140_v36 = vadd.f32 1.4214138, %v11132_v21  ;;  %v11141_v34 = vadd.f32 1.4214138, %v11133_v61  ;;  %v11193_v48 = vmul.f32 %v11185_v41, %v21621_v44 }
 0xdd1   :  { %v11203_v45 = vmul.f32 1.442695, %v11194_v54  ;;  %v11142_v59 = vadd.f32 1.4214138, %v11134_v12  ;;  %v11170_v1 = vadd.f32 0.2548296, %v11162_v24  ;;  %v11197_v55 = vmul.f32 %v11189_v2, %v21660_v39 }
 0xdd2   :  { %v10908_v38 = vadd.f32 %v10907_v40, %v10895_v58  ;;  %v11147_v40 = vmul.f32 %v11139_v31, %v21789_v56  ;;  %v11148_v25 = vmul.f32 %v11140_v36, %v21804_v42  ;;  %v11149_v46 = vmul.f32 %v11141_v34, %v21826_v27 }
 0xdd3   :  { %v10909_v16 = vpop.f32.mrf.mxu1  ;;  %v10870_v5 = vpop.f32.mrf.mxu3  ;;  %v11201_v21 = vmul.f32 1.442695, %v11193_v48  ;;  %v11143_v31 = vadd.f32 1.4214138, %v11135_v35  ;;  %v11150_v41 = vmul.f32 %v11142_v59, %v21844_v29  ;;  %v11190_v54 = vsub.f32 0.0, %v21669_v6 }
 0xdd4   :  { %v21857_v57 = vadd.f32 %v10920_v7, %v10908_v38  ;;  %v11187_v16 = vsub.f32 0.0, %v21629_v4  ;;  %v11155_v7 = vadd.f32 -0.28449672, %v11147_v40  ;;  %v11161_v5 = vmul.f32 %v11153_v13, %v21781_v19 }
 0xdd5   :  { %v11156_v61 = vadd.f32 -0.28449672, %v11148_v25  ;;  %v11157_v9 = vadd.f32 -0.28449672, %v11149_v46  ;;  %v11151_v36 = vmul.f32 %v11143_v31, %v21847_v26  ;;  %v11178_v12 = vmul.f32 %v11170_v1, %v21765_v43 }
 0xdd6   :  { %v21863_v50 = vmul.f32 0.70710677, %v21857_v57  ;;  %v11195_v38 = vmul.f32 %v11187_v16, %v21629_v4  ;;  %v11169_v40 = vadd.f32 0.2548296, %v11161_v5  ;;  %v11191_v13 = vsub.f32 0.0, %v21674_v32 }
 0xdd7   :  { %v10896_v37 = vpop.f32.mrf.mxu2  ;;  %v11164_v34 = vmul.f32 %v11156_v61, %v21804_v42  ;;  %v11207_v18 = vmul.f32 1.442695, %v11196_v33  ;;  %v11158_v16 = vadd.f32 -0.28449672, %v11150_v41  ;;  %v11165_v24 = vmul.f32 %v11157_v9, %v21826_v27 }
 0xdd8   :  { %v21868_v52 = vand.u32 2147483647, %v21863_v50  ;;  %v11163_v37 = vmul.f32 %v11155_v7, %v21789_v56  ;;  %v11205_v4 = vmul.f32 1.442695, %v11195_v38  ;;  %v11209_v39 = vmul.f32 1.442695, %v11197_v55 }
 0xdd9   :  { %v11159_v7 = vadd.f32 -0.28449672, %v11151_v36  ;;  %v11177_v43 = vmul.f32 %v11169_v40, %v21781_v19  ;;  %v11172_v59 = vadd.f32 0.2548296, %v11164_v34  ;;  %v11199_v46 = vmul.f32 %v11191_v13, %v21674_v32 }
 0xdda   :  { %v10984_v58 = vmul.f32 0.3275911, %v21868_v52  ;;  %v11171_v48 = vadd.f32 0.2548296, %v11163_v37  ;;  %v11166_v38 = vmul.f32 %v11158_v16, %v21844_v29  ;;  %v11173_v31 = vadd.f32 0.2548296, %v11165_v24 }
 0xddb   :  { %v11167_v37 = vmul.f32 %v11159_v7, %v21847_v26  ;;  %v11180_v32 = vmul.f32 %v11172_v59, %v21804_v42  ;;  %vm10960_vm11 = vcmp.ge.f32.partialorder %v21863_v50, 0.0 }
 0xddc   :  { %v21879_v44 = vadd.f32 1.0, %v10984_v58  ;;  %v11179_v2 = vmul.f32 %v11171_v48, %v21789_v56  ;;  %v11213_v56 = vmul.f32 1.442695, %v11199_v46  ;;  %v11174_v55 = vadd.f32 0.2548296, %v11166_v38 }
 0xddd   :  { %v11175_v13 = vadd.f32 0.2548296, %v11167_v37 }
 0xdde   :  { %20474 = vrcp.f32 %v21879_v44  ;;  %v11109_v5 = vand.u32 2147483648, %v21879_v44  ;;  %v11107_v19 = vand.u32 2147483647, %v21879_v44  ;;  %vm11103_vm2 = vweird.f32 %v21879_v44 }
 0xddf   :  { %20476 = vpow2.f32 %v11203_v45  ;;  %v11198_v45 = vmul.f32 %v11190_v54, %v21669_v6  ;;  %v11182_v24 = vmul.f32 %v11174_v55, %v21844_v29  ;;  %v11183_v7 = vmul.f32 %v11175_v13, %v21847_v26 }
 0xde0   :  { %20478 = vpow2.f32 %v11201_v21  ;;  %v11110_v36 = vor.u32 1.1754944e-38, %v11109_v5  ;;  %vm11108_vm4 = vcmp.eq.f32.partialorder %v11107_v19, 8.507059e+37 }
 0xde1   :  { %20480 = vpow2.f32 %v11205_v4  ;;  %v11211_v6 = vmul.f32 1.442695, %v11198_v45  ;;  %v11181_v4 = vmul.f32 %v11173_v31, %v21826_v27 }
 0xde2   :  { %20482 = vpow2.f32 %v11207_v18  ;;  %v11192_v18 = vsub.f32 0.0, %v21868_v52 }
 0xde3   :  { %20484 = vpow2.f32 %v11209_v39 }
 0xde4   :  { %v20475_v35 = vpop.eup %20474  ;;  %20486 = vpow2.f32 %v11211_v6  ;;  %v11200_v59 = vmul.f32 %v11192_v18, %v21868_v52  ;;  %v10941_v18 = vmul.f32 0.5, %v21632_v11 }
 0xde5   :  { %v20477_v25 = vpop.eup %20476  ;;  %v11099_v58 = vmul.f32 %v20475_v35, %v21879_v44  ;;  %vm11104_vm0 = vweird.f32 %v20475_v35  ;;  %20488 = vpow2.f32 %v11213_v56 }
 0xde6   :  { %v11218_v10 = vmul.f32 %v20477_v25, %v11178_v12  ;;  %v20479_v1 = vpop.eup %20478  ;;  %vm11105_vm3 = vmor %vm11103_vm2, %vm11104_vm0  ;;  %v22707_v25 = vmov -1.0   ;;  %vm11999_vm0 = vcmask 80896  }
 0xde7   :  { %v11100_v21 = vsub.f32 1.0, %v11099_v58  ;;  %v11217_v33 = vmul.f32 %v20479_v1, %v11177_v43  ;;  %v20481_v41 = vpop.eup %20480  ;;  %v10961_v29 = vsel %vm10953_vm5, 1.0, %v22707_v25  ;;  %v10963_v30 = vsel %vm10955_vm6, 1.0, %v22707_v25 }
 0xde8   :  { %v11219_v54 = vmul.f32 %v20481_v41, %v11179_v2  ;;  %v20483_v40 = vpop.eup %20482  ;;  %v11226_v12 = vsub.f32 1.0, %v11218_v10  ;;  %v10964_v26 = vsel %vm10956_vm7, 1.0, %v22707_v25  ;;  %v10965_v52 = vsel %vm10957_vm8, 1.0, %v22707_v25 }
 0xde9   :  { %v11101_v61 = vmul.f32 %v20475_v35, %v11100_v21  ;;  %v20485_v42 = vpop.eup %20484  ;;  %v11220_v48 = vmul.f32 %v20483_v40, %v11180_v32  ;;  %v11225_v27 = vsub.f32 1.0, %v11217_v33  ;;  %v10938_v32 = vmul.f32 0.5, %v21592_v17 }
 0xdea   :  { %v11227_v39 = vsub.f32 1.0, %v11219_v54  ;;  %v11221_v45 = vmul.f32 %v20485_v42, %v11181_v4  ;;  %v20487_v43 = vpop.eup %20486  ;;  %v10939_v4 = vmul.f32 0.5, %v21603_v20  ;;  %v10967_v47 = vsel %vm10959_vm10, 1.0, %v22707_v25 }
 0xdeb   :  { %v11102_v9 = vadd.f32 %v20475_v35, %v11101_v61  ;;  %v11228_v53 = vsub.f32 1.0, %v11220_v48  ;;  %v11222_v2 = vmul.f32 %v20487_v43, %v11182_v24  ;;  %v20489_v21 = vpop.eup %20488  ;;  %v11233_v38 = vmul.f32 %v11225_v27, %v10961_v29 }
 0xdec   :  { %v11235_v49 = vmul.f32 %v11227_v39, %v10963_v30  ;;  %v11229_v31 = vsub.f32 1.0, %v11221_v45  ;;  %v11223_v5 = vmul.f32 %v20489_v21, %v11183_v7  ;;  %v11215_v61 = vmul.f32 1.442695, %v11200_v59 }
 0xded   :  { %v11106_v34 = vsel %vm11105_vm3, %v20475_v35, %v11102_v9  ;;  %v10962_v35 = vsel %vm10954_vm1, 1.0, %v22707_v25  ;;  %v11236_v1 = vmul.f32 %v11228_v53, %v10964_v26  ;;  %v11230_v37 = vsub.f32 1.0, %v11222_v2  ;;  %v20231_v26 = vld [vmem:[%s22649_s14 + $0x38] sm:$0xff] }
 0xdee   :  { %v11111_v16 = vsel %vm11108_vm4, %v11110_v36, %v11106_v34  ;;  %v11234_v10 = vmul.f32 %v11226_v12, %v10962_v35  ;;  %v11241_v33 = vadd.f32 1.0, %v11233_v38  ;;  %v11243_v56 = vadd.f32 1.0, %v11235_v49  ;;  %11895 = vmatpush.bf16.msra.mxu3 %v20231_v26  ;;  %v20248_v26 = vld [vmem:[%s22649_s14 + $0xc0] sm:$0xff] }
 0xdef   :  { %v11120_v44 = vmul.f32 1.0614054, %v11111_v16  ;;  %v11237_v41 = vmul.f32 %v11229_v31, %v10965_v52  ;;  %v11231_v55 = vsub.f32 1.0, %v11223_v5  ;;  %v10966_v36 = vsel %vm10958_vm9, 1.0, %v22707_v25  ;;  %v20246_v52 = vld [vmem:[%s22649_s14 + $0xb0] sm:$0xff] }
 0xdf0   :  { %v11242_v62 = vadd.f32 1.0, %v11234_v10  ;;  %20490 = vpow2.f32 %v11215_v61  ;;  %v11244_v3 = vadd.f32 1.0, %v11236_v1  ;;  %v11238_v12 = vmul.f32 %v11230_v37, %v10966_v36  ;;  %v20230_v1 = vld [vmem:[%s22649_s14 + $0x30] sm:$0xff] }
 0xdf1   :  { %v11128_v58 = vadd.f32 -1.4531521, %v11120_v44  ;;  %v21930_v34 = vmul.f32 %v11241_v33, %v10937_v63  ;;  %v21932_v17 = vmul.f32 %v11243_v56, %v10939_v4  ;;  %v11245_v13 = vadd.f32 1.0, %v11237_v41  ;;  %v20238_v61 = vld [vmem:[%s22649_s14 + $0x70] sm:$0xff]  ;;  %v20229_v33 = vld [vmem:[%s22649_s14 + $0x28] sm:$0xff]  ;;  %v20236_v4 = vld [vmem:[%s22649_s14 + $0x60] sm:$0xff] }
 0xdf2   :  { %v21926_v54 = vmul.f32 %v11242_v62, %v10938_v32  ;;  %v11239_v48 = vmul.f32 %v11231_v55, %v10967_v47  ;;  %v21939_v44 = vmul.f32 %v11244_v3, %v10940_v51  ;;  %v11246_v27 = vadd.f32 1.0, %v11238_v12  ;;  %v20255_v62 = vld [vmem:[%s22649_s14 + $0xf8] sm:$0xff]  ;;  %11896 = vmatpush.bf16.msra.mxu3 %v20230_v1  ;;  %v20237_v32 = vld [vmem:[%s22649_s14 + $0x68] sm:$0xff]  ;;  %v20244_v3 = vld [vmem:[%s22649_s14 + $0xa0] sm:$0xff] }
 0xdf3   :  { %v11136_v46 = vmul.f32 %v11128_v58, %v11111_v16  ;;  %v21942_v35 = vmul.f32 %v11245_v13, %v10941_v18  ;;  %v10942_v58 = vmul.f32 0.5, %v21640_v8  ;;  %v10943_v43 = vmul.f32 0.5, %v21650_v0  ;;  %11934 = vmatpush.bf16.msrb.mxu1 %v20255_v62  ;;  %v20245_v56 = vld [vmem:[%s22649_s14 + $0xa8] sm:$0xff]  ;;  %v20227_v51 = vld [vmem:[%s22649_s14 + $0x18] sm:$0xff]  ;;  %v20262_v1 = vld [vmem:[%s22649_s14 + $0x130] sm:$0xff] }
 0xdf4   :  { %v11259_v20 = vadd.f32 %v21926_v54, %v21930_v34  ;;  %v11247_v7 = vadd.f32 1.0, %v11239_v48  ;;  %v10944_v8 = vmul.f32 0.5, %v21857_v57  ;;  %v20970_v38 = vmov 1024.0   ;;  %v20239_v57 = vld [vmem:[%s22649_s14 + $0x78] sm:$0xff]  ;;  %v20253_v41 = vld [vmem:[%s22649_s14 + $0xe8] sm:$0xff] }
 0xdf5   :  { %v11144_v6 = vadd.f32 1.4214138, %v11136_v46  ;;  %v21947_v53 = vmul.f32 %v11246_v27, %v10942_v58  ;;  %20492 = vrcp.f32 %v20970_v38  ;;  %11908 = vmatpush.bf16.msrb.mxu0 %v20239_v57  ;;  %v20226_v27 = vld [vmem:[%s22649_s14 + $0x10] sm:$0xff]  ;;  %v20263_v57 = vld [vmem:[%s22649_s14 + $0x138] sm:$0xff] }
 0xdf6   :  { %v20491_v39 = vpop.eup %20490  ;;  %v11260_v45 = vadd.f32 %v11259_v20, %v21932_v17  ;;  %v21951_v29 = vmul.f32 %v11247_v7, %v10943_v43  ;;  %11897 = vmatpush.bf16.msra.mxu3 %v20229_v33  ;;  %v20251_v20 = vld [vmem:[%s22649_s14 + $0xd8] sm:$0xff]  ;;  %v20250_v7 = vld [vmem:[%s22649_s14 + $0xd0] sm:$0xff]  ;;  %v20269_v33 = vld [vmem:[%s22649_s14 + $0x168] sm:$0xff] }
 0xdf7   :  { %v11152_v19 = vmul.f32 %v11144_v6, %v11111_v16  ;;  %v20247_v6 = vld [vmem:[%s22649_s14 + $0xb8] sm:$0xff] }
 0xdf8   :  { %v11261_v11 = vadd.f32 %v11260_v45, %v21939_v44  ;;  %11921 = vmatpush.bf16.msrb.mxu2 %v20247_v6  ;;  %v20271_v6 = vld [vmem:[%s22649_s14 + $0x178] sm:$0xff] }
 0xdf9   :  { %v11160_v9 = vadd.f32 -0.28449672, %v11152_v19  ;;  %v20254_v19 = vld [vmem:[%s22649_s14 + $0xf0] sm:$0xff]  ;;  %11909 = vmatpush.bf16.msrb.mxu0 %v20238_v61  ;;  %v20287_v62 = vld [vmem:[%s22649_s14 + $0x1f8] sm:$0xff] }
 0xdfa   :  { %v11262_v30 = vadd.f32 %v11261_v11, %v21942_v35  ;;  %11935 = vmatpush.bf16.msrb.mxu1 %v20254_v19  ;;  %v20225_v11 = vld [vmem:[%s22649_s14 + $0x8] sm:$0xff]  ;;  %v20270_v61 = vld [vmem:[%s22649_s14 + $0x170] sm:$0xff] }
 0xdfb   :  { %v11168_v40 = vmul.f32 %v11160_v9, %v11111_v16  ;;  %v20228_v9 = vld [vmem:[%s22649_s14 + $0x20] sm:$0xff]  ;;  %v20286_v19 = vld [vmem:[%s22649_s14 + $0x1f0] sm:$0xff] }
 0xdfc   :  { %v11263_v50 = vadd.f32 %v11262_v30, %v21947_v53  ;;  %11922 = vmatpush.bf16.msrb.mxu2 %v20246_v52  ;;  %11898 = vmatpush.bf16.msra.mxu3 %v20228_v9  ;;  %v20278_v52 = vld [vmem:[%s22649_s14 + $0x1b0] sm:$0xff]  ;;  %v20268_v9 = vld [vmem:[%s22649_s14 + $0x160] sm:$0xff] }
 0xdfd   :  { %v11176_v42 = vadd.f32 0.2548296, %v11168_v40  ;;  %11910 = vmatpush.bf16.msrb.mxu0 %v20237_v32  ;;  %v20252_v40 = vld [vmem:[%s22649_s14 + $0xe0] sm:$0xff]  ;;  %v20277_v32 = vld [vmem:[%s22649_s14 + $0x1a8] sm:$0xff] }
 0xdfe   :  { %v11264_v0 = vadd.f32 %v11263_v50, %v21951_v29  ;;  %11936 = vmatpush.bf16.msrb.mxu1 %v20253_v41  ;;  %v20260_v41 = vld [vmem:[%s22649_s14 + $0x120] sm:$0xff] }
 0xdff   :  { %v11184_v24 = vmul.f32 %v11176_v42, %v11111_v16  ;;  %v10968_v16 = vsel %vm10960_vm11, 1.0, %v22707_v25  ;;  %v20493_v25 = vpop.eup %20492  ;;  %v20235_v42 = vld [vmem:[%s22649_s14 + $0x58] sm:$0xff] }
 0xe00   :  { %v11269_v49 = vmul.f32 1024.0, %v20493_v25  ;;  %vm11273_vm12 = vweird.f32 %v20493_v25  ;;  %11923 = vmatpush.bf16.msrb.mxu2 %v20245_v56  ;;  %11899 = vmatpush.bf16.msra.mxu3 %v20227_v51  ;;  %v20285_v56 = vld [vmem:[%s22649_s14 + $0x1e8] sm:$0xff]  ;;  %v20283_v51 = vld [vmem:[%s22649_s14 + $0x1d8] sm:$0xff] }
 0xe01   :  { %v11224_v28 = vmul.f32 %v20491_v39, %v11184_v24  ;;  %11911 = vmatpush.bf16.msrb.mxu0 %v20236_v4  ;;  %v20234_v39 = vld [vmem:[%s22649_s14 + $0x50] sm:$0xff]  ;;  %v20284_v4 = vld [vmem:[%s22649_s14 + $0x1e0] sm:$0xff] }
 0xe02   :  { %v11270_v31 = vsub.f32 1.0, %v11269_v49  ;;  %11937 = vmatpush.bf16.msrb.mxu1 %v20252_v40  ;;  %v20232_v49 = vld [vmem:[%s22649_s14 + $0x40] sm:$0xff]  ;;  %v20275_v40 = vld [vmem:[%s22649_s14 + $0x198] sm:$0xff] }
 0xe03   :  { %v11232_v10 = vsub.f32 1.0, %v11224_v28  ;;  %v20242_v28 = vld [vmem:[%s22649_s14 + $0x90] sm:$0xff] }
 0xe04   :  { %v11271_v5 = vmul.f32 %v20493_v25, %v11270_v31  ;;  %11924 = vmatpush.bf16.msrb.mxu2 %v20244_v3  ;;  %11900 = vmatpush.bf16.msra.mxu3 %v20226_v27  ;;  %v20240_v31 = vld [vmem:[%s22649_s14 + $0x80] sm:$0xff]  ;;  %v20267_v3 = vld [vmem:[%s22649_s14 + $0x158] sm:$0xff]  ;;  %v20281_v27 = vld [vmem:[%s22649_s14 + $0x1c8] sm:$0xff] }
 0xe05   :  { %v11240_v59 = vmul.f32 %v11232_v10, %v10968_v16  ;;  %11912 = vmatpush.bf16.msrb.mxu0 %v20235_v42  ;;  %v20233_v16 = vld [vmem:[%s22649_s14 + $0x48] sm:$0xff]  ;;  %v20258_v42 = vld [vmem:[%s22649_s14 + $0x110] sm:$0xff] }
 0xe06   :  { %v11272_v37 = vadd.f32 %v20493_v25, %v11271_v5  ;;  %11938 = vmatpush.bf16.msrb.mxu1 %v20251_v20  ;;  %v20279_v5 = vld [vmem:[%s22649_s14 + $0x1b8] sm:$0xff]  ;;  %v20257_v20 = vld [vmem:[%s22649_s14 + $0x108] sm:$0xff] }
 0xe07   :  { %v11248_v46 = vadd.f32 1.0, %v11240_v59 }
 0xe08   :  { %v21996_v63 = vsel %vm11273_vm12, %v20493_v25, %v11272_v37  ;;  %11901 = vmatpush.bf16.msra.mxu3 %v20225_v11  ;;  %v20224_v25 = vld [vmem:[%s22649_s14] sm:$0xff]  ;;  %v20261_v37 = vld [vmem:[%s22649_s14 + $0x128] sm:$0xff] }
 0xe09   :  { %v21956_v2 = vmul.f32 %v11248_v46, %v10944_v8  ;;  %11913 = vmatpush.bf16.msrb.mxu0 %v20234_v39  ;;  %v20241_v8 = vld [vmem:[%s22649_s14 + $0x88] sm:$0xff]  ;;  %v20256_v39 = vld [vmem:[%s22649_s14 + $0x100] sm:$0xff] }
 0xe0a   :  { %11939 = vmatpush.bf16.msrb.mxu1 %v20250_v7  ;;  %v20249_v46 = vld [vmem:[%s22649_s14 + $0xc8] sm:$0xff] }
 0xe0b   :  { %v11265_v21 = vadd.f32 %v11264_v0, %v21956_v2 }
 0xe0c   :  { %11902 = vmatpush.bf16.msra.mxu3 %v20224_v25 }
 0xe0d   :  { %11266 = vadd.xlane.f32.xlu2 %v11265_v21  ;;  %11914 = vmatpush.bf16.msrb.mxu0 %v20233_v16 }
 0xe0e   :  { %11940 = vmatpush.bf16.msrb.mxu1 %v20249_v46 }
 0xe10   :  { %11947 = vmatpush.bf16.msrb.mxu3 %v20263_v57 }
 0xe11   :  { %11915 = vmatpush.bf16.msrb.mxu0 %v20232_v49 }
 0xe12   :  { %11941 = vmatpush.bf16.msrb.mxu1 %v20248_v26 }
 0xe14   :  { %11948 = vmatpush.bf16.msrb.mxu3 %v20262_v1 }
 0xe15   :  { %11960 = vmatpush.bf16.msra.mxu0 %v20271_v6 }
 0xe16   :  { %11986 = vmatpush.bf16.msra.mxu1 %v20287_v62 }
 0xe18   :  { %11949 = vmatpush.bf16.msrb.mxu3 %v20261_v37 }
 0xe19   :  { %11961 = vmatpush.bf16.msra.mxu0 %v20270_v61 }
 0xe1a   :  { %11987 = vmatpush.bf16.msra.mxu1 %v20286_v19 }
 0xe1c   :  { %11950 = vmatpush.bf16.msrb.mxu3 %v20260_v41 }
 0xe1d   :  { %11962 = vmatpush.bf16.msra.mxu0 %v20269_v33 }
 0xe1e   :  { %11988 = vmatpush.bf16.msra.mxu1 %v20285_v56 }
 0xe21   :  { %11963 = vmatpush.bf16.msra.mxu0 %v20268_v9 }
 0xe22   :  { %11989 = vmatpush.bf16.msra.mxu1 %v20284_v4 }
 0xe25   :  { %11964 = vmatpush.bf16.msra.mxu0 %v20267_v3  ;;  %v20294_v3 = vld [vmem:[%s22651_s16 + $0x30] sm:$0xff] }
 0xe26   :  { %11990 = vmatpush.bf16.msra.mxu1 %v20283_v51 }
 0xe80   :  { %v11267_v55 = vpop.xlane.xlu2 %11266 }
 0xe81   :  { %v11275_v36 = vmul.f32 %v21996_v63, %v11267_v55  ;;  %v20276_v55 = vld [vmem:[%s22649_s14 + $0x1a0] sm:$0xff] }
 0xe83   :  { %v22012_v12 = vsub.f32 %v21930_v34, %v11275_v36  ;;  %v22015_v13 = vsub.f32 %v21926_v54, %v11275_v36  ;;  %v22018_v47 = vsub.f32 %v21932_v17, %v11275_v36  ;;  %v22027_v48 = vsub.f32 %v21939_v44, %v11275_v36  ;;  %v20243_v17 = vld [vmem:[%s22649_s14 + $0x98] sm:$0xff] }
 0xe84   :  { %v22040_v18 = vsub.f32 %v21942_v35, %v11275_v36  ;;  %v22051_v45 = vsub.f32 %v21947_v53, %v11275_v36  ;;  %11925 = vmatpush.bf16.msrb.mxu2 %v20243_v17  ;;  %v22062_v43 = vsub.f32 %v21951_v29, %v11275_v36  ;;  %v22073_v59 = vsub.f32 %v21956_v2, %v11275_v36  ;;  %v20259_v36 = vld [vmem:[%s22649_s14 + $0x118] sm:$0xff]  ;;  %v20282_v17 = vld [vmem:[%s22649_s14 + $0x1d0] sm:$0xff] }
 0xe85   :  { %v11284_v54 = vmul.f32 %v22012_v12, %v22012_v12  ;;  %v11285_v34 = vmul.f32 %v22015_v13, %v22015_v13  ;;  %v11286_v44 = vmul.f32 %v22018_v47, %v22018_v47  ;;  %v11287_v35 = vmul.f32 %v22027_v48, %v22027_v48  ;;  %11951 = vmatpush.bf16.msrb.mxu3 %v20259_v36 }
 0xe86   :  { %v11288_v10 = vmul.f32 %v22040_v18, %v22040_v18  ;;  %v11289_v29 = vmul.f32 %v22051_v45, %v22051_v45  ;;  %v11290_v50 = vmul.f32 %v22062_v43, %v22062_v43  ;;  %v11291_v2 = vmul.f32 %v22073_v59, %v22073_v59  ;;  %11991 = vmatpush.bf16.msra.mxu1 %v20282_v17  ;;  %v20310_v17 = vld [vmem:[%s22651_s16 + $0xb0] sm:$0xff] }
 0xe87   :  { %v11292_v24 = vadd.f32 %v11285_v34, %v11284_v54  ;;  %v20266_v54 = vld [vmem:[%s22649_s14 + $0x150] sm:$0xff] }
 0xe88   :  { %11926 = vmatpush.bf16.msrb.mxu2 %v20242_v28  ;;  %v20274_v34 = vld [vmem:[%s22649_s14 + $0x190] sm:$0xff]  ;;  %11965 = vmatpush.bf16.msra.mxu0 %v20266_v54  ;;  %v20280_v28 = vld [vmem:[%s22649_s14 + $0x1c0] sm:$0xff] }
 0xe89   :  { %v11293_v58 = vadd.f32 %v11292_v24, %v11286_v44  ;;  %11952 = vmatpush.bf16.msrb.mxu3 %v20258_v42  ;;  %v20265_v44 = vld [vmem:[%s22649_s14 + $0x148] sm:$0xff] }
 0xe8a   :  { %v20273_v24 = vld [vmem:[%s22649_s14 + $0x188] sm:$0xff]  ;;  %11992 = vmatpush.bf16.msra.mxu1 %v20281_v27 }
 0xe8b   :  { %v11294_v53 = vadd.f32 %v11293_v58, %v11287_v35  ;;  %v20264_v35 = vld [vmem:[%s22649_s14 + $0x140] sm:$0xff]  ;;  %v20293_v27 = vld [vmem:[%s22651_s16 + $0x28] sm:$0xff] }
 0xe8c   :  { %11927 = vmatpush.bf16.msrb.mxu2 %v20241_v8  ;;  %11966 = vmatpush.bf16.msra.mxu0 %v20265_v44  ;;  %v20272_v58 = vld [vmem:[%s22649_s14 + $0x180] sm:$0xff]  ;;  %v22196_v8 = vld [vmem:[#allocation20] sm:$0xff] }
 0xe8d   :  { %v11295_v30 = vadd.f32 %v11294_v53, %v11288_v10  ;;  %11953 = vmatpush.bf16.msrb.mxu3 %v20257_v20  ;;  %v11325_v25 = vperm.slane %v22196_v8, 3  ;;  %v11326_v42 = vperm.slane %v22196_v8, 4  ;;  %v20318_v20 = vld [vmem:[%s22651_s16 + $0xf0] sm:$0xff] }
 0xe8e   :  { %11993 = vmatpush.bf16.msra.mxu1 %v20280_v28 }
 0xe8f   :  { %v11296_v0 = vadd.f32 %v11295_v30, %v11289_v29 }
 0xe90   :  { %11928 = vmatpush.bf16.msrb.mxu2 %v20240_v31  ;;  %11967 = vmatpush.bf16.msra.mxu0 %v20264_v35 }
 0xe91   :  { %v11297_v21 = vadd.f32 %v11296_v0, %v11290_v50  ;;  %11954 = vmatpush.bf16.msrb.mxu3 %v20256_v39  ;;  %v22198_v50 = vld [vmem:[#allocation22] sm:$0xff]  ;;  %v20301_v39 = vld [vmem:[%s22651_s16 + $0x68] sm:$0xff] }
 0xe92   :  { %v11348_v31 = vperm.slane %v22198_v50, 1  ;;  %v11349_v26 = vperm.slane %v22198_v50, 2  ;;  %v11350_v57 = vperm.slane %v22198_v50, 3  ;;  %v11352_v28 = vperm.slane %v22198_v50, 5 }
 0xe93   :  { %v11298_v38 = vadd.f32 %v11297_v21, %v11291_v2  ;;  %v11347_v2 = vperm.slane %v22198_v50, 0  ;;  %v11323_v21 = vperm.slane %v22196_v8, 1 }
 0xe94   :  { %11973 = vmatpush.bf16.msra.mxu2 %v20279_v5 }
 0xe95   :  { %11299 = vadd.xlane.f32.xlu0 %v11298_v38  ;;  %v11324_v38 = vperm.slane %v22196_v8, 2 }
 0xe98   :  { %11974 = vmatpush.bf16.msra.mxu2 %v20278_v52 }
 0xe9c   :  { %11975 = vmatpush.bf16.msra.mxu2 %v20277_v32 }
 0xea0   :  { %11976 = vmatpush.bf16.msra.mxu2 %v20276_v55 }
 0xea4   :  { %11977 = vmatpush.bf16.msra.mxu2 %v20275_v40  ;;  %v20302_v40 = vld [vmem:[%s22651_s16 + $0x70] sm:$0xff] }
 0xea8   :  { %11978 = vmatpush.bf16.msra.mxu2 %v20274_v34  ;;  %v11327_v34 = vperm.slane %v22196_v8, 5 }
 0xeac   :  { %11979 = vmatpush.bf16.msra.mxu2 %v20273_v24 }
 0xeb0   :  { %11980 = vmatpush.bf16.msra.mxu2 %v20272_v58  ;;  %v11351_v58 = vperm.slane %v22198_v50, 4 }
 0xf08   :  { %v11300_v7 = vpop.xlane.xlu0 %11299 }
 0xf09   :  { %v11301_v10 = vmul.f32 %v11300_v7, %v21996_v63  ;;  %v11322_v63 = vperm.slane %v22196_v8, 0  ;;  %v20317_v7 = vld [vmem:[%s22651_s16 + $0xe8] sm:$0xff] }
 0xf0b   :  { %v11302_v53 = vadd.f32 1e-05, %v11301_v10 }
 0xf0d   :  { %20494 = vrsqrt.f32 %v11302_v53  ;;  %vm11309_vm14 = vweird.f32 %v11302_v53 }
 0xf13   :  { %v20495_v11 = vpop.eup %20494 }
 0xf14   :  { %v11304_v16 = vmul.f32 %v20495_v11, %v11302_v53  ;;  %vm11310_vm13 = vweird.f32 %v20495_v11  ;;  %v11353_v53 = vperm.slane %v22198_v50, 6 }
 0xf15   :  { %vm11311_vm15 = vmor %vm11309_vm14, %vm11310_vm13 }
 0xf16   :  { %v11305_v29 = vmul.f32 %v20495_v11, %v11304_v16  ;;  %v11354_v16 = vperm.slane %v22198_v50, 7  ;;  %v20316_v50 = vld [vmem:[%s22651_s16 + $0xe0] sm:$0xff] }
 0xf18   :  { %v11306_v30 = vmul.f32 0.5, %v11305_v29  ;;  %v20292_v29 = vld [vmem:[%s22651_s16 + $0x20] sm:$0xff] }
 0xf1a   :  { %v11307_v46 = vsub.f32 1.5, %v11306_v30  ;;  %v20300_v30 = vld [vmem:[%s22651_s16 + $0x60] sm:$0xff] }
 0xf1c   :  { %v11308_v0 = vmul.f32 %v20495_v11, %v11307_v46 }
 0xf1e   :  { %v11312_v49 = vsel %vm11311_vm15, %v20495_v11, %v11308_v0  ;;  %v20308_v0 = vld [vmem:[%s22651_s16 + $0xa0] sm:$0xff] }
 0xf1f   :  { %v11313_v6 = vmul.f32 %v11312_v49, %v22012_v12  ;;  %v11314_v5 = vmul.f32 %v11312_v49, %v22015_v13  ;;  %v11315_v62 = vmul.f32 %v11312_v49, %v22018_v47  ;;  %v11316_v1 = vmul.f32 %v11312_v49, %v22027_v48  ;;  %v20295_v12 = vld [vmem:[%s22651_s16 + $0x38] sm:$0xff] }
 0xf20   :  { %v20303_v13 = vld [vmem:[%s22651_s16 + $0x78] sm:$0xff]  ;;  %v11317_v51 = vmul.f32 %v11312_v49, %v22040_v18  ;;  %v11318_v54 = vmul.f32 %v11312_v49, %v22051_v45  ;;  %v11319_v44 = vmul.f32 %v11312_v49, %v22062_v43  ;;  %v11328_v18 = vperm.slane %v22196_v8, 6 }
 0xf21   :  { %v11338_v61 = vmul.f32 %v11322_v63, %v11313_v6  ;;  %v11339_v52 = vmul.f32 %v11323_v21, %v11314_v5  ;;  %v11340_v19 = vmul.f32 %v11324_v38, %v11315_v62  ;;  %v11341_v37 = vmul.f32 %v11325_v25, %v11316_v1  ;;  %v20311_v47 = vld [vmem:[%s22651_s16 + $0xb8] sm:$0xff]  ;;  %v20290_v5 = vld [vmem:[%s22651_s16 + $0x10] sm:$0xff] }
 0xf22   :  { %v20319_v48 = vld [vmem:[%s22651_s16 + $0xf8] sm:$0xff]  ;;  %v11320_v24 = vmul.f32 %v11312_v49, %v22073_v59  ;;  %v11329_v45 = vperm.slane %v22196_v8, 7  ;;  %v11342_v35 = vmul.f32 %v11326_v42, %v11317_v51  ;;  %v11343_v43 = vmul.f32 %v11327_v34, %v11318_v54  ;;  %v20309_v59 = vld [vmem:[%s22651_s16 + $0xa8] sm:$0xff]  ;;  %v20298_v62 = vld [vmem:[%s22651_s16 + $0x50] sm:$0xff] }
 0xf23   :  { %v11363_v33 = vadd.f32 %v11347_v2, %v11338_v61  ;;  %v11364_v32 = vadd.f32 %v11348_v31, %v11339_v52  ;;  %v11365_v56 = vadd.f32 %v11349_v26, %v11340_v19  ;;  %v11366_v41 = vadd.f32 %v11350_v57, %v11341_v37  ;;  %v20291_v25 = vld [vmem:[%s22651_s16 + $0x18] sm:$0xff]  ;;  %v20306_v1 = vld [vmem:[%s22651_s16 + $0x90] sm:$0xff]  ;;  %v20289_v52 = vld [vmem:[%s22651_s16 + $0x8] sm:$0xff] }
 0xf24   :  { %v11344_v10 = vmul.f32 %v11328_v18, %v11319_v44  ;;  %v11345_v11 = vmul.f32 %v11329_v45, %v11320_v24  ;;  %v11367_v8 = vadd.f32 %v11351_v58, %v11342_v35  ;;  %v11368_v46 = vadd.f32 %v11352_v28, %v11343_v43  ;;  %v20299_v49 = vld [vmem:[%s22651_s16 + $0x58] sm:$0xff]  ;;  %v20314_v61 = vld [vmem:[%s22651_s16 + $0xd0] sm:$0xff]  ;;  %v20297_v19 = vld [vmem:[%s22651_s16 + $0x48] sm:$0xff] }
 0xf25   :  { %v11371_v9 = vpack.c.bf16 %v11363_v33, %v11363_v33  ;;  %v11372_v55 = vpack.c.bf16 %v11364_v32, %v11364_v32  ;;  %v11373_v4 = vpack.c.bf16 %v11365_v56, %v11365_v56  ;;  %v11374_v36 = vpack.c.bf16 %v11366_v41, %v11366_v41  ;;  %v20307_v57 = vld [vmem:[%s22651_s16 + $0x98] sm:$0xff]  ;;  %v20305_v37 = vld [vmem:[%s22651_s16 + $0x88] sm:$0xff]  ;;  %v20288_v32 = vld [vmem:[%s22651_s16] sm:$0xff] }
 0xf26   :  { %v11369_v63 = vadd.f32 %v11353_v53, %v11344_v10  ;;  %v11370_v2 = vadd.f32 %v11354_v16, %v11345_v11  ;;  %v11375_v21 = vpack.c.bf16 %v11367_v8, %v11367_v8  ;;  %v11376_v38 = vpack.c.bf16 %v11368_v46, %v11368_v46  ;;  %v20315_v6 = vld [vmem:[%s22651_s16 + $0xd8] sm:$0xff]  ;;  %v20313_v33 = vld [vmem:[%s22651_s16 + $0xc8] sm:$0xff]  ;;  %v20296_v56 = vld [vmem:[%s22651_s16 + $0x40] sm:$0xff] }
 0xf27   :  { %11903 = vmatmul.bf16.vlgmr.msra.gmra.mxu3 %v11371_v9  ;;  %11916 = vmatmul.bf16.vlgmr.msrb.gmra.mxu0 %v11372_v55  ;;  %v20304_v41 = vld [vmem:[%s22651_s16 + $0x80] sm:$0xff]  ;;  %v20327_v55 = vld [vmem:[%s22651_s16 + $0x138] sm:$0xff]  ;;  %v20333_v51 = vld [vmem:[%s22651_s16 + $0x168] sm:$0xff] }
 0xf28   :  { %11929 = vmatmul.bf16.vlgmr.msrb.gmra.mxu2 %v11373_v4  ;;  %11942 = vmatmul.bf16.vlgmr.msrb.gmra.mxu1 %v11374_v36  ;;  %v11377_v31 = vpack.c.bf16 %v11369_v63, %v11369_v63  ;;  %v11378_v26 = vpack.c.bf16 %v11370_v2, %v11370_v2  ;;  %v20312_v9 = vld [vmem:[%s22651_s16 + $0xc0] sm:$0xff]  ;;  %v20335_v4 = vld [vmem:[%s22651_s16 + $0x178] sm:$0xff]  ;;  %v20322_v18 = vld [vmem:[%s22651_s16 + $0x110] sm:$0xff] }
 0xf29   :  { %13029 = vmatpush.bf16.msra.mxu3 %v20295_v12  ;;  %13042 = vmatpush.bf16.msrb.mxu0 %v20303_v13  ;;  %v20343_v36 = vld [vmem:[%s22651_s16 + $0x1b8] sm:$0xff]  ;;  %v20326_v13 = vld [vmem:[%s22651_s16 + $0x130] sm:$0xff]  ;;  %v20340_v42 = vld [vmem:[%s22651_s16 + $0x1a0] sm:$0xff] }
 0xf2a   :  { %13055 = vmatpush.bf16.msrb.mxu2 %v20311_v47  ;;  %13068 = vmatpush.bf16.msrb.mxu1 %v20319_v48  ;;  %v20351_v12 = vld [vmem:[%s22651_s16 + $0x1f8] sm:$0xff]  ;;  %v20334_v47 = vld [vmem:[%s22651_s16 + $0x170] sm:$0xff]  ;;  %v20348_v54 = vld [vmem:[%s22651_s16 + $0x1e0] sm:$0xff] }
 0xf2b   :  { %v20342_v48 = vld [vmem:[%s22651_s16 + $0x1b0] sm:$0xff]  ;;  %v20323_v34 = vld [vmem:[%s22651_s16 + $0x118] sm:$0xff]  ;;  %v20329_v35 = vld [vmem:[%s22651_s16 + $0x148] sm:$0xff] }
 0xf2c   :  { %v20347_v44 = vld [vmem:[%s22651_s16 + $0x1d8] sm:$0xff]  ;;  %v20330_v24 = vld [vmem:[%s22651_s16 + $0x150] sm:$0xff]  ;;  %v20337_v58 = vld [vmem:[%s22651_s16 + $0x188] sm:$0xff] }
 0xf2d   :  { %13030 = vmatpush.bf16.msra.mxu3 %v20294_v3  ;;  %13043 = vmatpush.bf16.msrb.mxu0 %v20302_v40  ;;  %v20350_v3 = vld [vmem:[%s22651_s16 + $0x1f0] sm:$0xff]  ;;  %v20325_v40 = vld [vmem:[%s22651_s16 + $0x128] sm:$0xff]  ;;  %v20320_v28 = vld [vmem:[%s22651_s16 + $0x100] sm:$0xff] }
 0xf2e   :  { %13056 = vmatpush.bf16.msrb.mxu2 %v20310_v17  ;;  %13069 = vmatpush.bf16.msrb.mxu1 %v20318_v20  ;;  %v20331_v17 = vld [vmem:[%s22651_s16 + $0x158] sm:$0xff]  ;;  %v20338_v45 = vld [vmem:[%s22651_s16 + $0x190] sm:$0xff]  ;;  %v20345_v43 = vld [vmem:[%s22651_s16 + $0x1c8] sm:$0xff] }
 0xf2f   :  { %v20339_v20 = vld [vmem:[%s22651_s16 + $0x198] sm:$0xff]  ;;  %v20344_v10 = vld [vmem:[%s22651_s16 + $0x1c0] sm:$0xff]  ;;  %v20366_v8 = vld [vmem:[%s22651_s16 + $0x270] sm:$0xff] }
 0xf30   :  { %v20359_v53 = vld [vmem:[%s22651_s16 + $0x238] sm:$0xff]  ;;  %v20374_v46 = vld [vmem:[%s22651_s16 + $0x2b0] sm:$0xff] }
 0xf31   :  { %13031 = vmatpush.bf16.msra.mxu3 %v20293_v27  ;;  %13044 = vmatpush.bf16.msrb.mxu0 %v20301_v39  ;;  %v20346_v27 = vld [vmem:[%s22651_s16 + $0x1d0] sm:$0xff]  ;;  %v20321_v39 = vld [vmem:[%s22651_s16 + $0x108] sm:$0xff]  ;;  %v20367_v11 = vld [vmem:[%s22651_s16 + $0x278] sm:$0xff] }
 0xf32   :  { %13057 = vmatpush.bf16.msrb.mxu2 %v20309_v59  ;;  %13070 = vmatpush.bf16.msrb.mxu1 %v20317_v7  ;;  %v20328_v59 = vld [vmem:[%s22651_s16 + $0x140] sm:$0xff]  ;;  %v20375_v16 = vld [vmem:[%s22651_s16 + $0x2b8] sm:$0xff] }
 0xf33   :  { %v20336_v7 = vld [vmem:[%s22651_s16 + $0x180] sm:$0xff]  ;;  %v22709_v63 = vld [vmem:[#allocation41_spill] sm:$0xff] }
 0xf34   :  { %v22710_v2 = vld [vmem:[#allocation42_spill] sm:$0xff] }
 0xf35   :  { %13032 = vmatpush.bf16.msra.mxu3 %v20292_v29  ;;  %13045 = vmatpush.bf16.msrb.mxu0 %v20300_v30  ;;  %v20383_v29 = vld [vmem:[%s22651_s16 + $0x2f8] sm:$0xff]  ;;  %v20358_v30 = vld [vmem:[%s22651_s16 + $0x230] sm:$0xff] }
 0xf36   :  { %13058 = vmatpush.bf16.msrb.mxu2 %v20308_v0  ;;  %13071 = vmatpush.bf16.msrb.mxu1 %v20316_v50  ;;  %v20382_v0 = vld [vmem:[%s22651_s16 + $0x2f0] sm:$0xff] }
 0xf37   :  { %11955 = vmatmul.bf16.vlgmr.msrb.gmra.mxu3 %v11375_v21  ;;  %11968 = vmatmul.bf16.vlgmr.msra.gmra.mxu0 %v11376_v38  ;;  %v22708_v50 = vld [vmem:[#allocation40_spill] sm:$0xff] }
 0xf38   :  { %11981 = vmatmul.bf16.vlgmr.msra.gmra.mxu2 %v11377_v31  ;;  %11994 = vmatmul.bf16.vlgmr.msra.gmra.mxu1 %v11378_v26  ;;  %v20357_v21 = vld [vmem:[%s22651_s16 + $0x228] sm:$0xff]  ;;  %v20364_v31 = vld [vmem:[%s22651_s16 + $0x260] sm:$0xff] }
 0xf39   :  { %13033 = vmatpush.bf16.msra.mxu3 %v20291_v25  ;;  %13046 = vmatpush.bf16.msrb.mxu0 %v20299_v49  ;;  %v20365_v38 = vld [vmem:[%s22651_s16 + $0x268] sm:$0xff]  ;;  %v20356_v49 = vld [vmem:[%s22651_s16 + $0x220] sm:$0xff] }
 0xf3a   :  { %13059 = vmatpush.bf16.msrb.mxu2 %v20307_v57  ;;  %13072 = vmatpush.bf16.msrb.mxu1 %v20315_v6  ;;  %v20381_v25 = vld [vmem:[%s22651_s16 + $0x2e8] sm:$0xff]  ;;  %v20372_v26 = vld [vmem:[%s22651_s16 + $0x2a0] sm:$0xff]  ;;  %v20355_v6 = vld [vmem:[%s22651_s16 + $0x218] sm:$0xff] }
 0xf3b   :  { %v20380_v57 = vld [vmem:[%s22651_s16 + $0x2e0] sm:$0xff] }
 0xf3d   :  { %13034 = vmatpush.bf16.msra.mxu3 %v20290_v5  ;;  %13047 = vmatpush.bf16.msrb.mxu0 %v20298_v62  ;;  %v20363_v5 = vld [vmem:[%s22651_s16 + $0x258] sm:$0xff] }
 0xf3e   :  { %13060 = vmatpush.bf16.msrb.mxu2 %v20306_v1  ;;  %13073 = vmatpush.bf16.msrb.mxu1 %v20314_v61  ;;  %v20371_v62 = vld [vmem:[%s22651_s16 + $0x298] sm:$0xff]  ;;  %v20354_v61 = vld [vmem:[%s22651_s16 + $0x210] sm:$0xff] }
 0xf3f   :  { %v20379_v1 = vld [vmem:[%s22651_s16 + $0x2d8] sm:$0xff] }
 0xf41   :  { %13035 = vmatpush.bf16.msra.mxu3 %v20289_v52  ;;  %13048 = vmatpush.bf16.msrb.mxu0 %v20297_v19  ;;  %v20362_v52 = vld [vmem:[%s22651_s16 + $0x250] sm:$0xff] }
 0xf42   :  { %13061 = vmatpush.bf16.msrb.mxu2 %v20305_v37  ;;  %13074 = vmatpush.bf16.msrb.mxu1 %v20313_v33  ;;  %v20370_v19 = vld [vmem:[%s22651_s16 + $0x290] sm:$0xff]  ;;  %v20353_v33 = vld [vmem:[%s22651_s16 + $0x208] sm:$0xff] }
 0xf43   :  { %v20378_v37 = vld [vmem:[%s22651_s16 + $0x2d0] sm:$0xff] }
 0xf45   :  { %13036 = vmatpush.bf16.msra.mxu3 %v20288_v32  ;;  %13049 = vmatpush.bf16.msrb.mxu0 %v20296_v56  ;;  %v20361_v32 = vld [vmem:[%s22651_s16 + $0x248] sm:$0xff] }
 0xf46   :  { %13062 = vmatpush.bf16.msrb.mxu2 %v20304_v41  ;;  %13075 = vmatpush.bf16.msrb.mxu1 %v20312_v9  ;;  %v20369_v56 = vld [vmem:[%s22651_s16 + $0x288] sm:$0xff]  ;;  %v20352_v9 = vld [vmem:[%s22651_s16 + $0x200] sm:$0xff] }
 0xf47   :  { %v20377_v41 = vld [vmem:[%s22651_s16 + $0x2c8] sm:$0xff] }
 0xf48   :  { %13037 = vmatmul.bf16.vlgmr.msra.gmra.mxu3 %v21257_v14  ;;  %13050 = vmatmul.bf16.vlgmr.msrb.gmra.mxu0 %v21261_v15  ;;  %v20341_v14 = vld [vmem:[%s22651_s16 + $0x1a8] sm:$0xff] }
 0xf49   :  { %13081 = vmatpush.bf16.msrb.mxu3 %v20327_v55  ;;  %13094 = vmatpush.bf16.msra.mxu0 %v20335_v4  ;;  %v20349_v15 = vld [vmem:[%s22651_s16 + $0x1e8] sm:$0xff]  ;;  %v20360_v55 = vld [vmem:[%s22651_s16 + $0x240] sm:$0xff] }
 0xf4a   :  { %13107 = vmatpush.bf16.msra.mxu2 %v20343_v36  ;;  %13120 = vmatpush.bf16.msra.mxu1 %v20351_v12  ;;  %v20368_v4 = vld [vmem:[%s22651_s16 + $0x280] sm:$0xff]  ;;  %v20391_v12 = vld [vmem:[%s22651_s16 + $0x338] sm:$0xff] }
 0xf4b   :  { %13063 = vmatmul.bf16.vlgmr.msrb.gmra.mxu2 %v21265_v22  ;;  %13076 = vmatmul.bf16.vlgmr.msrb.gmra.mxu1 %v21269_v23  ;;  %v20324_v22 = vld [vmem:[%s22651_s16 + $0x120] sm:$0xff] }
 0xf4c   :  { %v20332_v23 = vld [vmem:[%s22651_s16 + $0x160] sm:$0xff] }
 0xf4d   :  { %13082 = vmatpush.bf16.msrb.mxu3 %v20326_v13  ;;  %13095 = vmatpush.bf16.msra.mxu0 %v20334_v47  ;;  %v20376_v36 = vld [vmem:[%s22651_s16 + $0x2c0] sm:$0xff]  ;;  %v20399_v13 = vld [vmem:[%s22651_s16 + $0x378] sm:$0xff] }
 0xf4e   :  { %13108 = vmatpush.bf16.msra.mxu2 %v20342_v48  ;;  %13121 = vmatpush.bf16.msra.mxu1 %v20350_v3  ;;  %v20407_v47 = vld [vmem:[%s22651_s16 + $0x3b8] sm:$0xff]  ;;  %v20390_v3 = vld [vmem:[%s22651_s16 + $0x330] sm:$0xff] }
 0xf4f   :  { %v20415_v48 = vld [vmem:[%s22651_s16 + $0x3f8] sm:$0xff] }
 0xf51   :  { %13083 = vmatpush.bf16.msrb.mxu3 %v20325_v40  ;;  %13096 = vmatpush.bf16.msra.mxu0 %v20333_v51  ;;  %v20398_v40 = vld [vmem:[%s22651_s16 + $0x370] sm:$0xff] }
 0xf52   :  { %13109 = vmatpush.bf16.msra.mxu2 %v20341_v14  ;;  %13122 = vmatpush.bf16.msra.mxu1 %v20349_v15  ;;  %v20406_v51 = vld [vmem:[%s22651_s16 + $0x3b0] sm:$0xff]  ;;  %v22711_v15 = vld [vmem:[#allocation43_spill] sm:$0xff] }
 0xf53   :  { %v20414_v14 = vld [vmem:[%s22651_s16 + $0x3f0] sm:$0xff] }
 0xf55   :  { %13084 = vmatpush.bf16.msrb.mxu3 %v20324_v22  ;;  %13097 = vmatpush.bf16.msra.mxu0 %v20332_v23  ;;  %v22712_v22 = vld [vmem:[#allocation44_spill] sm:$0xff]  ;;  %v22713_v23 = vld [vmem:[#allocation45_spill] sm:$0xff] }
 0xf56   :  { %13110 = vmatpush.bf16.msra.mxu2 %v20340_v42  ;;  %13123 = vmatpush.bf16.msra.mxu1 %v20348_v54  ;;  %v22714_v42 = vld [vmem:[#allocation46_spill] sm:$0xff]  ;;  %v20389_v54 = vld [vmem:[%s22651_s16 + $0x328] sm:$0xff] }
 0xf59   :  { %13085 = vmatpush.bf16.msrb.mxu3 %v20323_v34  ;;  %13098 = vmatpush.bf16.msra.mxu0 %v20331_v17  ;;  %v20397_v34 = vld [vmem:[%s22651_s16 + $0x368] sm:$0xff] }
 0xf5a   :  { %13111 = vmatpush.bf16.msra.mxu2 %v20339_v20  ;;  %13124 = vmatpush.bf16.msra.mxu1 %v20347_v44  ;;  %v20405_v17 = vld [vmem:[%s22651_s16 + $0x3a8] sm:$0xff]  ;;  %v20388_v44 = vld [vmem:[%s22651_s16 + $0x320] sm:$0xff] }
 0xf5b   :  { %v20413_v20 = vld [vmem:[%s22651_s16 + $0x3e8] sm:$0xff] }
 0xf5d   :  { %13086 = vmatpush.bf16.msrb.mxu3 %v20322_v18  ;;  %13099 = vmatpush.bf16.msra.mxu0 %v20330_v24  ;;  %v20396_v18 = vld [vmem:[%s22651_s16 + $0x360] sm:$0xff] }
 0xf5e   :  { %13112 = vmatpush.bf16.msra.mxu2 %v20338_v45  ;;  %13125 = vmatpush.bf16.msra.mxu1 %v20346_v27  ;;  %v20404_v24 = vld [vmem:[%s22651_s16 + $0x3a0] sm:$0xff]  ;;  %v20387_v27 = vld [vmem:[%s22651_s16 + $0x318] sm:$0xff] }
 0xf5f   :  { %v20412_v45 = vld [vmem:[%s22651_s16 + $0x3e0] sm:$0xff] }
 0xf61   :  { %13087 = vmatpush.bf16.msrb.mxu3 %v20321_v39  ;;  %13100 = vmatpush.bf16.msra.mxu0 %v20329_v35  ;;  %v20395_v39 = vld [vmem:[%s22651_s16 + $0x358] sm:$0xff] }
 0xf62   :  { %13113 = vmatpush.bf16.msra.mxu2 %v20337_v58  ;;  %13126 = vmatpush.bf16.msra.mxu1 %v20345_v43  ;;  %v20403_v35 = vld [vmem:[%s22651_s16 + $0x398] sm:$0xff]  ;;  %v20386_v43 = vld [vmem:[%s22651_s16 + $0x310] sm:$0xff] }
 0xf63   :  { %v20411_v58 = vld [vmem:[%s22651_s16 + $0x3d8] sm:$0xff] }
 0xf65   :  { %13088 = vmatpush.bf16.msrb.mxu3 %v20320_v28  ;;  %13101 = vmatpush.bf16.msra.mxu0 %v20328_v59  ;;  %v20394_v28 = vld [vmem:[%s22651_s16 + $0x350] sm:$0xff] }
 0xf66   :  { %13114 = vmatpush.bf16.msra.mxu2 %v20336_v7  ;;  %13127 = vmatpush.bf16.msra.mxu1 %v20344_v10  ;;  %v20402_v59 = vld [vmem:[%s22651_s16 + $0x390] sm:$0xff]  ;;  %v20385_v10 = vld [vmem:[%s22651_s16 + $0x308] sm:$0xff] }
 0xf67   :  { %v20410_v7 = vld [vmem:[%s22651_s16 + $0x3d0] sm:$0xff] }
 0xf68   :  { %13089 = vmatmul.bf16.vlgmr.msrb.gmra.mxu3 %v21277_v60  ;;  %13102 = vmatmul.bf16.vlgmr.msra.gmra.mxu0 %v22708_v50  ;;  %v20373_v60 = vld [vmem:[%s22651_s16 + $0x2a8] sm:$0xff] }
 0xf69   :  { %13133 = vmatpush.bf16.msra.mxu3 %v20359_v53  ;;  %13146 = vmatpush.bf16.msrb.mxu0 %v20367_v11  ;;  %v20393_v53 = vld [vmem:[%s22651_s16 + $0x348] sm:$0xff] }
 0xf6a   :  { %13159 = vmatpush.bf16.msrb.mxu2 %v20375_v16  ;;  %13172 = vmatpush.bf16.msrb.mxu1 %v20383_v29  ;;  %v20401_v11 = vld [vmem:[%s22651_s16 + $0x388] sm:$0xff]  ;;  %v20384_v29 = vld [vmem:[%s22651_s16 + $0x300] sm:$0xff] }
 0xf6b   :  { %13115 = vmatmul.bf16.vlgmr.msra.gmra.mxu2 %v22709_v63  ;;  %13128 = vmatmul.bf16.vlgmr.msra.gmra.mxu1 %v22710_v2  ;;  %v20409_v16 = vld [vmem:[%s22651_s16 + $0x3c8] sm:$0xff]  ;;  %v22717_v63 = vld [vmem:[#allocation49_spill] sm:$0xff]  ;;  %v22718_v2 = vld [vmem:[#allocation50_spill] sm:$0xff] }
 0xf6c   :  { %v22716_v50 = vld [vmem:[#allocation48_spill] sm:$0xff] }
 0xf6d   :  { %13134 = vmatpush.bf16.msra.mxu3 %v20358_v30  ;;  %13147 = vmatpush.bf16.msrb.mxu0 %v20366_v8  ;;  %v20392_v30 = vld [vmem:[%s22651_s16 + $0x340] sm:$0xff] }
 0xf6e   :  { %13160 = vmatpush.bf16.msrb.mxu2 %v20374_v46  ;;  %13173 = vmatpush.bf16.msrb.mxu1 %v20382_v0  ;;  %v20400_v8 = vld [vmem:[%s22651_s16 + $0x380] sm:$0xff] }
 0xf6f   :  { %v20408_v46 = vld [vmem:[%s22651_s16 + $0x3c0] sm:$0xff]  ;;  %s20971_s16 = smov [#allocation26]  }
 0xf70   :  { %v22715_v0 = vld [vmem:[#allocation47_spill] sm:$0xff]  ;;  %s13252_s30 = sshll.u32 %s20971_s16, 4  ;;  %s13253_s30 = int_to_ptr.vmem [resolvable:$true] %s13252_s30 }
 0xf71   :  { %13135 = vmatpush.bf16.msra.mxu3 %v20357_v21  ;;  %13148 = vmatpush.bf16.msrb.mxu0 %v20365_v38 }
 0xf72   :  { %13161 = vmatpush.bf16.msrb.mxu2 %v20373_v60  ;;  %13174 = vmatpush.bf16.msrb.mxu1 %v20381_v25  ;;  %v20446_v60 = vld [vmem:[#allocation23] ss:$0 sm:$0xff] }
 0xf75   :  { %13136 = vmatpush.bf16.msra.mxu3 %v20356_v49  ;;  %13149 = vmatpush.bf16.msrb.mxu0 %v20364_v31 }
 0xf76   :  { %13162 = vmatpush.bf16.msrb.mxu2 %v20372_v26  ;;  %13175 = vmatpush.bf16.msrb.mxu1 %v20380_v57 }
 0xf79   :  { %13137 = vmatpush.bf16.msra.mxu3 %v20355_v6  ;;  %13150 = vmatpush.bf16.msrb.mxu0 %v20363_v5 }
 0xf7a   :  { %13163 = vmatpush.bf16.msrb.mxu2 %v20371_v62  ;;  %13176 = vmatpush.bf16.msrb.mxu1 %v20379_v1 }
 0xf7d   :  { %13138 = vmatpush.bf16.msra.mxu3 %v20354_v61  ;;  %13151 = vmatpush.bf16.msrb.mxu0 %v20362_v52 }
 0xf7e   :  { %13164 = vmatpush.bf16.msrb.mxu2 %v20370_v19  ;;  %13177 = vmatpush.bf16.msrb.mxu1 %v20378_v37 }
 0xf81   :  { %13139 = vmatpush.bf16.msra.mxu3 %v20353_v33  ;;  %13152 = vmatpush.bf16.msrb.mxu0 %v20361_v32 }
 0xf82   :  { %13165 = vmatpush.bf16.msrb.mxu2 %v20369_v56  ;;  %13178 = vmatpush.bf16.msrb.mxu1 %v20377_v41 }
 0xf85   :  { %13140 = vmatpush.bf16.msra.mxu3 %v20352_v9  ;;  %13153 = vmatpush.bf16.msrb.mxu0 %v20360_v55 }
 0xf86   :  { %13166 = vmatpush.bf16.msrb.mxu2 %v20368_v4  ;;  %13179 = vmatpush.bf16.msrb.mxu1 %v20376_v36 }
 0xf88   :  { %13141 = vmatmul.bf16.vlgmr.msra.gmra.mxu3 %v22711_v15  ;;  %13154 = vmatmul.bf16.vlgmr.msrb.gmra.mxu0 %v22712_v22 }
 0xf89   :  { %13185 = vmatpush.bf16.msrb.mxu3 %v20391_v12  ;;  %13198 = vmatpush.bf16.msra.mxu0 %v20399_v13 }
 0xf8a   :  { %13211 = vmatpush.bf16.msra.mxu2 %v20407_v47  ;;  %13224 = vmatpush.bf16.msra.mxu1 %v20415_v48  ;;  %v20447_v48 = vld [vmem:[#allocation25] ss:$0 sm:$0xff] }
 0xf8b   :  { %13167 = vmatmul.bf16.vlgmr.msrb.gmra.mxu2 %v22713_v23  ;;  %13180 = vmatmul.bf16.vlgmr.msrb.gmra.mxu1 %v22714_v42 }
 0xf8d   :  { %13186 = vmatpush.bf16.msrb.mxu3 %v20390_v3  ;;  %13199 = vmatpush.bf16.msra.mxu0 %v20398_v40 }
 0xf8e   :  { %13212 = vmatpush.bf16.msra.mxu2 %v20406_v51  ;;  %13225 = vmatpush.bf16.msra.mxu1 %v20414_v14 }
 0xf91   :  { %13187 = vmatpush.bf16.msrb.mxu3 %v20389_v54  ;;  %13200 = vmatpush.bf16.msra.mxu0 %v20397_v34 }
 0xf92   :  { %13213 = vmatpush.bf16.msra.mxu2 %v20405_v17  ;;  %13226 = vmatpush.bf16.msra.mxu1 %v20413_v20 }
 0xf95   :  { %13188 = vmatpush.bf16.msrb.mxu3 %v20388_v44  ;;  %13201 = vmatpush.bf16.msra.mxu0 %v20396_v18 }
 0xf96   :  { %13214 = vmatpush.bf16.msra.mxu2 %v20404_v24  ;;  %13227 = vmatpush.bf16.msra.mxu1 %v20412_v45 }
 0xf99   :  { %13189 = vmatpush.bf16.msrb.mxu3 %v20387_v27  ;;  %13202 = vmatpush.bf16.msra.mxu0 %v20395_v39 }
 0xf9a   :  { %13215 = vmatpush.bf16.msra.mxu2 %v20403_v35  ;;  %13228 = vmatpush.bf16.msra.mxu1 %v20411_v58 }
 0xf9d   :  { %13190 = vmatpush.bf16.msrb.mxu3 %v20386_v43  ;;  %13203 = vmatpush.bf16.msra.mxu0 %v20394_v28 }
 0xf9e   :  { %13216 = vmatpush.bf16.msra.mxu2 %v20402_v59  ;;  %13229 = vmatpush.bf16.msra.mxu1 %v20410_v7 }
 0xfa1   :  { %13191 = vmatpush.bf16.msrb.mxu3 %v20385_v10  ;;  %13204 = vmatpush.bf16.msra.mxu0 %v20393_v53 }
 0xfa2   :  { %13217 = vmatpush.bf16.msra.mxu2 %v20401_v11  ;;  %13230 = vmatpush.bf16.msra.mxu1 %v20409_v16 }
 0xfa4   :  { %v11917_v21 = vpop.f32.mrf.mxu0 }
 0xfa5   :  { %13192 = vmatpush.bf16.msrb.mxu3 %v20384_v29  ;;  %13205 = vmatpush.bf16.msra.mxu0 %v20392_v30  ;;  %v11943_v38 = vpop.f32.mrf.mxu1 }
 0xfa6   :  { %13218 = vmatpush.bf16.msra.mxu2 %v20400_v8  ;;  %13231 = vmatpush.bf16.msra.mxu1 %v20408_v46 }
 0xfa8   :  { %13193 = vmatmul.bf16.vlgmr.msrb.gmra.mxu3 %v22715_v0  ;;  %13206 = vmatmul.bf16.vlgmr.msra.gmra.mxu0 %v22716_v50 }
 0xfa9   :  { %13219 = vmatmul.bf16.vlgmr.msra.gmra.mxu2 %v22717_v63  ;;  %13232 = vmatmul.bf16.vlgmr.msra.gmra.mxu1 %v22718_v2 }
 0xfaa   :  { %v11904_v25 = vpop.f32.mrf.mxu3 }
 0xfab   :  { %v11930_v49 = vpop.f32.mrf.mxu2  ;;  %v11905_v26 = vadd.f32 %v20446_v60, %v11904_v25 }
 0xfac   :  { %v11919_v31 = vpop.f32.mrf.mxu0 }
 0xfad   :  { %v11945_v57 = vpop.f32.mrf.mxu1  ;;  %v11918_v6 = vadd.f32 %v11917_v21, %v11905_v26 }
 0xfaf   :  { %v11931_v61 = vadd.f32 %v11930_v49, %v11918_v6 }
 0xfb1   :  { %v11944_v19 = vadd.f32 %v11943_v38, %v11931_v61 }
 0xfb2   :  { %v11906_v5 = vpop.f32.mrf.mxu3 }
 0xfb3   :  { %v11932_v62 = vpop.f32.mrf.mxu2 }
 0xfb4   :  { %v11969_v1 = vpop.f32.mrf.mxu0 }
 0xfb5   :  { %v11995_v52 = vpop.f32.mrf.mxu1 }
 0xfba   :  { %v11956_v37 = vpop.f32.mrf.mxu3 }
 0xfbb   :  { %v11957_v33 = vadd.f32 %v11956_v37, %v11944_v19  ;;  %v11982_v32 = vpop.f32.mrf.mxu2 }
 0xfbc   :  { %v11971_v56 = vpop.f32.mrf.mxu0 }
 0xfbd   :  { %v11970_v41 = vadd.f32 %v11969_v1, %v11957_v33  ;;  %v11997_v9 = vpop.f32.mrf.mxu1 }
 0xfbf   :  { %v11983_v55 = vadd.f32 %v11982_v32, %v11970_v41 }
 0xfc1   :  { %v11996_v4 = vadd.f32 %v11995_v52, %v11983_v55 }
 0xfc2   :  { %v11958_v36 = vpop.f32.mrf.mxu3 }
 0xfc3   :  { %v11984_v12 = vpop.f32.mrf.mxu2  ;;  %12000 = vst.msk [vmem:[#allocation26] sm:$0xff] %vm11999_vm0, %v11996_v4 }
 0xfc4   :  { %13257 = dma.vmem_to_hbm [thread:$0]  %s13253_s30, 128, %s13255_s0, [#allocation4]  }
 0xfc5   :  { %v13051_v13 = vpop.f32.mrf.mxu0 }
 0xfc8   :  { %v13077_v47 = vpop.f32.mrf.mxu1 }
 0xfcb   :  { %v13038_v3 = vpop.f32.mrf.mxu3 }
 0xfcc   :  { %v13039_v40 = vadd.f32 %v20447_v48, %v13038_v3 }
 0xfcd   :  { %v13053_v14 = vpop.f32.mrf.mxu0 }
 0xfce   :  { %v13064_v51 = vpop.f32.mrf.mxu2  ;;  %v13052_v15 = vadd.f32 %v13051_v13, %v13039_v40 }
 0xfd0   :  { %v13079_v22 = vpop.f32.mrf.mxu1  ;;  %v13065_v23 = vadd.f32 %v13064_v51, %v13052_v15 }
 0xfd2   :  { %v13078_v42 = vadd.f32 %v13077_v47, %v13065_v23 }
 0xfd3   :  { %v13040_v54 = vpop.f32.mrf.mxu3 }
 0xfd6   :  { %v13066_v34 = vpop.f32.mrf.mxu2 }
 0xfe5   :  { %v13103_v17 = vpop.f32.mrf.mxu0 }
 0xfe8   :  { %v13129_v20 = vpop.f32.mrf.mxu1 }
 0xfeb   :  { %v13090_v44 = vpop.f32.mrf.mxu3 }
 0xfec   :  { %v13091_v59 = vadd.f32 %v13090_v44, %v13078_v42 }
 0xfed   :  { %v13105_v24 = vpop.f32.mrf.mxu0 }
 0xfee   :  { %v13116_v18 = vpop.f32.mrf.mxu2  ;;  %v13104_v53 = vadd.f32 %v13103_v17, %v13091_v59 }
 0xff0   :  { %v13131_v45 = vpop.f32.mrf.mxu1  ;;  %v13117_v29 = vadd.f32 %v13116_v18, %v13104_v53 }
 0xff2   :  { %v13130_v30 = vadd.f32 %v13129_v20, %v13117_v29 }
 0xff3   :  { %v13092_v27 = vpop.f32.mrf.mxu3 }
 0xff6   :  { %v13118_v39 = vpop.f32.mrf.mxu2 }
0x1005   :  { %v13155_v35 = vpop.f32.mrf.mxu0 }
0x1008   :  { %v13181_v58 = vpop.f32.mrf.mxu1 }
0x100b   :  { %v13142_v43 = vpop.f32.mrf.mxu3 }
0x100c   :  { %v13143_v8 = vadd.f32 %v13142_v43, %v13130_v30 }
0x100d   :  { %v13157_v7 = vpop.f32.mrf.mxu0 }
0x100e   :  { %v13168_v28 = vpop.f32.mrf.mxu2  ;;  %v13156_v46 = vadd.f32 %v13155_v35, %v13143_v8 }
0x1010   :  { %v13183_v10 = vpop.f32.mrf.mxu1  ;;  %v13169_v50 = vadd.f32 %v13168_v28, %v13156_v46 }
0x1012   :  { %v13182_v2 = vadd.f32 %v13181_v58, %v13169_v50 }
0x1013   :  { %v13144_v11 = vpop.f32.mrf.mxu3 }
0x1016   :  { %v13170_v16 = vpop.f32.mrf.mxu2 }
0x1025   :  { %v13207_v0 = vpop.f32.mrf.mxu0 }
0x1026   :  { %v13233_v63 = vpop.f32.mrf.mxu1 }
0x102b   :  { %v13194_v21 = vpop.f32.mrf.mxu3 }
0x102c   :  { %v13195_v38 = vadd.f32 %v13194_v21, %v13182_v2  ;;  %v13220_v60 = vpop.f32.mrf.mxu2 }
0x102d   :  { %v13209_v25 = vpop.f32.mrf.mxu0 }
0x102e   :  { %v13208_v49 = vadd.f32 %v13207_v0, %v13195_v38  ;;  %v13235_v31 = vpop.f32.mrf.mxu1 }
0x1030   :  { %v13221_v26 = vadd.f32 %v13220_v60, %v13208_v49 }
0x1032   :  { %v13234_v57 = vadd.f32 %v13233_v63, %v13221_v26 }
0x1033   :  { %v13196_v6 = vpop.f32.mrf.mxu3 }
0x1034   :  { %v13222_v5 = vpop.f32.mrf.mxu2  ;;  %13237 = vst.msk [vmem:[#allocation27] sm:$0xff] %vm11999_vm0, %v13234_v57 }
0x1035   :  { %13268 = dma.vmem_to_hbm [thread:$0]  %s13264_s25, 128, %s13266_s26, [#allocation28]  }
0x1036   :  { %13279 = dma.vmem_to_hbm [thread:$0]  %s13275_s27, 16, %s13277_s29, [#allocation28]  }
0x1037   :  { %20944 = dma.done.wait [#allocation4], 128  }
0x1038   :  { %20945 = vsyncadd [#allocation4], 4294967168 }
0x1039   :  { %20946 = dma.done.wait [#allocation28], 144  }
0x103a   :  { %20947 = vsyncadd [#allocation28], 4294967152 }
0x103b   :  { %13292 = vsyncpa [#allocation3], 1 }
0x103c   :  { %13293 = vsyncpa [#allocation6], 1 }
0x103d   :  { %13294 = vsyncpa [#allocation9], 1 }
0x103e   :  { %13295 = vsyncpa [#allocation12], 1 }
0x103f   :  { %13296 = vsyncpa [#allocation15], 1 }
0x1040   :  { %13297 = vsyncpa [#allocation18], 1 }
0x1041   :  { %13298 = vsyncpa [#allocation21], 1 }
0x1042   :  { %13299 = vsyncpa [#allocation24], 1 }
0x1043   :  { %13300 = vsyncpa [#allocation4], 1 }
0x1044   :  { %13301 = vsyncpa [#allocation28], 1 }

</bundles_post_ra>
